<compile_context>
chip_gen: v5e
topology: v5e:2x2
jax: 0.10.0
libtpu: 0.0.40
codegen_flags: <defaults>
</compile_context>

<pallas_src>
import functools

import jax
import jax.numpy as jnp
from jax import lax
from jax.experimental import pallas as pl
from jax.experimental.pallas import tpu as pltpu


# ---------------------------------------------------------------------------
# layout helpers (glue, runs in XLA)
# ---------------------------------------------------------------------------
def nchw_to_mc(x):
    B, C, H, W = x.shape
    return jnp.transpose(x, (0, 2, 3, 1)).reshape(B * H * W, C)


def mc_to_nchw(x, B, H, W):
    C = x.shape[-1]
    return jnp.transpose(x.reshape(B, H, W, C), (0, 3, 1, 2))


def _pick_tile(n, cap=512):
    """Largest power-of-two tile <= cap that divides n (sublane-aligned)."""
    for t in (cap, 256, 128, 64, 32, 16, 8):
        if t <= n and n % t == 0:
            return t
    return n


# ---------------------------------------------------------------------------
# Kernel A: fused EDA convs  xm @ [w1|w2|w3] + [b1|b2|b3]  (+ channel means)
#   outputs: y3 = (edge_c | edge_n | x_r)  (M, 3*C2)
#            f_c = mean_c edge_c           (M, 1)
#            f_r = mean_c edge_r  (with the reference edge_r-reuses-edge_c bug)
# ---------------------------------------------------------------------------
def _eda_convs_kernel(x_ref, w_ref, b_ref, y_ref, fc_ref, fr_ref, *, c2):
    y = (
        jnp.dot(x_ref[...], w_ref[...], preferred_element_type=jnp.float32)
        + b_ref[...]
    )
    y_ref[...] = y
    ec = y[:, 0:c2]
    xr = y[:, 2 * c2:3 * c2]
    fc_ref[...] = jnp.mean(ec, axis=1, keepdims=True)
    if c2 > 1:
        # edge_r = [x_r ch0, edge_c ch(C2-1) repeated C2-1 times] -> channel mean
        fr_ref[...] = (xr[:, 0:1] + (c2 - 1.0) * ec[:, c2 - 1:c2]) * (1.0 / c2)
    else:
        fr_ref[...] = jnp.mean(xr, axis=1, keepdims=True)


def eda_convs(xm, w_cat, b_cat, c2, tm=None):
    M, C = xm.shape
    C3 = w_cat.shape[1]
    if tm is None:
        tm = _pick_tile(M, 512)
    row = lambda i: (i, 0)
    const = lambda i: (0, 0)
    return pl.pallas_call(
        functools.partial(_eda_convs_kernel, c2=c2),
        out_shape=(
            jax.ShapeDtypeStruct((M, C3), jnp.float32),
            jax.ShapeDtypeStruct((M, 1), jnp.float32),
            jax.ShapeDtypeStruct((M, 1), jnp.float32),
        ),
        grid_spec=pl.GridSpec(
            grid=(M // tm,),
            in_specs=[
                pl.BlockSpec((tm, C), row),
                pl.BlockSpec((C, C3), const),
                pl.BlockSpec((1, C3), const),
            ],
            out_specs=(
                pl.BlockSpec((tm, C3), row),
                pl.BlockSpec((tm, 1), row),
                pl.BlockSpec((tm, 1), row),
            ),
        ),
        compiler_params=pltpu.CompilerParams(dimension_semantics=("parallel",)),
    )(xm, w_cat, b_cat)


# ---------------------------------------------------------------------------
# Kernel B: EDA covariance/softmax/attention + w_out conv + SAM + add + conv1
#           + per-channel sum / sumsq accumulation (for two-pass BatchNorm).
#
#   Per pixel m = b*HW + h*W + w and channel c (channels-last layout):
#     d    = last[sp, c]  - f[m]        (last = edge slice at leaked b = B-1)
#     dT   = lastT[sp, c] - fT[m]       (H<->W permuted copies, tiny, precomputed)
#     cov  = dT * d / C2 ; softmax over c
#     lgts = edge_n * sm_c * sm_r
#     x1   = lgts @ w_out + b_out                      (EDA conv_out)
#     x2   = x * sigmoid(x @ w_sam + b_sam)            (SAM)
#     y    = (x1 + x2) @ w_c1                          (HAM conv1, bias=False)
#   plus resident (1, C) accumulators of sum(y) and sum(y*y).
#
#   grid = (B, HW // ts); both axes "arbitrary" (resident accumulators).
# ---------------------------------------------------------------------------
def _fused_main_kernel(en_ref, fc_ref, fcT_ref, fr_ref, frT_ref,
                       lc_ref, lcT_ref, lr_ref, lrT_ref,
                       x_ref, wo_ref, bo_ref, ws_ref, bs_ref, wc_ref,
                       y_ref, sum_ref, sq_ref, *, inv_c2):
    def cov_softmax(last, lastT, f, fT):
        d = last - f
        dT = lastT - fT
        cov = dT * d * inv_c2
        m = jnp.max(cov, axis=-1, keepdims=True)
        ex = jnp.exp(cov - m)
        denom = jnp.sum(ex, axis=-1, keepdims=True)
        return ex * pl.reciprocal(denom, approx=True)

    sm_c = cov_softmax(lc_ref[...], lcT_ref[...], fc_ref[...], fcT_ref[...])
    sm_r = cov_softmax(lr_ref[...], lrT_ref[...], fr_ref[...], frT_ref[...])
    logits = en_ref[...] * sm_c * sm_r

    x = x_ref[...]
    x1 = (
        jnp.dot(logits, wo_ref[...], preferred_element_type=jnp.float32)
        + bo_ref[...]
    )
    att = jax.nn.sigmoid(
        jnp.dot(x, ws_ref[...], preferred_element_type=jnp.float32) + bs_ref[...]
    )
    s = x1 + x * att
    y = jnp.dot(s, wc_ref[...], preferred_element_type=jnp.float32)
    y_ref[...] = y

    step = pl.program_id(0) * pl.num_programs(1) + pl.program_id(1)

    @pl.when(step == 0)
    def _():
        sum_ref[...] = jnp.zeros_like(sum_ref)
        sq_ref[...] = jnp.zeros_like(sq_ref)

    sum_ref[...] += jnp.sum(y, axis=0, keepdims=True)
    sq_ref[...] += jnp.sum(y * y, axis=0, keepdims=True)


def fused_main(edge_n, f_c, f_cT, f_r, f_rT,
               last_c, last_cT, last_r, last_rT,
               xm, w_out, b_out, w_sam, b_sam, w_c1,
               B, HW, C2, ts=None):
    M, C = xm.shape
    if ts is None:
        ts = _pick_tile(HW, 512)
    nst = HW // ts
    row = lambda b, j: (b * nst + j, 0)   # per-batch rows of (M, *) arrays
    sp = lambda b, j: (j, 0)              # b = B-1 slices (constant over batch)
    const = lambda b, j: (0, 0)

    en_spec = pl.BlockSpec((ts, C2), row)
    f_spec = pl.BlockSpec((ts, 1), row)
    l_spec = pl.BlockSpec((ts, C2), sp)

    return pl.pallas_call(
        functools.partial(_fused_main_kernel, inv_c2=1.0 / C2),
        out_shape=(
            jax.ShapeDtypeStruct((M, C), jnp.float32),
            jax.ShapeDtypeStruct((1, C), jnp.float32),
            jax.ShapeDtypeStruct((1, C), jnp.float32),
        ),
        grid_spec=pl.GridSpec(
            grid=(B, nst),
            in_specs=[
                en_spec, f_spec, f_spec, f_spec, f_spec,
                l_spec, l_spec, l_spec, l_spec,
                pl.BlockSpec((ts, C), row),
                pl.BlockSpec((C2, C), const),
                pl.BlockSpec((1, C), const),
                pl.BlockSpec((C, C), const),
                pl.BlockSpec((1, C), const),
                pl.BlockSpec((C, C), const),
            ],
            out_specs=(
                pl.BlockSpec((ts, C), row),
                pl.BlockSpec((1, C), const),   # resident accumulator
                pl.BlockSpec((1, C), const),   # resident accumulator
            ),
        ),
        compiler_params=pltpu.CompilerParams(
            dimension_semantics=("arbitrary", "arbitrary")),
    )(edge_n, f_c, f_cT, f_r, f_rT, last_c, last_cT, last_r, last_rT,
      xm, w_out, b_out, w_sam, b_sam, w_c1)


# ---------------------------------------------------------------------------
# Kernel C: BatchNorm(train, biased batch variance) + ReLU
# ---------------------------------------------------------------------------
def _bn_relu_kernel(y_ref, sum_ref, sq_ref, g_ref, bt_ref, o_ref, *, inv_m):
    mu = sum_ref[...] * inv_m
    var = sq_ref[...] * inv_m - mu * mu          # biased train-mode variance
    yhat = (y_ref[...] - mu) * lax.rsqrt(var + 1e-5)
    o_ref[...] = jnp.maximum(yhat * g_ref[...] + bt_ref[...], 0.0)


def bn_relu(y, ysum, ysq, gamma, beta, tm=None):
    M, C = y.shape
    if tm is None:
        tm = _pick_tile(M, 512)
    row = lambda i: (i, 0)
    const = lambda i: (0, 0)
    return pl.pallas_call(
        functools.partial(_bn_relu_kernel, inv_m=1.0 / M),
        out_shape=jax.ShapeDtypeStruct((M, C), jnp.float32),
        grid_spec=pl.GridSpec(
            grid=(M // tm,),
            in_specs=[
                pl.BlockSpec((tm, C), row),
                pl.BlockSpec((1, C), const),
                pl.BlockSpec((1, C), const),
                pl.BlockSpec((1, C), const),
                pl.BlockSpec((1, C), const),
            ],
            out_specs=pl.BlockSpec((tm, C), row),
        ),
        compiler_params=pltpu.CompilerParams(dimension_semantics=("parallel",)),
    )(y, ysum, ysq, gamma, beta)


# ---------------------------------------------------------------------------
# parameters (deterministic synthetic init; shapes follow the nn.Module)
# weights stored as (Cin, Cout) -- equivalent to PyTorch's (Cout, Cin, 1, 1)
# ---------------------------------------------------------------------------
def make_params(in_planes, key):
    C, C2 = in_planes, in_planes // 2
    keys = jax.random.split(key, 11)
    init = lambda k, shape: 0.1 * jax.random.normal(k, shape, jnp.float32)
    return {
        # EDA
        "w1": init(keys[0], (C, C2)), "b1": init(keys[1], (1, C2)),
        "w2": init(keys[2], (C, C2)), "b2": init(keys[3], (1, C2)),
        "w3": init(keys[4], (C, C2)), "b3": init(keys[5], (1, C2)),
        "w_out": init(keys[6], (C2, C)), "b_out": init(keys[7], (1, C)),
        # SAM
        "w_sam": init(keys[8], (C, C)), "b_sam": init(keys[9], (1, C)),
        # HAM conv1 (bias=False) + BatchNorm affine params (PyTorch default init)
        "w_c1": init(keys[10], (C, C)),
        "gamma": jnp.ones((1, C), jnp.float32),
        "beta": jnp.zeros((1, C), jnp.float32),
    }


# ---------------------------------------------------------------------------
# HAM forward
# ---------------------------------------------------------------------------
def ham_forward(params, x):
    B, C, H, W = x.shape
    assert H == W, "EDA covariance transpose-multiply requires square spatial dims"
    C2 = C // 2
    HW = H * W
    M = B * HW
    xm = nchw_to_mc(x)                                             # (M, C)

    # ---- pass A: fused EDA 1x1 convs (+ per-pixel channel means) -----------
    w_cat = jnp.concatenate([params["w1"], params["w2"], params["w3"]], axis=1)
    b_cat = jnp.concatenate([params["b1"], params["b2"], params["b3"]], axis=1)
    y3, f_c, f_r = eda_convs(xm, w_cat, b_cat, C2)                 # (M,3C2),(M,1),(M,1)
    edge_c = y3[:, 0:C2]
    edge_n = y3[:, C2:2 * C2]
    x_r = y3[:, 2 * C2:3 * C2]
    # TODO(synk): cv.Canny + uint8 round-trip skipped (no Pallas equivalent);
    #             the conv features stand in for the edge maps.

    # Leaked-index b = B-1 slices and the reference edge_r-reuses-edge_c bug.
    lo = (B - 1) * HW
    last_c = edge_c[lo:lo + HW]                                    # (HW, C2)
    if C2 > 1:
        last_r = jnp.concatenate(
            [x_r[lo:lo + HW, 0:1],
             jnp.repeat(edge_c[lo:lo + HW, C2 - 1:C2], C2 - 1, axis=1)],
            axis=1,
        )
    else:
        last_r = x_r[lo:lo + HW]

    # Tiny H<->W row permutations (layout plumbing; avoids streaming full
    # pre-transposed edge maps through the fused kernel).
    sw_sp = lambda a: jnp.swapaxes(a.reshape(H, W, -1), 0, 1).reshape(HW, -1)
    sw_b = lambda a: jnp.swapaxes(a.reshape(B, H, W), 1, 2).reshape(M, 1)
    last_cT, last_rT = sw_sp(last_c), sw_sp(last_r)
    f_cT, f_rT = sw_b(f_c), sw_b(f_r)

    # ---- pass B: attention + w_out + SAM + add + conv1 + BN stats ----------
    y, ysum, ysq = fused_main(edge_n, f_c, f_cT, f_r, f_rT,
                              last_c, last_cT, last_r, last_rT,
                              xm, params["w_out"], params["b_out"],
                              params["w_sam"], params["b_sam"], params["w_c1"],
                              B, HW, C2)

    # ---- pass C: BatchNorm(train) + ReLU ------------------------------------
    out_m = bn_relu(y, ysum, ysq, params["gamma"], params["beta"])
    return mc_to_nchw(out_m, B, H, W)


# ---------------------------------------------------------------------------
if __name__ == "__main__":
    key = jax.random.PRNGKey(0)
    k_param, k_x = jax.random.split(key)

    in_planes, B, H, W = 4, 2, 16, 16
    params = make_params(in_planes, k_param)
    x = jax.random.normal(k_x, (B, in_planes, H, W), jnp.float32)

    out = jax.jit(functools.partial(ham_forward, params))(x)
    jax.block_until_ready(out)
    assert out.shape == (B, in_planes, H, W)
    print("KERNEL_OK")
</pallas_src>

<mosaic_0001>
module attributes {stable_mosaic.version = 11 : i64} {
  func.func @_eda_convs_kernel(%arg0: i32, %arg1: memref<512x4xf32, #tpu.memory_space<vmem>>, %arg2: memref<4x6xf32, #tpu.memory_space<vmem>>, %arg3: memref<1x6xf32, #tpu.memory_space<vmem>>, %arg4: memref<512x6xf32, #tpu.memory_space<vmem>>, %arg5: memref<512x1xf32, #tpu.memory_space<vmem>>, %arg6: memref<512x1xf32, #tpu.memory_space<vmem>>) attributes {dimension_semantics = [#tpu.dimension_semantics<parallel>], iteration_bounds = array<i64: 1>, scalar_prefetch = 0 : i64, scratch_operands = 0 : i64, tpu.core_type = #tpu.core_type<tc>, window_params = [{transform_indices = @transform_0, window_bounds = array<i64: 512, 4>}, {pipeline_mode = #tpu.pipeline_mode<synchronous>, transform_indices = @transform_1, window_bounds = array<i64: 4, 6>}, {pipeline_mode = #tpu.pipeline_mode<synchronous>, transform_indices = @transform_2, window_bounds = array<i64: 1, 6>}, {transform_indices = @transform_3, window_bounds = array<i64: 512, 6>}, {transform_indices = @transform_4, window_bounds = array<i64: 512, 1>}, {transform_indices = @transform_5, window_bounds = array<i64: 512, 1>}]} {
    %c0 = arith.constant 0 : index
    %c0_0 = arith.constant 0 : index
    %0 = vector.load %arg1[%c0, %c0_0] : memref<512x4xf32, #tpu.memory_space<vmem>>, vector<512x4xf32>
    %c0_1 = arith.constant 0 : index
    %c0_2 = arith.constant 0 : index
    %1 = vector.load %arg2[%c0_1, %c0_2] : memref<4x6xf32, #tpu.memory_space<vmem>>, vector<4x6xf32>
    %cst = arith.constant dense<0.000000e+00> : vector<512x6xf32>
    %2 = tpu.matmul %0, %1, %cst {dimension_numbers = #tpu.dot_dimension_numbers<[1], [0], [0], [1], [0, 0, 1, 1], [], []>} : vector<512x4xf32>, vector<4x6xf32>, vector<512x6xf32> -> vector<512x6xf32>
    %c0_3 = arith.constant 0 : index
    %c0_4 = arith.constant 0 : index
    %3 = vector.load %arg3[%c0_3, %c0_4] : memref<1x6xf32, #tpu.memory_space<vmem>>, vector<1x6xf32>
    %4 = vector.broadcast %3 : vector<1x6xf32> to vector<512x6xf32>
    %5 = arith.addf %2, %4 : vector<512x6xf32>
    %c0_5 = arith.constant 0 : index
    %c0_6 = arith.constant 0 : index
    %6 = vector.load %arg4[%c0_5, %c0_6] : memref<512x6xf32, #tpu.memory_space<vmem>>, vector<512x6xf32>
    tpu.vector_store %arg4[%c0_5, %c0_6], %5 {strides = array<i32>} : memref<512x6xf32, #tpu.memory_space<vmem>>, vector<512x6xf32>,
    %7 = vector.extract_strided_slice %5 {offsets = [0, 0], sizes = [512, 2], strides = [1, 1]} : vector<512x6xf32> to vector<512x2xf32>
    %8 = vector.extract_strided_slice %5 {offsets = [0, 4], sizes = [512, 2], strides = [1, 1]} : vector<512x6xf32> to vector<512x2xf32>
    %cst_7 = arith.constant dense<0.000000e+00> : vector<512xf32>
    %9 = vector.multi_reduction <add>, %7, %cst_7 [1] : vector<512x2xf32> to vector<512xf32>
    %10 = vector.shape_cast %9 : vector<512xf32> to vector<512x1xf32>
    %cst_8 = arith.constant 2.000000e+00 : f32
    %11 = vector.broadcast %cst_8 : f32 to vector<512x1xf32>
    %12 = arith.divf %10, %11 : vector<512x1xf32>
    %c0_9 = arith.constant 0 : index
    %c0_10 = arith.constant 0 : index
    %13 = vector.load %arg5[%c0_9, %c0_10] : memref<512x1xf32, #tpu.memory_space<vmem>>, vector<512x1xf32>
    tpu.vector_store %arg5[%c0_9, %c0_10], %12 {strides = array<i32>} : memref<512x1xf32, #tpu.memory_space<vmem>>, vector<512x1xf32>,
    %14 = vector.extract_strided_slice %8 {offsets = [0, 0], sizes = [512, 1], strides = [1, 1]} : vector<512x2xf32> to vector<512x1xf32>
    %15 = vector.extract_strided_slice %7 {offsets = [0, 1], sizes = [512, 1], strides = [1, 1]} : vector<512x2xf32> to vector<512x1xf32>
    %cst_11 = arith.constant 1.000000e+00 : f32
    %16 = vector.broadcast %cst_11 : f32 to vector<512x1xf32>
    %17 = arith.mulf %16, %15 : vector<512x1xf32>
    %18 = arith.addf %14, %17 : vector<512x1xf32>
    %cst_12 = arith.constant 5.000000e-01 : f32
    %19 = vector.broadcast %cst_12 : f32 to vector<512x1xf32>
    %20 = arith.mulf %18, %19 : vector<512x1xf32>
    %c0_13 = arith.constant 0 : index
    %c0_14 = arith.constant 0 : index
    %21 = vector.load %arg6[%c0_13, %c0_14] : memref<512x1xf32, #tpu.memory_space<vmem>>, vector<512x1xf32>
    tpu.vector_store %arg6[%c0_13, %c0_14], %20 {strides = array<i32>} : memref<512x1xf32, #tpu.memory_space<vmem>>, vector<512x1xf32>,
    return
  }
  func.func @transform_0(%arg0: i32) -> (i32, i32) {
    %c0_i32 = arith.constant 0 : i32
    %c0_i32_0 = arith.constant 0 : i32
    return %arg0, %c0_i32 : i32, i32
  }
  func.func @transform_1(%arg0: i32) -> (i32, i32) {
    %c0_i32 = arith.constant 0 : i32
    %c0_i32_0 = arith.constant 0 : i32
    %c0_i32_1 = arith.constant 0 : i32
    return %c0_i32, %c0_i32_0 : i32, i32
  }
  func.func @transform_2(%arg0: i32) -> (i32, i32) {
    %c0_i32 = arith.constant 0 : i32
    %c0_i32_0 = arith.constant 0 : i32
    %c0_i32_1 = arith.constant 0 : i32
    return %c0_i32, %c0_i32_0 : i32, i32
  }
  func.func @transform_3(%arg0: i32) -> (i32, i32) {
    %c0_i32 = arith.constant 0 : i32
    %c0_i32_0 = arith.constant 0 : i32
    return %arg0, %c0_i32 : i32, i32
  }
  func.func @transform_4(%arg0: i32) -> (i32, i32) {
    %c0_i32 = arith.constant 0 : i32
    %c0_i32_0 = arith.constant 0 : i32
    return %arg0, %c0_i32 : i32, i32
  }
  func.func @transform_5(%arg0: i32) -> (i32, i32) {
    %c0_i32 = arith.constant 0 : i32
    %c0_i32_0 = arith.constant 0 : i32
    return %arg0, %c0_i32 : i32, i32
  }
}

module attributes {stable_mosaic.version = 11 : i64} {
  func.func @_fused_main_kernel(%arg0: i32, %arg1: i32, %arg2: memref<256x2xf32, #tpu.memory_space<vmem>>, %arg3: memref<256x1xf32, #tpu.memory_space<vmem>>, %arg4: memref<256x1xf32, #tpu.memory_space<vmem>>, %arg5: memref<256x1xf32, #tpu.memory_space<vmem>>, %arg6: memref<256x1xf32, #tpu.memory_space<vmem>>, %arg7: memref<256x2xf32, #tpu.memory_space<vmem>>, %arg8: memref<256x2xf32, #tpu.memory_space<vmem>>, %arg9: memref<256x2xf32, #tpu.memory_space<vmem>>, %arg10: memref<256x2xf32, #tpu.memory_space<vmem>>, %arg11: memref<256x4xf32, #tpu.memory_space<vmem>>, %arg12: memref<2x4xf32, #tpu.memory_space<vmem>>, %arg13: memref<1x4xf32, #tpu.memory_space<vmem>>, %arg14: memref<4x4xf32, #tpu.memory_space<vmem>>, %arg15: memref<1x4xf32, #tpu.memory_space<vmem>>, %arg16: memref<4x4xf32, #tpu.memory_space<vmem>>, %arg17: memref<256x4xf32, #tpu.memory_space<vmem>>, %arg18: memref<1x4xf32, #tpu.memory_space<vmem>>, %arg19: memref<1x4xf32, #tpu.memory_space<vmem>>) attributes {dimension_semantics = [#tpu.dimension_semantics<arbitrary>, #tpu.dimension_semantics<arbitrary>], iteration_bounds = array<i64: 2, 1>, scalar_prefetch = 0 : i64, scratch_operands = 0 : i64, tpu.core_type = #tpu.core_type<tc>, window_params = [{transform_indices = @transform_0, window_bounds = array<i64: 256, 2>}, {transform_indices = @transform_1, window_bounds = array<i64: 256, 1>}, {transform_indices = @transform_2, window_bounds = array<i64: 256, 1>}, {transform_indices = @transform_3, window_bounds = array<i64: 256, 1>}, {transform_indices = @transform_4, window_bounds = array<i64: 256, 1>}, {transform_indices = @transform_5, window_bounds = array<i64: 256, 2>}, {transform_indices = @transform_6, window_bounds = array<i64: 256, 2>}, {transform_indices = @transform_7, window_bounds = array<i64: 256, 2>}, {transform_indices = @transform_8, window_bounds = array<i64: 256, 2>}, {transform_indices = @transform_9, window_bounds = array<i64: 256, 4>}, {pipeline_mode = #tpu.pipeline_mode<synchronous>, transform_indices = @transform_10, window_bounds = array<i64: 2, 4>}, {pipeline_mode = #tpu.pipeline_mode<synchronous>, transform_indices = @transform_11, window_bounds = array<i64: 1, 4>}, {pipeline_mode = #tpu.pipeline_mode<synchronous>, transform_indices = @transform_12, window_bounds = array<i64: 4, 4>}, {pipeline_mode = #tpu.pipeline_mode<synchronous>, transform_indices = @transform_13, window_bounds = array<i64: 1, 4>}, {pipeline_mode = #tpu.pipeline_mode<synchronous>, transform_indices = @transform_14, window_bounds = array<i64: 4, 4>}, {transform_indices = @transform_15, window_bounds = array<i64: 256, 4>}, {pipeline_mode = #tpu.pipeline_mode<synchronous>, transform_indices = @transform_16, window_bounds = array<i64: 1, 4>}, {pipeline_mode = #tpu.pipeline_mode<synchronous>, transform_indices = @transform_17, window_bounds = array<i64: 1, 4>}]} {
    %c0 = arith.constant 0 : index
    %c0_0 = arith.constant 0 : index
    %0 = vector.load %arg7[%c0, %c0_0] : memref<256x2xf32, #tpu.memory_space<vmem>>, vector<256x2xf32>
    %c0_1 = arith.constant 0 : index
    %c0_2 = arith.constant 0 : index
    %1 = vector.load %arg8[%c0_1, %c0_2] : memref<256x2xf32, #tpu.memory_space<vmem>>, vector<256x2xf32>
    %c0_3 = arith.constant 0 : index
    %c0_4 = arith.constant 0 : index
    %2 = vector.load %arg3[%c0_3, %c0_4] : memref<256x1xf32, #tpu.memory_space<vmem>>, vector<256x1xf32>
    %c0_5 = arith.constant 0 : index
    %c0_6 = arith.constant 0 : index
    %3 = vector.load %arg4[%c0_5, %c0_6] : memref<256x1xf32, #tpu.memory_space<vmem>>, vector<256x1xf32>
    %4 = vector.broadcast %2 : vector<256x1xf32> to vector<256x2xf32>
    %5 = arith.subf %0, %4 : vector<256x2xf32>
    %6 = vector.broadcast %3 : vector<256x1xf32> to vector<256x2xf32>
    %7 = arith.subf %1, %6 : vector<256x2xf32>
    %8 = arith.mulf %7, %5 : vector<256x2xf32>
    %cst = arith.constant 5.000000e-01 : f32
    %9 = vector.broadcast %cst : f32 to vector<256x2xf32>
    %10 = arith.mulf %8, %9 : vector<256x2xf32>
    %cst_7 = arith.constant dense<0xFF800000> : vector<256xf32>
    %11 = vector.multi_reduction <maximumf>, %10, %cst_7 [1] : vector<256x2xf32> to vector<256xf32>
    %12 = vector.shape_cast %11 : vector<256xf32> to vector<256x1xf32>
    %13 = vector.broadcast %12 : vector<256x1xf32> to vector<256x2xf32>
    %14 = arith.subf %10, %13 : vector<256x2xf32>
    %15 = math.exp %14 : vector<256x2xf32>
    %cst_8 = arith.constant dense<0.000000e+00> : vector<256xf32>
    %16 = vector.multi_reduction <add>, %15, %cst_8 [1] : vector<256x2xf32> to vector<256xf32>
    %17 = vector.shape_cast %16 : vector<256xf32> to vector<256x1xf32>
    %18 = tpu.reciprocal %17 {approx = true} : vector<256x1xf32> -> vector<256x1xf32>
    %19 = vector.broadcast %18 : vector<256x1xf32> to vector<256x2xf32>
    %20 = arith.mulf %15, %19 : vector<256x2xf32>
    %c0_9 = arith.constant 0 : index
    %c0_10 = arith.constant 0 : index
    %21 = vector.load %arg9[%c0_9, %c0_10] : memref<256x2xf32, #tpu.memory_space<vmem>>, vector<256x2xf32>
    %c0_11 = arith.constant 0 : index
    %c0_12 = arith.constant 0 : index
    %22 = vector.load %arg10[%c0_11, %c0_12] : memref<256x2xf32, #tpu.memory_space<vmem>>, vector<256x2xf32>
    %c0_13 = arith.constant 0 : index
    %c0_14 = arith.constant 0 : index
    %23 = vector.load %arg5[%c0_13, %c0_14] : memref<256x1xf32, #tpu.memory_space<vmem>>, vector<256x1xf32>
    %c0_15 = arith.constant 0 : index
    %c0_16 = arith.constant 0 : index
    %24 = vector.load %arg6[%c0_15, %c0_16] : memref<256x1xf32, #tpu.memory_space<vmem>>, vector<256x1xf32>
    %25 = vector.broadcast %23 : vector<256x1xf32> to vector<256x2xf32>
    %26 = arith.subf %21, %25 : vector<256x2xf32>
    %27 = vector.broadcast %24 : vector<256x1xf32> to vector<256x2xf32>
    %28 = arith.subf %22, %27 : vector<256x2xf32>
    %29 = arith.mulf %28, %26 : vector<256x2xf32>
    %cst_17 = arith.constant 5.000000e-01 : f32
    %30 = vector.broadcast %cst_17 : f32 to vector<256x2xf32>
    %31 = arith.mulf %29, %30 : vector<256x2xf32>
    %cst_18 = arith.constant dense<0xFF800000> : vector<256xf32>
    %32 = vector.multi_reduction <maximumf>, %31, %cst_18 [1] : vector<256x2xf32> to vector<256xf32>
    %33 = vector.shape_cast %32 : vector<256xf32> to vector<256x1xf32>
    %34 = vector.broadcast %33 : vector<256x1xf32> to vector<256x2xf32>
    %35 = arith.subf %31, %34 : vector<256x2xf32>
    %36 = math.exp %35 : vector<256x2xf32>
    %cst_19 = arith.constant dense<0.000000e+00> : vector<256xf32>
    %37 = vector.multi_reduction <add>, %36, %cst_19 [1] : vector<256x2xf32> to vector<256xf32>
    %38 = vector.shape_cast %37 : vector<256xf32> to vector<256x1xf32>
    %39 = tpu.reciprocal %38 {approx = true} : vector<256x1xf32> -> vector<256x1xf32>
    %40 = vector.broadcast %39 : vector<256x1xf32> to vector<256x2xf32>
    %41 = arith.mulf %36, %40 : vector<256x2xf32>
    %c0_20 = arith.constant 0 : index
    %c0_21 = arith.constant 0 : index
    %42 = vector.load %arg2[%c0_20, %c0_21] : memref<256x2xf32, #tpu.memory_space<vmem>>, vector<256x2xf32>
    %43 = arith.mulf %42, %20 : vector<256x2xf32>
    %44 = arith.mulf %43, %41 : vector<256x2xf32>
    %c0_22 = arith.constant 0 : index
    %c0_23 = arith.constant 0 : index
    %45 = vector.load %arg11[%c0_22, %c0_23] : memref<256x4xf32, #tpu.memory_space<vmem>>, vector<256x4xf32>
    %c0_24 = arith.constant 0 : index
    %c0_25 = arith.constant 0 : index
    %46 = vector.load %arg12[%c0_24, %c0_25] : memref<2x4xf32, #tpu.memory_space<vmem>>, vector<2x4xf32>
    %cst_26 = arith.constant dense<0.000000e+00> : vector<256x4xf32>
    %47 = tpu.matmul %44, %46, %cst_26 {dimension_numbers = #tpu.dot_dimension_numbers<[1], [0], [0], [1], [0, 0, 1, 1], [], []>} : vector<256x2xf32>, vector<2x4xf32>, vector<256x4xf32> -> vector<256x4xf32>
    %c0_27 = arith.constant 0 : index
    %c0_28 = arith.constant 0 : index
    %48 = vector.load %arg13[%c0_27, %c0_28] : memref<1x4xf32, #tpu.memory_space<vmem>>, vector<1x4xf32>
    %49 = vector.broadcast %48 : vector<1x4xf32> to vector<256x4xf32>
    %50 = arith.addf %47, %49 : vector<256x4xf32>
    %c0_29 = arith.constant 0 : index
    %c0_30 = arith.constant 0 : index
    %51 = vector.load %arg14[%c0_29, %c0_30] : memref<4x4xf32, #tpu.memory_space<vmem>>, vector<4x4xf32>
    %cst_31 = arith.constant dense<0.000000e+00> : vector<256x4xf32>
    %52 = tpu.matmul %45, %51, %cst_31 {dimension_numbers = #tpu.dot_dimension_numbers<[1], [0], [0], [1], [0, 0, 1, 1], [], []>} : vector<256x4xf32>, vector<4x4xf32>, vector<256x4xf32> -> vector<256x4xf32>
    %c0_32 = arith.constant 0 : index
    %c0_33 = arith.constant 0 : index
    %53 = vector.load %arg15[%c0_32, %c0_33] : memref<1x4xf32, #tpu.memory_space<vmem>>, vector<1x4xf32>
    %54 = vector.broadcast %53 : vector<1x4xf32> to vector<256x4xf32>
    %55 = arith.addf %52, %54 : vector<256x4xf32>
    %56 = arith.negf %55 : vector<256x4xf32>
    %57 = math.exp %56 : vector<256x4xf32>
    %cst_34 = arith.constant 1.000000e+00 : f32
    %58 = vector.broadcast %cst_34 : f32 to vector<256x4xf32>
    %59 = arith.addf %58, %57 : vector<256x4xf32>
    %60 = arith.divf %58, %59 : vector<256x4xf32>
    %61 = arith.mulf %45, %60 : vector<256x4xf32>
    %62 = arith.addf %50, %61 : vector<256x4xf32>
    %c0_35 = arith.constant 0 : index
    %c0_36 = arith.constant 0 : index
    %63 = vector.load %arg16[%c0_35, %c0_36] : memref<4x4xf32, #tpu.memory_space<vmem>>, vector<4x4xf32>
    %cst_37 = arith.constant dense<0.000000e+00> : vector<256x4xf32>
    %64 = tpu.matmul %62, %63, %cst_37 {dimension_numbers = #tpu.dot_dimension_numbers<[1], [0], [0], [1], [0, 0, 1, 1], [], []>} : vector<256x4xf32>, vector<4x4xf32>, vector<256x4xf32> -> vector<256x4xf32>
    %c0_38 = arith.constant 0 : index
    %c0_39 = arith.constant 0 : index
    %65 = vector.load %arg17[%c0_38, %c0_39] : memref<256x4xf32, #tpu.memory_space<vmem>>, vector<256x4xf32>
    tpu.vector_store %arg17[%c0_38, %c0_39], %64 {strides = array<i32>} : memref<256x4xf32, #tpu.memory_space<vmem>>, vector<256x4xf32>,
    %c1_i32 = arith.constant 1 : i32
    %66 = arith.muli %arg0, %c1_i32 : i32
    %67 = arith.addi %66, %arg1 : i32
    %c0_i32 = arith.constant 0 : i32
    %68 = arith.cmpi eq, %67, %c0_i32 : i32
    %69 = arith.extui %68 : i1 to i32
    %c0_i32_40 = arith.constant 0 : i32
    %70 = arith.cmpi ne, %69, %c0_i32_40 : i32
    scf.if %70 {
      %cst_51 = arith.constant 0.000000e+00 : f32
      %82 = vector.broadcast %cst_51 : f32 to vector<1x4xf32>
      %c0_52 = arith.constant 0 : index
      %c0_53 = arith.constant 0 : index
      %83 = vector.load %arg18[%c0_52, %c0_53] : memref<1x4xf32, #tpu.memory_space<vmem>>, vector<1x4xf32>
      tpu.vector_store %arg18[%c0_52, %c0_53], %82 {strides = array<i32>} : memref<1x4xf32, #tpu.memory_space<vmem>>, vector<1x4xf32>,
      %cst_54 = arith.constant 0.000000e+00 : f32
      %84 = vector.broadcast %cst_54 : f32 to vector<1x4xf32>
      %c0_55 = arith.constant 0 : index
      %c0_56 = arith.constant 0 : index
      %85 = vector.load %arg19[%c0_55, %c0_56] : memref<1x4xf32, #tpu.memory_space<vmem>>, vector<1x4xf32>
      tpu.vector_store %arg19[%c0_55, %c0_56], %84 {strides = array<i32>} : memref<1x4xf32, #tpu.memory_space<vmem>>, vector<1x4xf32>,
    } else {
    }
    %c0_41 = arith.constant 0 : index
    %c0_42 = arith.constant 0 : index
    %71 = vector.load %arg18[%c0_41, %c0_42] : memref<1x4xf32, #tpu.memory_space<vmem>>, vector<1x4xf32>
    %cst_43 = arith.constant dense<0.000000e+00> : vector<4xf32>
    %72 = vector.multi_reduction <add>, %64, %cst_43 [0] : vector<256x4xf32> to vector<4xf32>
    %73 = vector.shape_cast %72 : vector<4xf32> to vector<1x4xf32>
    %74 = arith.addf %71, %73 : vector<1x4xf32>
    %c0_44 = arith.constant 0 : index
    %c0_45 = arith.constant 0 : index
    %75 = vector.load %arg18[%c0_44, %c0_45] : memref<1x4xf32, #tpu.memory_space<vmem>>, vector<1x4xf32>
    tpu.vector_store %arg18[%c0_44, %c0_45], %74 {strides = array<i32>} : memref<1x4xf32, #tpu.memory_space<vmem>>, vector<1x4xf32>,
    %c0_46 = arith.constant 0 : index
    %c0_47 = arith.constant 0 : index
    %76 = vector.load %arg19[%c0_46, %c0_47] : memref<1x4xf32, #tpu.memory_space<vmem>>, vector<1x4xf32>
    %77 = arith.mulf %64, %64 : vector<256x4xf32>
    %cst_48 = arith.constant dense<0.000000e+00> : vector<4xf32>
    %78 = vector.multi_reduction <add>, %77, %cst_48 [0] : vector<256x4xf32> to vector<4xf32>
    %79 = vector.shape_cast %78 : vector<4xf32> to vector<1x4xf32>
    %80 = arith.addf %76, %79 : vector<1x4xf32>
    %c0_49 = arith.constant 0 : index
    %c0_50 = arith.constant 0 : index
    %81 = vector.load %arg19[%c0_49, %c0_50] : memref<1x4xf32, #tpu.memory_space<vmem>>, vector<1x4xf32>
    tpu.vector_store %arg19[%c0_49, %c0_50], %80 {strides = array<i32>} : memref<1x4xf32, #tpu.memory_space<vmem>>, vector<1x4xf32>,
    return
  }
  func.func @transform_0(%arg0: i32, %arg1: i32) -> (i32, i32) {
    %c1_i32 = arith.constant 1 : i32
    %0 = arith.muli %arg0, %c1_i32 : i32
    %1 = arith.addi %0, %arg1 : i32
    %c0_i32 = arith.constant 0 : i32
    %c0_i32_0 = arith.constant 0 : i32
    return %1, %c0_i32 : i32, i32
  }
  func.func @transform_1(%arg0: i32, %arg1: i32) -> (i32, i32) {
    %c1_i32 = arith.constant 1 : i32
    %0 = arith.muli %arg0, %c1_i32 : i32
    %1 = arith.addi %0, %arg1 : i32
    %c0_i32 = arith.constant 0 : i32
    %c0_i32_0 = arith.constant 0 : i32
    return %1, %c0_i32 : i32, i32
  }
  func.func @transform_2(%arg0: i32, %arg1: i32) -> (i32, i32) {
    %c1_i32 = arith.constant 1 : i32
    %0 = arith.muli %arg0, %c1_i32 : i32
    %1 = arith.addi %0, %arg1 : i32
    %c0_i32 = arith.constant 0 : i32
    %c0_i32_0 = arith.constant 0 : i32
    return %1, %c0_i32 : i32, i32
  }
  func.func @transform_3(%arg0: i32, %arg1: i32) -> (i32, i32) {
    %c1_i32 = arith.constant 1 : i32
    %0 = arith.muli %arg0, %c1_i32 : i32
    %1 = arith.addi %0, %arg1 : i32
    %c0_i32 = arith.constant 0 : i32
    %c0_i32_0 = arith.constant 0 : i32
    return %1, %c0_i32 : i32, i32
  }
  func.func @transform_4(%arg0: i32, %arg1: i32) -> (i32, i32) {
    %c1_i32 = arith.constant 1 : i32
    %0 = arith.muli %arg0, %c1_i32 : i32
    %1 = arith.addi %0, %arg1 : i32
    %c0_i32 = arith.constant 0 : i32
    %c0_i32_0 = arith.constant 0 : i32
    return %1, %c0_i32 : i32, i32
  }
  func.func @transform_5(%arg0: i32, %arg1: i32) -> (i32, i32) {
    %c0_i32 = arith.constant 0 : i32
    %c0_i32_0 = arith.constant 0 : i32
    return %arg1, %c0_i32 : i32, i32
  }
  func.func @transform_6(%arg0: i32, %arg1: i32) -> (i32, i32) {
    %c0_i32 = arith.constant 0 : i32
    %c0_i32_0 = arith.constant 0 : i32
    return %arg1, %c0_i32 : i32, i32
  }
  func.func @transform_7(%arg0: i32, %arg1: i32) -> (i32, i32) {
    %c0_i32 = arith.constant 0 : i32
    %c0_i32_0 = arith.constant 0 : i32
    return %arg1, %c0_i32 : i32, i32
  }
  func.func @transform_8(%arg0: i32, %arg1: i32) -> (i32, i32) {
    %c0_i32 = arith.constant 0 : i32
    %c0_i32_0 = arith.constant 0 : i32
    return %arg1, %c0_i32 : i32, i32
  }
  func.func @transform_9(%arg0: i32, %arg1: i32) -> (i32, i32) {
    %c1_i32 = arith.constant 1 : i32
    %0 = arith.muli %arg0, %c1_i32 : i32
    %1 = arith.addi %0, %arg1 : i32
    %c0_i32 = arith.constant 0 : i32
    %c0_i32_0 = arith.constant 0 : i32
    return %1, %c0_i32 : i32, i32
  }
  func.func @transform_10(%arg0: i32, %arg1: i32) -> (i32, i32) {
    %c0_i32 = arith.constant 0 : i32
    %c0_i32_0 = arith.constant 0 : i32
    %c0_i32_1 = arith.constant 0 : i32
    return %c0_i32, %c0_i32_0 : i32, i32
  }
  func.func @transform_11(%arg0: i32, %arg1: i32) -> (i32, i32) {
    %c0_i32 = arith.constant 0 : i32
    %c0_i32_0 = arith.constant 0 : i32
    %c0_i32_1 = arith.constant 0 : i32
    return %c0_i32, %c0_i32_0 : i32, i32
  }
  func.func @transform_12(%arg0: i32, %arg1: i32) -> (i32, i32) {
    %c0_i32 = arith.constant 0 : i32
    %c0_i32_0 = arith.constant 0 : i32
    %c0_i32_1 = arith.constant 0 : i32
    return %c0_i32, %c0_i32_0 : i32, i32
  }
  func.func @transform_13(%arg0: i32, %arg1: i32) -> (i32, i32) {
    %c0_i32 = arith.constant 0 : i32
    %c0_i32_0 = arith.constant 0 : i32
    %c0_i32_1 = arith.constant 0 : i32
    return %c0_i32, %c0_i32_0 : i32, i32
  }
  func.func @transform_14(%arg0: i32, %arg1: i32) -> (i32, i32) {
    %c0_i32 = arith.constant 0 : i32
    %c0_i32_0 = arith.constant 0 : i32
    %c0_i32_1 = arith.constant 0 : i32
    return %c0_i32, %c0_i32_0 : i32, i32
  }
  func.func @transform_15(%arg0: i32, %arg1: i32) -> (i32, i32) {
    %c1_i32 = arith.constant 1 : i32
    %0 = arith.muli %arg0, %c1_i32 : i32
    %1 = arith.addi %0, %arg1 : i32
    %c0_i32 = arith.constant 0 : i32
    %c0_i32_0 = arith.constant 0 : i32
    return %1, %c0_i32 : i32, i32
  }
  func.func @transform_16(%arg0: i32, %arg1: i32) -> (i32, i32) {
    %c0_i32 = arith.constant 0 : i32
    %c0_i32_0 = arith.constant 0 : i32
    %c0_i32_1 = arith.constant 0 : i32
    return %c0_i32, %c0_i32_0 : i32, i32
  }
  func.func @transform_17(%arg0: i32, %arg1: i32) -> (i32, i32) {
    %c0_i32 = arith.constant 0 : i32
    %c0_i32_0 = arith.constant 0 : i32
    %c0_i32_1 = arith.constant 0 : i32
    return %c0_i32, %c0_i32_0 : i32, i32
  }
}

module attributes {stable_mosaic.version = 11 : i64} {
  func.func @_bn_relu_kernel(%arg0: i32, %arg1: memref<512x4xf32, #tpu.memory_space<vmem>>, %arg2: memref<1x4xf32, #tpu.memory_space<vmem>>, %arg3: memref<1x4xf32, #tpu.memory_space<vmem>>, %arg4: memref<1x4xf32, #tpu.memory_space<vmem>>, %arg5: memref<1x4xf32, #tpu.memory_space<vmem>>, %arg6: memref<512x4xf32, #tpu.memory_space<vmem>>) attributes {dimension_semantics = [#tpu.dimension_semantics<parallel>], iteration_bounds = array<i64: 1>, scalar_prefetch = 0 : i64, scratch_operands = 0 : i64, tpu.core_type = #tpu.core_type<tc>, window_params = [{transform_indices = @transform_0, window_bounds = array<i64: 512, 4>}, {pipeline_mode = #tpu.pipeline_mode<synchronous>, transform_indices = @transform_1, window_bounds = array<i64: 1, 4>}, {pipeline_mode = #tpu.pipeline_mode<synchronous>, transform_indices = @transform_2, window_bounds = array<i64: 1, 4>}, {pipeline_mode = #tpu.pipeline_mode<synchronous>, transform_indices = @transform_3, window_bounds = array<i64: 1, 4>}, {pipeline_mode = #tpu.pipeline_mode<synchronous>, transform_indices = @transform_4, window_bounds = array<i64: 1, 4>}, {transform_indices = @transform_5, window_bounds = array<i64: 512, 4>}]} {
    %c0 = arith.constant 0 : index
    %c0_0 = arith.constant 0 : index
    %0 = vector.load %arg2[%c0, %c0_0] : memref<1x4xf32, #tpu.memory_space<vmem>>, vector<1x4xf32>
    %cst = arith.constant 0.001953125 : f32
    %1 = vector.broadcast %cst : f32 to vector<1x4xf32>
    %2 = arith.mulf %0, %1 : vector<1x4xf32>
    %c0_1 = arith.constant 0 : index
    %c0_2 = arith.constant 0 : index
    %3 = vector.load %arg3[%c0_1, %c0_2] : memref<1x4xf32, #tpu.memory_space<vmem>>, vector<1x4xf32>
    %cst_3 = arith.constant 0.001953125 : f32
    %4 = vector.broadcast %cst_3 : f32 to vector<1x4xf32>
    %5 = arith.mulf %3, %4 : vector<1x4xf32>
    %6 = arith.mulf %2, %2 : vector<1x4xf32>
    %7 = arith.subf %5, %6 : vector<1x4xf32>
    %c0_4 = arith.constant 0 : index
    %c0_5 = arith.constant 0 : index
    %8 = vector.load %arg1[%c0_4, %c0_5] : memref<512x4xf32, #tpu.memory_space<vmem>>, vector<512x4xf32>
    %9 = vector.broadcast %2 : vector<1x4xf32> to vector<512x4xf32>
    %10 = arith.subf %8, %9 : vector<512x4xf32>
    %cst_6 = arith.constant 9.99999974E-6 : f32
    %11 = vector.broadcast %cst_6 : f32 to vector<1x4xf32>
    %12 = arith.addf %7, %11 : vector<1x4xf32>
    %13 = math.rsqrt %12 : vector<1x4xf32>
    %14 = vector.broadcast %13 : vector<1x4xf32> to vector<512x4xf32>
    %15 = arith.mulf %10, %14 : vector<512x4xf32>
    %c0_7 = arith.constant 0 : index
    %c0_8 = arith.constant 0 : index
    %16 = vector.load %arg4[%c0_7, %c0_8] : memref<1x4xf32, #tpu.memory_space<vmem>>, vector<1x4xf32>
    %17 = vector.broadcast %16 : vector<1x4xf32> to vector<512x4xf32>
    %18 = arith.mulf %15, %17 : vector<512x4xf32>
    %c0_9 = arith.constant 0 : index
    %c0_10 = arith.constant 0 : index
    %19 = vector.load %arg5[%c0_9, %c0_10] : memref<1x4xf32, #tpu.memory_space<vmem>>, vector<1x4xf32>
    %20 = vector.broadcast %19 : vector<1x4xf32> to vector<512x4xf32>
    %21 = arith.addf %18, %20 : vector<512x4xf32>
    %cst_11 = arith.constant 0.000000e+00 : f32
    %22 = vector.broadcast %cst_11 : f32 to vector<512x4xf32>
    %23 = arith.maximumf %21, %22 : vector<512x4xf32>
    %c0_12 = arith.constant 0 : index
    %c0_13 = arith.constant 0 : index
    %24 = vector.load %arg6[%c0_12, %c0_13] : memref<512x4xf32, #tpu.memory_space<vmem>>, vector<512x4xf32>
    tpu.vector_store %arg6[%c0_12, %c0_13], %23 {strides = array<i32>} : memref<512x4xf32, #tpu.memory_space<vmem>>, vector<512x4xf32>,
    return
  }
  func.func @transform_0(%arg0: i32) -> (i32, i32) {
    %c0_i32 = arith.constant 0 : i32
    %c0_i32_0 = arith.constant 0 : i32
    return %arg0, %c0_i32 : i32, i32
  }
  func.func @transform_1(%arg0: i32) -> (i32, i32) {
    %c0_i32 = arith.constant 0 : i32
    %c0_i32_0 = arith.constant 0 : i32
    %c0_i32_1 = arith.constant 0 : i32
    return %c0_i32, %c0_i32_0 : i32, i32
  }
  func.func @transform_2(%arg0: i32) -> (i32, i32) {
    %c0_i32 = arith.constant 0 : i32
    %c0_i32_0 = arith.constant 0 : i32
    %c0_i32_1 = arith.constant 0 : i32
    return %c0_i32, %c0_i32_0 : i32, i32
  }
  func.func @transform_3(%arg0: i32) -> (i32, i32) {
    %c0_i32 = arith.constant 0 : i32
    %c0_i32_0 = arith.constant 0 : i32
    %c0_i32_1 = arith.constant 0 : i32
    return %c0_i32, %c0_i32_0 : i32, i32
  }
  func.func @transform_4(%arg0: i32) -> (i32, i32) {
    %c0_i32 = arith.constant 0 : i32
    %c0_i32_0 = arith.constant 0 : i32
    %c0_i32_1 = arith.constant 0 : i32
    return %c0_i32, %c0_i32_0 : i32, i32
  }
  func.func @transform_5(%arg0: i32) -> (i32, i32) {
    %c0_i32 = arith.constant 0 : i32
    %c0_i32_0 = arith.constant 0 : i32
    return %arg0, %c0_i32 : i32, i32
  }
}

</mosaic_0001>

<bundles_post_ra>
// kernel: ham_forward.3
= control target key start
LH: loop header
LB: loop body
LE: loop exit
PB: predicated region body
PF: predicated region fallthrough
CT: control target
= control target key end

     0   :  { %vm279_vm0 = vcmask 1043456   ;;  %vm86_vm1 = vcmask 31744   ;;  %vm557_vm2 = vcmask 15360   ;;  %vm492_vm3 = vcmask 48128   ;;  %s1677_s6 = smov 3   ;;  %s1679_s10 = smov 124   ;;  %s3603_s1 = inlined_call_operand.vmem [shape: f32[4,6], index: 1, kind: input, shape index: {}]   ;;  %s3604_s0 = inlined_call_operand.vmem [shape: f32[512,4], index: 0, kind: input, shape index: {}]   ;;  %s3605_s2 = inlined_call_operand.vmem [shape: f32[1,6], index: 2, kind: input, shape index: {}]   ;;  %s3606_s3 = inlined_call_operand.vmem [shape: f32[512,6], index: 3, kind: output, shape index: {0}]   ;;  %s3607_s4 = inlined_call_operand.vmem [shape: f32[512,1], index: 4, kind: output, shape index: {1}]   ;;  %s3608_s5 = inlined_call_operand.vmem [shape: f32[512,1], index: 5, kind: output, shape index: {2}]  }
   0x1   :  { %v81_v0 = vld [vmem:[%s3603_s1] sm:$0xf]  ;;  %v18_v5 = vld [vmem:[%s3604_s0 + $0x8] sm:$0xff]  ;;  %v19_v9 = vld [vmem:[%s3604_s0 + $0x10] sm:$0xff]  ;;  %v1678_v60 = vmov 2.0   ;;  %vm821_vm5 = vcmask 7168  }
   0x2   :  { %v17_v1 = vld [vmem:[%s3604_s0] sm:$0xff]  ;;  %1602 = vmatpush.msk.msra.mxu0 %vm279_vm0, %v81_v0  ;;  %1668 = vmatpush.msk.msra.mxu2 %vm279_vm0, %v81_v0  ;;  %v50_v6 = vld [vmem:[%s3604_s0 + $0x108] sm:$0xff]  ;;  %v51_v10 = vld [vmem:[%s3604_s0 + $0x110] sm:$0xff]  ;;  %1674 = vrcp.f32 %v1678_v60 }
   0x3   :  { %v49_v2 = vld [vmem:[%s3604_s0 + $0x100] sm:$0xff]  ;;  %1603 = vmatmul.msk.f32.vlgmr.msra.gmra.mxu0 %vm86_vm1, %v17_v1  ;;  %1669 = vmatpush.msk.msra.mxu3 %vm279_vm0, %v81_v0  ;;  %v34_v7 = vld [vmem:[%s3604_s0 + $0x88] sm:$0xff]  ;;  %v35_v11 = vld [vmem:[%s3604_s0 + $0x90] sm:$0xff] }
   0x4   :  { %v65_v3 = vld [vmem:[%s3604_s0 + $0x180] sm:$0xff]  ;;  %1635 = vmatmul.msk.f32.vlgmr.msra.gmra.mxu2 %vm86_vm1, %v49_v2  ;;  %1667 = vmatpush.msk.msra.mxu1 %vm279_vm0, %v81_v0  ;;  %v66_v8 = vld [vmem:[%s3604_s0 + $0x188] sm:$0xff]  ;;  %v36_v12 = vld [vmem:[%s3604_s0 + $0x98] sm:$0xff] }
   0x5   :  { %v33_v4 = vld [vmem:[%s3604_s0 + $0x80] sm:$0xff]  ;;  %1651 = vmatmul.msk.f32.vlgmr.msra.gmra.mxu3 %vm86_vm1, %v65_v3  ;;  %v67_v13 = vld [vmem:[%s3604_s0 + $0x190] sm:$0xff]  ;;  %v20_v14 = vld [vmem:[%s3604_s0 + $0x18] sm:$0xff] }
   0x6   :  { %1619 = vmatmul.msk.f32.vlgmr.msra.gmra.mxu1 %vm86_vm1, %v33_v4  ;;  %v68_v15 = vld [vmem:[%s3604_s0 + $0x198] sm:$0xff]  ;;  %v1776_v16 = vld [vmem:[%s3605_s2] ss:$0 sm:$0xff]  ;;  %v54_v48 = vld [vmem:[%s3604_s0 + $0x128] sm:$0xff] }
   0x7   :  { %v37_v20 = vld [vmem:[%s3604_s0 + $0xa0] sm:$0xff]  ;;  %v52_v40 = vld [vmem:[%s3604_s0 + $0x118] sm:$0xff]  ;;  %v22_v53 = vld [vmem:[%s3604_s0 + $0x28] sm:$0xff] }
   0x8   :  { %v21_v21 = vld [vmem:[%s3604_s0 + $0x20] sm:$0xff]  ;;  %v38_v54 = vld [vmem:[%s3604_s0 + $0xa8] sm:$0xff]  ;;  %v39_v59 = vld [vmem:[%s3604_s0 + $0xb0] sm:$0xff]  ;;  %v1675_v61 = vpop.eup %1674 }
   0x9   :  { %v53_v43 = vld [vmem:[%s3604_s0 + $0x120] sm:$0xff]  ;;  %v751_v62 = vmul.f32 2.0, %v1675_v61  ;;  %vm755_vm4 = vweird.f32 %v1675_v61 }
   0xa   :  { %v69_v45 = vld [vmem:[%s3604_s0 + $0x1a0] sm:$0xff] }
   0xb   :  { %1604 = vmatmul.msk.f32.gmra.mxu0 %vm86_vm1, %v18_v5  ;;  %v752_v2 = vsub.f32 1.0, %v751_v62 }
   0xc   :  { %1636 = vmatmul.msk.f32.gmra.mxu2 %vm86_vm1, %v50_v6 }
   0xd   :  { %1652 = vmatmul.msk.f32.gmra.mxu3 %vm86_vm1, %v66_v8  ;;  %v753_v4 = vmul.f32 %v1675_v61, %v752_v2 }
   0xe   :  { %1620 = vmatmul.msk.f32.gmra.mxu1 %vm86_vm1, %v34_v7  ;;  %v70_v7 = vld [vmem:[%s3604_s0 + $0x1a8] sm:$0xff] }
   0xf   :  { %v754_v5 = vadd.f32 %v1675_v61, %v753_v4 }
  0x13   :  { %1605 = vmatmul.msk.f32.gmra.mxu0 %vm86_vm1, %v19_v9  ;;  %v1967_v9 = vsel %vm755_vm4, %v1675_v61, %v754_v5 }
  0x14   :  { %1637 = vmatmul.msk.f32.gmra.mxu2 %vm86_vm1, %v51_v10 }
  0x15   :  { %1653 = vmatmul.msk.f32.gmra.mxu3 %vm86_vm1, %v67_v13  ;;  %v71_v13 = vld [vmem:[%s3604_s0 + $0x1b0] sm:$0xff] }
  0x16   :  { %1621 = vmatmul.msk.f32.gmra.mxu1 %vm86_vm1, %v35_v11 }
  0x1b   :  { %1606 = vmatmul.msk.f32.gmra.mxu0 %vm86_vm1, %v20_v14 }
  0x1c   :  { %1638 = vmatmul.msk.f32.gmra.mxu2 %vm86_vm1, %v52_v40 }
  0x1d   :  { %1654 = vmatmul.msk.f32.gmra.mxu3 %vm86_vm1, %v68_v15 }
  0x1e   :  { %1622 = vmatmul.msk.f32.gmra.mxu1 %vm86_vm1, %v36_v12  ;;  %v23_v12 = vld [vmem:[%s3604_s0 + $0x30] sm:$0xff] }
  0x23   :  { %1607 = vmatmul.msk.f32.gmra.mxu0 %vm86_vm1, %v21_v21 }
  0x24   :  { %1639 = vmatmul.msk.f32.gmra.mxu2 %vm86_vm1, %v53_v43 }
  0x25   :  { %1655 = vmatmul.msk.f32.gmra.mxu3 %vm86_vm1, %v69_v45 }
  0x26   :  { %1623 = vmatmul.msk.f32.gmra.mxu1 %vm86_vm1, %v37_v20 }
  0x2b   :  { %1608 = vmatmul.msk.f32.gmra.mxu0 %vm86_vm1, %v22_v53 }
  0x2c   :  { %1640 = vmatmul.msk.f32.gmra.mxu2 %vm86_vm1, %v54_v48 }
  0x2d   :  { %1656 = vmatmul.msk.f32.gmra.mxu3 %vm86_vm1, %v70_v7 }
  0x2e   :  { %1624 = vmatmul.msk.f32.gmra.mxu1 %vm86_vm1, %v38_v54 }
  0x33   :  { %1609 = vmatmul.msk.f32.gmra.mxu0 %vm86_vm1, %v23_v12 }
  0x35   :  { %1657 = vmatmul.msk.f32.gmra.mxu3 %vm86_vm1, %v71_v13 }
  0x36   :  { %1625 = vmatmul.msk.f32.gmra.mxu1 %vm86_vm1, %v39_v59  ;;  %v56_v59 = vld [vmem:[%s3604_s0 + $0x138] sm:$0xff] }
  0x80   :  { %v300_v17 = vpop.f32.mrf.mxu0 }
  0x81   :  { %v1779_v18 = vadd.f32 %v1776_v16, %v300_v17 }
  0x83   :  { %v348_v19 = vpop.f32.mrf.mxu1  ;;  %493 = vst.msk [vmem:[%s3606_s3] sm:$0xff] %vm492_vm3, %v1779_v18  ;;  %950 = vrot.lane.b32.xlu1 %v1779_v18, %s1677_s6  ;;  %v558_v22 = vsel %vm557_vm2, %v1779_v18, 0.0 }
  0x84   :  { %v1797_v23 = vadd.f32 %v1776_v16, %v348_v19  ;;  %559 = vadd.xlane.f32.xlu0 %v558_v22 }
  0x86   :  { %509 = vst.msk [vmem:[%s3606_s3 + $0x80] sm:$0xff] %vm492_vm3, %v1797_v23  ;;  %v606_v44 = vsel %vm557_vm2, %v1797_v23, 0.0 }
  0x87   :  { %v396_v24 = vpop.f32.mrf.mxu2 }
  0x88   :  { %v1807_v25 = vadd.f32 %v1776_v16, %v396_v24  ;;  %v444_v26 = vpop.f32.mrf.mxu3  ;;  %v303_v27 = vpop.f32.mrf.mxu0 }
  0x89   :  { %v1815_v28 = vadd.f32 %v1776_v16, %v444_v26  ;;  %v1820_v30 = vadd.f32 %v1776_v16, %v303_v27 }
  0x8a   :  { %525 = vst.msk [vmem:[%s3606_s3 + $0x100] sm:$0xff] %vm492_vm3, %v1807_v25  ;;  %v654_v29 = vsel %vm557_vm2, %v1807_v25, 0.0 }
  0x8b   :  { %655 = vadd.xlane.f32.xlu2 %v654_v29  ;;  %v351_v31 = vpop.f32.mrf.mxu1  ;;  %541 = vst.msk [vmem:[%s3606_s3 + $0x180] sm:$0xff] %vm492_vm3, %v1815_v28  ;;  %982 = vrot.lane.b32.xlu1 %v1797_v23, %s1677_s6  ;;  %v702_v32 = vsel %vm557_vm2, %v1815_v28, 0.0  ;;  %v561_v56 = vsel %vm557_vm2, %v1820_v30, 0.0 }
  0x8c   :  { %v1832_v33 = vadd.f32 %v1776_v16, %v351_v31  ;;  %703 = vadd.xlane.f32.xlu0 %v702_v32  ;;  %494 = vst.msk [vmem:[%s3606_s3 + $0x8] sm:$0xff] %vm492_vm3, %v1820_v30  ;;  %v40_v31 = vld [vmem:[%s3604_s0 + $0xb8] sm:$0xff] }
  0x8d   :  { %1626 = vmatmul.msk.f32.gmra.mxu1 %vm86_vm1, %v40_v31 }
  0x8e   :  { %3634 = vst [vmem:[#allocation2_spill] sm:$0xff] %v1832_v33  ;;  %v609_v55 = vsel %vm557_vm2, %v1832_v33, 0.0 }
  0x8f   :  { %510 = vst.msk [vmem:[%s3606_s3 + $0x88] sm:$0xff] %vm492_vm3, %v1832_v33  ;;  %v399_v37 = vpop.f32.mrf.mxu2 }
  0x90   :  { %v447_v34 = vpop.f32.mrf.mxu3  ;;  %v306_v36 = vpop.f32.mrf.mxu0  ;;  %v1856_v39 = vadd.f32 %v1776_v16, %v399_v37  ;;  %v24_v37 = vld [vmem:[%s3604_s0 + $0x38] sm:$0xff] }
  0x91   :  { %v1845_v35 = vadd.f32 %v1776_v16, %v447_v34  ;;  %v1853_v38 = vadd.f32 %v1776_v16, %v306_v36  ;;  %1610 = vmatmul.msk.f32.gmra.mxu0 %vm86_vm1, %v24_v37  ;;  %v42_v37 = vld [vmem:[%s3604_s0 + $0xc8] sm:$0xff] }
  0x92   :  { %526 = vst.msk [vmem:[%s3606_s3 + $0x108] sm:$0xff] %vm492_vm3, %v1856_v39  ;;  %v657_v58 = vsel %vm557_vm2, %v1856_v39, 0.0 }
  0x93   :  { %542 = vst.msk [vmem:[%s3606_s3 + $0x188] sm:$0xff] %vm492_vm3, %v1845_v35  ;;  %v354_v46 = vpop.f32.mrf.mxu1  ;;  %v705_v49 = vsel %vm557_vm2, %v1845_v35, 0.0  ;;  %v564_v52 = vsel %vm557_vm2, %v1853_v38, 0.0 }
  0x94   :  { %3635 = vst [vmem:[#allocation3_spill] sm:$0xff] %v1853_v38  ;;  %v1895_v47 = vadd.f32 %v1776_v16, %v354_v46  ;;  %v55_v46 = vld [vmem:[%s3604_s0 + $0x130] sm:$0xff] }
  0x95   :  { %495 = vst.msk [vmem:[%s3606_s3 + $0x10] sm:$0xff] %vm492_vm3, %v1853_v38  ;;  %1641 = vmatmul.msk.f32.gmra.mxu2 %vm86_vm1, %v55_v46 }
  0x96   :  { %511 = vst.msk [vmem:[%s3606_s3 + $0x90] sm:$0xff] %vm492_vm3, %v1895_v47  ;;  %v612_v29 = vsel %vm557_vm2, %v1895_v47, 0.0 }
  0x97   :  { %v402_v41 = vpop.f32.mrf.mxu2 }
  0x98   :  { %v1877_v42 = vadd.f32 %v1776_v16, %v402_v41  ;;  %v450_v63 = vpop.f32.mrf.mxu3  ;;  %v309_v1 = vpop.f32.mrf.mxu0 }
  0x99   :  { %v1945_v0 = vadd.f32 %v1776_v16, %v450_v63  ;;  %v1953_v3 = vadd.f32 %v1776_v16, %v309_v1 }
  0x9a   :  { %527 = vst.msk [vmem:[%s3606_s3 + $0x110] sm:$0xff] %vm492_vm3, %v1877_v42  ;;  %v660_v57 = vsel %vm557_vm2, %v1877_v42, 0.0 }
  0x9b   :  { %v357_v50 = vpop.f32.mrf.mxu1  ;;  %3637 = vst [vmem:[#allocation5_spill] sm:$0xff] %v1945_v0  ;;  %v708_v22 = vsel %vm557_vm2, %v1945_v0, 0.0  ;;  %v567_v26 = vsel %vm557_vm2, %v1953_v3, 0.0 }
  0x9c   :  { %v1909_v51 = vadd.f32 %v1776_v16, %v357_v50  ;;  %543 = vst.msk [vmem:[%s3606_s3 + $0x190] sm:$0xff] %vm492_vm3, %v1945_v0 }
  0x9d   :  { %496 = vst.msk [vmem:[%s3606_s3 + $0x18] sm:$0xff] %vm492_vm3, %v1953_v3  ;;  %1642 = vmatmul.msk.f32.gmra.mxu2 %vm86_vm1, %v56_v59  ;;  %v73_v59 = vld [vmem:[%s3604_s0 + $0x1c0] sm:$0xff] }
  0x9e   :  { %3636 = vst [vmem:[#allocation4_spill] sm:$0xff] %v1909_v51  ;;  %v615_v32 = vsel %vm557_vm2, %v1909_v51, 0.0 }
  0x9f   :  { %512 = vst.msk [vmem:[%s3606_s3 + $0x98] sm:$0xff] %vm492_vm3, %v1909_v51 }
  0xa0   :  { %984 = vrot.lane.b32.xlu0 %v1832_v33, %s1677_s6  ;;  %v453_v6 = vpop.f32.mrf.mxu3  ;;  %v312_v24 = vpop.f32.mrf.mxu0 }
  0xa1   :  { %v1964_v8 = vadd.f32 %v1776_v16, %v453_v6  ;;  %v2010_v27 = vadd.f32 %v1776_v16, %v312_v24  ;;  %v72_v6 = vld [vmem:[%s3604_s0 + $0x1b8] sm:$0xff] }
  0xa2   :  { %1658 = vmatmul.msk.f32.gmra.mxu3 %vm86_vm1, %v72_v6 }
  0xa3   :  { %952 = vrot.lane.b32.xlu2 %v1820_v30, %s1677_s6  ;;  %3638 = vst [vmem:[#allocation6_spill] sm:$0xff] %v1964_v8  ;;  %v360_v20 = vpop.f32.mrf.mxu1  ;;  %v711_v34 = vsel %vm557_vm2, %v1964_v8, 0.0 }
  0xa4   :  { %544 = vst.msk [vmem:[%s3606_s3 + $0x198] sm:$0xff] %vm492_vm3, %v1964_v8  ;;  %v1998_v21 = vadd.f32 %v1776_v16, %v360_v20 }
  0xa5   :  { %497 = vst.msk [vmem:[%s3606_s3 + $0x20] sm:$0xff] %vm492_vm3, %v2010_v27 }
  0xa6   :  { %3639 = vst [vmem:[#allocation7_spill] sm:$0xff] %v1998_v21  ;;  %v618_v31 = vsel %vm557_vm2, %v1998_v21, 0.0 }
  0xa7   :  { %513 = vst.msk [vmem:[%s3606_s3 + $0xa0] sm:$0xff] %vm492_vm3, %v1998_v21 }
  0xa8   :  { %v315_v7 = vpop.f32.mrf.mxu0 }
  0xaa   :  { %1659 = vmatmul.msk.f32.gmra.mxu3 %vm86_vm1, %v73_v59 }
  0xb5   :  { %607 = vadd.xlane.f32.xlu1 %v606_v44  ;;  %v405_v44 = vpop.f32.mrf.mxu2 }
  0xb6   :  { %v2039_v45 = vadd.f32 %v1776_v16, %v405_v44 }
  0xb8   :  { %528 = vst.msk [vmem:[%s3606_s3 + $0x118] sm:$0xff] %vm492_vm3, %v2039_v45  ;;  %v663_v13 = vsel %vm557_vm2, %v2039_v45, 0.0 }
  0xbd   :  { %706 = vadd.xlane.f32.xlu1 %v705_v49  ;;  %v408_v50 = vpop.f32.mrf.mxu2 }
  0xc5   :  { %565 = vadd.xlane.f32.xlu1 %v564_v52  ;;  %v2060_v52 = vadd.f32 %v1776_v16, %v408_v50  ;;  %v411_v61 = vpop.f32.mrf.mxu2 }
  0xc6   :  { %v2099_v4 = vadd.f32 %v1776_v16, %v411_v61 }
  0xc7   :  { %529 = vst.msk [vmem:[%s3606_s3 + $0x120] sm:$0xff] %vm492_vm3, %v2060_v52  ;;  %v666_v20 = vsel %vm557_vm2, %v2060_v52, 0.0 }
  0xc8   :  { %530 = vst.msk [vmem:[%s3606_s3 + $0x128] sm:$0xff] %vm492_vm3, %v2099_v4 }
  0xca   :  { %562 = vadd.xlane.f32.xlu0 %v561_v56 }
  0xcc   :  { %610 = vadd.xlane.f32.xlu2 %v609_v55  ;;  %v456_v55 = vpop.f32.mrf.mxu3 }
  0xcd   :  { %661 = vadd.xlane.f32.xlu1 %v660_v57  ;;  %v2076_v56 = vadd.f32 %v1776_v16, %v456_v55 }
  0xcf   :  { %545 = vst.msk [vmem:[%s3606_s3 + $0x1a0] sm:$0xff] %vm492_vm3, %v2076_v56 }
  0xd2   :  { %658 = vadd.xlane.f32.xlu0 %v657_v58 }
  0xd4   :  { %v459_v46 = vpop.f32.mrf.mxu3 }
  0xe4   :  { %986 = vrot.lane.b32.xlu2 %v1895_v47, %s1677_s6 }
  0xe6   :  { %988 = vrot.lane.b32.xlu1 %v1909_v51, %s1677_s6  ;;  %954 = vrot.lane.b32.xlu0 %v1853_v38, %s1677_s6 }
  0xf5   :  { %v2027_v36 = vpop.permute.xlu1 %950 }
  0xf7   :  { %v560_v10 = vpop.xlane.xlu0 %559 }
  0xf8   :  { %v757_v11 = vmul.f32 %v1967_v9, %v560_v10 }
  0xfa   :  { %822 = vst.msk [vmem:[%s3607_s4] sm:$0xff] %vm821_vm5, %v757_v11  ;;  %v2120_v11 = vadd.f32 %v1776_v16, %v315_v7 }
  0xfc   :  { %3641 = vst [vmem:[#allocation9_spill] sm:$0xff] %v2120_v11 }
  0xfd   :  { %v2033_v40 = vpop.permute.xlu1 %982  ;;  %498 = vst.msk [vmem:[%s3606_s3 + $0x28] sm:$0xff] %vm492_vm3, %v2120_v11 }
  0xfe   :  { %v656_v14 = vpop.xlane.xlu2 %655 }
  0xff   :  { %v789_v15 = vmul.f32 %v1967_v9, %v656_v14  ;;  %v704_v17 = vpop.xlane.xlu0 %703  ;;  %v363_v14 = vpop.f32.mrf.mxu1 }
 0x100   :  { %v805_v19 = vmul.f32 %v1967_v9, %v704_v17  ;;  %v2138_v17 = vadd.f32 %v1776_v16, %v363_v14 }
 0x101   :  { %854 = vst.msk [vmem:[%s3607_s4 + $0x100] sm:$0xff] %vm821_vm5, %v789_v15  ;;  %v57_v15 = vld [vmem:[%s3604_s0 + $0x140] sm:$0xff] }
 0x102   :  { %870 = vst.msk [vmem:[%s3607_s4 + $0x180] sm:$0xff] %vm821_vm5, %v805_v19  ;;  %1643 = vmatmul.msk.f32.gmra.mxu2 %vm86_vm1, %v57_v15  ;;  %v570_v19 = vsel %vm557_vm2, %v2010_v27, 0.0  ;;  %v621_v15 = vsel %vm557_vm2, %v2138_v17, 0.0 }
 0x103   :  { %3642 = vst [vmem:[#allocation10_spill] sm:$0xff] %v2138_v17 }
 0x104   :  { %514 = vst.msk [vmem:[%s3606_s3 + $0xa8] sm:$0xff] %vm492_vm3, %v2138_v17 }
 0x106   :  { %v2073_v54 = vpop.permute.xlu2 %952 }
 0x107   :  { %v366_v24 = vpop.f32.mrf.mxu1 }
 0x10d   :  { %709 = vadd.xlane.f32.xlu2 %v708_v22  ;;  %v25_v22 = vld [vmem:[%s3604_s0 + $0x40] sm:$0xff] }
 0x10e   :  { %1611 = vmatmul.msk.f32.gmra.mxu0 %vm86_vm1, %v25_v22 }
 0x110   :  { %568 = vadd.xlane.f32.xlu1 %v567_v26  ;;  %613 = vadd.xlane.f32.xlu0 %v612_v29  ;;  %v2155_v26 = vadd.f32 %v1776_v16, %v366_v24  ;;  %v714_v29 = vsel %vm557_vm2, %v2076_v56, 0.0 }
 0x112   :  { %v2071_v53 = vpop.permute.xlu0 %984  ;;  %3643 = vst [vmem:[#allocation11_spill] sm:$0xff] %v2155_v26 }
 0x113   :  { %3640 = vst [vmem:[#allocation8_spill] sm:$0xff] %v2071_v53 }
 0x114   :  { %515 = vst.msk [vmem:[%s3606_s3 + $0xb0] sm:$0xff] %vm492_vm3, %v2155_v26 }
 0x118   :  { %616 = vadd.xlane.f32.xlu1 %v615_v32  ;;  %712 = vadd.xlane.f32.xlu0 %v711_v34  ;;  %v669_v32 = vsel %vm557_vm2, %v2099_v4, 0.0  ;;  %v41_v34 = vld [vmem:[%s3604_s0 + $0xc0] sm:$0xff] }
 0x119   :  { %1627 = vmatmul.msk.f32.gmra.mxu1 %vm86_vm1, %v41_v34  ;;  %v43_v34 = vld [vmem:[%s3604_s0 + $0xd0] sm:$0xff] }
 0x121   :  { %1628 = vmatmul.msk.f32.gmra.mxu1 %vm86_vm1, %v42_v37  ;;  %v27_v37 = vld [vmem:[%s3604_s0 + $0x50] sm:$0xff] }
 0x125   :  { %956 = vrot.lane.b32.xlu2 %v1953_v3, %s1677_s6 }
 0x128   :  { %v608_v41 = vpop.xlane.xlu1 %607 }
 0x129   :  { %v773_v43 = vmul.f32 %v1967_v9, %v608_v41  ;;  %v318_v41 = vpop.f32.mrf.mxu0  ;;  %1629 = vmatmul.msk.f32.gmra.mxu1 %vm86_vm1, %v43_v34 }
 0x12a   :  { %v2183_v44 = vadd.f32 %v1776_v16, %v318_v41  ;;  %v414_v41 = vpop.f32.mrf.mxu2 }
 0x12b   :  { %838 = vst.msk [vmem:[%s3607_s4 + $0x80] sm:$0xff] %vm821_vm5, %v773_v43 }
 0x12c   :  { %990 = vrot.lane.b32.xlu0 %v1998_v21, %s1677_s6  ;;  %499 = vst.msk [vmem:[%s3606_s3 + $0x30] sm:$0xff] %vm492_vm3, %v2183_v44 }
 0x130   :  { %v707_v48 = vpop.xlane.xlu1 %706 }
 0x131   :  { %958 = vrot.lane.b32.xlu1 %v2010_v27, %s1677_s6  ;;  %v806_v49 = vmul.f32 %v1967_v9, %v707_v48  ;;  %v2191_v48 = vadd.f32 %v1776_v16, %v459_v46  ;;  %v321_v22 = vpop.f32.mrf.mxu0  ;;  %v2286_v46 = vadd.f32 %v1776_v16, %v414_v41 }
 0x132   :  { %v2264_v24 = vadd.f32 %v1776_v16, %v321_v22 }
 0x133   :  { %871 = vst.msk [vmem:[%s3607_s4 + $0x188] sm:$0xff] %vm821_vm5, %v806_v49 }
 0x134   :  { %546 = vst.msk [vmem:[%s3606_s3 + $0x1a8] sm:$0xff] %vm492_vm3, %v2191_v48 }
 0x135   :  { %500 = vst.msk [vmem:[%s3606_s3 + $0x38] sm:$0xff] %vm492_vm3, %v2264_v24 }
 0x136   :  { %531 = vst.msk [vmem:[%s3606_s3 + $0x130] sm:$0xff] %vm492_vm3, %v2286_v46 }
 0x138   :  { %v566_v57 = vpop.xlane.xlu1 %565 }
 0x139   :  { %v759_v58 = vmul.f32 %v1967_v9, %v566_v57 }
 0x13b   :  { %824 = vst.msk [vmem:[%s3607_s4 + $0x10] sm:$0xff] %vm821_vm5, %v759_v58  ;;  %v462_v58 = vpop.f32.mrf.mxu3 }
 0x13d   :  { %v563_v60 = vpop.xlane.xlu0 %562 }
 0x13e   :  { %v758_v62 = vmul.f32 %v1967_v9, %v563_v60  ;;  %v2209_v60 = vadd.f32 %v1776_v16, %v462_v58  ;;  %v58_v58 = vld [vmem:[%s3604_s0 + $0x148] sm:$0xff] }
 0x13f   :  { %v611_v63 = vpop.xlane.xlu2 %610  ;;  %1644 = vmatmul.msk.f32.gmra.mxu2 %vm86_vm1, %v58_v58  ;;  %v28_v58 = vld [vmem:[%s3604_s0 + $0x58] sm:$0xff] }
 0x140   :  { %v774_v1 = vmul.f32 %v1967_v9, %v611_v63  ;;  %823 = vst.msk [vmem:[%s3607_s4 + $0x8] sm:$0xff] %vm821_vm5, %v758_v62  ;;  %v662_v2 = vpop.xlane.xlu1 %661 }
 0x141   :  { %v791_v5 = vmul.f32 %v1967_v9, %v662_v2  ;;  %3646 = vst [vmem:[#allocation14_spill] sm:$0xff] %v2209_v60  ;;  %v26_v2 = vld [vmem:[%s3604_s0 + $0x48] sm:$0xff] }
 0x142   :  { %839 = vst.msk [vmem:[%s3607_s4 + $0x88] sm:$0xff] %vm821_vm5, %v774_v1  ;;  %1612 = vmatmul.msk.f32.gmra.mxu0 %vm86_vm1, %v26_v2 }
 0x143   :  { %856 = vst.msk [vmem:[%s3607_s4 + $0x110] sm:$0xff] %vm821_vm5, %v791_v5  ;;  %v74_v5 = vld [vmem:[%s3604_s0 + $0x1c8] sm:$0xff] }
 0x144   :  { %547 = vst.msk [vmem:[%s3606_s3 + $0x1b0] sm:$0xff] %vm492_vm3, %v2209_v60  ;;  %1660 = vmatmul.msk.f32.gmra.mxu3 %vm86_vm1, %v74_v5 }
 0x145   :  { %v659_v10 = vpop.xlane.xlu0 %658 }
 0x146   :  { %v790_v12 = vmul.f32 %v1967_v9, %v659_v10 }
 0x147   :  { %v2180_v43 = vpop.permute.xlu2 %986 }
 0x148   :  { %855 = vst.msk [vmem:[%s3607_s4 + $0x108] sm:$0xff] %vm821_vm5, %v790_v12 }
 0x14a   :  { %1613 = vmatmul.msk.f32.gmra.mxu0 %vm86_vm1, %v27_v37 }
 0x14e   :  { %664 = vadd.xlane.f32.xlu2 %v663_v13  ;;  %v369_v13 = vpop.f32.mrf.mxu1 }
 0x14f   :  { %v2250_v14 = vadd.f32 %v1776_v16, %v369_v13 }
 0x151   :  { %3647 = vst [vmem:[#allocation15_spill] sm:$0xff] %v2250_v14 }
 0x152   :  { %516 = vst.msk [vmem:[%s3606_s3 + $0xb8] sm:$0xff] %vm492_vm3, %v2250_v14  ;;  %1614 = vmatmul.msk.f32.gmra.mxu0 %vm86_vm1, %v28_v58 }
 0x156   :  { %571 = vadd.xlane.f32.xlu2 %v570_v19  ;;  %667 = vadd.xlane.f32.xlu0 %v666_v20  ;;  %v576_v19 = vsel %vm557_vm2, %v2183_v44, 0.0  ;;  %v573_v20 = vsel %vm557_vm2, %v2120_v11, 0.0 }
 0x158   :  { %v2193_v49 = vpop.permute.xlu1 %988  ;;  %v2195_v50 = vpop.permute.xlu0 %954 }
 0x159   :  { %3644 = vst [vmem:[#allocation12_spill] sm:$0xff] %v2193_v49 }
 0x15a   :  { %3645 = vst [vmem:[#allocation13_spill] sm:$0xff] %v2195_v50 }
 0x15b   :  { %715 = vadd.xlane.f32.xlu1 %v714_v29  ;;  %v720_v29 = vsel %vm557_vm2, %v2209_v60, 0.0 }
 0x15e   :  { %619 = vadd.xlane.f32.xlu2 %v618_v31  ;;  %v717_v31 = vsel %vm557_vm2, %v2191_v48, 0.0 }
 0x163   :  { %670 = vadd.xlane.f32.xlu1 %v669_v32  ;;  %v624_v32 = vsel %vm557_vm2, %v2155_v26, 0.0 }
 0x16a   :  { %960 = vrot.lane.b32.xlu0 %v2120_v11, %s1677_s6 }
 0x176   :  { %992 = vrot.lane.b32.xlu2 %v2138_v17, %s1677_s6 }
 0x17c   :  { %994 = vrot.lane.b32.xlu1 %v2155_v26, %s1677_s6 }
 0x180   :  { %v710_v55 = vpop.xlane.xlu2 %709 }
 0x181   :  { %v807_v57 = vmul.f32 %v1967_v9, %v710_v55 }
 0x183   :  { %872 = vst.msk [vmem:[%s3607_s4 + $0x190] sm:$0xff] %vm821_vm5, %v807_v57  ;;  %v614_v61 = vpop.xlane.xlu0 %613  ;;  %v569_v62 = vpop.xlane.xlu1 %568 }
 0x184   :  { %v775_v63 = vmul.f32 %v1967_v9, %v614_v61  ;;  %v760_v1 = vmul.f32 %v1967_v9, %v569_v62  ;;  %v417_v57 = vpop.f32.mrf.mxu2 }
 0x185   :  { %v2305_v59 = vadd.f32 %v1776_v16, %v417_v57  ;;  %v75_v57 = vld [vmem:[%s3604_s0 + $0x1d0] sm:$0xff] }
 0x186   :  { %840 = vst.msk [vmem:[%s3607_s4 + $0x90] sm:$0xff] %vm821_vm5, %v775_v63  ;;  %1661 = vmatmul.msk.f32.gmra.mxu3 %vm86_vm1, %v75_v57  ;;  %v29_v57 = vld [vmem:[%s3604_s0 + $0x60] sm:$0xff] }
 0x187   :  { %825 = vst.msk [vmem:[%s3607_s4 + $0x18] sm:$0xff] %vm821_vm5, %v760_v1  ;;  %v59_v1 = vld [vmem:[%s3604_s0 + $0x150] sm:$0xff]  ;;  %1615 = vmatmul.msk.f32.gmra.mxu0 %vm86_vm1, %v29_v57  ;;  %v61_v57 = vld [vmem:[%s3604_s0 + $0x160] sm:$0xff] }
 0x188   :  { %v2293_v55 = vpop.permute.xlu2 %956  ;;  %532 = vst.msk [vmem:[%s3606_s3 + $0x138] sm:$0xff] %vm492_vm3, %v2305_v59  ;;  %1645 = vmatmul.msk.f32.gmra.mxu2 %vm86_vm1, %v59_v1 }
 0x18b   :  { %v713_v6 = vpop.xlane.xlu0 %712  ;;  %v617_v7 = vpop.xlane.xlu1 %616 }
 0x18c   :  { %v808_v10 = vmul.f32 %v1967_v9, %v713_v6  ;;  %v776_v12 = vmul.f32 %v1967_v9, %v617_v7 }
 0x18e   :  { %873 = vst.msk [vmem:[%s3607_s4 + $0x198] sm:$0xff] %vm821_vm5, %v808_v10  ;;  %v465_v10 = vpop.f32.mrf.mxu3 }
 0x18f   :  { %841 = vst.msk [vmem:[%s3607_s4 + $0x98] sm:$0xff] %vm821_vm5, %v776_v12  ;;  %v2333_v13 = vadd.f32 %v1776_v16, %v465_v10  ;;  %v44_v10 = vld [vmem:[%s3604_s0 + $0xd8] sm:$0xff] }
 0x190   :  { %1630 = vmatmul.msk.f32.gmra.mxu1 %vm86_vm1, %v44_v10  ;;  %v76_v10 = vld [vmem:[%s3604_s0 + $0x1d8] sm:$0xff] }
 0x191   :  { %548 = vst.msk [vmem:[%s3606_s3 + $0x1b8] sm:$0xff] %vm492_vm3, %v2333_v13  ;;  %1662 = vmatmul.msk.f32.gmra.mxu3 %vm86_vm1, %v76_v10 }
 0x194   :  { %622 = vadd.xlane.f32.xlu0 %v621_v15 }
 0x196   :  { %v372_v1 = vpop.f32.mrf.mxu1 }
 0x19c   :  { %577 = vadd.xlane.f32.xlu0 %v576_v19 }
 0x19e   :  { %v2308_v62 = vpop.permute.xlu0 %990 }
 0x19f   :  { %574 = vadd.xlane.f32.xlu2 %v573_v20  ;;  %3648 = vst [vmem:[#allocation16_spill] sm:$0xff] %v2308_v62 }
 0x1a3   :  { %v2323_v2 = vpop.permute.xlu1 %958 }
 0x1a4   :  { %721 = vadd.xlane.f32.xlu0 %v720_v29  ;;  %v420_v29 = vpop.f32.mrf.mxu2 }
 0x1a6   :  { %625 = vadd.xlane.f32.xlu1 %v624_v32  ;;  %v324_v32 = vpop.f32.mrf.mxu0 }
 0x1a7   :  { %718 = vadd.xlane.f32.xlu2 %v717_v31  ;;  %v2351_v31 = vadd.f32 %v1776_v16, %v420_v29  ;;  %v2358_v34 = vadd.f32 %v1776_v16, %v324_v32 }
 0x1a9   :  { %3649 = vst [vmem:[#allocation17_spill] sm:$0xff] %v2358_v34  ;;  %v678_v29 = vsel %vm557_vm2, %v2351_v31, 0.0 }
 0x1aa   :  { %533 = vst.msk [vmem:[%s3606_s3 + $0x140] sm:$0xff] %vm492_vm3, %v2351_v31 }
 0x1ab   :  { %501 = vst.msk [vmem:[%s3606_s3 + $0x40] sm:$0xff] %vm492_vm3, %v2358_v34 }
 0x1b8   :  { %996 = vrot.lane.b32.xlu0 %v2250_v14, %s1677_s6 }
 0x1bf   :  { %962 = vrot.lane.b32.xlu2 %v2183_v44, %s1677_s6  ;;  %964 = vrot.lane.b32.xlu1 %v2264_v24, %s1677_s6 }
 0x1c1   :  { %v665_v61 = vpop.xlane.xlu2 %664 }
 0x1c2   :  { %v792_v63 = vmul.f32 %v1967_v9, %v665_v61  ;;  %v675_v61 = vsel %vm557_vm2, %v2305_v59, 0.0 }
 0x1c4   :  { %857 = vst.msk [vmem:[%s3607_s4 + $0x118] sm:$0xff] %vm821_vm5, %v792_v63  ;;  %v672_v63 = vsel %vm557_vm2, %v2286_v46, 0.0 }
 0x1c9   :  { %v572_v5 = vpop.xlane.xlu2 %571  ;;  %v668_v7 = vpop.xlane.xlu0 %667 }
 0x1ca   :  { %v761_v6 = vmul.f32 %v1967_v9, %v572_v5  ;;  %v793_v12 = vmul.f32 %v1967_v9, %v668_v7  ;;  %v2388_v5 = vadd.f32 %v1776_v16, %v372_v1  ;;  %v60_v7 = vld [vmem:[%s3604_s0 + $0x158] sm:$0xff] }
 0x1cb   :  { %1646 = vmatmul.msk.f32.gmra.mxu2 %vm86_vm1, %v60_v7 }
 0x1cc   :  { %826 = vst.msk [vmem:[%s3607_s4 + $0x20] sm:$0xff] %vm821_vm5, %v761_v6  ;;  %v579_v6 = vsel %vm557_vm2, %v2264_v24, 0.0 }
 0x1cd   :  { %858 = vst.msk [vmem:[%s3607_s4 + $0x120] sm:$0xff] %vm821_vm5, %v793_v12  ;;  %v627_v12 = vsel %vm557_vm2, %v2250_v14, 0.0 }
 0x1ce   :  { %v716_v15 = vpop.xlane.xlu1 %715  ;;  %3650 = vst [vmem:[#allocation18_spill] sm:$0xff] %v2388_v5 }
 0x1cf   :  { %v809_v19 = vmul.f32 %v1967_v9, %v716_v15  ;;  %517 = vst.msk [vmem:[%s3606_s3 + $0xc0] sm:$0xff] %vm492_vm3, %v2388_v5  ;;  %v375_v15 = vpop.f32.mrf.mxu1 }
 0x1d1   :  { %v620_v20 = vpop.xlane.xlu2 %619  ;;  %874 = vst.msk [vmem:[%s3607_s4 + $0x1a0] sm:$0xff] %vm821_vm5, %v809_v19  ;;  %v2408_v19 = vadd.f32 %v1776_v16, %v375_v15  ;;  %v30_v15 = vld [vmem:[%s3604_s0 + $0x68] sm:$0xff] }
 0x1d2   :  { %v777_v22 = vmul.f32 %v1967_v9, %v620_v20  ;;  %v723_v20 = vsel %vm557_vm2, %v2333_v13, 0.0  ;;  %1616 = vmatmul.msk.f32.gmra.mxu0 %vm86_vm1, %v30_v15 }
 0x1d3   :  { %3651 = vst [vmem:[#allocation19_spill] sm:$0xff] %v2408_v19  ;;  %1647 = vmatmul.msk.f32.gmra.mxu2 %vm86_vm1, %v61_v57 }
 0x1d4   :  { %842 = vst.msk [vmem:[%s3607_s4 + $0xa0] sm:$0xff] %vm821_vm5, %v777_v22  ;;  %v45_v22 = vld [vmem:[%s3604_s0 + $0xe0] sm:$0xff] }
 0x1d5   :  { %518 = vst.msk [vmem:[%s3606_s3 + $0xc8] sm:$0xff] %vm492_vm3, %v2408_v19  ;;  %1631 = vmatmul.msk.f32.gmra.mxu1 %vm86_vm1, %v45_v22 }
 0x1d6   :  { %v671_v37 = vpop.xlane.xlu1 %670 }
 0x1d7   :  { %v794_v41 = vmul.f32 %v1967_v9, %v671_v37  ;;  %v327_v37 = vpop.f32.mrf.mxu0  ;;  %v378_v57 = vpop.f32.mrf.mxu1 }
 0x1d8   :  { %v2431_v58 = vadd.f32 %v1776_v16, %v327_v37 }
 0x1d9   :  { %859 = vst.msk [vmem:[%s3607_s4 + $0x128] sm:$0xff] %vm821_vm5, %v794_v41  ;;  %v468_v41 = vpop.f32.mrf.mxu3 }
 0x1da   :  { %502 = vst.msk [vmem:[%s3606_s3 + $0x48] sm:$0xff] %vm492_vm3, %v2431_v58 }
 0x1dc   :  { %v2425_v32 = vpop.permute.xlu0 %960 }
 0x1dd   :  { %3652 = vst [vmem:[#allocation20_spill] sm:$0xff] %v2425_v32 }
 0x1e1   :  { %v471_v7 = vpop.f32.mrf.mxu3 }
 0x1e2   :  { %676 = vadd.xlane.f32.xlu0 %v675_v61  ;;  %v2434_v61 = vadd.f32 %v1776_v16, %v468_v41 }
 0x1e4   :  { %549 = vst.msk [vmem:[%s3606_s3 + $0x1c0] sm:$0xff] %vm492_vm3, %v2434_v61 }
 0x1e8   :  { %673 = vadd.xlane.f32.xlu2 %v672_v63 }
 0x1e9   :  { %580 = vadd.xlane.f32.xlu1 %v579_v6  ;;  %v2450_v6 = vpop.permute.xlu2 %992 }
 0x1ea   :  { %3653 = vst [vmem:[#allocation21_spill] sm:$0xff] %v2450_v6 }
 0x1f0   :  { %628 = vadd.xlane.f32.xlu2 %v627_v12  ;;  %v2460_v12 = vadd.f32 %v1776_v16, %v471_v7 }
 0x1f1   :  { %724 = vadd.xlane.f32.xlu1 %v723_v20 }
 0x1f2   :  { %3654 = vst [vmem:[#allocation22_spill] sm:$0xff] %v2460_v12 }
 0x1f3   :  { %550 = vst.msk [vmem:[%s3606_s3 + $0x1c8] sm:$0xff] %vm492_vm3, %v2460_v12 }
 0x1f6   :  { %966 = vrot.lane.b32.xlu0 %v2358_v34, %s1677_s6 }
 0x1f9   :  { %679 = vadd.xlane.f32.xlu1 %v678_v29  ;;  %v2473_v29 = vpop.permute.xlu1 %994 }
 0x1fa   :  { %3655 = vst [vmem:[#allocation23_spill] sm:$0xff] %v2473_v29 }
 0x207   :  { %v623_v63 = vpop.xlane.xlu0 %622 }
 0x208   :  { %998 = vrot.lane.b32.xlu2 %v2388_v5, %s1677_s6  ;;  %v778_v1 = vmul.f32 %v1967_v9, %v623_v63  ;;  %v77_v63 = vld [vmem:[%s3604_s0 + $0x1e0] sm:$0xff] }
 0x209   :  { %1663 = vmatmul.msk.f32.gmra.mxu3 %vm86_vm1, %v77_v63  ;;  %v2516_v63 = vadd.f32 %v1776_v16, %v378_v57  ;;  %v78_v57 = vld [vmem:[%s3604_s0 + $0x1e8] sm:$0xff] }
 0x20a   :  { %843 = vst.msk [vmem:[%s3607_s4 + $0xa8] sm:$0xff] %vm821_vm5, %v778_v1 }
 0x20b   :  { %3656 = vst [vmem:[#allocation24_spill] sm:$0xff] %v2516_v63 }
 0x20c   :  { %519 = vst.msk [vmem:[%s3606_s3 + $0xd0] sm:$0xff] %vm492_vm3, %v2516_v63 }
 0x20f   :  { %v578_v20 = vpop.xlane.xlu0 %577 }
 0x210   :  { %v763_v22 = vmul.f32 %v1967_v9, %v578_v20 }
 0x211   :  { %1664 = vmatmul.msk.f32.gmra.mxu3 %vm86_vm1, %v78_v57 }
 0x212   :  { %v575_v37 = vpop.xlane.xlu2 %574  ;;  %1000 = vrot.lane.b32.xlu1 %v2408_v19, %s1677_s6  ;;  %828 = vst.msk [vmem:[%s3607_s4 + $0x30] sm:$0xff] %vm821_vm5, %v763_v22 }
 0x213   :  { %v762_v41 = vmul.f32 %v1967_v9, %v575_v37  ;;  %v62_v37 = vld [vmem:[%s3604_s0 + $0x168] sm:$0xff] }
 0x214   :  { %1648 = vmatmul.msk.f32.gmra.mxu2 %vm86_vm1, %v62_v37  ;;  %v31_v37 = vld [vmem:[%s3604_s0 + $0x70] sm:$0xff] }
 0x215   :  { %827 = vst.msk [vmem:[%s3607_s4 + $0x28] sm:$0xff] %vm821_vm5, %v762_v41  ;;  %v630_v41 = vsel %vm557_vm2, %v2388_v5, 0.0  ;;  %1617 = vmatmul.msk.f32.gmra.mxu0 %vm86_vm1, %v31_v37 }
 0x217   :  { %v722_v1 = vpop.xlane.xlu0 %721 }
 0x218   :  { %v811_v7 = vmul.f32 %v1967_v9, %v722_v1  ;;  %v585_v1 = vsel %vm557_vm2, %v2431_v58, 0.0 }
 0x219   :  { %v626_v15 = vpop.xlane.xlu1 %625 }
 0x21a   :  { %v719_v10 = vpop.xlane.xlu2 %718  ;;  %876 = vst.msk [vmem:[%s3607_s4 + $0x1b0] sm:$0xff] %vm821_vm5, %v811_v7  ;;  %v779_v22 = vmul.f32 %v1967_v9, %v626_v15  ;;  %v582_v7 = vsel %vm557_vm2, %v2358_v34, 0.0  ;;  %v330_v15 = vpop.f32.mrf.mxu0 }
 0x21b   :  { %v810_v20 = vmul.f32 %v1967_v9, %v719_v10  ;;  %v729_v10 = vsel %vm557_vm2, %v2460_v12, 0.0 }
 0x21c   :  { %844 = vst.msk [vmem:[%s3607_s4 + $0xb0] sm:$0xff] %vm821_vm5, %v779_v22  ;;  %v726_v22 = vsel %vm557_vm2, %v2434_v61, 0.0 }
 0x21d   :  { %875 = vst.msk [vmem:[%s3607_s4 + $0x1a8] sm:$0xff] %vm821_vm5, %v810_v20  ;;  %v2530_v20 = vadd.f32 %v1776_v16, %v330_v15 }
 0x21f   :  { %503 = vst.msk [vmem:[%s3606_s3 + $0x50] sm:$0xff] %vm492_vm3, %v2530_v20 }
 0x220   :  { %631 = vadd.xlane.f32.xlu0 %v630_v41  ;;  %v633_v41 = vsel %vm557_vm2, %v2408_v19, 0.0 }
 0x228   :  { %586 = vadd.xlane.f32.xlu0 %v585_v1  ;;  %v46_v1 = vld [vmem:[%s3604_s0 + $0xe8] sm:$0xff] }
 0x229   :  { %1632 = vmatmul.msk.f32.gmra.mxu1 %vm86_vm1, %v46_v1  ;;  %v48_v1 = vld [vmem:[%s3604_s0 + $0xf8] sm:$0xff] }
 0x22a   :  { %v2574_v57 = vpop.permute.xlu0 %996 }
 0x22b   :  { %3657 = vst [vmem:[#allocation25_spill] sm:$0xff] %v2574_v57  ;;  %v333_v57 = vpop.f32.mrf.mxu0 }
 0x22c   :  { %v2599_v62 = vadd.f32 %v1776_v16, %v333_v57  ;;  %v474_v57 = vpop.f32.mrf.mxu3 }
 0x22e   :  { %3658 = vst [vmem:[#allocation26_spill] sm:$0xff] %v2599_v62 }
 0x22f   :  { %504 = vst.msk [vmem:[%s3606_s3 + $0x58] sm:$0xff] %vm492_vm3, %v2599_v62 }
 0x230   :  { %730 = vadd.xlane.f32.xlu0 %v729_v10  ;;  %v63_v10 = vld [vmem:[%s3604_s0 + $0x170] sm:$0xff] }
 0x231   :  { %583 = vadd.xlane.f32.xlu2 %v582_v7  ;;  %v423_v7 = vpop.f32.mrf.mxu2  ;;  %1649 = vmatmul.msk.f32.gmra.mxu2 %vm86_vm1, %v63_v10  ;;  %v2589_v10 = vpop.permute.xlu1 %964 }
 0x232   :  { %v2557_v15 = vadd.f32 %v1776_v16, %v423_v7  ;;  %v2587_v7 = vpop.permute.xlu2 %962 }
 0x234   :  { %534 = vst.msk [vmem:[%s3606_s3 + $0x148] sm:$0xff] %vm492_vm3, %v2557_v15 }
 0x239   :  { %727 = vadd.xlane.f32.xlu2 %v726_v22  ;;  %v47_v22 = vld [vmem:[%s3604_s0 + $0xf0] sm:$0xff]  ;;  %v426_v37 = vpop.f32.mrf.mxu2 }
 0x23a   :  { %1633 = vmatmul.msk.f32.gmra.mxu1 %vm86_vm1, %v47_v22 }
 0x23c   :  { %634 = vadd.xlane.f32.xlu1 %v633_v41  ;;  %v2572_v41 = vadd.f32 %v1776_v16, %v426_v37 }
 0x23e   :  { %535 = vst.msk [vmem:[%s3606_s3 + $0x150] sm:$0xff] %vm492_vm3, %v2572_v41 }
 0x242   :  { %1634 = vmatmul.msk.f32.gmra.mxu1 %vm86_vm1, %v48_v1 }
 0x244   :  { %1002 = vrot.lane.b32.xlu0 %v2516_v63, %s1677_s6 }
 0x251   :  { %968 = vrot.lane.b32.xlu2 %v2431_v58, %s1677_s6 }
 0x255   :  { %970 = vrot.lane.b32.xlu1 %v2530_v20, %s1677_s6  ;;  %v677_v22 = vpop.xlane.xlu0 %676 }
 0x256   :  { %v796_v37 = vmul.f32 %v1967_v9, %v677_v22 }
 0x258   :  { %861 = vst.msk [vmem:[%s3607_s4 + $0x138] sm:$0xff] %vm821_vm5, %v796_v37  ;;  %v79_v37 = vld [vmem:[%s3604_s0 + $0x1f0] sm:$0xff] }
 0x259   :  { %1665 = vmatmul.msk.f32.gmra.mxu3 %vm86_vm1, %v79_v37  ;;  %v429_v37 = vpop.f32.mrf.mxu2 }
 0x25b   :  { %v674_v14 = vpop.xlane.xlu2 %673 }
 0x25c   :  { %v795_v1 = vmul.f32 %v1967_v9, %v674_v14  ;;  %v581_v21 = vpop.xlane.xlu1 %580 }
 0x25d   :  { %v764_v22 = vmul.f32 %v1967_v9, %v581_v21 }
 0x25e   :  { %860 = vst.msk [vmem:[%s3607_s4 + $0x130] sm:$0xff] %vm821_vm5, %v795_v1  ;;  %v2622_v1 = vadd.f32 %v1776_v16, %v474_v57  ;;  %v684_v57 = vsel %vm557_vm2, %v2572_v41, 0.0 }
 0x25f   :  { %829 = vst.msk [vmem:[%s3607_s4 + $0x38] sm:$0xff] %vm821_vm5, %v764_v22  ;;  %v32_v22 = vld [vmem:[%s3604_s0 + $0x78] sm:$0xff] }
 0x260   :  { %551 = vst.msk [vmem:[%s3606_s3 + $0x1d0] sm:$0xff] %vm492_vm3, %v2622_v1  ;;  %1618 = vmatmul.msk.f32.gmra.mxu0 %vm86_vm1, %v32_v22  ;;  %v2657_v22 = vadd.f32 %v1776_v16, %v429_v37  ;;  %v588_v37 = vsel %vm557_vm2, %v2530_v20, 0.0 }
 0x262   :  { %536 = vst.msk [vmem:[%s3606_s3 + $0x158] sm:$0xff] %vm492_vm3, %v2657_v22 }
 0x263   :  { %v629_v14 = vpop.xlane.xlu2 %628 }
 0x264   :  { %v780_v53 = vmul.f32 %v1967_v9, %v629_v14  ;;  %v725_v33 = vpop.xlane.xlu1 %724 }
 0x265   :  { %v812_v21 = vmul.f32 %v1967_v9, %v725_v33  ;;  %v80_v33 = vld [vmem:[%s3604_s0 + $0x1f8] sm:$0xff] }
 0x266   :  { %845 = vst.msk [vmem:[%s3607_s4 + $0xb8] sm:$0xff] %vm821_vm5, %v780_v53  ;;  %v381_v53 = vpop.f32.mrf.mxu1  ;;  %1666 = vmatmul.msk.f32.gmra.mxu3 %vm86_vm1, %v80_v33 }
 0x267   :  { %877 = vst.msk [vmem:[%s3607_s4 + $0x1b8] sm:$0xff] %vm821_vm5, %v812_v21  ;;  %v2646_v14 = vadd.f32 %v1776_v16, %v381_v53 }
 0x269   :  { %3659 = vst [vmem:[#allocation27_spill] sm:$0xff] %v2646_v14 }
 0x26a   :  { %520 = vst.msk [vmem:[%s3606_s3 + $0xd8] sm:$0xff] %vm492_vm3, %v2646_v14 }
 0x26c   :  { %v680_v21 = vpop.xlane.xlu1 %679 }
 0x26d   :  { %v797_v34 = vmul.f32 %v1967_v9, %v680_v21  ;;  %v732_v21 = vsel %vm557_vm2, %v2622_v1, 0.0 }
 0x26e   :  { %685 = vadd.xlane.f32.xlu0 %v684_v57  ;;  %v384_v53 = vpop.f32.mrf.mxu1  ;;  %v681_v57 = vsel %vm557_vm2, %v2557_v15, 0.0 }
 0x26f   :  { %862 = vst.msk [vmem:[%s3607_s4 + $0x140] sm:$0xff] %vm821_vm5, %v797_v34  ;;  %v2670_v33 = vadd.f32 %v1776_v16, %v384_v53  ;;  %v636_v34 = vsel %vm557_vm2, %v2516_v63, 0.0  ;;  %v336_v53 = vpop.f32.mrf.mxu0 }
 0x270   :  { %v2688_v32 = vadd.f32 %v1776_v16, %v336_v53 }
 0x271   :  { %521 = vst.msk [vmem:[%s3606_s3 + $0xe0] sm:$0xff] %vm492_vm3, %v2670_v33 }
 0x272   :  { %505 = vst.msk [vmem:[%s3606_s3 + $0x60] sm:$0xff] %vm492_vm3, %v2688_v32 }
 0x27a   :  { %682 = vadd.xlane.f32.xlu2 %v681_v57  ;;  %v2695_v57 = vpop.permute.xlu0 %966 }
 0x27b   :  { %3660 = vst [vmem:[#allocation28_spill] sm:$0xff] %v2695_v57 }
 0x27f   :  { %589 = vadd.xlane.f32.xlu1 %v588_v37  ;;  %v687_v37 = vsel %vm557_vm2, %v2657_v22, 0.0 }
 0x282   :  { %637 = vadd.xlane.f32.xlu2 %v636_v34  ;;  %972 = vrot.lane.b32.xlu0 %v2599_v62, %s1677_s6  ;;  %v339_v34 = vpop.f32.mrf.mxu0 }
 0x283   :  { %v2700_v63 = vadd.f32 %v1776_v16, %v339_v34 }
 0x285   :  { %506 = vst.msk [vmem:[%s3606_s3 + $0x68] sm:$0xff] %vm492_vm3, %v2700_v63 }
 0x287   :  { %733 = vadd.xlane.f32.xlu1 %v732_v21  ;;  %v477_v21 = vpop.f32.mrf.mxu3 }
 0x288   :  { %v2708_v53 = vadd.f32 %v1776_v16, %v477_v21  ;;  %v432_v21 = vpop.f32.mrf.mxu2 }
 0x289   :  { %v2725_v50 = vadd.f32 %v1776_v16, %v432_v21 }
 0x28a   :  { %552 = vst.msk [vmem:[%s3606_s3 + $0x1d8] sm:$0xff] %vm492_vm3, %v2708_v53  ;;  %v735_v29 = vsel %vm557_vm2, %v2708_v53, 0.0 }
 0x28b   :  { %3661 = vst [vmem:[#allocation29_spill] sm:$0xff] %v2725_v50 }
 0x28c   :  { %537 = vst.msk [vmem:[%s3606_s3 + $0x160] sm:$0xff] %vm492_vm3, %v2725_v50 }
 0x28f   :  { %688 = vadd.xlane.f32.xlu1 %v687_v37  ;;  %v642_v37 = vsel %vm557_vm2, %v2670_v33, 0.0  ;;  %v480_v57 = vpop.f32.mrf.mxu3 }
 0x290   :  { %v2728_v38 = vadd.f32 %v1776_v16, %v480_v57 }
 0x292   :  { %3662 = vst [vmem:[#allocation30_spill] sm:$0xff] %v2728_v38 }
 0x293   :  { %v632_v11 = vpop.xlane.xlu0 %631  ;;  %553 = vst.msk [vmem:[%s3606_s3 + $0x1e0] sm:$0xff] %vm492_vm3, %v2728_v38 }
 0x294   :  { %v781_v34 = vmul.f32 %v1967_v9, %v632_v11  ;;  %v2730_v11 = vpop.permute.xlu2 %998 }
 0x295   :  { %3663 = vst [vmem:[#allocation31_spill] sm:$0xff] %v2730_v11 }
 0x296   :  { %846 = vst.msk [vmem:[%s3607_s4 + $0xc0] sm:$0xff] %vm821_vm5, %v781_v34 }
 0x297   :  { %643 = vadd.xlane.f32.xlu1 %v642_v37  ;;  %v435_v57 = vpop.f32.mrf.mxu2 }
 0x298   :  { %v2748_v37 = vadd.f32 %v1776_v16, %v435_v57  ;;  %v64_v16 = vld [vmem:[%s3604_s0 + $0x178] sm:$0xff] }
 0x299   :  { %1650 = vmatmul.msk.f32.gmra.mxu2 %vm86_vm1, %v64_v16  ;;  %v342_v16 = vpop.f32.mrf.mxu0 }
 0x29a   :  { %1004 = vrot.lane.b32.xlu2 %v2646_v14, %s1677_s6  ;;  %538 = vst.msk [vmem:[%s3606_s3 + $0x168] sm:$0xff] %vm492_vm3, %v2748_v37 }
 0x29b   :  { %v587_v12 = vpop.xlane.xlu0 %586 }
 0x29c   :  { %v766_v34 = vmul.f32 %v1967_v9, %v587_v12 }
 0x29e   :  { %831 = vst.msk [vmem:[%s3607_s4 + $0x48] sm:$0xff] %vm821_vm5, %v766_v34  ;;  %v2761_v34 = vpop.permute.xlu1 %1000 }
 0x29f   :  { %3664 = vst [vmem:[#allocation32_spill] sm:$0xff] %v2761_v34  ;;  %v594_v34 = vsel %vm557_vm2, %v2688_v32, 0.0 }
 0x2a3   :  { %v731_v19 = vpop.xlane.xlu0 %730 }
 0x2a4   :  { %v584_v21 = vpop.xlane.xlu2 %583  ;;  %v814_v60 = vmul.f32 %v1967_v9, %v731_v19  ;;  %v639_v19 = vsel %vm557_vm2, %v2646_v14, 0.0 }
 0x2a5   :  { %v765_v12 = vmul.f32 %v1967_v9, %v584_v21 }
 0x2a6   :  { %879 = vst.msk [vmem:[%s3607_s4 + $0x1c8] sm:$0xff] %vm821_vm5, %v814_v60 }
 0x2a7   :  { %830 = vst.msk [vmem:[%s3607_s4 + $0x40] sm:$0xff] %vm821_vm5, %v765_v12 }
 0x2ac   :  { %v728_v57 = vpop.xlane.xlu2 %727  ;;  %640 = vadd.xlane.f32.xlu0 %v639_v19 }
 0x2ad   :  { %v813_v21 = vmul.f32 %v1967_v9, %v728_v57  ;;  %v2790_v57 = vld [vmem:[%s3605_s2] ss:$0 sm:$0xff] }
 0x2ae   :  { %v2793_v19 = vadd.f32 %v2790_v57, %v342_v16  ;;  %v591_v16 = vsel %vm557_vm2, %v2599_v62, 0.0 }
 0x2af   :  { %878 = vst.msk [vmem:[%s3607_s4 + $0x1c0] sm:$0xff] %vm821_vm5, %v813_v21  ;;  %v635_v12 = vpop.xlane.xlu1 %634  ;;  %v738_v21 = vsel %vm557_vm2, %v2728_v38, 0.0  ;;  %v693_v38 = vsel %vm557_vm2, %v2748_v37, 0.0 }
 0x2b0   :  { %976 = vrot.lane.b32.xlu1 %v2700_v63, %s1677_s6  ;;  %v782_v60 = vmul.f32 %v1967_v9, %v635_v12  ;;  %507 = vst.msk [vmem:[%s3606_s3 + $0x70] sm:$0xff] %vm492_vm3, %v2793_v19  ;;  %v387_v12 = vpop.f32.mrf.mxu1 }
 0x2b2   :  { %847 = vst.msk [vmem:[%s3607_s4 + $0xc8] sm:$0xff] %vm821_vm5, %v782_v60  ;;  %v483_v60 = vpop.f32.mrf.mxu3 }
 0x2b3   :  { %v2813_v14 = vadd.f32 %v2790_v57, %v483_v60 }
 0x2b4   :  { %595 = vadd.xlane.f32.xlu0 %v594_v34  ;;  %v2803_v34 = vadd.f32 %v2790_v57, %v387_v12  ;;  %v438_v12 = vpop.f32.mrf.mxu2  ;;  %v2859_v11 = vpop.permute.xlu2 %968 }
 0x2b5   :  { %554 = vst.msk [vmem:[%s3606_s3 + $0x1e8] sm:$0xff] %vm492_vm3, %v2813_v14  ;;  %v2828_v60 = vadd.f32 %v2790_v57, %v438_v12  ;;  %v741_v12 = vsel %vm557_vm2, %v2813_v14, 0.0 }
 0x2b6   :  { %522 = vst.msk [vmem:[%s3606_s3 + $0xe8] sm:$0xff] %vm492_vm3, %v2803_v34 }
 0x2b7   :  { %539 = vst.msk [vmem:[%s3606_s3 + $0x170] sm:$0xff] %vm492_vm3, %v2828_v60  ;;  %v696_v8 = vsel %vm557_vm2, %v2828_v60, 0.0 }
 0x2bc   :  { %739 = vadd.xlane.f32.xlu0 %v738_v21  ;;  %v390_v21 = vpop.f32.mrf.mxu1 }
 0x2bd   :  { %v2825_v62 = vadd.f32 %v2790_v57, %v390_v21  ;;  %v597_v21 = vsel %vm557_vm2, %v2700_v63, 0.0 }
 0x2bf   :  { %523 = vst.msk [vmem:[%s3606_s3 + $0xf0] sm:$0xff] %vm492_vm3, %v2825_v62 }
 0x2c3   :  { %592 = vadd.xlane.f32.xlu2 %v591_v16 }
 0x2c4   :  { %694 = vadd.xlane.f32.xlu0 %v693_v38  ;;  %v393_v38 = vpop.f32.mrf.mxu1 }
 0x2c5   :  { %v2841_v16 = vadd.f32 %v2790_v57, %v393_v38 }
 0x2c7   :  { %524 = vst.msk [vmem:[%s3606_s3 + $0xf8] sm:$0xff] %vm492_vm3, %v2841_v16 }
 0x2cb   :  { %736 = vadd.xlane.f32.xlu2 %v735_v29  ;;  %v2852_v29 = vpop.permute.xlu0 %1002 }
 0x2cc   :  { %3665 = vst [vmem:[#allocation33_spill] sm:$0xff] %v2852_v29 }
 0x2d8   :  { %978 = vrot.lane.b32.xlu0 %v2793_v19, %s1677_s6 }
 0x2da   :  { %598 = vadd.xlane.f32.xlu1 %v597_v21 }
 0x2dc   :  { %v486_v29 = vpop.f32.mrf.mxu3 }
 0x2dd   :  { %v345_v5 = vpop.f32.mrf.mxu0  ;;  %v2871_v49 = vadd.f32 %v2790_v57, %v486_v29 }
 0x2de   :  { %v2866_v21 = vadd.f32 %v2790_v57, %v345_v5 }
 0x2df   :  { %3666 = vst [vmem:[#allocation34_spill] sm:$0xff] %v2871_v49 }
 0x2e0   :  { %508 = vst.msk [vmem:[%s3606_s3 + $0x78] sm:$0xff] %vm492_vm3, %v2866_v21 }
 0x2e1   :  { %v686_v38 = vpop.xlane.xlu0 %685  ;;  %555 = vst.msk [vmem:[%s3606_s3 + $0x1f0] sm:$0xff] %vm492_vm3, %v2871_v49 }
 0x2e2   :  { %742 = vadd.xlane.f32.xlu1 %v741_v12  ;;  %v799_v26 = vmul.f32 %v1967_v9, %v686_v38  ;;  %v651_v38 = vsel %vm557_vm2, %v2841_v16, 0.0 }
 0x2e3   :  { %974 = vrot.lane.b32.xlu2 %v2688_v32, %s1677_s6 }
 0x2e4   :  { %864 = vst.msk [vmem:[%s3607_s4 + $0x150] sm:$0xff] %vm821_vm5, %v799_v26  ;;  %v2883_v26 = vpop.permute.xlu1 %970 }
 0x2e9   :  { %v489_v29 = vpop.f32.mrf.mxu3 }
 0x2ea   :  { %697 = vadd.xlane.f32.xlu1 %v696_v8  ;;  %v2893_v51 = vadd.f32 %v2790_v57, %v489_v29 }
 0x2ec   :  { %556 = vst.msk [vmem:[%s3606_s3 + $0x1f8] sm:$0xff] %vm492_vm3, %v2893_v51 }
 0x2ed   :  { %v683_v5 = vpop.xlane.xlu2 %682 }
 0x2ee   :  { %v798_v12 = vmul.f32 %v1967_v9, %v683_v5 }
 0x2f0   :  { %863 = vst.msk [vmem:[%s3607_s4 + $0x148] sm:$0xff] %vm821_vm5, %v798_v12 }
 0x2f2   :  { %652 = vadd.xlane.f32.xlu1 %v651_v38  ;;  %v590_v8 = vpop.xlane.xlu1 %589 }
 0x2f3   :  { %v767_v5 = vmul.f32 %v1967_v9, %v590_v8 }
 0x2f5   :  { %v638_v6 = vpop.xlane.xlu2 %637  ;;  %832 = vst.msk [vmem:[%s3607_s4 + $0x50] sm:$0xff] %vm821_vm5, %v767_v5  ;;  %v690_v5 = vsel %vm557_vm2, %v2725_v50, 0.0 }
 0x2f6   :  { %v783_v17 = vmul.f32 %v1967_v9, %v638_v6  ;;  %v648_v6 = vsel %vm557_vm2, %v2825_v62, 0.0 }
 0x2f8   :  { %848 = vst.msk [vmem:[%s3607_s4 + $0xd0] sm:$0xff] %vm821_vm5, %v783_v17  ;;  %v603_v17 = vsel %vm557_vm2, %v2866_v21, 0.0 }
 0x2fa   :  { %v734_v12 = vpop.xlane.xlu1 %733 }
 0x2fb   :  { %v815_v29 = vmul.f32 %v1967_v9, %v734_v12 }
 0x2fd   :  { %880 = vst.msk [vmem:[%s3607_s4 + $0x1d0] sm:$0xff] %vm821_vm5, %v815_v29 }
 0x302   :  { %649 = vadd.xlane.f32.xlu0 %v648_v6  ;;  %v689_v38 = vpop.xlane.xlu1 %688  ;;  %v747_v6 = vsel %vm557_vm2, %v2893_v51, 0.0 }
 0x303   :  { %v800_v8 = vmul.f32 %v1967_v9, %v689_v38  ;;  %v645_v38 = vsel %vm557_vm2, %v2803_v34, 0.0 }
 0x305   :  { %865 = vst.msk [vmem:[%s3607_s4 + $0x158] sm:$0xff] %vm821_vm5, %v800_v8  ;;  %v2939_v8 = vpop.permute.xlu0 %972 }
 0x30a   :  { %604 = vadd.xlane.f32.xlu0 %v603_v17  ;;  %v644_v12 = vpop.xlane.xlu1 %643  ;;  %v600_v17 = vsel %vm557_vm2, %v2793_v19, 0.0 }
 0x30b   :  { %1006 = vrot.lane.b32.xlu1 %v2670_v33, %s1677_s6  ;;  %v785_v29 = vmul.f32 %v1967_v9, %v644_v12 }
 0x30c   :  { %691 = vadd.xlane.f32.xlu2 %v690_v5 }
 0x30d   :  { %850 = vst.msk [vmem:[%s3607_s4 + $0xe0] sm:$0xff] %vm821_vm5, %v785_v29  ;;  %v744_v29 = vsel %vm557_vm2, %v2871_v49, 0.0 }
 0x312   :  { %748 = vadd.xlane.f32.xlu0 %v747_v6 }
 0x313   :  { %1012 = vrot.lane.b32.xlu1 %v2841_v16, %s1677_s6 }
 0x314   :  { %646 = vadd.xlane.f32.xlu2 %v645_v38 }
 0x31b   :  { %1018 = vrot.lane.b32.xlu1 %v1877_v42, %s1677_s6 }
 0x31c   :  { %601 = vadd.xlane.f32.xlu2 %v600_v17  ;;  %v2963_v17 = vpop.permute.xlu2 %1004 }
 0x31f   :  { %v641_v5 = vpop.xlane.xlu0 %640 }
 0x320   :  { %v784_v12 = vmul.f32 %v1967_v9, %v641_v5  ;;  %v441_v5 = vpop.f32.mrf.mxu2 }
 0x322   :  { %849 = vst.msk [vmem:[%s3607_s4 + $0xd8] sm:$0xff] %vm821_vm5, %v784_v12 }
 0x323   :  { %1024 = vrot.lane.b32.xlu1 %v2099_v4, %s1677_s6 }
 0x324   :  { %745 = vadd.xlane.f32.xlu2 %v744_v29  ;;  %v2968_v29 = vadd.f32 %v2790_v57, %v441_v5 }
 0x326   :  { %1008 = vrot.lane.b32.xlu0 %v2803_v34, %s1677_s6  ;;  %540 = vst.msk [vmem:[%s3606_s3 + $0x178] sm:$0xff] %vm492_vm3, %v2968_v29 }
 0x327   :  { %v596_v6 = vpop.xlane.xlu0 %595 }
 0x328   :  { %v769_v38 = vmul.f32 %v1967_v9, %v596_v6 }
 0x32a   :  { %834 = vst.msk [vmem:[%s3607_s4 + $0x60] sm:$0xff] %vm821_vm5, %v769_v38 }
 0x32b   :  { %1030 = vrot.lane.b32.xlu1 %v2351_v31, %s1677_s6 }
 0x32e   :  { %1014 = vrot.lane.b32.xlu0 %v1807_v25, %s1677_s6 }
 0x32f   :  { %v740_v12 = vpop.xlane.xlu0 %739 }
 0x330   :  { %v817_v6 = vmul.f32 %v1967_v9, %v740_v12 }
 0x332   :  { %882 = vst.msk [vmem:[%s3607_s4 + $0x1e0] sm:$0xff] %vm821_vm5, %v817_v6 }
 0x333   :  { %1036 = vrot.lane.b32.xlu1 %v2657_v22, %s1677_s6 }
 0x336   :  { %v593_v38 = vpop.xlane.xlu2 %592  ;;  %1020 = vrot.lane.b32.xlu0 %v2039_v45, %s1677_s6 }
 0x337   :  { %v768_v57 = vmul.f32 %v1967_v9, %v593_v38  ;;  %v695_v5 = vpop.xlane.xlu0 %694 }
 0x338   :  { %v802_v12 = vmul.f32 %v1967_v9, %v695_v5 }
 0x339   :  { %833 = vst.msk [vmem:[%s3607_s4 + $0x58] sm:$0xff] %vm821_vm5, %v768_v57  ;;  %v3007_v57 = vpop.permute.xlu1 %976 }
 0x33a   :  { %867 = vst.msk [vmem:[%s3607_s4 + $0x168] sm:$0xff] %vm821_vm5, %v802_v12 }
 0x33b   :  { %1042 = vrot.lane.b32.xlu1 %v2828_v60, %s1677_s6 }
 0x33c   :  { %980 = vrot.lane.b32.xlu2 %v2866_v21, %s1677_s6 }
 0x33e   :  { %v737_v6 = vpop.xlane.xlu2 %736  ;;  %1026 = vrot.lane.b32.xlu0 %v2286_v46, %s1677_s6 }
 0x33f   :  { %v816_v38 = vmul.f32 %v1967_v9, %v737_v6 }
 0x341   :  { %881 = vst.msk [vmem:[%s3607_s4 + $0x1d8] sm:$0xff] %vm821_vm5, %v816_v38 }
 0x343   :  { %1048 = vrot.lane.b32.xlu1 %v1845_v35, %s1677_s6 }
 0x346   :  { %1032 = vrot.lane.b32.xlu0 %v2557_v15, %s1677_s6 }
 0x34b   :  { %1054 = vrot.lane.b32.xlu1 %v2076_v56, %s1677_s6 }
 0x34d   :  { %v599_v5 = vpop.xlane.xlu1 %598 }
 0x34e   :  { %1038 = vrot.lane.b32.xlu0 %v2725_v50, %s1677_s6  ;;  %v770_v12 = vmul.f32 %v1967_v9, %v599_v5 }
 0x350   :  { %835 = vst.msk [vmem:[%s3607_s4 + $0x68] sm:$0xff] %vm821_vm5, %v770_v12 }
 0x353   :  { %1060 = vrot.lane.b32.xlu1 %v2333_v13, %s1677_s6 }
 0x355   :  { %v743_v6 = vpop.xlane.xlu1 %742 }
 0x356   :  { %1044 = vrot.lane.b32.xlu0 %v2968_v29, %s1677_s6  ;;  %v818_v38 = vmul.f32 %v1967_v9, %v743_v6  ;;  %v699_v6 = vsel %vm557_vm2, %v2968_v29, 0.0 }
 0x358   :  { %883 = vst.msk [vmem:[%s3607_s4 + $0x1e8] sm:$0xff] %vm821_vm5, %v818_v38  ;;  %v1142_v38 = vadd.f32 %v2027_v36, %v1779_v18  ;;  %v1148_v36 = vadd.f32 %v2587_v7, %v2183_v44  ;;  %v1151_v44 = vadd.f32 %v2859_v11, %v2431_v58 }
 0x35a   :  { %v1215_v58 = vmul.f32 0.5, %v1151_v44 }
 0x35b   :  { %1066 = vrot.lane.b32.xlu1 %v2622_v1, %s1677_s6 }
 0x35d   :  { %v698_v5 = vpop.xlane.xlu1 %697 }
 0x35e   :  { %1050 = vrot.lane.b32.xlu0 %v1945_v0, %s1677_s6  ;;  %v803_v12 = vmul.f32 %v1967_v9, %v698_v5  ;;  %v3054_v0 = vpop.permute.xlu0 %978 }
 0x360   :  { %868 = vst.msk [vmem:[%s3607_s4 + $0x170] sm:$0xff] %vm821_vm5, %v803_v12  ;;  %v1206_v12 = vmul.f32 0.5, %v1142_v38 }
 0x363   :  { %1072 = vrot.lane.b32.xlu1 %v2813_v14, %s1677_s6 }
 0x365   :  { %700 = vadd.xlane.f32.xlu2 %v699_v6  ;;  %v653_v50 = vpop.xlane.xlu1 %652  ;;  %v1145_v6 = vadd.f32 %v2293_v55, %v1953_v3  ;;  %v1212_v3 = vmul.f32 0.5, %v1148_v36  ;;  %v1143_v36 = vadd.f32 %v2073_v54, %v1820_v30 }
 0x366   :  { %1056 = vrot.lane.b32.xlu0 %v2191_v48, %s1677_s6  ;;  %v788_v5 = vmul.f32 %v1967_v9, %v653_v50 }
 0x367   :  { %v1209_v18 = vmul.f32 0.5, %v1145_v6  ;;  %v1207_v11 = vmul.f32 0.5, %v1143_v36 }
 0x368   :  { %853 = vst.msk [vmem:[%s3607_s4 + $0xf8] sm:$0xff] %vm821_vm5, %v788_v5  ;;  %v975_v5 = vpop.permute.xlu2 %974 }
 0x36b   :  { %1334 = vrot.lane.b32.xlu1 %v1206_v12, %s1679_s10 }
 0x36e   :  { %1062 = vrot.lane.b32.xlu0 %v2434_v61, %s1677_s6 }
 0x373   :  { %1340 = vrot.lane.b32.xlu1 %v1209_v18, %s1679_s10 }
 0x375   :  { %v650_v50 = vpop.xlane.xlu0 %649 }
 0x376   :  { %1068 = vrot.lane.b32.xlu0 %v2708_v53, %s1677_s6  ;;  %v787_v38 = vmul.f32 %v1967_v9, %v650_v50  ;;  %v1154_v50 = vadd.f32 %v975_v5, %v2688_v32 }
 0x378   :  { %852 = vst.msk [vmem:[%s3607_s4 + $0xf0] sm:$0xff] %vm821_vm5, %v787_v38 }
 0x37b   :  { %1346 = vrot.lane.b32.xlu1 %v1212_v3, %s1679_s10 }
 0x37d   :  { %1010 = vrot.lane.b32.xlu2 %v2825_v62, %s1677_s6  ;;  %v3073_v55 = vpop.permute.xlu1 %1006  ;;  %v605_v7 = vpop.xlane.xlu0 %604 }
 0x37e   :  { %1074 = vrot.lane.b32.xlu0 %v2871_v49, %s1677_s6  ;;  %v772_v6 = vmul.f32 %v1967_v9, %v605_v7  ;;  %v1146_v7 = vadd.f32 %v2323_v2, %v2010_v27 }
 0x37f   :  { %v692_v12 = vpop.xlane.xlu2 %691 }
 0x380   :  { %v801_v18 = vmul.f32 %v1967_v9, %v692_v12  ;;  %837 = vst.msk [vmem:[%s3607_s4 + $0x78] sm:$0xff] %vm821_vm5, %v772_v6  ;;  %v1218_v12 = vmul.f32 0.5, %v1154_v50  ;;  %v1210_v32 = vmul.f32 0.5, %v1146_v7  ;;  %v1149_v6 = vadd.f32 %v2589_v10, %v2264_v24 }
 0x381   :  { %v1152_v50 = vadd.f32 %v2883_v26, %v2530_v20  ;;  %v1155_v20 = vadd.f32 %v3007_v57, %v2700_v63 }
 0x382   :  { %866 = vst.msk [vmem:[%s3607_s4 + $0x160] sm:$0xff] %vm821_vm5, %v801_v18  ;;  %v1213_v18 = vmul.f32 0.5, %v1149_v6  ;;  %v3668_v6 = vld [vmem:[#allocation21_spill] sm:$0xff] }
 0x383   :  { %1352 = vrot.lane.b32.xlu1 %v1215_v58, %s1679_s10  ;;  %v1216_v10 = vmul.f32 0.5, %v1152_v50  ;;  %v1219_v7 = vmul.f32 0.5, %v1155_v20 }
 0x385   :  { %1016 = vrot.lane.b32.xlu2 %v1856_v39, %s1677_s6  ;;  %v3093_v30 = vpop.permute.xlu1 %1012  ;;  %v749_v54 = vpop.xlane.xlu0 %748 }
 0x386   :  { %1336 = vrot.lane.b32.xlu0 %v1207_v11, %s1679_s10  ;;  %v820_v3 = vmul.f32 %v1967_v9, %v749_v54 }
 0x387   :  { %v647_v38 = vpop.xlane.xlu2 %646 }
 0x388   :  { %v786_v44 = vmul.f32 %v1967_v9, %v647_v38  ;;  %885 = vst.msk [vmem:[%s3607_s4 + $0x1f8] sm:$0xff] %vm821_vm5, %v820_v3 }
 0x38a   :  { %851 = vst.msk [vmem:[%s3607_s4 + $0xe8] sm:$0xff] %vm821_vm5, %v786_v44 }
 0x38b   :  { %1358 = vrot.lane.b32.xlu1 %v1218_v12, %s1679_s10  ;;  %v1160_v12 = vadd.f32 %v2180_v43, %v1895_v47  ;;  %v3669_v43 = vld [vmem:[#allocation4_spill] sm:$0xff] }
 0x38d   :  { %1022 = vrot.lane.b32.xlu2 %v2060_v52, %s1677_s6  ;;  %v3111_v5 = vpop.permute.xlu1 %1018  ;;  %v1224_v57 = vmul.f32 0.5, %v1160_v12  ;;  %v3675_v12 = vld [vmem:[#allocation23_spill] sm:$0xff] }
 0x38e   :  { %1342 = vrot.lane.b32.xlu0 %v1210_v32, %s1679_s10 }
 0x38f   :  { %v602_v27 = vpop.xlane.xlu2 %601 }
 0x390   :  { %v771_v2 = vmul.f32 %v1967_v9, %v602_v27 }
 0x392   :  { %836 = vst.msk [vmem:[%s3607_s4 + $0x70] sm:$0xff] %vm821_vm5, %v771_v2  ;;  %v3667_v2 = vld [vmem:[#allocation10_spill] sm:$0xff] }
 0x395   :  { %1028 = vrot.lane.b32.xlu2 %v2305_v59, %s1677_s6  ;;  %v3123_v36 = vpop.permute.xlu1 %1024 }
 0x396   :  { %1348 = vrot.lane.b32.xlu0 %v1213_v18, %s1679_s10  ;;  %v1163_v18 = vadd.f32 %v3668_v6, %v3667_v2  ;;  %v3676_v6 = vld [vmem:[#allocation14_spill] sm:$0xff] }
 0x397   :  { %v746_v58 = vpop.xlane.xlu2 %745 }
 0x398   :  { %v819_v11 = vmul.f32 %v1967_v9, %v746_v58  ;;  %v3129_v24 = vpop.permute.xlu0 %1008  ;;  %v3670_v58 = vld [vmem:[#allocation12_spill] sm:$0xff] }
 0x39a   :  { %884 = vst.msk [vmem:[%s3607_s4 + $0x1f0] sm:$0xff] %vm821_vm5, %v819_v11  ;;  %v1161_v11 = vadd.f32 %v3670_v58, %v3669_v43 }
 0x39c   :  { %v1225_v50 = vmul.f32 0.5, %v1161_v11  ;;  %v3678_v11 = vld [vmem:[#allocation19_spill] sm:$0xff] }
 0x39d   :  { %1034 = vrot.lane.b32.xlu2 %v2572_v41, %s1677_s6  ;;  %v3137_v54 = vpop.permute.xlu1 %1030 }
 0x39e   :  { %1354 = vrot.lane.b32.xlu0 %v1216_v10, %s1679_s10  ;;  %v3671_v10 = vld [vmem:[#allocation6_spill] sm:$0xff] }
 0x39f   :  { %v981_v38 = vpop.permute.xlu2 %980 }
 0x3a0   :  { %v1157_v3 = vadd.f32 %v981_v38, %v2866_v21  ;;  %v3143_v26 = vpop.permute.xlu0 %1014  ;;  %v1158_v21 = vadd.f32 %v2033_v40, %v1797_v23  ;;  %v1227_v40 = vmul.f32 0.5, %v1163_v18  ;;  %v3672_v38 = vld [vmem:[#allocation18_spill] sm:$0xff]  ;;  %v3677_v18 = vld [vmem:[#allocation27_spill] sm:$0xff] }
 0x3a1   :  { %v1169_v43 = vadd.f32 %v2963_v17, %v3677_v18  ;;  %v1170_v17 = vadd.f32 %v3073_v55, %v2670_v33  ;;  %v3682_v55 = vld [vmem:[#allocation3_spill] sm:$0xff] }
 0x3a2   :  { %v1221_v44 = vmul.f32 0.5, %v1157_v3  ;;  %v1222_v27 = vmul.f32 0.5, %v1158_v21  ;;  %v3673_v3 = vld [vmem:[#allocation31_spill] sm:$0xff] }
 0x3a3   :  { %v1166_v20 = vadd.f32 %v3673_v3, %v3672_v38  ;;  %v1233_v3 = vmul.f32 0.5, %v1169_v43  ;;  %v1173_v43 = vadd.f32 %v3093_v30, %v2841_v16 }
 0x3a4   :  { %1364 = vrot.lane.b32.xlu1 %v1221_v44, %s1679_s10 }
 0x3a5   :  { %1040 = vrot.lane.b32.xlu2 %v2748_v37, %s1677_s6  ;;  %v3150_v32 = vpop.permute.xlu1 %1036 }
 0x3a6   :  { %1360 = vrot.lane.b32.xlu0 %v1219_v7, %s1679_s10  ;;  %v3674_v7 = vld [vmem:[#allocation11_spill] sm:$0xff] }
 0x3a7   :  { %v1164_v21 = vadd.f32 %v3675_v12, %v3674_v7  ;;  %v3680_v7 = vld [vmem:[#allocation22_spill] sm:$0xff] }
 0x3a8   :  { %v3155_v63 = vpop.permute.xlu0 %1020 }
 0x3a9   :  { %v1228_v2 = vmul.f32 0.5, %v1164_v21 }
 0x3ac   :  { %1370 = vrot.lane.b32.xlu1 %v1224_v57, %s1679_s10 }
 0x3ad   :  { %1046 = vrot.lane.b32.xlu2 %v1815_v28, %s1677_s6  ;;  %v3162_v47 = vpop.permute.xlu1 %1042 }
 0x3ae   :  { %1366 = vrot.lane.b32.xlu0 %v1222_v27, %s1679_s10  ;;  %v1230_v27 = vmul.f32 0.5, %v1166_v20 }
 0x3b0   :  { %v3167_v23 = vpop.permute.xlu0 %1026 }
 0x3b4   :  { %1376 = vrot.lane.b32.xlu1 %v1227_v40, %s1679_s10  ;;  %v3679_v40 = vld [vmem:[#allocation32_spill] sm:$0xff] }
 0x3b5   :  { %1052 = vrot.lane.b32.xlu2 %v3671_v10, %s1677_s6  ;;  %v3174_v44 = vpop.permute.xlu1 %1048 }
 0x3b6   :  { %1372 = vrot.lane.b32.xlu0 %v1225_v50, %s1679_s10  ;;  %v1167_v50 = vadd.f32 %v3679_v40, %v3678_v11  ;;  %v1237_v40 = vmul.f32 0.5, %v1173_v43 }
 0x3b8   :  { %v3179_v57 = vpop.permute.xlu0 %1032  ;;  %v1231_v20 = vmul.f32 0.5, %v1167_v50  ;;  %v3683_v50 = vld [vmem:[#allocation13_spill] sm:$0xff] }
 0x3bc   :  { %1382 = vrot.lane.b32.xlu1 %v1230_v27, %s1679_s10  ;;  %v1234_v27 = vmul.f32 0.5, %v1170_v17  ;;  %v1176_v17 = vadd.f32 %v3111_v5, %v1877_v42 }
 0x3bd   :  { %1058 = vrot.lane.b32.xlu2 %v3676_v6, %s1677_s6  ;;  %v3186_v58 = vpop.permute.xlu1 %1054 }
 0x3be   :  { %1378 = vrot.lane.b32.xlu0 %v1228_v2, %s1679_s10  ;;  %v3681_v2 = vld [vmem:[#allocation30_spill] sm:$0xff]  ;;  %v1240_v43 = vmul.f32 0.5, %v1176_v17 }
 0x3c0   :  { %v3191_v38 = vpop.permute.xlu0 %1038 }
 0x3c4   :  { %1388 = vrot.lane.b32.xlu1 %v1233_v3, %s1679_s10  ;;  %v1144_v3 = vadd.f32 %v3683_v50, %v3682_v55  ;;  %v3684_v50 = vld [vmem:[#allocation9_spill] sm:$0xff] }
 0x3c5   :  { %1064 = vrot.lane.b32.xlu2 %v3680_v7, %s1677_s6  ;;  %v3196_v12 = vpop.permute.xlu1 %1060 }
 0x3c6   :  { %1384 = vrot.lane.b32.xlu0 %v1231_v20, %s1679_s10  ;;  %v1208_v30 = vmul.f32 0.5, %v1144_v3 }
 0x3c8   :  { %v3201_v21 = vpop.permute.xlu0 %1044 }
 0x3cd   :  { %1070 = vrot.lane.b32.xlu2 %v3681_v2, %s1677_s6  ;;  %v3205_v18 = vpop.permute.xlu1 %1066 }
 0x3ce   :  { %1390 = vrot.lane.b32.xlu0 %v1234_v27, %s1679_s10 }
 0x3d0   :  { %v3210_v11 = vpop.permute.xlu0 %1050 }
 0x3d5   :  { %1076 = vrot.lane.b32.xlu2 %v2893_v51, %s1677_s6  ;;  %v3214_v33 = vpop.permute.xlu1 %1072 }
 0x3d6   :  { %1396 = vrot.lane.b32.xlu0 %v1237_v40, %s1679_s10  ;;  %v3685_v40 = vld [vmem:[#allocation20_spill] sm:$0xff] }
 0x3d7   :  { %v1147_v49 = vadd.f32 %v3685_v40, %v3684_v50  ;;  %v3686_v50 = vld [vmem:[#allocation17_spill] sm:$0xff] }
 0x3d8   :  { %v701_v20 = vpop.xlane.xlu2 %700  ;;  %v3222_v16 = vpop.permute.xlu0 %1056 }
 0x3d9   :  { %v804_v27 = vmul.f32 %v1967_v9, %v701_v20  ;;  %v1179_v9 = vadd.f32 %v3123_v36, %v2099_v4  ;;  %v1211_v20 = vmul.f32 0.5, %v1147_v49  ;;  %v1182_v49 = vadd.f32 %v3137_v54, %v2351_v31 }
 0x3da   :  { %v1185_v31 = vadd.f32 %v3150_v32, %v2657_v22  ;;  %v1188_v22 = vadd.f32 %v3162_v47, %v2828_v60  ;;  %v1191_v60 = vadd.f32 %v3174_v44, %v1845_v35 }
 0x3db   :  { %869 = vst.msk [vmem:[%s3607_s4 + $0x178] sm:$0xff] %vm821_vm5, %v804_v27  ;;  %v1243_v27 = vmul.f32 0.5, %v1179_v9  ;;  %v1246_v9 = vmul.f32 0.5, %v1182_v49 }
 0x3dc   :  { %v1252_v49 = vmul.f32 0.5, %v1188_v22  ;;  %v3694_v22 = vld [vmem:[#allocation25_spill] sm:$0xff] }
 0x3dd   :  { %1338 = vrot.lane.b32.xlu2 %v1208_v30, %s1679_s10  ;;  %v1335_v55 = vpop.permute.xlu1 %1334 }
 0x3de   :  { %1526 = vst.msk [vmem:[%s3608_s5] sm:$0xff] %vm821_vm5, %v1335_v55  ;;  %1402 = vrot.lane.b32.xlu0 %v1240_v43, %s1679_s10  ;;  %v3687_v55 = vld [vmem:[#allocation28_spill] sm:$0xff] }
 0x3df   :  { %v1150_v40 = vadd.f32 %v3687_v55, %v3686_v50  ;;  %v1249_v55 = vmul.f32 0.5, %v1185_v31  ;;  %v3691_v31 = vld [vmem:[#allocation7_spill] sm:$0xff] }
 0x3e0   :  { %v1011_v42 = vpop.permute.xlu2 %1010  ;;  %v3239_v3 = vpop.permute.xlu0 %1062 }
 0x3e1   :  { %v1172_v5 = vadd.f32 %v1011_v42, %v2825_v62  ;;  %v1214_v43 = vmul.f32 0.5, %v1150_v40  ;;  %v1156_v40 = vadd.f32 %v3054_v0, %v2793_v19 }
 0x3e3   :  { %v1236_v17 = vmul.f32 0.5, %v1172_v5  ;;  %v1220_v0 = vmul.f32 0.5, %v1156_v40 }
 0x3e5   :  { %1394 = vrot.lane.b32.xlu1 %v1236_v17, %s1679_s10  ;;  %1344 = vrot.lane.b32.xlu2 %v1211_v20, %s1679_s10  ;;  %v1341_v30 = vpop.permute.xlu1 %1340  ;;  %v3688_v20 = vld [vmem:[#allocation26_spill] sm:$0xff] }
 0x3e6   :  { %1529 = vst.msk [vmem:[%s3608_s5 + $0x18] sm:$0xff] %vm821_vm5, %v1341_v30  ;;  %1408 = vrot.lane.b32.xlu0 %v1243_v27, %s1679_s10  ;;  %v1153_v17 = vadd.f32 %v2939_v8, %v3688_v20 }
 0x3e8   :  { %v1017_v4 = vpop.permute.xlu2 %1016  ;;  %v3253_v36 = vpop.permute.xlu0 %1068  ;;  %v1217_v30 = vmul.f32 0.5, %v1153_v17 }
 0x3e9   :  { %v1175_v62 = vadd.f32 %v1017_v4, %v1856_v39 }
 0x3eb   :  { %v1239_v42 = vmul.f32 0.5, %v1175_v62 }
 0x3ed   :  { %1400 = vrot.lane.b32.xlu1 %v1239_v42, %s1679_s10  ;;  %1350 = vrot.lane.b32.xlu2 %v1214_v43, %s1679_s10  ;;  %v1347_v5 = vpop.permute.xlu1 %1346  ;;  %v3689_v43 = vld [vmem:[#allocation2_spill] sm:$0xff]  ;;  %v3690_v42 = vld [vmem:[#allocation8_spill] sm:$0xff] }
 0x3ee   :  { %1532 = vst.msk [vmem:[%s3608_s5 + $0x30] sm:$0xff] %vm821_vm5, %v1347_v5  ;;  %1414 = vrot.lane.b32.xlu0 %v1246_v9, %s1679_s10  ;;  %v1159_v9 = vadd.f32 %v3690_v42, %v3689_v43  ;;  %v3695_v43 = vld [vmem:[#allocation24_spill] sm:$0xff]  ;;  %v3696_v42 = vld [vmem:[#allocation33_spill] sm:$0xff] }
 0x3f0   :  { %v1023_v39 = vpop.permute.xlu2 %1022  ;;  %v3267_v27 = vpop.permute.xlu0 %1074  ;;  %v1223_v20 = vmul.f32 0.5, %v1159_v9  ;;  %v1168_v9 = vadd.f32 %v3696_v42, %v3695_v43 }
 0x3f1   :  { %v1178_v54 = vadd.f32 %v1023_v39, %v2060_v52  ;;  %v1255_v39 = vmul.f32 0.5, %v1191_v60 }
 0x3f2   :  { %v1232_v60 = vmul.f32 0.5, %v1168_v9 }
 0x3f3   :  { %v1242_v50 = vmul.f32 0.5, %v1178_v54  ;;  %v3692_v54 = vld [vmem:[#allocation16_spill] sm:$0xff] }
 0x3f5   :  { %1406 = vrot.lane.b32.xlu1 %v1242_v50, %s1679_s10  ;;  %1356 = vrot.lane.b32.xlu2 %v1217_v30, %s1679_s10  ;;  %v1353_v8 = vpop.permute.xlu1 %1352  ;;  %v1162_v30 = vadd.f32 %v3692_v54, %v3691_v31 }
 0x3f6   :  { %1535 = vst.msk [vmem:[%s3608_s5 + $0x48] sm:$0xff] %vm821_vm5, %v1353_v8  ;;  %1420 = vrot.lane.b32.xlu0 %v1249_v55, %s1679_s10 }
 0x3f7   :  { %v1226_v55 = vmul.f32 0.5, %v1162_v30  ;;  %v1174_v30 = vadd.f32 %v3143_v26, %v1807_v25  ;;  %v1177_v26 = vadd.f32 %v3155_v63, %v2039_v45  ;;  %v1180_v63 = vadd.f32 %v3167_v23, %v2286_v46 }
 0x3f8   :  { %v1029_v52 = vpop.permute.xlu2 %1028  ;;  %v1337_v4 = vpop.permute.xlu0 %1336  ;;  %v1183_v46 = vadd.f32 %v3179_v57, %v2557_v15 }
 0x3f9   :  { %v1181_v32 = vadd.f32 %v1029_v52, %v2305_v59  ;;  %1527 = vst.msk [vmem:[%s3608_s5 + $0x8] sm:$0xff] %vm821_vm5, %v1337_v4  ;;  %v3693_v52 = vld [vmem:[#allocation15_spill] sm:$0xff] }
 0x3fb   :  { %v1245_v19 = vmul.f32 0.5, %v1181_v32  ;;  %v1165_v32 = vadd.f32 %v3694_v22, %v3693_v52  ;;  %v1244_v22 = vmul.f32 0.5, %v1180_v63 }
 0x3fd   :  { %1412 = vrot.lane.b32.xlu1 %v1245_v19, %s1679_s10  ;;  %1362 = vrot.lane.b32.xlu2 %v1220_v0, %s1679_s10  ;;  %v1359_v62 = vpop.permute.xlu1 %1358  ;;  %v1229_v0 = vmul.f32 0.5, %v1165_v32 }
 0x3fe   :  { %1538 = vst.msk [vmem:[%s3608_s5 + $0x60] sm:$0xff] %vm821_vm5, %v1359_v62  ;;  %1426 = vrot.lane.b32.xlu0 %v1252_v49, %s1679_s10 }
 0x400   :  { %v1035_v59 = vpop.permute.xlu2 %1034  ;;  %v1343_v5 = vpop.permute.xlu0 %1342 }
 0x401   :  { %v1184_v47 = vadd.f32 %v1035_v59, %v2572_v41  ;;  %1530 = vst.msk [vmem:[%s3608_s5 + $0x20] sm:$0xff] %vm821_vm5, %v1343_v5  ;;  %v1194_v41 = vadd.f32 %v3186_v58, %v2076_v56 }
 0x403   :  { %v1248_v17 = vmul.f32 0.5, %v1184_v47  ;;  %v1258_v40 = vmul.f32 0.5, %v1194_v41 }
 0x405   :  { %1418 = vrot.lane.b32.xlu1 %v1248_v17, %s1679_s10  ;;  %1368 = vrot.lane.b32.xlu2 %v1223_v20, %s1679_s10  ;;  %v1171_v17 = vadd.f32 %v3129_v24, %v2803_v34 }
 0x406   :  { %1432 = vrot.lane.b32.xlu0 %v1255_v39, %s1679_s10 }
 0x407   :  { %v1235_v34 = vmul.f32 0.5, %v1171_v17 }
 0x408   :  { %v1041_v35 = vpop.permute.xlu2 %1040  ;;  %v1349_v50 = vpop.permute.xlu0 %1348 }
 0x409   :  { %v1187_v44 = vadd.f32 %v1041_v35, %v2748_v37  ;;  %1533 = vst.msk [vmem:[%s3608_s5 + $0x38] sm:$0xff] %vm821_vm5, %v1349_v50  ;;  %v1197_v37 = vadd.f32 %v3196_v12, %v2333_v13  ;;  %v1200_v13 = vadd.f32 %v3205_v18, %v2622_v1  ;;  %v1238_v35 = vmul.f32 0.5, %v1174_v30 }
 0x40b   :  { %v1251_v8 = vmul.f32 0.5, %v1187_v44  ;;  %v1261_v49 = vmul.f32 0.5, %v1197_v37  ;;  %v1264_v5 = vmul.f32 0.5, %v1200_v13  ;;  %v3697_v37 = vld [vmem:[#allocation29_spill] sm:$0xff] }
 0x40d   :  { %1424 = vrot.lane.b32.xlu1 %v1251_v8, %s1679_s10  ;;  %1374 = vrot.lane.b32.xlu2 %v1226_v55, %s1679_s10  ;;  %v1241_v55 = vmul.f32 0.5, %v1177_v26 }
 0x40e   :  { %1438 = vrot.lane.b32.xlu0 %v1258_v40, %s1679_s10 }
 0x410   :  { %v1047_v56 = vpop.permute.xlu2 %1046  ;;  %v1355_v4 = vpop.permute.xlu0 %1354 }
 0x411   :  { %v1190_v58 = vadd.f32 %v1047_v56, %v1815_v28  ;;  %1536 = vst.msk [vmem:[%s3608_s5 + $0x50] sm:$0xff] %vm821_vm5, %v1355_v4  ;;  %v1247_v56 = vmul.f32 0.5, %v1183_v46 }
 0x413   :  { %v1254_v19 = vmul.f32 0.5, %v1190_v58  ;;  %v1186_v58 = vadd.f32 %v3191_v38, %v3697_v37 }
 0x415   :  { %1430 = vrot.lane.b32.xlu1 %v1254_v19, %s1679_s10  ;;  %1380 = vrot.lane.b32.xlu2 %v1229_v0, %s1679_s10  ;;  %v1250_v57 = vmul.f32 0.5, %v1186_v58  ;;  %v1189_v0 = vadd.f32 %v3201_v21, %v2968_v29 }
 0x416   :  { %v1365_v62 = vpop.permute.xlu1 %1364  ;;  %1444 = vrot.lane.b32.xlu0 %v1261_v49, %s1679_s10 }
 0x417   :  { %1541 = vst.msk [vmem:[%s3608_s5 + $0x78] sm:$0xff] %vm821_vm5, %v1365_v62  ;;  %v1253_v49 = vmul.f32 0.5, %v1189_v0  ;;  %v3698_v62 = vld [vmem:[#allocation5_spill] sm:$0xff] }
 0x418   :  { %v1053_v28 = vpop.permute.xlu2 %1052  ;;  %v1361_v59 = vpop.permute.xlu0 %1360  ;;  %v1192_v43 = vadd.f32 %v3210_v11, %v3698_v62  ;;  %v1195_v11 = vadd.f32 %v3222_v16, %v2191_v48  ;;  %v1198_v48 = vadd.f32 %v3239_v3, %v2434_v61  ;;  %v1201_v61 = vadd.f32 %v3253_v36, %v2708_v53  ;;  %v3699_v53 = vld [vmem:[#allocation34_spill] sm:$0xff] }
 0x419   :  { %v1193_v12 = vadd.f32 %v1053_v28, %v3671_v10  ;;  %1539 = vst.msk [vmem:[%s3608_s5 + $0x68] sm:$0xff] %vm821_vm5, %v1361_v59  ;;  %v1203_v10 = vadd.f32 %v3214_v33, %v2813_v14  ;;  %v1204_v36 = vadd.f32 %v3267_v27, %v3699_v53 }
 0x41a   :  { %v1256_v9 = vmul.f32 0.5, %v1192_v43  ;;  %v1259_v59 = vmul.f32 0.5, %v1195_v11 }
 0x41b   :  { %v1257_v47 = vmul.f32 0.5, %v1193_v12  ;;  %v1267_v31 = vmul.f32 0.5, %v1203_v10 }
 0x41d   :  { %1436 = vrot.lane.b32.xlu1 %v1257_v47, %s1679_s10  ;;  %1386 = vrot.lane.b32.xlu2 %v1232_v60, %s1679_s10 }
 0x41e   :  { %v1371_v20 = vpop.permute.xlu1 %1370  ;;  %1450 = vrot.lane.b32.xlu0 %v1264_v5, %s1679_s10  ;;  %v1262_v5 = vmul.f32 0.5, %v1198_v48 }
 0x41f   :  { %1544 = vst.msk [vmem:[%s3608_s5 + $0x90] sm:$0xff] %vm821_vm5, %v1371_v20 }
 0x420   :  { %v1059_v1 = vpop.permute.xlu2 %1058  ;;  %v1367_v39 = vpop.permute.xlu0 %1366 }
 0x421   :  { %v1196_v18 = vadd.f32 %v1059_v1, %v3676_v6  ;;  %1542 = vst.msk [vmem:[%s3608_s5 + $0x80] sm:$0xff] %vm821_vm5, %v1367_v39  ;;  %v1265_v1 = vmul.f32 0.5, %v1201_v61 }
 0x423   :  { %v1260_v24 = vmul.f32 0.5, %v1196_v18 }
 0x425   :  { %1442 = vrot.lane.b32.xlu1 %v1260_v24, %s1679_s10  ;;  %1392 = vrot.lane.b32.xlu2 %v1235_v34, %s1679_s10  ;;  %v1268_v34 = vmul.f32 0.5, %v1204_v36 }
 0x426   :  { %v1377_v54 = vpop.permute.xlu1 %1376  ;;  %1456 = vrot.lane.b32.xlu0 %v1267_v31, %s1679_s10 }
 0x427   :  { %1547 = vst.msk [vmem:[%s3608_s5 + $0xa8] sm:$0xff] %vm821_vm5, %v1377_v54 }
 0x428   :  { %v1065_v14 = vpop.permute.xlu2 %1064  ;;  %v1373_v33 = vpop.permute.xlu0 %1372 }
 0x429   :  { %v1199_v6 = vadd.f32 %v1065_v14, %v3680_v7  ;;  %1545 = vst.msk [vmem:[%s3608_s5 + $0x98] sm:$0xff] %vm821_vm5, %v1373_v33 }
 0x42b   :  { %v1263_v41 = vmul.f32 0.5, %v1199_v6 }
 0x42d   :  { %1448 = vrot.lane.b32.xlu1 %v1263_v41, %s1679_s10  ;;  %1398 = vrot.lane.b32.xlu2 %v1238_v35, %s1679_s10 }
 0x42e   :  { %v1383_v25 = vpop.permute.xlu1 %1382 }
 0x42f   :  { %1550 = vst.msk [vmem:[%s3608_s5 + $0xc0] sm:$0xff] %vm821_vm5, %v1383_v25 }
 0x430   :  { %v1071_v7 = vpop.permute.xlu2 %1070  ;;  %v1379_v50 = vpop.permute.xlu0 %1378 }
 0x431   :  { %v1202_v44 = vadd.f32 %v1071_v7, %v3681_v2  ;;  %1548 = vst.msk [vmem:[%s3608_s5 + $0xb0] sm:$0xff] %vm821_vm5, %v1379_v50 }
 0x433   :  { %v1266_v8 = vmul.f32 0.5, %v1202_v44 }
 0x435   :  { %1454 = vrot.lane.b32.xlu1 %v1266_v8, %s1679_s10  ;;  %1404 = vrot.lane.b32.xlu2 %v1241_v55, %s1679_s10 }
 0x436   :  { %v1389_v45 = vpop.permute.xlu1 %1388 }
 0x437   :  { %1553 = vst.msk [vmem:[%s3608_s5 + $0xd8] sm:$0xff] %vm821_vm5, %v1389_v45 }
 0x438   :  { %v1077_v2 = vpop.permute.xlu2 %1076  ;;  %v1385_v52 = vpop.permute.xlu0 %1384 }
 0x439   :  { %v1205_v40 = vadd.f32 %v1077_v2, %v2893_v51  ;;  %1551 = vst.msk [vmem:[%s3608_s5 + $0xc8] sm:$0xff] %vm821_vm5, %v1385_v52 }
 0x43b   :  { %v1269_v32 = vmul.f32 0.5, %v1205_v40 }
 0x43d   :  { %1460 = vrot.lane.b32.xlu1 %v1269_v32, %s1679_s10  ;;  %1410 = vrot.lane.b32.xlu2 %v1244_v22, %s1679_s10 }
 0x440   :  { %v1339_v23 = vpop.permute.xlu2 %1338  ;;  %v1391_v51 = vpop.permute.xlu0 %1390 }
 0x441   :  { %1528 = vst.msk [vmem:[%s3608_s5 + $0x10] sm:$0xff] %vm821_vm5, %v1339_v23 }
 0x442   :  { %1554 = vst.msk [vmem:[%s3608_s5 + $0xe0] sm:$0xff] %vm821_vm5, %v1391_v51 }
 0x445   :  { %1416 = vrot.lane.b32.xlu2 %v1247_v56, %s1679_s10 }
 0x448   :  { %v1345_v4 = vpop.permute.xlu2 %1344  ;;  %v1397_v15 = vpop.permute.xlu0 %1396 }
 0x449   :  { %1531 = vst.msk [vmem:[%s3608_s5 + $0x28] sm:$0xff] %vm821_vm5, %v1345_v4 }
 0x44a   :  { %1557 = vst.msk [vmem:[%s3608_s5 + $0xf8] sm:$0xff] %vm821_vm5, %v1397_v15 }
 0x44d   :  { %1422 = vrot.lane.b32.xlu2 %v1250_v57, %s1679_s10 }
 0x450   :  { %v1351_v19 = vpop.permute.xlu2 %1350  ;;  %v1403_v38 = vpop.permute.xlu0 %1402 }
 0x451   :  { %1534 = vst.msk [vmem:[%s3608_s5 + $0x40] sm:$0xff] %vm821_vm5, %v1351_v19 }
 0x452   :  { %1560 = vst.msk [vmem:[%s3608_s5 + $0x110] sm:$0xff] %vm821_vm5, %v1403_v38 }
 0x455   :  { %1428 = vrot.lane.b32.xlu2 %v1253_v49, %s1679_s10 }
 0x457   :  { %v1395_v42 = vpop.permute.xlu1 %1394 }
 0x458   :  { %1556 = vst.msk [vmem:[%s3608_s5 + $0xf0] sm:$0xff] %vm821_vm5, %v1395_v42  ;;  %v1357_v29 = vpop.permute.xlu2 %1356  ;;  %v1409_v21 = vpop.permute.xlu0 %1408 }
 0x459   :  { %1537 = vst.msk [vmem:[%s3608_s5 + $0x58] sm:$0xff] %vm821_vm5, %v1357_v29 }
 0x45a   :  { %1563 = vst.msk [vmem:[%s3608_s5 + $0x128] sm:$0xff] %vm821_vm5, %v1409_v21 }
 0x45d   :  { %1434 = vrot.lane.b32.xlu2 %v1256_v9, %s1679_s10 }
 0x45f   :  { %v1401_v28 = vpop.permute.xlu1 %1400 }
 0x460   :  { %1559 = vst.msk [vmem:[%s3608_s5 + $0x108] sm:$0xff] %vm821_vm5, %v1401_v28  ;;  %v1363_v13 = vpop.permute.xlu2 %1362  ;;  %v1415_v12 = vpop.permute.xlu0 %1414 }
 0x461   :  { %1540 = vst.msk [vmem:[%s3608_s5 + $0x70] sm:$0xff] %vm821_vm5, %v1363_v13 }
 0x462   :  { %1566 = vst.msk [vmem:[%s3608_s5 + $0x140] sm:$0xff] %vm821_vm5, %v1415_v12 }
 0x465   :  { %1440 = vrot.lane.b32.xlu2 %v1259_v59, %s1679_s10 }
 0x467   :  { %v1407_v16 = vpop.permute.xlu1 %1406 }
 0x468   :  { %1562 = vst.msk [vmem:[%s3608_s5 + $0x120] sm:$0xff] %vm821_vm5, %v1407_v16  ;;  %v1369_v60 = vpop.permute.xlu2 %1368  ;;  %v1421_v47 = vpop.permute.xlu0 %1420 }
 0x469   :  { %1543 = vst.msk [vmem:[%s3608_s5 + $0x88] sm:$0xff] %vm821_vm5, %v1369_v60 }
 0x46a   :  { %1569 = vst.msk [vmem:[%s3608_s5 + $0x158] sm:$0xff] %vm821_vm5, %v1421_v47 }
 0x46d   :  { %1446 = vrot.lane.b32.xlu2 %v1262_v5, %s1679_s10 }
 0x46f   :  { %v1413_v3 = vpop.permute.xlu1 %1412 }
 0x470   :  { %1565 = vst.msk [vmem:[%s3608_s5 + $0x138] sm:$0xff] %vm821_vm5, %v1413_v3  ;;  %v1375_v20 = vpop.permute.xlu2 %1374  ;;  %v1427_v17 = vpop.permute.xlu0 %1426 }
 0x471   :  { %1546 = vst.msk [vmem:[%s3608_s5 + $0xa0] sm:$0xff] %vm821_vm5, %v1375_v20 }
 0x472   :  { %1572 = vst.msk [vmem:[%s3608_s5 + $0x170] sm:$0xff] %vm821_vm5, %v1427_v17 }
 0x475   :  { %1452 = vrot.lane.b32.xlu2 %v1265_v1, %s1679_s10 }
 0x477   :  { %v1419_v10 = vpop.permute.xlu1 %1418 }
 0x478   :  { %1568 = vst.msk [vmem:[%s3608_s5 + $0x150] sm:$0xff] %vm821_vm5, %v1419_v10  ;;  %v1381_v18 = vpop.permute.xlu2 %1380  ;;  %v1433_v39 = vpop.permute.xlu0 %1432 }
 0x479   :  { %1549 = vst.msk [vmem:[%s3608_s5 + $0xb8] sm:$0xff] %vm821_vm5, %v1381_v18 }
 0x47a   :  { %1575 = vst.msk [vmem:[%s3608_s5 + $0x188] sm:$0xff] %vm821_vm5, %v1433_v39 }
 0x47d   :  { %1458 = vrot.lane.b32.xlu2 %v1268_v34, %s1679_s10 }
 0x47f   :  { %v1425_v27 = vpop.permute.xlu1 %1424 }
 0x480   :  { %1571 = vst.msk [vmem:[%s3608_s5 + $0x168] sm:$0xff] %vm821_vm5, %v1425_v27  ;;  %v1387_v24 = vpop.permute.xlu2 %1386  ;;  %v1439_v31 = vpop.permute.xlu0 %1438 }
 0x481   :  { %1552 = vst.msk [vmem:[%s3608_s5 + $0xd0] sm:$0xff] %vm821_vm5, %v1387_v24 }
 0x482   :  { %1578 = vst.msk [vmem:[%s3608_s5 + $0x1a0] sm:$0xff] %vm821_vm5, %v1439_v31 }
 0x487   :  { %v1431_v54 = vpop.permute.xlu1 %1430 }
 0x488   :  { %1574 = vst.msk [vmem:[%s3608_s5 + $0x180] sm:$0xff] %vm821_vm5, %v1431_v54  ;;  %v1393_v30 = vpop.permute.xlu2 %1392  ;;  %v1445_v14 = vpop.permute.xlu0 %1444 }
 0x489   :  { %1555 = vst.msk [vmem:[%s3608_s5 + $0xe8] sm:$0xff] %vm821_vm5, %v1393_v30 }
 0x48a   :  { %1581 = vst.msk [vmem:[%s3608_s5 + $0x1b8] sm:$0xff] %vm821_vm5, %v1445_v14 }
 0x48f   :  { %v1437_v6 = vpop.permute.xlu1 %1436 }
 0x490   :  { %1577 = vst.msk [vmem:[%s3608_s5 + $0x198] sm:$0xff] %vm821_vm5, %v1437_v6  ;;  %v1399_v33 = vpop.permute.xlu2 %1398  ;;  %v1451_v35 = vpop.permute.xlu0 %1450 }
 0x491   :  { %1558 = vst.msk [vmem:[%s3608_s5 + $0x100] sm:$0xff] %vm821_vm5, %v1399_v33 }
 0x492   :  { %1584 = vst.msk [vmem:[%s3608_s5 + $0x1d0] sm:$0xff] %vm821_vm5, %v1451_v35 }
 0x497   :  { %v1443_v41 = vpop.permute.xlu1 %1442 }
 0x498   :  { %1580 = vst.msk [vmem:[%s3608_s5 + $0x1b0] sm:$0xff] %vm821_vm5, %v1443_v41  ;;  %v1405_v25 = vpop.permute.xlu2 %1404  ;;  %v1457_v26 = vpop.permute.xlu0 %1456 }
 0x499   :  { %1561 = vst.msk [vmem:[%s3608_s5 + $0x118] sm:$0xff] %vm821_vm5, %v1405_v25 }
 0x49a   :  { %1587 = vst.msk [vmem:[%s3608_s5 + $0x1e8] sm:$0xff] %vm821_vm5, %v1457_v26 }
 0x49f   :  { %v1449_v7 = vpop.permute.xlu1 %1448 }
 0x4a0   :  { %1583 = vst.msk [vmem:[%s3608_s5 + $0x1c8] sm:$0xff] %vm821_vm5, %v1449_v7  ;;  %v1411_v44 = vpop.permute.xlu2 %1410 }
 0x4a1   :  { %1564 = vst.msk [vmem:[%s3608_s5 + $0x130] sm:$0xff] %vm821_vm5, %v1411_v44 }
 0x4a7   :  { %v1455_v50 = vpop.permute.xlu1 %1454 }
 0x4a8   :  { %1586 = vst.msk [vmem:[%s3608_s5 + $0x1e0] sm:$0xff] %vm821_vm5, %v1455_v50  ;;  %v1417_v55 = vpop.permute.xlu2 %1416 }
 0x4a9   :  { %1567 = vst.msk [vmem:[%s3608_s5 + $0x148] sm:$0xff] %vm821_vm5, %v1417_v55 }
 0x4af   :  { %v1461_v8 = vpop.permute.xlu1 %1460 }
 0x4b0   :  { %1589 = vst.msk [vmem:[%s3608_s5 + $0x1f8] sm:$0xff] %vm821_vm5, %v1461_v8  ;;  %v1423_v45 = vpop.permute.xlu2 %1422 }
 0x4b1   :  { %1570 = vst.msk [vmem:[%s3608_s5 + $0x160] sm:$0xff] %vm821_vm5, %v1423_v45 }
 0x4b8   :  { %v1429_v63 = vpop.permute.xlu2 %1428 }
 0x4b9   :  { %1573 = vst.msk [vmem:[%s3608_s5 + $0x178] sm:$0xff] %vm821_vm5, %v1429_v63 }
 0x4c0   :  { %v1435_v2 = vpop.permute.xlu2 %1434 }
 0x4c1   :  { %1576 = vst.msk [vmem:[%s3608_s5 + $0x190] sm:$0xff] %vm821_vm5, %v1435_v2 }
 0x4c8   :  { %v1441_v40 = vpop.permute.xlu2 %1440 }
 0x4c9   :  { %1579 = vst.msk [vmem:[%s3608_s5 + $0x1a8] sm:$0xff] %vm821_vm5, %v1441_v40 }
 0x4d0   :  { %v1447_v52 = vpop.permute.xlu2 %1446 }
 0x4d1   :  { %1582 = vst.msk [vmem:[%s3608_s5 + $0x1c0] sm:$0xff] %vm821_vm5, %v1447_v52 }
 0x4d8   :  { %v1453_v22 = vpop.permute.xlu2 %1452 }
 0x4d9   :  { %1585 = vst.msk [vmem:[%s3608_s5 + $0x1d8] sm:$0xff] %vm821_vm5, %v1453_v22 }
 0x4e0   :  { %v1459_v32 = vpop.permute.xlu2 %1458 }
 0x4e1   :  { %1588 = vst.msk [vmem:[%s3608_s5 + $0x1f0] sm:$0xff] %vm821_vm5, %v1459_v32 }

// kernel: ham_forward.5
= control target key start
LH: loop header
LB: loop body
LE: loop exit
PB: predicated region body
PF: predicated region fallthrough
CT: control target
= control target key end

     0   :  { %vm435_vm3 = vcmask 31744   ;;  %s1476_s1 = inlined_call_operand.vmem [shape: f32[1,4], index: 1, kind: input, shape index: {}]   ;;  %s1477_s2 = inlined_call_operand.vmem [shape: f32[1,4], index: 2, kind: input, shape index: {}]   ;;  %s1478_s3 = inlined_call_operand.vmem [shape: f32[1,4], index: 3, kind: input, shape index: {}]   ;;  %s1479_s4 = inlined_call_operand.vmem [shape: f32[1,4], index: 4, kind: input, shape index: {}]   ;;  %s1480_s0 = inlined_call_operand.vmem [shape: f32[512,4], index: 0, kind: input, shape index: {}]   ;;  %s1481_s5 = inlined_call_operand.vmem [shape: f32[512,4], index: 5, kind: output, shape index: {}]  }
   0x1   :  { %v20_v0 = vld [vmem:[%s1476_s1] sm:$0x1]  ;;  %v554_v9 = vld [vmem:[%s1480_s0 + $0x8] sm:$0xff]  ;;  %v561_v11 = vld [vmem:[%s1480_s0 + $0x10] sm:$0xff] }
   0x2   :  { %v22_v1 = vld [vmem:[%s1477_s2] sm:$0x1]  ;;  %v21_v2 = vmul.f32 0.001953125, %v20_v0  ;;  %v566_v12 = vld [vmem:[%s1480_s0 + $0x18] sm:$0xff]  ;;  %v577_v15 = vld [vmem:[%s1480_s0 + $0x28] sm:$0xff] }
   0x3   :  { %v23_v3 = vmul.f32 0.001953125, %v22_v1  ;;  %v547_v7 = vld [vmem:[%s1480_s0] sm:$0xff]  ;;  %v582_v16 = vld [vmem:[%s1480_s0 + $0x30] sm:$0xff]  ;;  %v587_v17 = vld [vmem:[%s1480_s0 + $0x38] sm:$0xff] }
   0x4   :  { %v24_v4 = vmul.f32 %v21_v2, %v21_v2  ;;  %v549_v8 = vperm.slane %v21_v2, 0  ;;  %v571_v13 = vld [vmem:[%s1480_s0 + $0x20] sm:$0xff]  ;;  %v597_v19 = vld [vmem:[%s1480_s0 + $0x48] sm:$0xff]  ;;  %v602_v20 = vld [vmem:[%s1480_s0 + $0x50] sm:$0xff] }
   0x5   :  { %v592_v18 = vld [vmem:[%s1480_s0 + $0x40] sm:$0xff]  ;;  %v612_v24 = vld [vmem:[%s1480_s0 + $0x58] sm:$0xff]  ;;  %v622_v26 = vld [vmem:[%s1480_s0 + $0x68] sm:$0xff] }
   0x6   :  { %v25_v5 = vsub.f32 %v23_v3, %v24_v4  ;;  %v93_v21 = vsub.f32 %v547_v7, %v549_v8  ;;  %v94_v23 = vsub.f32 %v554_v9, %v549_v8  ;;  %v617_v25 = vld [vmem:[%s1480_s0 + $0x60] sm:$0xff]  ;;  %v95_v27 = vsub.f32 %v561_v11, %v549_v8  ;;  %v632_v29 = vld [vmem:[%s1480_s0 + $0x70] sm:$0xff]  ;;  %v637_v30 = vld [vmem:[%s1480_s0 + $0x78] sm:$0xff] }
   0x7   :  { %v96_v28 = vsub.f32 %v566_v12, %v549_v8  ;;  %v642_v31 = vld [vmem:[%s1480_s0 + $0x80] sm:$0xff]  ;;  %v97_v33 = vsub.f32 %v571_v13, %v549_v8  ;;  %v98_v34 = vsub.f32 %v577_v15, %v549_v8  ;;  %v99_v35 = vsub.f32 %v582_v16, %v549_v8  ;;  %v653_v36 = vld [vmem:[%s1480_s0 + $0x88] sm:$0xff]  ;;  %v658_v37 = vld [vmem:[%s1480_s0 + $0x90] sm:$0xff] }
   0x8   :  { %v157_v6 = vadd.f32 1e-05, %v25_v5  ;;  %v663_v38 = vld [vmem:[%s1480_s0 + $0x98] sm:$0xff]  ;;  %v100_v39 = vsub.f32 %v587_v17, %v549_v8  ;;  %v101_v40 = vsub.f32 %v592_v18, %v549_v8  ;;  %v102_v41 = vsub.f32 %v597_v19, %v549_v8  ;;  %v676_v43 = vld [vmem:[%s1480_s0 + $0xa0] sm:$0xff]  ;;  %v681_v44 = vld [vmem:[%s1480_s0 + $0xa8] sm:$0xff] }
   0x9   :  { %v103_v42 = vsub.f32 %v602_v20, %v549_v8  ;;  %v686_v45 = vld [vmem:[%s1480_s0 + $0xb0] sm:$0xff]  ;;  %v104_v48 = vsub.f32 %v612_v24, %v549_v8  ;;  %v105_v49 = vsub.f32 %v617_v25, %v549_v8  ;;  %v106_v50 = vsub.f32 %v622_v26, %v549_v8  ;;  %v704_v51 = vld [vmem:[%s1480_s0 + $0xb8] sm:$0xff]  ;;  %v709_v52 = vld [vmem:[%s1480_s0 + $0xc0] sm:$0xff] }
   0xa   :  { %506 = vrsqrt.f32 %v157_v6  ;;  %vm164_vm0 = vweird.f32 %v157_v6  ;;  %v107_v53 = vsub.f32 %v632_v29, %v549_v8  ;;  %v108_v54 = vsub.f32 %v637_v30, %v549_v8  ;;  %v722_v57 = vld [vmem:[%s1480_s0 + $0xc8] sm:$0xff]  ;;  %v727_v58 = vld [vmem:[%s1480_s0 + $0xd0] sm:$0xff]  ;;  %v732_v59 = vld [vmem:[%s1480_s0 + $0xd8] sm:$0xff] }
   0xb   :  { %v109_v55 = vsub.f32 %v642_v31, %v549_v8  ;;  %v110_v56 = vsub.f32 %v653_v36, %v549_v8  ;;  %v111_v61 = vsub.f32 %v658_v37, %v549_v8  ;;  %v744_v0 = vld [vmem:[%s1480_s0 + $0xe0] sm:$0xff]  ;;  %v749_v1 = vld [vmem:[%s1480_s0 + $0xe8] sm:$0xff]  ;;  %v754_v2 = vld [vmem:[%s1480_s0 + $0xf0] sm:$0xff]  ;;  %v1485_v31 = vsub.f32 %v676_v43, %v549_v8 }
   0xc   :  { %v767_v13 = vld [vmem:[%s1480_s0 + $0xf8] sm:$0xff]  ;;  %v804_v17 = vld [vmem:[%s1480_s0 + $0x110] sm:$0xff]  ;;  %v1486_v37 = vsub.f32 %v681_v44, %v549_v8 }
  0x10   :  { %v556_v10 = vpop.eup %506 }
  0x11   :  { %v159_v14 = vmul.f32 %v556_v10, %v157_v6  ;;  %vm165_vm1 = vweird.f32 %v556_v10  ;;  %v821_v6 = vld [vmem:[%s1479_s4] ss:$0 sm:$0xff] }
  0x12   :  { %vm691_vm2 = vmor %vm164_vm0, %vm165_vm1 }
  0x13   :  { %v160_v22 = vmul.f32 %v556_v10, %v159_v14  ;;  %v772_v14 = vld [vmem:[%s1480_s0 + $0x100] sm:$0xff] }
  0x15   :  { %v161_v32 = vmul.f32 0.5, %v160_v22 }
  0x17   :  { %v162_v46 = vsub.f32 1.5, %v161_v32  ;;  %v786_v32 = vld [vmem:[%s1480_s0 + $0x108] sm:$0xff] }
  0x19   :  { %v163_v60 = vmul.f32 %v556_v10, %v162_v46 }
  0x1b   :  { %v167_v15 = vsel %vm691_vm2, %v556_v10, %v163_v60  ;;  %v793_v10 = vld [vmem:[%s1478_s3] ss:$0 sm:$0xff] }
  0x1c   :  { %v788_v46 = vperm.slane %v167_v15, 0 }
  0x1e   :  { %v171_v22 = vmul.f32 %v788_v46, %v93_v21  ;;  %v172_v16 = vmul.f32 %v788_v46, %v94_v23  ;;  %v173_v60 = vmul.f32 %v788_v46, %v95_v27  ;;  %v174_v7 = vmul.f32 %v788_v46, %v96_v28 }
  0x1f   :  { %v175_v21 = vmul.f32 %v788_v46, %v97_v33  ;;  %v176_v47 = vmul.f32 %v788_v46, %v98_v34  ;;  %v177_v15 = vmul.f32 %v788_v46, %v99_v35  ;;  %v178_v9 = vmul.f32 %v788_v46, %v100_v39 }
  0x20   :  { %v239_v23 = vmul.f32 %v793_v10, %v171_v22  ;;  %v240_v5 = vmul.f32 %v793_v10, %v172_v16  ;;  %v241_v11 = vmul.f32 %v793_v10, %v173_v60  ;;  %v242_v27 = vmul.f32 %v793_v10, %v174_v7 }
  0x21   :  { %v243_v12 = vmul.f32 %v793_v10, %v175_v21  ;;  %v244_v28 = vmul.f32 %v793_v10, %v176_v47  ;;  %v245_v33 = vmul.f32 %v793_v10, %v177_v15  ;;  %v246_v34 = vmul.f32 %v793_v10, %v178_v9 }
  0x22   :  { %v307_v35 = vadd.f32 %v821_v6, %v239_v23  ;;  %v308_v39 = vadd.f32 %v821_v6, %v240_v5  ;;  %v309_v22 = vadd.f32 %v821_v6, %v241_v11  ;;  %v310_v16 = vadd.f32 %v821_v6, %v242_v27 }
  0x23   :  { %v311_v60 = vadd.f32 %v821_v6, %v243_v12  ;;  %v312_v7 = vadd.f32 %v821_v6, %v244_v28  ;;  %v313_v21 = vadd.f32 %v821_v6, %v245_v33  ;;  %v314_v47 = vadd.f32 %v821_v6, %v246_v34 }
  0x24   :  { %v371_v4 = vmax.f32 %v307_v35, 0.0  ;;  %v372_v15 = vmax.f32 %v308_v39, 0.0  ;;  %v373_v3 = vmax.f32 %v309_v22, 0.0  ;;  %v374_v9 = vmax.f32 %v310_v16, 0.0 }
  0x25   :  { %v375_v63 = vmax.f32 %v311_v60, 0.0  ;;  %v376_v23 = vmax.f32 %v312_v7, 0.0  ;;  %v377_v62 = vmax.f32 %v313_v21, 0.0  ;;  %v378_v5 = vmax.f32 %v314_v47, 0.0 }
  0x26   :  { %436 = vst.msk [vmem:[%s1481_s5] sm:$0xff] %vm435_vm3, %v371_v4  ;;  %v179_v11 = vmul.f32 %v788_v46, %v101_v40  ;;  %v180_v27 = vmul.f32 %v788_v46, %v102_v41  ;;  %v181_v12 = vmul.f32 %v788_v46, %v103_v42  ;;  %v182_v4 = vmul.f32 %v788_v46, %v104_v48 }
  0x27   :  { %437 = vst.msk [vmem:[%s1481_s5 + $0x8] sm:$0xff] %vm435_vm3, %v372_v15  ;;  %v183_v18 = vmul.f32 %v788_v46, %v105_v49  ;;  %v184_v19 = vmul.f32 %v788_v46, %v106_v50  ;;  %v185_v20 = vmul.f32 %v788_v46, %v107_v53  ;;  %v186_v24 = vmul.f32 %v788_v46, %v108_v54 }
  0x28   :  { %438 = vst.msk [vmem:[%s1481_s5 + $0x10] sm:$0xff] %vm435_vm3, %v373_v3  ;;  %v247_v25 = vmul.f32 %v793_v10, %v179_v11  ;;  %v248_v26 = vmul.f32 %v793_v10, %v180_v27  ;;  %v249_v40 = vmul.f32 %v793_v10, %v181_v12  ;;  %v250_v29 = vmul.f32 %v793_v10, %v182_v4 }
  0x29   :  { %439 = vst.msk [vmem:[%s1481_s5 + $0x18] sm:$0xff] %vm435_vm3, %v374_v9  ;;  %v251_v30 = vmul.f32 %v793_v10, %v183_v18  ;;  %v252_v41 = vmul.f32 %v793_v10, %v184_v19  ;;  %v253_v42 = vmul.f32 %v793_v10, %v185_v20  ;;  %v254_v48 = vmul.f32 %v793_v10, %v186_v24 }
  0x2a   :  { %440 = vst.msk [vmem:[%s1481_s5 + $0x20] sm:$0xff] %vm435_vm3, %v375_v63  ;;  %v315_v49 = vadd.f32 %v821_v6, %v247_v25  ;;  %v316_v50 = vadd.f32 %v821_v6, %v248_v26  ;;  %v317_v53 = vadd.f32 %v821_v6, %v249_v40  ;;  %v318_v54 = vadd.f32 %v821_v6, %v250_v29 }
  0x2b   :  { %441 = vst.msk [vmem:[%s1481_s5 + $0x28] sm:$0xff] %vm435_vm3, %v376_v23  ;;  %v319_v3 = vadd.f32 %v821_v6, %v251_v30  ;;  %v320_v28 = vadd.f32 %v821_v6, %v252_v41  ;;  %v321_v33 = vadd.f32 %v821_v6, %v253_v42  ;;  %v322_v63 = vadd.f32 %v821_v6, %v254_v48 }
  0x2c   :  { %442 = vst.msk [vmem:[%s1481_s5 + $0x30] sm:$0xff] %vm435_vm3, %v377_v62  ;;  %v379_v34 = vmax.f32 %v315_v49, 0.0  ;;  %v380_v35 = vmax.f32 %v316_v50, 0.0  ;;  %v381_v39 = vmax.f32 %v317_v53, 0.0  ;;  %v382_v22 = vmax.f32 %v318_v54, 0.0 }
  0x2d   :  { %443 = vst.msk [vmem:[%s1481_s5 + $0x38] sm:$0xff] %vm435_vm3, %v378_v5  ;;  %v383_v16 = vmax.f32 %v319_v3, 0.0  ;;  %v384_v60 = vmax.f32 %v320_v28, 0.0  ;;  %v385_v7 = vmax.f32 %v321_v33, 0.0  ;;  %v386_v21 = vmax.f32 %v322_v63, 0.0 }
  0x2e   :  { %444 = vst.msk [vmem:[%s1481_s5 + $0x40] sm:$0xff] %vm435_vm3, %v379_v34  ;;  %v187_v62 = vmul.f32 %v788_v46, %v109_v55  ;;  %v188_v47 = vmul.f32 %v788_v46, %v110_v56  ;;  %v189_v15 = vmul.f32 %v788_v46, %v111_v61  ;;  %v1484_v9 = vsub.f32 %v663_v38, %v549_v8 }
  0x2f   :  { %445 = vst.msk [vmem:[%s1481_s5 + $0x48] sm:$0xff] %vm435_vm3, %v380_v35  ;;  %v191_v36 = vmul.f32 %v788_v46, %v1485_v31  ;;  %v192_v55 = vmul.f32 %v788_v46, %v1486_v37  ;;  %v1487_v38 = vsub.f32 %v686_v45, %v549_v8  ;;  %v1488_v61 = vsub.f32 %v704_v51, %v549_v8 }
  0x30   :  { %v190_v23 = vmul.f32 %v788_v46, %v1484_v9  ;;  %446 = vst.msk [vmem:[%s1481_s5 + $0x50] sm:$0xff] %vm435_vm3, %v381_v39  ;;  %v255_v43 = vmul.f32 %v793_v10, %v187_v62  ;;  %v256_v44 = vmul.f32 %v793_v10, %v188_v47  ;;  %v257_v11 = vmul.f32 %v793_v10, %v189_v15 }
  0x31   :  { %v193_v56 = vmul.f32 %v788_v46, %v1487_v38  ;;  %v194_v5 = vmul.f32 %v788_v46, %v1488_v61  ;;  %447 = vst.msk [vmem:[%s1481_s5 + $0x58] sm:$0xff] %vm435_vm3, %v382_v22  ;;  %v259_v51 = vmul.f32 %v793_v10, %v191_v36  ;;  %v260_v27 = vmul.f32 %v793_v10, %v192_v55  ;;  %v61_v55 = vld [vmem:[%s1480_s0 + $0x118] sm:$0xff] }
  0x32   :  { %v258_v45 = vmul.f32 %v793_v10, %v190_v23  ;;  %448 = vst.msk [vmem:[%s1481_s5 + $0x60] sm:$0xff] %vm435_vm3, %v383_v16  ;;  %v323_v18 = vadd.f32 %v821_v6, %v255_v43  ;;  %v324_v19 = vadd.f32 %v821_v6, %v256_v44  ;;  %v325_v20 = vadd.f32 %v821_v6, %v257_v11  ;;  %v62_v43 = vld [vmem:[%s1480_s0 + $0x120] sm:$0xff]  ;;  %v63_v44 = vld [vmem:[%s1480_s0 + $0x128] sm:$0xff]  ;;  %v64_v11 = vld [vmem:[%s1480_s0 + $0x130] sm:$0xff] }
  0x33   :  { %v261_v12 = vmul.f32 %v793_v10, %v193_v56  ;;  %v262_v4 = vmul.f32 %v793_v10, %v194_v5  ;;  %449 = vst.msk [vmem:[%s1481_s5 + $0x68] sm:$0xff] %vm435_vm3, %v384_v60  ;;  %v327_v25 = vadd.f32 %v821_v6, %v259_v51  ;;  %v328_v26 = vadd.f32 %v821_v6, %v260_v27 }
  0x34   :  { %v326_v24 = vadd.f32 %v821_v6, %v258_v45  ;;  %450 = vst.msk [vmem:[%s1481_s5 + $0x70] sm:$0xff] %vm435_vm3, %v385_v7  ;;  %v387_v30 = vmax.f32 %v323_v18, 0.0  ;;  %v388_v41 = vmax.f32 %v324_v19, 0.0  ;;  %v389_v42 = vmax.f32 %v325_v20, 0.0 }
  0x35   :  { %v329_v40 = vadd.f32 %v821_v6, %v261_v12  ;;  %v330_v29 = vadd.f32 %v821_v6, %v262_v4  ;;  %451 = vst.msk [vmem:[%s1481_s5 + $0x78] sm:$0xff] %vm435_vm3, %v386_v21  ;;  %v391_v49 = vmax.f32 %v327_v25, 0.0  ;;  %v392_v50 = vmax.f32 %v328_v26, 0.0  ;;  %v65_v4 = vld [vmem:[%s1480_s0 + $0x138] sm:$0xff] }
  0x36   :  { %v390_v48 = vmax.f32 %v326_v24, 0.0  ;;  %452 = vst.msk [vmem:[%s1481_s5 + $0x80] sm:$0xff] %vm435_vm3, %v387_v30  ;;  %v1489_v3 = vsub.f32 %v709_v52, %v549_v8  ;;  %v1490_v33 = vsub.f32 %v722_v57, %v549_v8  ;;  %v1491_v34 = vsub.f32 %v727_v58, %v549_v8 }
  0x37   :  { %v393_v53 = vmax.f32 %v329_v40, 0.0  ;;  %v394_v54 = vmax.f32 %v330_v29, 0.0  ;;  %v1492_v39 = vsub.f32 %v732_v59, %v549_v8  ;;  %453 = vst.msk [vmem:[%s1481_s5 + $0x88] sm:$0xff] %vm435_vm3, %v388_v41  ;;  %v1493_v52 = vsub.f32 %v744_v0, %v549_v8 }
  0x38   :  { %v195_v28 = vmul.f32 %v788_v46, %v1489_v3  ;;  %v196_v63 = vmul.f32 %v788_v46, %v1490_v33  ;;  %v197_v35 = vmul.f32 %v788_v46, %v1491_v34  ;;  %v1494_v58 = vsub.f32 %v749_v1, %v549_v8  ;;  %454 = vst.msk [vmem:[%s1481_s5 + $0x90] sm:$0xff] %vm435_vm3, %v389_v42 }
  0x39   :  { %v198_v22 = vmul.f32 %v788_v46, %v1492_v39  ;;  %v199_v57 = vmul.f32 %v788_v46, %v1493_v52  ;;  %v1495_v59 = vsub.f32 %v754_v2, %v549_v8  ;;  %v1496_v7 = vsub.f32 %v767_v13, %v549_v8  ;;  %455 = vst.msk [vmem:[%s1481_s5 + $0x98] sm:$0xff] %vm435_vm3, %v390_v48 }
  0x3a   :  { %v200_v16 = vmul.f32 %v788_v46, %v1494_v58  ;;  %v263_v0 = vmul.f32 %v793_v10, %v195_v28  ;;  %v264_v1 = vmul.f32 %v793_v10, %v196_v63  ;;  %v265_v62 = vmul.f32 %v793_v10, %v197_v35  ;;  %456 = vst.msk [vmem:[%s1481_s5 + $0xa0] sm:$0xff] %vm435_vm3, %v391_v49 }
  0x3b   :  { %v201_v60 = vmul.f32 %v788_v46, %v1495_v59  ;;  %v202_v21 = vmul.f32 %v788_v46, %v1496_v7  ;;  %v266_v2 = vmul.f32 %v793_v10, %v198_v22  ;;  %v267_v13 = vmul.f32 %v793_v10, %v199_v57  ;;  %457 = vst.msk [vmem:[%s1481_s5 + $0xa8] sm:$0xff] %vm435_vm3, %v392_v50  ;;  %v66_v59 = vld [vmem:[%s1480_s0 + $0x140] sm:$0xff]  ;;  %v68_v7 = vld [vmem:[%s1480_s0 + $0x150] sm:$0xff] }
  0x3c   :  { %v268_v47 = vmul.f32 %v793_v10, %v200_v16  ;;  %v331_v23 = vadd.f32 %v821_v6, %v263_v0  ;;  %v332_v31 = vadd.f32 %v821_v6, %v264_v1  ;;  %v333_v36 = vadd.f32 %v821_v6, %v265_v62  ;;  %458 = vst.msk [vmem:[%s1481_s5 + $0xb0] sm:$0xff] %vm435_vm3, %v393_v53 }
  0x3d   :  { %v269_v15 = vmul.f32 %v793_v10, %v201_v60  ;;  %v270_v9 = vmul.f32 %v793_v10, %v202_v21  ;;  %v334_v37 = vadd.f32 %v821_v6, %v266_v2  ;;  %v335_v38 = vadd.f32 %v821_v6, %v267_v13  ;;  %459 = vst.msk [vmem:[%s1481_s5 + $0xb8] sm:$0xff] %vm435_vm3, %v394_v54  ;;  %v67_v60 = vld [vmem:[%s1480_s0 + $0x148] sm:$0xff] }
  0x3e   :  { %v336_v56 = vadd.f32 %v821_v6, %v268_v47  ;;  %v395_v45 = vmax.f32 %v331_v23, 0.0  ;;  %v396_v51 = vmax.f32 %v332_v31, 0.0  ;;  %v397_v27 = vmax.f32 %v333_v36, 0.0  ;;  %v70_v23 = vld [vmem:[%s1480_s0 + $0x160] sm:$0xff] }
  0x3f   :  { %v337_v61 = vadd.f32 %v821_v6, %v269_v15  ;;  %v338_v5 = vadd.f32 %v821_v6, %v270_v9  ;;  %v398_v12 = vmax.f32 %v334_v37, 0.0  ;;  %v399_v18 = vmax.f32 %v335_v38, 0.0  ;;  %v69_v9 = vld [vmem:[%s1480_s0 + $0x158] sm:$0xff]  ;;  %v71_v38 = vld [vmem:[%s1480_s0 + $0x168] sm:$0xff] }
  0x40   :  { %v400_v19 = vmax.f32 %v336_v56, 0.0  ;;  %460 = vst.msk [vmem:[%s1481_s5 + $0xc0] sm:$0xff] %vm435_vm3, %v395_v45  ;;  %v1497_v25 = vsub.f32 %v772_v14, %v549_v8  ;;  %v1498_v40 = vsub.f32 %v786_v32, %v549_v8  ;;  %v1499_v30 = vsub.f32 %v804_v17, %v549_v8  ;;  %v72_v56 = vld [vmem:[%s1480_s0 + $0x170] sm:$0xff] }
  0x41   :  { %v401_v20 = vmax.f32 %v337_v61, 0.0  ;;  %v402_v24 = vmax.f32 %v338_v5, 0.0  ;;  %v128_v42 = vsub.f32 %v61_v55, %v549_v8  ;;  %461 = vst.msk [vmem:[%s1481_s5 + $0xc8] sm:$0xff] %vm435_vm3, %v396_v51  ;;  %v129_v14 = vsub.f32 %v62_v43, %v549_v8  ;;  %v73_v61 = vld [vmem:[%s1480_s0 + $0x178] sm:$0xff] }
  0x42   :  { %v203_v26 = vmul.f32 %v788_v46, %v1497_v25  ;;  %v204_v29 = vmul.f32 %v788_v46, %v1498_v40  ;;  %v205_v41 = vmul.f32 %v788_v46, %v1499_v30  ;;  %v130_v48 = vsub.f32 %v63_v44, %v549_v8  ;;  %462 = vst.msk [vmem:[%s1481_s5 + $0xd0] sm:$0xff] %vm435_vm3, %v397_v27 }
  0x43   :  { %v131_v32 = vsub.f32 %v64_v11, %v549_v8  ;;  %v132_v49 = vsub.f32 %v65_v4, %v549_v8  ;;  %v206_v54 = vmul.f32 %v788_v46, %v128_v42  ;;  %463 = vst.msk [vmem:[%s1481_s5 + $0xd8] sm:$0xff] %vm435_vm3, %v398_v12  ;;  %v207_v3 = vmul.f32 %v788_v46, %v129_v14 }
  0x44   :  { %v271_v17 = vmul.f32 %v793_v10, %v203_v26  ;;  %v272_v50 = vmul.f32 %v793_v10, %v204_v29  ;;  %v273_v53 = vmul.f32 %v793_v10, %v205_v41  ;;  %v208_v28 = vmul.f32 %v788_v46, %v130_v48  ;;  %464 = vst.msk [vmem:[%s1481_s5 + $0xe0] sm:$0xff] %vm435_vm3, %v399_v18 }
  0x45   :  { %v209_v33 = vmul.f32 %v788_v46, %v131_v32  ;;  %v210_v63 = vmul.f32 %v788_v46, %v132_v49  ;;  %v274_v22 = vmul.f32 %v793_v10, %v206_v54  ;;  %465 = vst.msk [vmem:[%s1481_s5 + $0xe8] sm:$0xff] %vm435_vm3, %v400_v19  ;;  %v275_v52 = vmul.f32 %v793_v10, %v207_v3  ;;  %v74_v3 = vld [vmem:[%s1480_s0 + $0x180] sm:$0xff] }
  0x46   :  { %v339_v34 = vadd.f32 %v821_v6, %v271_v17  ;;  %v340_v35 = vadd.f32 %v821_v6, %v272_v50  ;;  %v341_v39 = vadd.f32 %v821_v6, %v273_v53  ;;  %v276_v57 = vmul.f32 %v793_v10, %v208_v28  ;;  %466 = vst.msk [vmem:[%s1481_s5 + $0xf0] sm:$0xff] %vm435_vm3, %v401_v20  ;;  %v75_v28 = vld [vmem:[%s1480_s0 + $0x188] sm:$0xff] }
  0x47   :  { %v277_v58 = vmul.f32 %v793_v10, %v209_v33  ;;  %v278_v16 = vmul.f32 %v793_v10, %v210_v63  ;;  %v342_v62 = vadd.f32 %v821_v6, %v274_v22  ;;  %467 = vst.msk [vmem:[%s1481_s5 + $0xf8] sm:$0xff] %vm435_vm3, %v402_v24  ;;  %v343_v2 = vadd.f32 %v821_v6, %v275_v52  ;;  %v76_v33 = vld [vmem:[%s1480_s0 + $0x190] sm:$0xff] }
  0x48   :  { %v403_v21 = vmax.f32 %v339_v34, 0.0  ;;  %v404_v0 = vmax.f32 %v340_v35, 0.0  ;;  %v405_v1 = vmax.f32 %v341_v39, 0.0  ;;  %v344_v13 = vadd.f32 %v821_v6, %v276_v57 }
  0x49   :  { %v345_v47 = vadd.f32 %v821_v6, %v277_v58  ;;  %v346_v15 = vadd.f32 %v821_v6, %v278_v16  ;;  %v406_v31 = vmax.f32 %v342_v62, 0.0  ;;  %v133_v36 = vsub.f32 %v66_v59, %v549_v8  ;;  %v77_v16 = vld [vmem:[%s1480_s0 + $0x198] sm:$0xff]  ;;  %v78_v59 = vld [vmem:[%s1480_s0 + $0x1a0] sm:$0xff]  ;;  %v80_v62 = vld [vmem:[%s1480_s0 + $0x1b0] sm:$0xff] }
  0x4a   :  { %468 = vst.msk [vmem:[%s1481_s5 + $0x100] sm:$0xff] %vm435_vm3, %v403_v21  ;;  %v134_v37 = vsub.f32 %v67_v60, %v549_v8  ;;  %v135_v55 = vsub.f32 %v68_v7, %v549_v8  ;;  %v407_v5 = vmax.f32 %v343_v2, 0.0  ;;  %v408_v43 = vmax.f32 %v344_v13, 0.0  ;;  %v81_v2 = vld [vmem:[%s1480_s0 + $0x1b8] sm:$0xff] }
  0x4b   :  { %469 = vst.msk [vmem:[%s1481_s5 + $0x108] sm:$0xff] %vm435_vm3, %v404_v0  ;;  %v409_v44 = vmax.f32 %v345_v47, 0.0  ;;  %v410_v11 = vmax.f32 %v346_v15, 0.0  ;;  %v211_v45 = vmul.f32 %v788_v46, %v133_v36  ;;  %v136_v12 = vsub.f32 %v69_v9, %v549_v8 }
  0x4c   :  { %470 = vst.msk [vmem:[%s1481_s5 + $0x110] sm:$0xff] %vm435_vm3, %v405_v1  ;;  %v212_v51 = vmul.f32 %v788_v46, %v134_v37  ;;  %v213_v27 = vmul.f32 %v788_v46, %v135_v55  ;;  %v137_v4 = vsub.f32 %v70_v23, %v549_v8  ;;  %v138_v18 = vsub.f32 %v71_v38, %v549_v8  ;;  %v79_v1 = vld [vmem:[%s1480_s0 + $0x1a8] sm:$0xff] }
  0x4d   :  { %471 = vst.msk [vmem:[%s1481_s5 + $0x118] sm:$0xff] %vm435_vm3, %v406_v31  ;;  %v139_v19 = vsub.f32 %v72_v56, %v549_v8  ;;  %v140_v20 = vsub.f32 %v73_v61, %v549_v8  ;;  %v279_v24 = vmul.f32 %v793_v10, %v211_v45  ;;  %v214_v40 = vmul.f32 %v788_v46, %v136_v12 }
  0x4e   :  { %472 = vst.msk [vmem:[%s1481_s5 + $0x120] sm:$0xff] %vm435_vm3, %v407_v5  ;;  %v280_v25 = vmul.f32 %v793_v10, %v212_v51  ;;  %v281_v26 = vmul.f32 %v793_v10, %v213_v27  ;;  %v215_v29 = vmul.f32 %v788_v46, %v137_v4  ;;  %v216_v30 = vmul.f32 %v788_v46, %v138_v18 }
  0x4f   :  { %473 = vst.msk [vmem:[%s1481_s5 + $0x128] sm:$0xff] %vm435_vm3, %v408_v43  ;;  %v217_v41 = vmul.f32 %v788_v46, %v139_v19  ;;  %v218_v42 = vmul.f32 %v788_v46, %v140_v20  ;;  %v347_v14 = vadd.f32 %v821_v6, %v279_v24  ;;  %v282_v49 = vmul.f32 %v793_v10, %v214_v40 }
  0x50   :  { %474 = vst.msk [vmem:[%s1481_s5 + $0x130] sm:$0xff] %vm435_vm3, %v409_v44  ;;  %v348_v48 = vadd.f32 %v821_v6, %v280_v25  ;;  %v349_v32 = vadd.f32 %v821_v6, %v281_v26  ;;  %v283_v17 = vmul.f32 %v793_v10, %v215_v29  ;;  %v284_v50 = vmul.f32 %v793_v10, %v216_v30  ;;  %v82_v29 = vld [vmem:[%s1480_s0 + $0x1c0] sm:$0xff]  ;;  %v83_v30 = vld [vmem:[%s1480_s0 + $0x1c8] sm:$0xff] }
  0x51   :  { %475 = vst.msk [vmem:[%s1481_s5 + $0x138] sm:$0xff] %vm435_vm3, %v410_v11  ;;  %v285_v53 = vmul.f32 %v793_v10, %v217_v41  ;;  %v286_v54 = vmul.f32 %v793_v10, %v218_v42  ;;  %v411_v63 = vmax.f32 %v347_v14, 0.0  ;;  %v350_v39 = vadd.f32 %v821_v6, %v282_v49  ;;  %v84_v41 = vld [vmem:[%s1480_s0 + $0x1d0] sm:$0xff] }
  0x52   :  { %v412_v34 = vmax.f32 %v348_v48, 0.0  ;;  %v413_v35 = vmax.f32 %v349_v32, 0.0  ;;  %v351_v22 = vadd.f32 %v821_v6, %v283_v17  ;;  %v352_v52 = vadd.f32 %v821_v6, %v284_v50 }
  0x53   :  { %v353_v57 = vadd.f32 %v821_v6, %v285_v53  ;;  %v354_v58 = vadd.f32 %v821_v6, %v286_v54  ;;  %476 = vst.msk [vmem:[%s1481_s5 + $0x140] sm:$0xff] %vm435_vm3, %v411_v63  ;;  %v414_v60 = vmax.f32 %v350_v39, 0.0  ;;  %v141_v7 = vsub.f32 %v74_v3, %v549_v8  ;;  %v85_v54 = vld [vmem:[%s1480_s0 + $0x1d8] sm:$0xff]  ;;  %v86_v3 = vld [vmem:[%s1480_s0 + $0x1e0] sm:$0xff]  ;;  %v88_v39 = vld [vmem:[%s1480_s0 + $0x1f0] sm:$0xff] }
  0x54   :  { %v142_v21 = vsub.f32 %v75_v28, %v549_v8  ;;  %v143_v0 = vsub.f32 %v76_v33, %v549_v8  ;;  %477 = vst.msk [vmem:[%s1481_s5 + $0x148] sm:$0xff] %vm435_vm3, %v412_v34  ;;  %v415_v13 = vmax.f32 %v351_v22, 0.0  ;;  %v416_v47 = vmax.f32 %v352_v52, 0.0  ;;  %v89_v22 = vld [vmem:[%s1480_s0 + $0x1f8] sm:$0xff] }
  0x55   :  { %v417_v15 = vmax.f32 %v353_v57, 0.0  ;;  %v418_v9 = vmax.f32 %v354_v58, 0.0  ;;  %478 = vst.msk [vmem:[%s1481_s5 + $0x150] sm:$0xff] %vm435_vm3, %v413_v35  ;;  %v219_v23 = vmul.f32 %v788_v46, %v141_v7  ;;  %v144_v37 = vsub.f32 %v77_v16, %v549_v8  ;;  %v87_v35 = vld [vmem:[%s1480_s0 + $0x1e8] sm:$0xff] }
  0x56   :  { %v220_v31 = vmul.f32 %v788_v46, %v142_v21  ;;  %v221_v36 = vmul.f32 %v788_v46, %v143_v0  ;;  %479 = vst.msk [vmem:[%s1481_s5 + $0x158] sm:$0xff] %vm435_vm3, %v414_v60  ;;  %v145_v55 = vsub.f32 %v78_v59, %v549_v8  ;;  %v146_v38 = vsub.f32 %v79_v1, %v549_v8 }
  0x57   :  { %v147_v56 = vsub.f32 %v80_v62, %v549_v8  ;;  %v148_v61 = vsub.f32 %v81_v2, %v549_v8  ;;  %480 = vst.msk [vmem:[%s1481_s5 + $0x160] sm:$0xff] %vm435_vm3, %v415_v13  ;;  %v287_v5 = vmul.f32 %v793_v10, %v219_v23  ;;  %v222_v11 = vmul.f32 %v788_v46, %v144_v37 }
  0x58   :  { %v288_v43 = vmul.f32 %v793_v10, %v220_v31  ;;  %v289_v44 = vmul.f32 %v793_v10, %v221_v36  ;;  %481 = vst.msk [vmem:[%s1481_s5 + $0x168] sm:$0xff] %vm435_vm3, %v416_v47  ;;  %v223_v45 = vmul.f32 %v788_v46, %v145_v55  ;;  %v224_v51 = vmul.f32 %v788_v46, %v146_v38 }
  0x59   :  { %v225_v27 = vmul.f32 %v788_v46, %v147_v56  ;;  %v226_v12 = vmul.f32 %v788_v46, %v148_v61  ;;  %482 = vst.msk [vmem:[%s1481_s5 + $0x170] sm:$0xff] %vm435_vm3, %v417_v15  ;;  %v355_v4 = vadd.f32 %v821_v6, %v287_v5  ;;  %v290_v20 = vmul.f32 %v793_v10, %v222_v11 }
  0x5a   :  { %v356_v18 = vadd.f32 %v821_v6, %v288_v43  ;;  %v357_v19 = vadd.f32 %v821_v6, %v289_v44  ;;  %483 = vst.msk [vmem:[%s1481_s5 + $0x178] sm:$0xff] %vm435_vm3, %v418_v9  ;;  %v291_v24 = vmul.f32 %v793_v10, %v223_v45  ;;  %v292_v25 = vmul.f32 %v793_v10, %v224_v51 }
  0x5b   :  { %v293_v26 = vmul.f32 %v793_v10, %v225_v27  ;;  %v294_v40 = vmul.f32 %v793_v10, %v226_v12  ;;  %v419_v42 = vmax.f32 %v355_v4, 0.0  ;;  %v358_v32 = vadd.f32 %v821_v6, %v290_v20 }
  0x5c   :  { %v420_v14 = vmax.f32 %v356_v18, 0.0  ;;  %v421_v48 = vmax.f32 %v357_v19, 0.0  ;;  %v359_v49 = vadd.f32 %v821_v6, %v291_v24  ;;  %v360_v17 = vadd.f32 %v821_v6, %v292_v25 }
  0x5d   :  { %v361_v50 = vadd.f32 %v821_v6, %v293_v26  ;;  %v362_v53 = vadd.f32 %v821_v6, %v294_v40  ;;  %484 = vst.msk [vmem:[%s1481_s5 + $0x180] sm:$0xff] %vm435_vm3, %v419_v42  ;;  %v422_v28 = vmax.f32 %v358_v32, 0.0  ;;  %v149_v33 = vsub.f32 %v82_v29, %v549_v8 }
  0x5e   :  { %v150_v63 = vsub.f32 %v83_v30, %v549_v8  ;;  %v151_v34 = vsub.f32 %v84_v41, %v549_v8  ;;  %485 = vst.msk [vmem:[%s1481_s5 + $0x188] sm:$0xff] %vm435_vm3, %v420_v14  ;;  %v423_v52 = vmax.f32 %v359_v49, 0.0  ;;  %v424_v57 = vmax.f32 %v360_v17, 0.0 }
  0x5f   :  { %v425_v58 = vmax.f32 %v361_v50, 0.0  ;;  %v426_v16 = vmax.f32 %v362_v53, 0.0  ;;  %486 = vst.msk [vmem:[%s1481_s5 + $0x190] sm:$0xff] %vm435_vm3, %v421_v48  ;;  %v227_v59 = vmul.f32 %v788_v46, %v149_v33  ;;  %v152_v21 = vsub.f32 %v85_v54, %v549_v8 }
  0x60   :  { %v228_v60 = vmul.f32 %v788_v46, %v150_v63  ;;  %v229_v7 = vmul.f32 %v788_v46, %v151_v34  ;;  %487 = vst.msk [vmem:[%s1481_s5 + $0x198] sm:$0xff] %vm435_vm3, %v422_v28  ;;  %v153_v0 = vsub.f32 %v86_v3, %v549_v8  ;;  %v154_v1 = vsub.f32 %v87_v35, %v549_v8 }
  0x61   :  { %v155_v62 = vsub.f32 %v88_v39, %v549_v8  ;;  %v156_v2 = vsub.f32 %v89_v22, %v549_v8  ;;  %488 = vst.msk [vmem:[%s1481_s5 + $0x1a0] sm:$0xff] %vm435_vm3, %v423_v52  ;;  %v295_v13 = vmul.f32 %v793_v10, %v227_v59  ;;  %v230_v9 = vmul.f32 %v788_v46, %v152_v21 }
  0x62   :  { %v296_v47 = vmul.f32 %v793_v10, %v228_v60  ;;  %v297_v15 = vmul.f32 %v793_v10, %v229_v7  ;;  %489 = vst.msk [vmem:[%s1481_s5 + $0x1a8] sm:$0xff] %vm435_vm3, %v424_v57  ;;  %v231_v8 = vmul.f32 %v788_v46, %v153_v0  ;;  %v232_v23 = vmul.f32 %v788_v46, %v154_v1 }
  0x63   :  { %v233_v31 = vmul.f32 %v788_v46, %v155_v62  ;;  %v234_v36 = vmul.f32 %v788_v46, %v156_v2  ;;  %490 = vst.msk [vmem:[%s1481_s5 + $0x1b0] sm:$0xff] %vm435_vm3, %v425_v58  ;;  %v363_v37 = vadd.f32 %v821_v6, %v295_v13  ;;  %v298_v56 = vmul.f32 %v793_v10, %v230_v9 }
  0x64   :  { %v364_v55 = vadd.f32 %v821_v6, %v296_v47  ;;  %v365_v38 = vadd.f32 %v821_v6, %v297_v15  ;;  %491 = vst.msk [vmem:[%s1481_s5 + $0x1b8] sm:$0xff] %vm435_vm3, %v426_v16  ;;  %v299_v46 = vmul.f32 %v793_v10, %v231_v8  ;;  %v300_v61 = vmul.f32 %v793_v10, %v232_v23 }
  0x65   :  { %v301_v5 = vmul.f32 %v793_v10, %v233_v31  ;;  %v302_v43 = vmul.f32 %v793_v10, %v234_v36  ;;  %v427_v44 = vmax.f32 %v363_v37, 0.0  ;;  %v366_v51 = vadd.f32 %v821_v6, %v298_v56 }
  0x66   :  { %v428_v11 = vmax.f32 %v364_v55, 0.0  ;;  %v429_v45 = vmax.f32 %v365_v38, 0.0  ;;  %v367_v27 = vadd.f32 %v821_v6, %v299_v46  ;;  %v368_v12 = vadd.f32 %v821_v6, %v300_v61 }
  0x67   :  { %v369_v4 = vadd.f32 %v821_v6, %v301_v5  ;;  %v370_v18 = vadd.f32 %v821_v6, %v302_v43  ;;  %492 = vst.msk [vmem:[%s1481_s5 + $0x1c0] sm:$0xff] %vm435_vm3, %v427_v44  ;;  %v430_v19 = vmax.f32 %v366_v51, 0.0 }
  0x68   :  { %493 = vst.msk [vmem:[%s1481_s5 + $0x1c8] sm:$0xff] %vm435_vm3, %v428_v11  ;;  %v431_v10 = vmax.f32 %v367_v27, 0.0  ;;  %v432_v20 = vmax.f32 %v368_v12, 0.0 }
  0x69   :  { %494 = vst.msk [vmem:[%s1481_s5 + $0x1d0] sm:$0xff] %vm435_vm3, %v429_v45  ;;  %v433_v24 = vmax.f32 %v369_v4, 0.0  ;;  %v434_v6 = vmax.f32 %v370_v18, 0.0 }
  0x6a   :  { %495 = vst.msk [vmem:[%s1481_s5 + $0x1d8] sm:$0xff] %vm435_vm3, %v430_v19 }
  0x6b   :  { %496 = vst.msk [vmem:[%s1481_s5 + $0x1e0] sm:$0xff] %vm435_vm3, %v431_v10 }
  0x6c   :  { %497 = vst.msk [vmem:[%s1481_s5 + $0x1e8] sm:$0xff] %vm435_vm3, %v432_v20 }
  0x6d   :  { %498 = vst.msk [vmem:[%s1481_s5 + $0x1f0] sm:$0xff] %vm435_vm3, %v433_v24 }
  0x6e   :  { %499 = vst.msk [vmem:[%s1481_s5 + $0x1f8] sm:$0xff] %vm435_vm3, %v434_v6 }

// kernel: ham_forward.4
= control target key start
LH: loop header
LB: loop body
LE: loop exit
PB: predicated region body
PF: predicated region fallthrough
CT: control target
= control target key end

     0   :  { %s5229_s24 = smov 0   ;;  %s5231_s25 = smov 0   ;;  %s7897_s0 = inlined_call_operand.vmem [shape: f32[512,2], index: 0, kind: input, shape index: {}]   ;;  %s7898_s1 = inlined_call_operand.vmem [shape: f32[512,1], index: 1, kind: input, shape index: {}]   ;;  %s7899_s2 = inlined_call_operand.vmem [shape: f32[512,1], index: 2, kind: input, shape index: {}]   ;;  %s7900_s3 = inlined_call_operand.vmem [shape: f32[512,1], index: 3, kind: input, shape index: {}]   ;;  %s7901_s4 = inlined_call_operand.vmem [shape: f32[512,1], index: 4, kind: input, shape index: {}]   ;;  %s7902_s5 = inlined_call_operand.vmem [shape: f32[256,2], index: 5, kind: input, shape index: {}]   ;;  %s7903_s6 = inlined_call_operand.vmem [shape: f32[256,2], index: 6, kind: input, shape index: {}]   ;;  %s7904_s7 = inlined_call_operand.vmem [shape: f32[256,2], index: 7, kind: input, shape index: {}]   ;;  %s7905_s8 = inlined_call_operand.vmem [shape: f32[256,2], index: 8, kind: input, shape index: {}]   ;;  %s7906_s9 = inlined_call_operand.vmem [shape: f32[512,4], index: 9, kind: input, shape index: {}]   ;;  %s7907_s10 = inlined_call_operand.vmem [shape: f32[2,4], index: 10, kind: input, shape index: {}]   ;;  %s7908_s11 = inlined_call_operand.vmem [shape: f32[1,4], index: 11, kind: input, shape index: {}]   ;;  %s7909_s12 = inlined_call_operand.vmem [shape: f32[4,4], index: 12, kind: input, shape index: {}]   ;;  %s7910_s13 = inlined_call_operand.vmem [shape: f32[1,4], index: 13, kind: input, shape index: {}]   ;;  %s7911_s14 = inlined_call_operand.vmem [shape: f32[4,4], index: 14, kind: input, shape index: {}]   ;;  %s7912_s15 = inlined_call_operand.vmem [shape: f32[512,4], index: 15, kind: output, shape index: {0}]   ;;  %s7913_s16 = inlined_call_operand.vmem [shape: f32[1,4], index: 16, kind: output, shape index: {1}]   ;;  %s7914_s17 = inlined_call_operand.vmem [shape: f32[1,4], index: 17, kind: output, shape index: {2}]  }
   0x1   :  { %7934 = sst [smem:[#allocation38_spill]] %s7897_s0  ;;  %s5233_s26 = smov 0  }
   0x2   :  { %7935 = sst [smem:[#allocation39_spill]] %s7898_s1 }
   0x3   :  { %7936 = sst [smem:[#allocation40_spill]] %s7899_s2 }
   0x4 LB: > { %s40_s27 = sadd.s32 1, %s5131_s25  ;;  %p4536_p0 = scmp.ge.s32.totalorder %s5135_s26, 1  ;;  %s5135_s26 = sphi %s5233_s26, %s28_s26   ;;  %s5131_s25 = sphi %s5231_s25, %s8059_s25   ;;  %s5127_s24 = sphi %s5229_s24, %s8058_s24  }
   0x5   : > { %p42_p1 = scmp.ge.s32.totalorder %s40_s27, 2  ;;  %p620_p2 = scmp.lt.s32.totalorder %s5135_s26, 3 }
   0x7   : > { %s8061_s27 = smov (%p42_p1, %s40_s27), 0  ;;  %p621_p3 = pnand %p4536_p0, %p620_p2 }
   0x9   : > { %624 = sbr.rel (%p621_p3) target bundleno = 2210 (0x8a2), region = 80 }
   0xe   : > { %s4537_s28 = sshll.u32 %s5127_s24, 5  ;;  %v5137_v0 = vmov 0   ;;  %s7937_s18 = sld [smem:[#allocation39_spill]]  ;;  %vm1380_vm0 = vcmask 15360   ;;  %vm3109_vm1 = vcmask 1043456   ;;  %vm3012_vm2 = vcmask 31744  }
   0xf   : > { %4716 = vset.pattern.permute.xlu2 %v5137_v0  ;;  %4715 = vset.pattern.permute.xlu1 %v5137_v0  ;;  %p726_p4 = scmp.lt.s32.totalorder %s4537_s28, 63  ;;  %s7938_s2 = sld [smem:[#allocation40_spill]]  ;;  %vm2890_vm3 = vcmask 1041408  }
  0x10   : > { %4714 = vset.pattern.permute.xlu0 %v5137_v0  ;;  %p4682_p5 = scmp.ne.s32.totalorder %s5127_s24, 0 }
  0x11   : > { %s8063_s28 = smov (!%p726_p4, %s4537_s28), 63 }
  0x12   : > { %s5250_s29 = sshll.u32 %s8063_s28, 3 }
  0x13   : > { %s5911_s22 = scalar_lea.vmem %s7900_s3, %s5250_s29  ;;  %s5918_s0 = scalar_lea.vmem %s7901_s4, %s5250_s29 }
  0x14   : > { %s5256_s19 = scalar_lea.vmem %s7937_s18, %s5250_s29  ;;  %s6194_s30 = scalar_lea.vmem %s7906_s9, %s5250_s29 }
  0x15   : > { %v872_v1 = vld [vmem:[%s5256_s19 + $0x20] sm:$0xff]  ;;  %v870_v2 = vld [vmem:[%s5256_s19 + $0x10] sm:$0xff]  ;;  %v873_v4 = vld [vmem:[%s5256_s19 + $0x28] sm:$0xff]  ;;  %s5292_s21 = scalar_lea.vmem %s7938_s2, %s5250_s29 }
  0x16   : > { %v868_v3 = vld [vmem:[%s5256_s19] sm:$0xff]  ;;  %954 = vperm.xlu2 %4716, %v872_v1   ;;  %944 = vperm.xlu1 %4715, %v870_v2   ;;  %v871_v5 = vld [vmem:[%s5256_s19 + $0x18] sm:$0xff]  ;;  %v869_v6 = vld [vmem:[%s5256_s19 + $0x8] sm:$0xff] }
  0x17   : > { %934 = vperm.xlu0 %4714, %v868_v3   ;;  %v876_v7 = vld [vmem:[%s5256_s19 + $0x40] sm:$0xff]  ;;  %v875_v8 = vld [vmem:[%s5256_s19 + $0x38] sm:$0xff]  ;;  %v874_v9 = vld [vmem:[%s5256_s19 + $0x30] sm:$0xff] }
  0x18   : > { %v879_v10 = vld [vmem:[%s5256_s19 + $0x58] sm:$0xff]  ;;  %v878_v11 = vld [vmem:[%s5256_s19 + $0x50] sm:$0xff]  ;;  %v877_v12 = vld [vmem:[%s5256_s19 + $0x48] sm:$0xff] }
  0x19   : > { %v882_v13 = vld [vmem:[%s5256_s19 + $0x70] sm:$0xff]  ;;  %v881_v14 = vld [vmem:[%s5256_s19 + $0x68] sm:$0xff]  ;;  %v880_v15 = vld [vmem:[%s5256_s19 + $0x60] sm:$0xff] }
  0x1a   : > { %v885_v16 = vld [vmem:[%s5256_s19 + $0x88] sm:$0xff]  ;;  %v884_v17 = vld [vmem:[%s5256_s19 + $0x80] sm:$0xff]  ;;  %v883_v18 = vld [vmem:[%s5256_s19 + $0x78] sm:$0xff] }
  0x1b   : > { %v888_v19 = vld [vmem:[%s5256_s19 + $0xa0] sm:$0xff]  ;;  %v887_v20 = vld [vmem:[%s5256_s19 + $0x98] sm:$0xff]  ;;  %v886_v21 = vld [vmem:[%s5256_s19 + $0x90] sm:$0xff] }
  0x1c   : > { %v891_v22 = vld [vmem:[%s5256_s19 + $0xb8] sm:$0xff]  ;;  %v890_v23 = vld [vmem:[%s5256_s19 + $0xb0] sm:$0xff]  ;;  %v889_v24 = vld [vmem:[%s5256_s19 + $0xa8] sm:$0xff] }
  0x1d   : > { %v894_v25 = vld [vmem:[%s5256_s19 + $0xd0] sm:$0xff]  ;;  %v893_v26 = vld [vmem:[%s5256_s19 + $0xc8] sm:$0xff]  ;;  %v892_v27 = vld [vmem:[%s5256_s19 + $0xc0] sm:$0xff] }
  0x1e   : > { %959 = vperm.xlu2 %4716, %v873_v4   ;;  %949 = vperm.xlu1 %4715, %v871_v5   ;;  %v897_v28 = vld [vmem:[%s5256_s19 + $0xe8] sm:$0xff]  ;;  %v896_v29 = vld [vmem:[%s5256_s19 + $0xe0] sm:$0xff]  ;;  %v895_v30 = vld [vmem:[%s5256_s19 + $0xd8] sm:$0xff] }
  0x1f   : > { %939 = vperm.xlu0 %4714, %v869_v6   ;;  %v900_v31 = vld [vmem:[%s5292_s21] sm:$0xff]  ;;  %v899_v32 = vld [vmem:[%s5256_s19 + $0xf8] sm:$0xff]  ;;  %v898_v33 = vld [vmem:[%s5256_s19 + $0xf0] sm:$0xff] }
  0x20   : > { %v903_v34 = vld [vmem:[%s5292_s21 + $0x18] sm:$0xff]  ;;  %v902_v35 = vld [vmem:[%s5292_s21 + $0x10] sm:$0xff]  ;;  %v901_v36 = vld [vmem:[%s5292_s21 + $0x8] sm:$0xff] }
  0x21   : > { %v906_v38 = vld [vmem:[%s5292_s21 + $0x30] sm:$0xff]  ;;  %v905_v39 = vld [vmem:[%s5292_s21 + $0x28] sm:$0xff]  ;;  %v904_v40 = vld [vmem:[%s5292_s21 + $0x20] sm:$0xff] }
  0x22   : > { %v909_v42 = vld [vmem:[%s5292_s21 + $0x48] sm:$0xff]  ;;  %v908_v43 = vld [vmem:[%s5292_s21 + $0x40] sm:$0xff]  ;;  %v907_v44 = vld [vmem:[%s5292_s21 + $0x38] sm:$0xff] }
  0x23   : > { %v912_v46 = vld [vmem:[%s5292_s21 + $0x60] sm:$0xff]  ;;  %v911_v47 = vld [vmem:[%s5292_s21 + $0x58] sm:$0xff]  ;;  %v910_v48 = vld [vmem:[%s5292_s21 + $0x50] sm:$0xff] }
  0x24   : > { %v915_v52 = vld [vmem:[%s5292_s21 + $0x78] sm:$0xff]  ;;  %v914_v53 = vld [vmem:[%s5292_s21 + $0x70] sm:$0xff]  ;;  %v913_v54 = vld [vmem:[%s5292_s21 + $0x68] sm:$0xff] }
  0x25   : > { %v918_v58 = vld [vmem:[%s5292_s21 + $0x90] sm:$0xff]  ;;  %v917_v59 = vld [vmem:[%s5292_s21 + $0x88] sm:$0xff]  ;;  %v916_v60 = vld [vmem:[%s5292_s21 + $0x80] sm:$0xff] }
  0x26   : > { %974 = vperm.xlu2 %4716, %v876_v7   ;;  %969 = vperm.xlu1 %4715, %v875_v8   ;;  %v921_v0 = vld [vmem:[%s5292_s21 + $0xa8] sm:$0xff]  ;;  %v920_v1 = vld [vmem:[%s5292_s21 + $0xa0] sm:$0xff]  ;;  %v919_v2 = vld [vmem:[%s5292_s21 + $0x98] sm:$0xff] }
  0x27   : > { %964 = vperm.xlu0 %4714, %v874_v9   ;;  %v924_v6 = vld [vmem:[%s5292_s21 + $0xc0] sm:$0xff]  ;;  %v923_v7 = vld [vmem:[%s5292_s21 + $0xb8] sm:$0xff]  ;;  %v922_v8 = vld [vmem:[%s5292_s21 + $0xb0] sm:$0xff] }
  0x2e   : > { %989 = vperm.xlu2 %4716, %v879_v10   ;;  %984 = vperm.xlu1 %4715, %v878_v11  }
  0x2f   : > { %979 = vperm.xlu0 %4714, %v877_v12   ;;  %v927_v12 = vld [vmem:[%s5292_s21 + $0xd8] sm:$0xff] }
  0x36   : > { %1004 = vperm.xlu2 %4716, %v882_v13   ;;  %999 = vperm.xlu1 %4715, %v881_v14   ;;  %v926_v13 = vld [vmem:[%s5292_s21 + $0xd0] sm:$0xff]  ;;  %v925_v14 = vld [vmem:[%s5292_s21 + $0xc8] sm:$0xff] }
  0x37   : > { %994 = vperm.xlu0 %4714, %v880_v15  }
  0x3e   : > { %1019 = vperm.xlu2 %4716, %v885_v16   ;;  %1014 = vperm.xlu1 %4715, %v884_v17  }
  0x3f   : > { %1009 = vperm.xlu0 %4714, %v883_v18   ;;  %v930_v18 = vld [vmem:[%s5292_s21 + $0xf0] sm:$0xff] }
  0x46   : > { %1034 = vperm.xlu2 %4716, %v888_v19   ;;  %1029 = vperm.xlu1 %4715, %v887_v20   ;;  %v929_v19 = vld [vmem:[%s5292_s21 + $0xe8] sm:$0xff]  ;;  %v928_v20 = vld [vmem:[%s5292_s21 + $0xe0] sm:$0xff] }
  0x47   : > { %1024 = vperm.xlu0 %4714, %v886_v21  }
  0x4e   : > { %1049 = vperm.xlu2 %4716, %v891_v22   ;;  %1044 = vperm.xlu1 %4715, %v890_v23  }
  0x4f   : > { %1039 = vperm.xlu0 %4714, %v889_v24   ;;  %v931_v24 = vld [vmem:[%s5292_s21 + $0xf8] sm:$0xff]  ;;  %s7975_s21 = sld [smem:[#allocation38_spill]] }
  0x55   : > { %s6233_s23 = scalar_lea.vmem %s7975_s21, %s5250_s29  ;;  %s6438_s21 = scalar_lea.vmem %s7912_s15, %s5250_s29 }
  0x56   : > { %1064 = vperm.xlu2 %4716, %v894_v25   ;;  %1059 = vperm.xlu1 %4715, %v893_v26  }
  0x57   : > { %1054 = vperm.xlu0 %4714, %v892_v27  }
  0x5e   : > { %1079 = vperm.xlu2 %4716, %v897_v28   ;;  %1074 = vperm.xlu1 %4715, %v896_v29  }
  0x5f   : > { %1069 = vperm.xlu0 %4714, %v895_v30  }
  0x66   : > { %1126 = vperm.xlu2 %4716, %v900_v31   ;;  %1089 = vperm.xlu1 %4715, %v899_v32   ;;  %v836_v31 = vld [vmem:[%s7903_s6] sm:$0xff] }
  0x67   : > { %1084 = vperm.xlu0 %4714, %v898_v33  }
  0x6e   : > { %1141 = vperm.xlu2 %4716, %v903_v34   ;;  %1136 = vperm.xlu1 %4715, %v902_v35   ;;  %v804_v35 = vld [vmem:[%s7902_s5] sm:$0xff] }
  0x6f   : > { %1131 = vperm.xlu0 %4714, %v901_v36  }
  0x70   : > { %v5300_v37 = vpop.permute.xlu2 %954 }
  0x76   : > { %1156 = vperm.xlu2 %4716, %v906_v38   ;;  %1151 = vperm.xlu1 %4715, %v905_v39  }
  0x77   : > { %1146 = vperm.xlu0 %4714, %v904_v40  }
  0x78   : > { %v5305_v41 = vpop.permute.xlu2 %959 }
  0x7e   : > { %1171 = vperm.xlu2 %4716, %v909_v42   ;;  %1166 = vperm.xlu1 %4715, %v908_v43  }
  0x7f   : > { %1161 = vperm.xlu0 %4714, %v907_v44  }
  0x80   : > { %v5310_v45 = vpop.permute.xlu2 %974 }
  0x86   : > { %1186 = vperm.xlu2 %4716, %v912_v46   ;;  %1181 = vperm.xlu1 %4715, %v911_v47   ;;  %v806_v46 = vld [vmem:[%s7902_s5 + $0x10] sm:$0xff] }
  0x87   : > { %1176 = vperm.xlu0 %4714, %v910_v48   ;;  %v838_v47 = vld [vmem:[%s7903_s6 + $0x10] sm:$0xff]  ;;  %v805_v48 = vld [vmem:[%s7902_s5 + $0x8] sm:$0xff] }
  0x88   : > { %v5315_v49 = vpop.permute.xlu2 %989  ;;  %v5317_v50 = vpop.permute.xlu1 %944 }
  0x89   : > { %v5319_v51 = vpop.permute.xlu0 %934 }
  0x8a   : > { %v1092_v38 = vsub.f32 %v804_v35, %v5319_v51 }
  0x8e   : > { %1201 = vperm.xlu2 %4716, %v915_v52   ;;  %1196 = vperm.xlu1 %4715, %v914_v53   ;;  %v837_v52 = vld [vmem:[%s7903_s6 + $0x8] sm:$0xff] }
  0x8f   : > { %1191 = vperm.xlu0 %4714, %v913_v54   ;;  %v1094_v54 = vsub.f32 %v806_v46, %v5317_v50  ;;  %v810_v50 = vld [vmem:[%s7902_s5 + $0x30] sm:$0xff]  ;;  %v813_v46 = vld [vmem:[%s7902_s5 + $0x48] sm:$0xff] }
  0x90   : > { %v5324_v55 = vpop.permute.xlu2 %1004  ;;  %v5326_v56 = vpop.permute.xlu1 %949 }
  0x91   : > { %v5328_v57 = vpop.permute.xlu0 %939 }
  0x96   : > { %1216 = vperm.xlu2 %4716, %v918_v58   ;;  %1211 = vperm.xlu1 %4715, %v917_v59   ;;  %v839_v58 = vld [vmem:[%s7903_s6 + $0x18] sm:$0xff]  ;;  %v842_v59 = vld [vmem:[%s7903_s6 + $0x30] sm:$0xff] }
  0x97   : > { %1206 = vperm.xlu0 %4714, %v916_v60  }
  0x98   : > { %v5333_v61 = vpop.permute.xlu2 %1019  ;;  %v5335_v62 = vpop.permute.xlu1 %969 }
  0x99   : > { %v5337_v63 = vpop.permute.xlu0 %964 }
  0x9e   : > { %1231 = vperm.xlu2 %4716, %v921_v0   ;;  %1226 = vperm.xlu1 %4715, %v920_v1   ;;  %v1093_v1 = vsub.f32 %v805_v48, %v5328_v57  ;;  %v1098_v57 = vsub.f32 %v810_v50, %v5337_v63  ;;  %v809_v48 = vld [vmem:[%s7902_s5 + $0x28] sm:$0xff] }
  0x9f   : > { %1221 = vperm.xlu0 %4714, %v919_v2  }
  0xa0   : > { %v5342_v3 = vpop.permute.xlu2 %1034  ;;  %v5344_v4 = vpop.permute.xlu1 %984 }
  0xa1   : > { %v5346_v5 = vpop.permute.xlu0 %979 }
  0xa6   : > { %1246 = vperm.xlu2 %4716, %v924_v6   ;;  %1241 = vperm.xlu1 %4715, %v923_v7   ;;  %v807_v6 = vld [vmem:[%s7902_s5 + $0x18] sm:$0xff] }
  0xa7   : > { %1236 = vperm.xlu0 %4714, %v922_v8  }
  0xa8   : > { %v5351_v9 = vpop.permute.xlu2 %1049  ;;  %v5353_v10 = vpop.permute.xlu1 %999 }
  0xa9   : > { %v5355_v11 = vpop.permute.xlu0 %994 }
  0xae   : > { %1261 = vperm.xlu2 %4716, %v927_v12   ;;  %1256 = vperm.xlu1 %4715, %v926_v13  }
  0xaf   : > { %1251 = vperm.xlu0 %4714, %v925_v14  }
  0xb0   : > { %v5360_v15 = vpop.permute.xlu2 %1064  ;;  %v5362_v16 = vpop.permute.xlu1 %1014 }
  0xb1   : > { %v5364_v17 = vpop.permute.xlu0 %1009 }
  0xb6   : > { %1276 = vperm.xlu2 %4716, %v930_v18   ;;  %1271 = vperm.xlu1 %4715, %v929_v19   ;;  %v1095_v19 = vsub.f32 %v807_v6, %v5326_v56 }
  0xb7   : > { %1266 = vperm.xlu0 %4714, %v928_v20  }
  0xb8   : > { %v5369_v21 = vpop.permute.xlu2 %1079  ;;  %v5371_v22 = vpop.permute.xlu1 %1029 }
  0xb9   : > { %v5373_v23 = vpop.permute.xlu0 %1024 }
  0xbf   : > { %1281 = vperm.xlu0 %4714, %v931_v24   ;;  %v808_v24 = vld [vmem:[%s7902_s5 + $0x20] sm:$0xff] }
  0xc0   : > { %v1127_v25 = vpop.permute.xlu2 %1126  ;;  %v5376_v26 = vpop.permute.xlu1 %1044 }
  0xc1   : > { %v5378_v27 = vpop.permute.xlu0 %1039  ;;  %v1284_v36 = vsub.f32 %v836_v31, %v1127_v25  ;;  %v845_v31 = vld [vmem:[%s7903_s6 + $0x48] sm:$0xff] }
  0xc3   : > { %v1316_v39 = vmul.f32 %v1284_v36, %v1092_v38  ;;  %v841_v36 = vld [vmem:[%s7903_s6 + $0x28] sm:$0xff] }
  0xc5   : > { %v5399_v44 = vmul.f32 0.5, %v1316_v39  ;;  %v1096_v39 = vsub.f32 %v808_v24, %v5300_v37  ;;  %v1097_v37 = vsub.f32 %v809_v48, %v5305_v41  ;;  %v812_v24 = vld [vmem:[%s7902_s5 + $0x40] sm:$0xff] }
  0xc7   : > { %v1381_v51 = vsel %vm1380_vm0, %v5399_v44, -inf }
  0xc8   : > { %v1142_v28 = vpop.permute.xlu2 %1141  ;;  %v5380_v29 = vpop.permute.xlu1 %1059 }
  0xc9   : > { %v5382_v30 = vpop.permute.xlu0 %1054  ;;  %v1287_v8 = vsub.f32 %v839_v58, %v1142_v28  ;;  %v840_v28 = vld [vmem:[%s7903_s6 + $0x20] sm:$0xff] }
  0xcb   : > { %v1319_v35 = vmul.f32 %v1287_v8, %v1095_v19  ;;  %v848_v8 = vld [vmem:[%s7903_s6 + $0x60] sm:$0xff] }
  0xd0   : > { %v5387_v32 = vpop.permute.xlu1 %1074  ;;  %v1157_v33 = vpop.permute.xlu2 %1156 }
  0xd1   : > { %v5389_v34 = vpop.permute.xlu0 %1069  ;;  %v1290_v12 = vsub.f32 %v842_v59, %v1157_v33  ;;  %v1101_v59 = vsub.f32 %v813_v46, %v5346_v5  ;;  %v851_v46 = vld [vmem:[%s7903_s6 + $0x78] sm:$0xff] }
  0xd3   : > { %v1322_v33 = vmul.f32 %v1290_v12, %v1098_v57  ;;  %v844_v12 = vld [vmem:[%s7903_s6 + $0x40] sm:$0xff] }
  0xd8   : > { %v5395_v40 = vpop.permute.xlu1 %1089  ;;  %v1172_v43 = vpop.permute.xlu2 %1171 }
  0xd9   : > { %v5397_v42 = vpop.permute.xlu0 %1084 }
  0xe0   : > { %v1137_v53 = vpop.permute.xlu1 %1136  ;;  %1382 = vmax.xlane.f32.xlu1 %v1381_v51  ;;  %v5429_v14 = vpop.permute.xlu2 %1186  ;;  %v1293_v51 = vsub.f32 %v845_v31, %v1172_v43  ;;  %v843_v43 = vld [vmem:[%s7903_s6 + $0x38] sm:$0xff] }
  0xe1   : > { %v1286_v60 = vsub.f32 %v838_v47, %v1137_v53  ;;  %v1132_v0 = vpop.permute.xlu0 %1131  ;;  %v5460_v53 = vmul.f32 0.5, %v1322_v33  ;;  %v1296_v31 = vsub.f32 %v848_v8, %v5429_v14  ;;  %v846_v14 = vld [vmem:[%s7903_s6 + $0x50] sm:$0xff] }
  0xe2   : > { %v1285_v2 = vsub.f32 %v837_v52, %v1132_v0  ;;  %v811_v0 = vld [vmem:[%s7902_s5 + $0x38] sm:$0xff] }
  0xe3   : > { %v1318_v7 = vmul.f32 %v1286_v60, %v1094_v54  ;;  %v5462_v54 = vmul.f32 0.5, %v1319_v35  ;;  %v1399_v50 = vsel %vm1380_vm0, %v5460_v53, -inf  ;;  %v1099_v19 = vsub.f32 %v811_v0, %v5335_v62  ;;  %v819_v0 = vld [vmem:[%s7902_s5 + $0x78] sm:$0xff] }
  0xe4   : > { %v1317_v13 = vmul.f32 %v1285_v2, %v1093_v1  ;;  %v1325_v2 = vmul.f32 %v1293_v51, %v1101_v59  ;;  %v1100_v62 = vsub.f32 %v812_v24, %v5310_v45  ;;  %v1107_v8 = vsub.f32 %v819_v0, %v5364_v17  ;;  %v857_v0 = vld [vmem:[%s7903_s6 + $0xa8] sm:$0xff] }
  0xe5   : > { %v5431_v18 = vmul.f32 0.5, %v1318_v7  ;;  %v1390_v5 = vsel %vm1380_vm0, %v5462_v54, -inf }
  0xe6   : > { %v5435_v20 = vmul.f32 0.5, %v1317_v13 }
  0xe7   : > { %v1387_v25 = vsel %vm1380_vm0, %v5431_v18, -inf }
  0xe8   : > { %v1152_v56 = vpop.permute.xlu1 %1151  ;;  %v1384_v63 = vsel %vm1380_vm0, %v5435_v20, -inf  ;;  %v1202_v1 = vpop.permute.xlu2 %1201 }
  0xe9   : > { %1388 = vmax.xlane.f32.xlu0 %v1387_v25  ;;  %1385 = vmax.xlane.f32.xlu2 %v1384_v63  ;;  %v1147_v38 = vpop.permute.xlu0 %1146  ;;  %v1289_v52 = vsub.f32 %v841_v36, %v1152_v56  ;;  %v816_v25 = vld [vmem:[%s7902_s5 + $0x60] sm:$0xff] }
  0xea   : > { %v1288_v47 = vsub.f32 %v840_v28, %v1147_v38  ;;  %v5493_v28 = vmul.f32 0.5, %v1325_v2  ;;  %v1104_v35 = vsub.f32 %v816_v25, %v5355_v11  ;;  %v814_v38 = vld [vmem:[%s7902_s5 + $0x50] sm:$0xff]  ;;  %v815_v2 = vld [vmem:[%s7902_s5 + $0x58] sm:$0xff] }
  0xeb   : > { %v1321_v7 = vmul.f32 %v1289_v52, %v1097_v37  ;;  %v1102_v37 = vsub.f32 %v814_v38, %v5344_v4  ;;  %v1103_v4 = vsub.f32 %v815_v2, %v5315_v49  ;;  %v818_v38 = vld [vmem:[%s7902_s5 + $0x70] sm:$0xff] }
  0xec   : > { %v1320_v58 = vmul.f32 %v1288_v47, %v1096_v39  ;;  %v1408_v39 = vsel %vm1380_vm0, %v5493_v28, -inf  ;;  %v1328_v48 = vmul.f32 %v1296_v31, %v1104_v35  ;;  %v854_v31 = vld [vmem:[%s7903_s6 + $0x90] sm:$0xff] }
  0xed   : > { %v5496_v63 = vmul.f32 0.5, %v1321_v7 }
  0xee   : > { %v5466_v60 = vmul.f32 0.5, %v1320_v58  ;;  %v847_v58 = vld [vmem:[%s7903_s6 + $0x58] sm:$0xff] }
  0xef   : > { %v1396_v11 = vsel %vm1380_vm0, %v5496_v63, -inf }
  0xf0   : > { %v1167_v6 = vpop.permute.xlu1 %1166  ;;  %v1393_v41 = vsel %vm1380_vm0, %v5466_v60, -inf  ;;  %v1217_v52 = vpop.permute.xlu2 %1216 }
  0xf1   : > { %1400 = vmax.xlane.f32.xlu0 %v1399_v50  ;;  %1391 = vmax.xlane.f32.xlu2 %v1390_v5  ;;  %v1162_v13 = vpop.permute.xlu0 %1161  ;;  %v1292_v56 = vsub.f32 %v844_v12, %v1167_v6  ;;  %v1299_v6 = vsub.f32 %v851_v46, %v1202_v1  ;;  %v5527_v5 = vmul.f32 0.5, %v1328_v48  ;;  %v849_v1 = vld [vmem:[%s7903_s6 + $0x68] sm:$0xff] }
  0xf2   : > { %1394 = vmax.xlane.f32.xlu1 %v1393_v41  ;;  %v1291_v57 = vsub.f32 %v843_v43, %v1162_v13  ;;  %v817_v13 = vld [vmem:[%s7902_s5 + $0x68] sm:$0xff] }
  0xf3   : > { %v1324_v51 = vmul.f32 %v1292_v56, %v1100_v62  ;;  %v1417_v24 = vsel %vm1380_vm0, %v5527_v5, -inf  ;;  %v850_v56 = vld [vmem:[%s7903_s6 + $0x70] sm:$0xff]  ;;  %v1105_v62 = vsub.f32 %v817_v13, %v5353_v10  ;;  %v1106_v10 = vsub.f32 %v818_v38, %v5324_v55 }
  0xf4   : > { %v1323_v33 = vmul.f32 %v1291_v57, %v1099_v19  ;;  %v1331_v19 = vmul.f32 %v1299_v6, %v1107_v8 }
  0xf5   : > { %v5529_v41 = vmul.f32 0.5, %v1324_v51 }
  0xf6   : > { %v5500_v36 = vmul.f32 0.5, %v1323_v33  ;;  %v5560_v46 = vmul.f32 0.5, %v1331_v19 }
  0xf7   : > { %v1405_v17 = vsel %vm1380_vm0, %v5529_v41, -inf }
  0xf8   : > { %v1182_v45 = vpop.permute.xlu1 %1181  ;;  %v1402_v47 = vsel %vm1380_vm0, %v5500_v36, -inf }
  0xf9   : > { %1409 = vmax.xlane.f32.xlu0 %v1408_v39  ;;  %1397 = vmax.xlane.f32.xlu2 %v1396_v11  ;;  %v1177_v59 = vpop.permute.xlu0 %1176  ;;  %v1295_v50 = vsub.f32 %v847_v58, %v1182_v45  ;;  %v822_v39 = vld [vmem:[%s7902_s5 + $0x90] sm:$0xff]  ;;  %v1302_v45 = vsub.f32 %v854_v31, %v1217_v52  ;;  %v852_v52 = vld [vmem:[%s7903_s6 + $0x80] sm:$0xff] }
  0xfa   : > { %1403 = vmax.xlane.f32.xlu1 %v1402_v47  ;;  %v1294_v43 = vsub.f32 %v846_v14, %v1177_v59  ;;  %v1232_v14 = vpop.permute.xlu2 %1231  ;;  %v1110_v51 = vsub.f32 %v822_v39, %v5373_v23  ;;  %v820_v59 = vld [vmem:[%s7902_s5 + $0x80] sm:$0xff] }
  0xfb   : > { %v1327_v25 = vmul.f32 %v1295_v50, %v1103_v4  ;;  %v853_v50 = vld [vmem:[%s7903_s6 + $0x88] sm:$0xff]  ;;  %v1108_v8 = vsub.f32 %v820_v59, %v5362_v16  ;;  %v1305_v19 = vsub.f32 %v857_v0, %v1232_v14  ;;  %v824_v59 = vld [vmem:[%s7902_s5 + $0xa0] sm:$0xff] }
  0xfc   : > { %v1326_v7 = vmul.f32 %v1294_v43, %v1102_v37  ;;  %v1426_v37 = vsel %vm1380_vm0, %v5560_v46, -inf  ;;  %v1334_v2 = vmul.f32 %v1302_v45, %v1110_v51  ;;  %v825_v4 = vld [vmem:[%s7902_s5 + $0xa8] sm:$0xff]  ;;  %v860_v45 = vld [vmem:[%s7903_s6 + $0xc0] sm:$0xff] }
  0xfd   : > { %v5562_v47 = vmul.f32 0.5, %v1327_v25  ;;  %v1113_v25 = vsub.f32 %v825_v4, %v5378_v27  ;;  %v858_v4 = vld [vmem:[%s7903_s6 + $0xb0] sm:$0xff] }
  0xfe   : > { %v5533_v12 = vmul.f32 0.5, %v1326_v7 }
  0xff   : > { %v1414_v23 = vsel %vm1380_vm0, %v5562_v47, -inf }
 0x100   : > { %v1197_v57 = vpop.permute.xlu1 %1196  ;;  %v1411_v49 = vsel %vm1380_vm0, %v5533_v12, -inf }
 0x101   : > { %1418 = vmax.xlane.f32.xlu0 %v1417_v24  ;;  %1406 = vmax.xlane.f32.xlu2 %v1405_v17  ;;  %v1192_v33 = vpop.permute.xlu0 %1191  ;;  %v1298_v11 = vsub.f32 %v850_v56, %v1197_v57  ;;  %v5593_v24 = vmul.f32 0.5, %v1334_v2  ;;  %v1112_v2 = vsub.f32 %v824_v59, %v5342_v3  ;;  %v863_v3 = vld [vmem:[%s7903_s6 + $0xd8] sm:$0xff] }
 0x102   : > { %1412 = vmax.xlane.f32.xlu1 %v1411_v49  ;;  %v1297_v35 = vsub.f32 %v849_v1, %v1192_v33  ;;  %v821_v1 = vld [vmem:[%s7902_s5 + $0x88] sm:$0xff]  ;;  %v1247_v16 = vpop.permute.xlu2 %1246  ;;  %v823_v33 = vld [vmem:[%s7902_s5 + $0x98] sm:$0xff] }
 0x103   : > { %v1330_v6 = vmul.f32 %v1298_v11, %v1106_v10  ;;  %v1109_v31 = vsub.f32 %v821_v1, %v5333_v61  ;;  %v1435_v39 = vsel %vm1380_vm0, %v5593_v24, -inf  ;;  %v856_v11 = vld [vmem:[%s7903_s6 + $0xa0] sm:$0xff]  ;;  %v1111_v10 = vsub.f32 %v823_v33, %v5371_v22 }
 0x104   : > { %v1329_v48 = vmul.f32 %v1297_v35, %v1105_v62  ;;  %v855_v62 = vld [vmem:[%s7903_s6 + $0x98] sm:$0xff]  ;;  %v1337_v35 = vmul.f32 %v1305_v19, %v1113_v25  ;;  %v1308_v0 = vsub.f32 %v860_v45, %v1247_v16 }
 0x105   : > { %v5595_v17 = vmul.f32 0.5, %v1330_v6 }
 0x106   : > { %v5566_v58 = vmul.f32 0.5, %v1329_v48 }
 0x107   : > { %v1423_v27 = vsel %vm1380_vm0, %v5595_v17, -inf }
 0x108   : > { %v1212_v55 = vpop.permute.xlu1 %1211  ;;  %v1420_v43 = vsel %vm1380_vm0, %v5566_v58, -inf }
 0x109   : > { %1427 = vmax.xlane.f32.xlu0 %v1426_v37  ;;  %1415 = vmax.xlane.f32.xlu2 %v1414_v23  ;;  %v1207_v7 = vpop.permute.xlu0 %1206  ;;  %v1301_v57 = vsub.f32 %v853_v50, %v1212_v55  ;;  %v828_v37 = vld [vmem:[%s7902_s5 + $0xc0] sm:$0xff]  ;;  %v826_v50 = vld [vmem:[%s7902_s5 + $0xb0] sm:$0xff] }
 0x10a   : > { %1421 = vmax.xlane.f32.xlu1 %v1420_v43  ;;  %v1300_v13 = vsub.f32 %v852_v52, %v1207_v7  ;;  %v5626_v52 = vmul.f32 0.5, %v1337_v35  ;;  %v1116_v22 = vsub.f32 %v828_v37, %v5382_v30  ;;  %v1262_v7 = vpop.permute.xlu2 %1261  ;;  %v1114_v16 = vsub.f32 %v826_v50, %v5376_v26 }
 0x10b   : > { %v1333_v14 = vmul.f32 %v1301_v57, %v1109_v31  ;;  %v831_v31 = vld [vmem:[%s7902_s5 + $0xd8] sm:$0xff]  ;;  %v1311_v35 = vsub.f32 %v863_v3, %v1262_v7  ;;  %v830_v7 = vld [vmem:[%s7902_s5 + $0xd0] sm:$0xff] }
 0x10c   : > { %v1332_v49 = vmul.f32 %v1300_v13, %v1108_v8  ;;  %v1444_v8 = vsel %vm1380_vm0, %v5626_v52, -inf  ;;  %v1340_v19 = vmul.f32 %v1308_v0, %v1116_v22  ;;  %v866_v0 = vld [vmem:[%s7903_s6 + $0xf0] sm:$0xff] }
 0x10d   : > { %v5628_v23 = vmul.f32 0.5, %v1333_v14  ;;  %v1119_v14 = vsub.f32 %v831_v31, %v5389_v34 }
 0x10e   : > { %v5599_v56 = vmul.f32 0.5, %v1332_v49  ;;  %v859_v49 = vld [vmem:[%s7903_s6 + $0xb8] sm:$0xff] }
 0x10f   : > { %v1432_v30 = vsel %vm1380_vm0, %v5628_v23, -inf }
 0x110   : > { %v1227_v38 = vpop.permute.xlu1 %1226  ;;  %v1429_v61 = vsel %vm1380_vm0, %v5599_v56, -inf }
 0x111   : > { %1436 = vmax.xlane.f32.xlu0 %v1435_v39  ;;  %1424 = vmax.xlane.f32.xlu2 %v1423_v27  ;;  %v1222_v48 = vpop.permute.xlu0 %1221  ;;  %v1304_v55 = vsub.f32 %v856_v11, %v1227_v38  ;;  %v5659_v39 = vmul.f32 0.5, %v1340_v19  ;;  %v829_v11 = vld [vmem:[%s7902_s5 + $0xc8] sm:$0xff]  ;;  %v1118_v19 = vsub.f32 %v830_v7, %v5360_v15 }
 0x112   : > { %1430 = vmax.xlane.f32.xlu1 %v1429_v61  ;;  %v1303_v51 = vsub.f32 %v855_v62, %v1222_v48  ;;  %v827_v62 = vld [vmem:[%s7902_s5 + $0xb8] sm:$0xff]  ;;  %v861_v48 = vld [vmem:[%s7903_s6 + $0xc8] sm:$0xff]  ;;  %v1117_v22 = vsub.f32 %v829_v11, %v5380_v29 }
 0x113   : > { %v1336_v57 = vmul.f32 %v1304_v55, %v1112_v2  ;;  %v1115_v26 = vsub.f32 %v827_v62, %v5351_v9  ;;  %v1453_v59 = vsel %vm1380_vm0, %v5659_v39, -inf  ;;  %v1277_v55 = vpop.permute.xlu2 %1276  ;;  %v865_v62 = vld [vmem:[%s7903_s6 + $0xe8] sm:$0xff] }
 0x114   : > { %v1335_v43 = vmul.f32 %v1303_v51, %v1111_v10  ;;  %v1343_v10 = vmul.f32 %v1311_v35, %v1119_v14  ;;  %v1314_v3 = vsub.f32 %v866_v0, %v1277_v55 }
 0x115   : > { %v5661_v27 = vmul.f32 0.5, %v1336_v57 }
 0x116   : > { %v5632_v6 = vmul.f32 0.5, %v1335_v43  ;;  %v862_v43 = vld [vmem:[%s7903_s6 + $0xd0] sm:$0xff] }
 0x117   : > { %v1441_v34 = vsel %vm1380_vm0, %v5661_v27, -inf }
 0x118   : > { %v1242_v13 = vpop.permute.xlu1 %1241  ;;  %v1438_v1 = vsel %vm1380_vm0, %v5632_v6, -inf }
 0x119   : > { %1445 = vmax.xlane.f32.xlu0 %v1444_v8  ;;  %1433 = vmax.xlane.f32.xlu2 %v1432_v30  ;;  %v1237_v25 = vpop.permute.xlu0 %1236  ;;  %v1307_v38 = vsub.f32 %v859_v49, %v1242_v13  ;;  %v834_v8 = vld [vmem:[%s7902_s5 + $0xf0] sm:$0xff]  ;;  %v832_v49 = vld [vmem:[%s7902_s5 + $0xe0] sm:$0xff] }
 0x11a   : > { %1439 = vmax.xlane.f32.xlu1 %v1438_v1  ;;  %v1306_v33 = vsub.f32 %v858_v4, %v1237_v25  ;;  %v5692_v4 = vmul.f32 0.5, %v1343_v10  ;;  %v1122_v29 = vsub.f32 %v834_v8, %v5397_v42 }
 0x11b   : > { %v1339_v37 = vmul.f32 %v1307_v38, %v1115_v26  ;;  %v833_v26 = vld [vmem:[%s7902_s5 + $0xe8] sm:$0xff] }
 0x11c   : > { %v1338_v61 = vmul.f32 %v1306_v33, %v1114_v16  ;;  %v1462_v25 = vsel %vm1380_vm0, %v5692_v4, -inf  ;;  %v864_v16 = vld [vmem:[%s7903_s6 + $0xe0] sm:$0xff]  ;;  %v1346_v42 = vmul.f32 %v1314_v3, %v1122_v29 }
 0x11d   : > { %v5694_v30 = vmul.f32 0.5, %v1339_v37 }
 0x11e   : > { %v5665_v45 = vmul.f32 0.5, %v1338_v61  ;;  %v1120_v61 = vsub.f32 %v832_v49, %v5387_v32  ;;  %v835_v32 = vld [vmem:[%s7902_s5 + $0xf8] sm:$0xff] }
 0x11f   : > { %v1450_v31 = vsel %vm1380_vm0, %v5694_v30, -inf }
 0x120   : > { %v1257_v51 = vpop.permute.xlu1 %1256  ;;  %v1447_v9 = vsel %vm1380_vm0, %v5665_v45, -inf }
 0x121   : > { %1454 = vmax.xlane.f32.xlu0 %v1453_v59  ;;  %1442 = vmax.xlane.f32.xlu2 %v1441_v34  ;;  %v1252_v2 = vpop.permute.xlu0 %1251  ;;  %v1310_v13 = vsub.f32 %v862_v43, %v1257_v51  ;;  %v1121_v59 = vsub.f32 %v833_v26, %v5369_v21 }
 0x122   : > { %1448 = vmax.xlane.f32.xlu1 %v1447_v9  ;;  %v1309_v50 = vsub.f32 %v861_v48, %v1252_v2  ;;  %v5719_v48 = vmul.f32 0.5, %v1346_v42  ;;  %v867_v9 = vld [vmem:[%s7903_s6 + $0xf8] sm:$0xff]  ;;  %v1123_v2 = vsub.f32 %v835_v32, %v5395_v40 }
 0x123   : > { %v1342_v33 = vmul.f32 %v1310_v13, %v1118_v19 }
 0x124   : > { %v1341_v1 = vmul.f32 %v1309_v50, %v1117_v22  ;;  %v1471_v37 = vsel %vm1380_vm0, %v5719_v48, -inf }
 0x125   : > { %v5721_v10 = vmul.f32 0.5, %v1342_v33 }
 0x126   : > { %v5698_v57 = vmul.f32 0.5, %v1341_v1 }
 0x127   : > { %v1459_v0 = vsel %vm1380_vm0, %v5721_v10, -inf }
 0x128   : > { %v1456_v15 = vsel %vm1380_vm0, %v5698_v57, -inf  ;;  %v1272_v35 = vpop.permute.xlu1 %1271 }
 0x129   : > { %1463 = vmax.xlane.f32.xlu0 %v1462_v25  ;;  %1451 = vmax.xlane.f32.xlu2 %v1450_v31  ;;  %v1267_v38 = vpop.permute.xlu0 %1266  ;;  %v1313_v11 = vsub.f32 %v865_v62, %v1272_v35 }
 0x12a   : > { %1457 = vmax.xlane.f32.xlu1 %v1456_v15  ;;  %v1312_v14 = vsub.f32 %v864_v16, %v1267_v38 }
 0x12b   : > { %v1345_v21 = vmul.f32 %v1313_v11, %v1121_v59 }
 0x12c   : > { %v1344_v51 = vmul.f32 %v1312_v14, %v1120_v61 }
 0x12d   : > { %v5739_v50 = vmul.f32 0.5, %v1345_v21 }
 0x12e   : > { %v5724_v34 = vmul.f32 0.5, %v1344_v51 }
 0x12f   : > { %v1468_v3 = vsel %vm1380_vm0, %v5739_v50, -inf }
 0x130   : > { %v1465_v55 = vsel %vm1380_vm0, %v5724_v34, -inf }
 0x131   : > { %1472 = vmax.xlane.f32.xlu0 %v1471_v37  ;;  %1460 = vmax.xlane.f32.xlu2 %v1459_v0  ;;  %v1282_v43 = vpop.permute.xlu0 %1281 }
 0x132   : > { %1466 = vmax.xlane.f32.xlu1 %v1465_v55  ;;  %v1315_v22 = vsub.f32 %v867_v9, %v1282_v43 }
 0x134   : > { %v1347_v7 = vmul.f32 %v1315_v22, %v1123_v2 }
 0x136   : > { %v5741_v8 = vmul.f32 0.5, %v1347_v7 }
 0x138   : > { %v1474_v13 = vsel %vm1380_vm0, %v5741_v8, -inf }
 0x139   : > { %1469 = vmax.xlane.f32.xlu2 %v1468_v3 }
 0x13a   : > { %1475 = vmax.xlane.f32.xlu1 %v1474_v13 }
 0x153   : > { %v1383_v1 = vpop.xlane.xlu1 %1382 }
 0x154   : > { %v1477_v19 = vsub.f32 %v5399_v44, %v1383_v1 }
 0x156   : > { %v1509_v29 = vmul.f32 1.442695, %v1477_v19 }
 0x158   : > { %4719 = vpow2.f32 %v1509_v29 }
 0x15c   : > { %v1386_v40 = vpop.xlane.xlu2 %1385  ;;  %v1389_v49 = vpop.xlane.xlu0 %1388 }
 0x15d   : > { %v1478_v25 = vsub.f32 %v5435_v20, %v1386_v40  ;;  %v1479_v16 = vsub.f32 %v5431_v18, %v1389_v49 }
 0x15e   : > { %v5750_v31 = vpop.eup %4719 }
 0x15f   : > { %v1511_v15 = vmul.f32 1.442695, %v1478_v25  ;;  %v1513_v42 = vmul.f32 1.442695, %v1479_v16  ;;  %v1573_v33 = vsel %vm1380_vm0, %v5750_v31, 0.0 }
 0x160   : > { %1574 = vadd.xlane.f32.xlu2 %v1573_v33 }
 0x161   : > { %4721 = vpow2.f32 %v1511_v15 }
 0x162   : > { %4723 = vpow2.f32 %v1513_v42 }
 0x164   : > { %v1392_v62 = vpop.xlane.xlu2 %1391  ;;  %v1401_v44 = vpop.xlane.xlu0 %1400 }
 0x165   : > { %v1480_v35 = vsub.f32 %v5462_v54, %v1392_v62  ;;  %v1395_v38 = vpop.xlane.xlu1 %1394  ;;  %v1483_v14 = vsub.f32 %v5460_v53, %v1401_v44 }
 0x166   : > { %v1481_v61 = vsub.f32 %v5466_v60, %v1395_v38 }
 0x167   : > { %v5756_v20 = vpop.eup %4721  ;;  %v1515_v18 = vmul.f32 1.442695, %v1480_v35  ;;  %v1521_v54 = vmul.f32 1.442695, %v1483_v14 }
 0x168   : > { %v5759_v26 = vpop.eup %4723  ;;  %v1517_v11 = vmul.f32 1.442695, %v1481_v61  ;;  %v1576_v51 = vsel %vm1380_vm0, %v5756_v20, 0.0 }
 0x169   : > { %4725 = vpow2.f32 %v1515_v18  ;;  %1577 = vadd.xlane.f32.xlu0 %v1576_v51  ;;  %v1579_v59 = vsel %vm1380_vm0, %v5759_v26, 0.0 }
 0x16a   : > { %4727 = vpow2.f32 %v1517_v11  ;;  %1580 = vadd.xlane.f32.xlu1 %v1579_v59 }
 0x16b   : > { %4729 = vpow2.f32 %v1521_v54 }
 0x16c   : > { %v1398_v60 = vpop.xlane.xlu2 %1397  ;;  %v1410_v32 = vpop.xlane.xlu0 %1409 }
 0x16d   : > { %v1482_v9 = vsub.f32 %v5496_v63, %v1398_v60  ;;  %v1404_v37 = vpop.xlane.xlu1 %1403  ;;  %v1486_v21 = vsub.f32 %v5493_v28, %v1410_v32 }
 0x16e   : > { %v1484_v53 = vsub.f32 %v5500_v36, %v1404_v37 }
 0x16f   : > { %v5767_v0 = vpop.eup %4725  ;;  %v1519_v55 = vmul.f32 1.442695, %v1482_v9  ;;  %v1527_v36 = vmul.f32 1.442695, %v1486_v21 }
 0x170   : > { %v5770_v43 = vpop.eup %4727  ;;  %v1523_v2 = vmul.f32 1.442695, %v1484_v53  ;;  %v1582_v22 = vsel %vm1380_vm0, %v5767_v0, 0.0 }
 0x171   : > { %4731 = vpow2.f32 %v1519_v55  ;;  %1583 = vadd.xlane.f32.xlu2 %v1582_v22  ;;  %v1585_v63 = vsel %vm1380_vm0, %v5770_v43, 0.0  ;;  %v5776_v13 = vpop.eup %4729 }
 0x172   : > { %4733 = vpow2.f32 %v1523_v2  ;;  %1586 = vadd.xlane.f32.xlu0 %v1585_v63  ;;  %v1591_v42 = vsel %vm1380_vm0, %v5776_v13, 0.0 }
 0x173   : > { %4735 = vpow2.f32 %v1527_v36 }
 0x174   : > { %v1407_v7 = vpop.xlane.xlu2 %1406  ;;  %v1419_v3 = vpop.xlane.xlu0 %1418 }
 0x175   : > { %v1485_v28 = vsub.f32 %v5529_v41, %v1407_v7  ;;  %v1413_v1 = vpop.xlane.xlu1 %1412  ;;  %v1489_v49 = vsub.f32 %v5527_v5, %v1419_v3 }
 0x176   : > { %v1487_v19 = vsub.f32 %v5533_v12, %v1413_v1 }
 0x177   : > { %v5780_v29 = vpop.eup %4731  ;;  %v1525_v40 = vmul.f32 1.442695, %v1485_v28  ;;  %v1533_v12 = vmul.f32 1.442695, %v1489_v49 }
 0x178   : > { %v5783_v25 = vpop.eup %4733  ;;  %v1529_v16 = vmul.f32 1.442695, %v1487_v19  ;;  %v1588_v15 = vsel %vm1380_vm0, %v5780_v29, 0.0 }
 0x179   : > { %4737 = vpow2.f32 %v1525_v40  ;;  %v1594_v41 = vsel %vm1380_vm0, %v5783_v25, 0.0  ;;  %1589 = vadd.xlane.f32.xlu1 %v1588_v15  ;;  %1592 = vadd.xlane.f32.xlu2 %v1591_v42  ;;  %v5791_v62 = vpop.eup %4735 }
 0x17a   : > { %4739 = vpow2.f32 %v1529_v16  ;;  %1595 = vadd.xlane.f32.xlu0 %v1594_v41  ;;  %7939 = vst [vmem:[#allocation2_spill] sm:$0xff] %v5791_v62  ;;  %v1600_v54 = vsel %vm1380_vm0, %v5791_v62, 0.0  ;;  %v2664_v62 = vld [vmem:[%s6233_s23 + $0x18] sm:$0xff] }
 0x17b   : > { %4741 = vpow2.f32 %v1533_v12 }
 0x17c   : > { %v1416_v33 = vpop.xlane.xlu2 %1415  ;;  %v1428_v5 = vpop.xlane.xlu0 %1427 }
 0x17d   : > { %v1488_v44 = vsub.f32 %v5562_v47, %v1416_v33  ;;  %v1422_v35 = vpop.xlane.xlu1 %1421  ;;  %v1492_v14 = vsub.f32 %v5560_v46, %v1428_v5 }
 0x17e   : > { %v1490_v38 = vsub.f32 %v5566_v58, %v1422_v35 }
 0x17f   : > { %v5795_v61 = vpop.eup %4737  ;;  %v1531_v18 = vmul.f32 1.442695, %v1488_v44  ;;  %v1539_v58 = vmul.f32 1.442695, %v1492_v14 }
 0x180   : > { %v5798_v11 = vpop.eup %4739  ;;  %v1535_v51 = vmul.f32 1.442695, %v1490_v38  ;;  %v1597_v59 = vsel %vm1380_vm0, %v5795_v61, 0.0 }
 0x181   : > { %7940 = vst [vmem:[#allocation3_spill] sm:$0xff] %v5798_v11  ;;  %4743 = vpow2.f32 %v1531_v18  ;;  %v1603_v47 = vsel %vm1380_vm0, %v5798_v11, 0.0  ;;  %1598 = vadd.xlane.f32.xlu1 %v1597_v59  ;;  %1601 = vadd.xlane.f32.xlu2 %v1600_v54  ;;  %v5806_v32 = vpop.eup %4741  ;;  %v1792_v11 = vld [vmem:[%s7905_s8 + $0xd8] sm:$0xff] }
 0x182   : > { %4745 = vpow2.f32 %v1535_v51  ;;  %1604 = vadd.xlane.f32.xlu0 %v1603_v47  ;;  %7941 = vst [vmem:[#allocation4_spill] sm:$0xff] %v5806_v32  ;;  %v1609_v7 = vsel %vm1380_vm0, %v5806_v32, 0.0 }
 0x183   : > { %4747 = vpow2.f32 %v1539_v58 }
 0x184   : > { %v1425_v60 = vpop.xlane.xlu2 %1424  ;;  %v1437_v46 = vpop.xlane.xlu0 %1436 }
 0x185   : > { %v1491_v9 = vsub.f32 %v5595_v17, %v1425_v60  ;;  %v1431_v37 = vpop.xlane.xlu1 %1430  ;;  %v1495_v2 = vsub.f32 %v5593_v24, %v1437_v46 }
 0x186   : > { %v1493_v53 = vsub.f32 %v5599_v56, %v1431_v37 }
 0x187   : > { %v5810_v55 = vpop.eup %4743  ;;  %v1537_v21 = vmul.f32 1.442695, %v1491_v9  ;;  %v1545_v56 = vmul.f32 1.442695, %v1495_v2 }
 0x188   : > { %7942 = vst [vmem:[#allocation5_spill] sm:$0xff] %v5810_v55  ;;  %v5813_v22 = vpop.eup %4745  ;;  %v1541_v63 = vmul.f32 1.442695, %v1493_v53  ;;  %v1606_v36 = vsel %vm1380_vm0, %v5810_v55, 0.0 }
 0x189   : > { %7943 = vst [vmem:[#allocation6_spill] sm:$0xff] %v5813_v22  ;;  %4749 = vpow2.f32 %v1537_v21  ;;  %v1612_v17 = vsel %vm1380_vm0, %v5813_v22, 0.0  ;;  %1607 = vadd.xlane.f32.xlu1 %v1606_v36  ;;  %1610 = vadd.xlane.f32.xlu2 %v1609_v7  ;;  %v5821_v28 = vpop.eup %4747 }
 0x18a   : > { %4751 = vpow2.f32 %v1541_v63  ;;  %1613 = vadd.xlane.f32.xlu0 %v1612_v17  ;;  %7944 = vst [vmem:[#allocation7_spill] sm:$0xff] %v5821_v28  ;;  %v1618_v33 = vsel %vm1380_vm0, %v5821_v28, 0.0 }
 0x18b   : > { %4753 = vpow2.f32 %v1545_v56 }
 0x18c   : > { %v1434_v3 = vpop.xlane.xlu2 %1433  ;;  %v1446_v24 = vpop.xlane.xlu0 %1445 }
 0x18d   : > { %v1494_v1 = vsub.f32 %v5628_v23, %v1434_v3  ;;  %v1440_v19 = vpop.xlane.xlu1 %1439  ;;  %v1498_v15 = vsub.f32 %v5626_v52, %v1446_v24 }
 0x18e   : > { %v1496_v40 = vsub.f32 %v5632_v6, %v1440_v19 }
 0x18f   : > { %v5825_v49 = vpop.eup %4749  ;;  %v1543_v16 = vmul.f32 1.442695, %v1494_v1  ;;  %v1551_v6 = vmul.f32 1.442695, %v1498_v15 }
 0x190   : > { %7945 = vst [vmem:[#allocation8_spill] sm:$0xff] %v5825_v49  ;;  %v5828_v42 = vpop.eup %4751  ;;  %v1547_v41 = vmul.f32 1.442695, %v1496_v40  ;;  %v1615_v12 = vsel %vm1380_vm0, %v5825_v49, 0.0 }
 0x191   : > { %7946 = vst [vmem:[#allocation9_spill] sm:$0xff] %v5828_v42  ;;  %4755 = vpow2.f32 %v1543_v16  ;;  %v1621_v23 = vsel %vm1380_vm0, %v5828_v42, 0.0  ;;  %1616 = vadd.xlane.f32.xlu1 %v1615_v12  ;;  %1619 = vadd.xlane.f32.xlu2 %v1618_v33  ;;  %v5836_v44 = vpop.eup %4753 }
 0x192   : > { %4757 = vpow2.f32 %v1547_v41  ;;  %1622 = vadd.xlane.f32.xlu0 %v1621_v23  ;;  %7947 = vst [vmem:[#allocation10_spill] sm:$0xff] %v5836_v44  ;;  %v1627_v60 = vsel %vm1380_vm0, %v5836_v44, 0.0 }
 0x193   : > { %4759 = vpow2.f32 %v1551_v6 }
 0x194   : > { %v1443_v5 = vpop.xlane.xlu2 %1442  ;;  %v1455_v52 = vpop.xlane.xlu0 %1454 }
 0x195   : > { %v1497_v35 = vsub.f32 %v5661_v27, %v1443_v5  ;;  %v1449_v38 = vpop.xlane.xlu1 %1448  ;;  %v1501_v59 = vsub.f32 %v5659_v39, %v1455_v52 }
 0x196   : > { %v1499_v18 = vsub.f32 %v5665_v45, %v1449_v38 }
 0x197   : > { %v5840_v14 = vpop.eup %4755  ;;  %v1549_v51 = vmul.f32 1.442695, %v1497_v35  ;;  %v1557_v45 = vmul.f32 1.442695, %v1501_v59 }
 0x198   : > { %7948 = vst [vmem:[#allocation11_spill] sm:$0xff] %v5840_v14  ;;  %v5843_v54 = vpop.eup %4757  ;;  %v1553_v47 = vmul.f32 1.442695, %v1499_v18  ;;  %v1624_v58 = vsel %vm1380_vm0, %v5840_v14, 0.0 }
 0x199   : > { %7949 = vst [vmem:[#allocation12_spill] sm:$0xff] %v5843_v54  ;;  %4761 = vpow2.f32 %v1549_v51  ;;  %v1630_v27 = vsel %vm1380_vm0, %v5843_v54, 0.0  ;;  %1625 = vadd.xlane.f32.xlu1 %v1624_v58  ;;  %1628 = vadd.xlane.f32.xlu2 %v1627_v60  ;;  %v5851_v9 = vpop.eup %4759  ;;  %v1767_v54 = vld [vmem:[%s7905_s8 + $0x10] sm:$0xff] }
 0x19a   : > { %4763 = vpow2.f32 %v1553_v47  ;;  %1631 = vadd.xlane.f32.xlu0 %v1630_v27  ;;  %7950 = vst [vmem:[#allocation13_spill] sm:$0xff] %v5851_v9  ;;  %v1636_v3 = vsel %vm1380_vm0, %v5851_v9, 0.0 }
 0x19b   : > { %4765 = vpow2.f32 %v1557_v45 }
 0x19c   : > { %v1452_v46 = vpop.xlane.xlu2 %1451  ;;  %v1464_v39 = vpop.xlane.xlu0 %1463 }
 0x19d   : > { %v1500_v37 = vsub.f32 %v5694_v30, %v1452_v46  ;;  %v1458_v53 = vpop.xlane.xlu1 %1457  ;;  %v1504_v36 = vsub.f32 %v5692_v4, %v1464_v39 }
 0x19e   : > { %v1502_v21 = vsub.f32 %v5698_v57, %v1458_v53 }
 0x19f   : > { %v5855_v2 = vpop.eup %4761  ;;  %v1555_v63 = vmul.f32 1.442695, %v1500_v37  ;;  %v1563_v57 = vmul.f32 1.442695, %v1504_v36  ;;  %v1797_v36 = vld [vmem:[%s5911_s22] sm:$0xff] }
 0x1a0   : > { %7951 = vst [vmem:[#allocation14_spill] sm:$0xff] %v5855_v2  ;;  %v5858_v7 = vpop.eup %4763  ;;  %v1559_v17 = vmul.f32 1.442695, %v1502_v21  ;;  %v1633_v56 = vsel %vm1380_vm0, %v5855_v2, 0.0  ;;  %v1798_v21 = vld [vmem:[%s5911_s22 + $0x8] sm:$0xff] }
 0x1a1   : > { %7952 = vst [vmem:[#allocation15_spill] sm:$0xff] %v5858_v7  ;;  %4767 = vpow2.f32 %v1555_v63  ;;  %v1639_v30 = vsel %vm1380_vm0, %v5858_v7, 0.0  ;;  %1634 = vadd.xlane.f32.xlu1 %v1633_v56  ;;  %1637 = vadd.xlane.f32.xlu2 %v1636_v3  ;;  %v5866_v1 = vpop.eup %4765  ;;  %v1829_v63 = vld [vmem:[%s5918_s0] sm:$0xff]  ;;  %v1831_v56 = vld [vmem:[%s5918_s0 + $0x10] sm:$0xff]  ;;  %v1832_v3 = vld [vmem:[%s5918_s0 + $0x18] sm:$0xff] }
 0x1a2   : > { %4769 = vpow2.f32 %v1559_v17  ;;  %1640 = vadd.xlane.f32.xlu0 %v1639_v30  ;;  %v1645_v5 = vsel %vm1380_vm0, %v5866_v1, 0.0  ;;  %v1799_v17 = vld [vmem:[%s5911_s22 + $0x10] sm:$0xff] }
 0x1a3   : > { %4771 = vpow2.f32 %v1563_v57 }
 0x1a4   : > { %v1461_v24 = vpop.xlane.xlu2 %1460  ;;  %v1473_v4 = vpop.xlane.xlu0 %1472 }
 0x1a5   : > { %v1503_v19 = vsub.f32 %v5721_v10, %v1461_v24  ;;  %v1467_v40 = vpop.xlane.xlu1 %1466  ;;  %v1507_v12 = vsub.f32 %v5719_v48, %v1473_v4  ;;  %v1821_v24 = vld [vmem:[%s5911_s22 + $0xc0] sm:$0xff] }
 0x1a6   : > { %v1505_v16 = vsub.f32 %v5724_v34, %v1467_v40 }
 0x1a7   : > { %v5870_v15 = vpop.eup %4767  ;;  %v1561_v41 = vmul.f32 1.442695, %v1503_v19  ;;  %v1569_v34 = vmul.f32 1.442695, %v1507_v12 }
 0x1a8   : > { %7953 = vst [vmem:[#allocation16_spill] sm:$0xff] %v5870_v15  ;;  %v5873_v33 = vpop.eup %4769  ;;  %v1565_v23 = vmul.f32 1.442695, %v1505_v16  ;;  %v1642_v6 = vsel %vm1380_vm0, %v5870_v15, 0.0  ;;  %v1833_v16 = vld [vmem:[%s5918_s0 + $0x20] sm:$0xff] }
 0x1a9   : > { %4773 = vpow2.f32 %v1561_v41  ;;  %v1648_v10 = vsel %vm1380_vm0, %v5873_v33, 0.0  ;;  %1643 = vadd.xlane.f32.xlu1 %v1642_v6  ;;  %1646 = vadd.xlane.f32.xlu2 %v1645_v5  ;;  %v5881_v48 = vpop.eup %4771  ;;  %v1802_v6 = vld [vmem:[%s5911_s22 + $0x28] sm:$0xff] }
 0x1aa   : > { %4775 = vpow2.f32 %v1565_v23  ;;  %1649 = vadd.xlane.f32.xlu0 %v1648_v10  ;;  %v1654_v27 = vsel %vm1380_vm0, %v5881_v48, 0.0 }
 0x1ab   : > { %4777 = vpow2.f32 %v1569_v34 }
 0x1ac   : > { %v1470_v52 = vpop.xlane.xlu2 %1469 }
 0x1ad   : > { %v1506_v35 = vsub.f32 %v5739_v50, %v1470_v52  ;;  %v1476_v38 = vpop.xlane.xlu1 %1475  ;;  %v1855_v52 = vld [vmem:[%s5918_s0 + $0xd0] sm:$0xff] }
 0x1ae   : > { %v1508_v18 = vsub.f32 %v5741_v8, %v1476_v38 }
 0x1af   : > { %v5885_v51 = vpop.eup %4773  ;;  %v1567_v59 = vmul.f32 1.442695, %v1506_v35 }
 0x1b0   : > { %v5887_v47 = vpop.eup %4775  ;;  %v1571_v58 = vmul.f32 1.442695, %v1508_v18  ;;  %v1651_v60 = vsel %vm1380_vm0, %v5885_v51, 0.0  ;;  %v1835_v18 = vld [vmem:[%s5918_s0 + $0x30] sm:$0xff] }
 0x1b1   : > { %7954 = vst [vmem:[#allocation17_spill] sm:$0xff] %v5887_v47  ;;  %4779 = vpow2.f32 %v1567_v59  ;;  %v1657_v50 = vsel %vm1380_vm0, %v5887_v47, 0.0  ;;  %1652 = vadd.xlane.f32.xlu1 %v1651_v60  ;;  %1655 = vadd.xlane.f32.xlu2 %v1654_v27  ;;  %v5895_v8 = vpop.eup %4777  ;;  %v1856_v27 = vld [vmem:[%s5918_s0 + $0xd8] sm:$0xff] }
 0x1b2   : > { %4781 = vpow2.f32 %v1571_v58  ;;  %1658 = vadd.xlane.f32.xlu0 %v1657_v50  ;;  %7955 = vst [vmem:[#allocation18_spill] sm:$0xff] %v5895_v8  ;;  %v1663_v37 = vsel %vm1380_vm0, %v5895_v8, 0.0 }
 0x1b7   : > { %v5897_v45 = vpop.eup %4779 }
 0x1b8   : > { %7956 = vst [vmem:[#allocation19_spill] sm:$0xff] %v5897_v45  ;;  %v5899_v46 = vpop.eup %4781  ;;  %v1660_v39 = vsel %vm1380_vm0, %v5897_v45, 0.0 }
 0x1b9   : > { %7957 = vst [vmem:[#allocation20_spill] sm:$0xff] %v5899_v46  ;;  %v1666_v53 = vsel %vm1380_vm0, %v5899_v46, 0.0  ;;  %1661 = vadd.xlane.f32.xlu1 %v1660_v39  ;;  %1664 = vadd.xlane.f32.xlu2 %v1663_v37  ;;  %v1804_v37 = vld [vmem:[%s5911_s22 + $0x38] sm:$0xff] }
 0x1ba   : > { %1667 = vadd.xlane.f32.xlu0 %v1666_v53 }
 0x1ce   : > { %1868 = vperm.xlu0 %4714, %v1798_v21  }
 0x1d1   : > { %2055 = vperm.xlu2 %4716, %v1829_v63  }
 0x1d2   : > { %1863 = vperm.xlu1 %4715, %v1797_v36   ;;  %v1836_v36 = vld [vmem:[%s5918_s0 + $0x38] sm:$0xff] }
 0x1d3   : > { %v5925_v30 = vpop.xlane.xlu2 %1574 }
 0x1d6   : > { %1873 = vperm.xlu0 %4714, %v1799_v17  }
 0x1d9   : > { %2065 = vperm.xlu2 %4716, %v1831_v56  }
 0x1dc   : > { %v5927_v57 = vpop.xlane.xlu0 %1577 }
 0x1dd   : > { %v5930_v4 = vpop.xlane.xlu1 %1580 }
 0x1de   : > { %2070 = vperm.xlu0 %4714, %v1832_v3  }
 0x1e1   : > { %1983 = vperm.xlu2 %4716, %v1821_v24   ;;  %v1825_v24 = vld [vmem:[%s5911_s22 + $0xe0] sm:$0xff] }
 0x1e4   : > { %v5932_v19 = vpop.xlane.xlu2 %1583 }
 0x1e5   : > { %v5934_v40 = vpop.xlane.xlu0 %1586 }
 0x1e9   : > { %2075 = vperm.xlu2 %4716, %v1833_v16  }
 0x1ec   : > { %v5937_v41 = vpop.xlane.xlu1 %1589  ;;  %v5939_v12 = vpop.xlane.xlu2 %1592 }
 0x1ed   : > { %v5941_v23 = vpop.xlane.xlu0 %1595 }
 0x1f1   : > { %1888 = vperm.xlu2 %4716, %v1802_v6  }
 0x1f4   : > { %v5944_v5 = vpop.xlane.xlu2 %1601  ;;  %v5948_v34 = vpop.xlane.xlu1 %1598 }
 0x1f5   : > { %v5946_v10 = vpop.xlane.xlu0 %1604 }
 0x1f6   : > { %7958 = vst [vmem:[#allocation21_spill] sm:$0xff] %v5946_v10 }
 0x1f9   : > { %2185 = vperm.xlu2 %4716, %v1855_v52  }
 0x1fc   : > { %v5951_v35 = vpop.xlane.xlu2 %1610  ;;  %v5956_v59 = vpop.xlane.xlu1 %1607 }
 0x1fd   : > { %7959 = vst [vmem:[#allocation22_spill] sm:$0xff] %v5951_v35  ;;  %v5953_v38 = vpop.xlane.xlu0 %1613 }
 0x1fe   : > { %7960 = vst [vmem:[#allocation23_spill] sm:$0xff] %v5953_v38 }
 0x1ff   : > { %7961 = vst [vmem:[#allocation24_spill] sm:$0xff] %v5956_v59 }
 0x201   : > { %2085 = vperm.xlu2 %4716, %v1835_v18  }
 0x204   : > { %v5958_v58 = vpop.xlane.xlu2 %1619  ;;  %v5963_v50 = vpop.xlane.xlu1 %1616 }
 0x205   : > { %7962 = vst [vmem:[#allocation25_spill] sm:$0xff] %v5958_v58  ;;  %v5960_v60 = vpop.xlane.xlu0 %1622 }
 0x206   : > { %7963 = vst [vmem:[#allocation26_spill] sm:$0xff] %v5960_v60 }
 0x207   : > { %7964 = vst [vmem:[#allocation27_spill] sm:$0xff] %v5963_v50 }
 0x209   : > { %2190 = vperm.xlu2 %4716, %v1856_v27  }
 0x20c   : > { %v5965_v39 = vpop.xlane.xlu2 %1628  ;;  %v5970_v21 = vpop.xlane.xlu1 %1625 }
 0x20d   : > { %7965 = vst [vmem:[#allocation28_spill] sm:$0xff] %v5965_v39  ;;  %v5968_v53 = vpop.xlane.xlu0 %1631 }
 0x20e   : > { %7966 = vst [vmem:[#allocation29_spill] sm:$0xff] %v5968_v53  ;;  %v1735_v53 = vld [vmem:[%s7904_s7 + $0x10] sm:$0xff] }
 0x20f   : > { %7967 = vst [vmem:[#allocation30_spill] sm:$0xff] %v5970_v21 }
 0x211   : > { %1898 = vperm.xlu2 %4716, %v1804_v37  }
 0x214   : > { %v5972_v63 = vpop.xlane.xlu2 %1637  ;;  %v5977_v56 = vpop.xlane.xlu1 %1634 }
 0x215   : > { %7968 = vst [vmem:[#allocation31_spill] sm:$0xff] %v5972_v63  ;;  %v5975_v17 = vpop.xlane.xlu0 %1640 }
 0x216   : > { %7969 = vst [vmem:[#allocation32_spill] sm:$0xff] %v5975_v17 }
 0x217   : > { %7970 = vst [vmem:[#allocation33_spill] sm:$0xff] %v5977_v56 }
 0x219   : > { %2090 = vperm.xlu2 %4716, %v1836_v36  }
 0x21c   : > { %v5979_v3 = vpop.xlane.xlu2 %1646  ;;  %v5984_v6 = vpop.xlane.xlu1 %1643 }
 0x21d   : > { %v5982_v16 = vpop.xlane.xlu0 %1649  ;;  %7971 = vst [vmem:[#allocation34_spill] sm:$0xff] %v5984_v6  ;;  %v1733_v6 = vld [vmem:[%s7904_s7] sm:$0xff] }
 0x221   : > { %2003 = vperm.xlu2 %4716, %v1825_v24   ;;  %v1765_v24 = vld [vmem:[%s7905_s8] sm:$0xff] }
 0x224   : > { %v5986_v52 = vpop.xlane.xlu2 %1655  ;;  %v5990_v27 = vpop.xlane.xlu1 %1652 }
 0x225   : > { %v5988_v18 = vpop.xlane.xlu0 %1658 }
 0x22c   : > { %v5992_v37 = vpop.xlane.xlu2 %1664  ;;  %v5996_v15 = vpop.xlane.xlu1 %1661 }
 0x22d   : > { %7972 = vst [vmem:[#allocation35_spill] sm:$0xff] %v5992_v37  ;;  %v5994_v36 = vpop.xlane.xlu0 %1667 }
 0x22e   : > { %7973 = vst [vmem:[#allocation36_spill] sm:$0xff] %v5994_v36 }
 0x22f   : > { %7974 = vst [vmem:[#allocation37_spill] sm:$0xff] %v5996_v15 }
 0x234   : > { %v2056_v7 = vpop.permute.xlu2 %2055 }
 0x235   : > { %v2213_v2 = vsub.f32 %v1765_v24, %v2056_v7 }
 0x23c   : > { %v2066_v56 = vpop.permute.xlu2 %2065 }
 0x23d   : > { %v2215_v14 = vsub.f32 %v1767_v54, %v2066_v56  ;;  %v1800_v54 = vld [vmem:[%s5911_s22 + $0x18] sm:$0xff] }
 0x240   : > { %v1869_v9 = vpop.permute.xlu0 %1868 }
 0x244   : > { %v1864_v17 = vpop.permute.xlu1 %1863 }
 0x245   : > { %v2021_v63 = vsub.f32 %v1733_v6, %v1864_v17 }
 0x247   : > { %v2245_v44 = vmul.f32 %v2213_v2, %v2021_v63  ;;  %v1830_v2 = vld [vmem:[%s5918_s0 + $0x8] sm:$0xff] }
 0x248   : > { %v1874_v39 = vpop.permute.xlu0 %1873  ;;  %v1826_v63 = vld [vmem:[%s5911_s22 + $0xe8] sm:$0xff] }
 0x249   : > { %v2023_v21 = vsub.f32 %v1735_v53, %v1874_v39  ;;  %v6010_v7 = vmul.f32 0.5, %v2245_v44  ;;  %v1853_v44 = vld [vmem:[%s5918_s0 + $0xc0] sm:$0xff]  ;;  %v1834_v39 = vld [vmem:[%s5918_s0 + $0x28] sm:$0xff] }
 0x24a   : > { %v1857_v53 = vld [vmem:[%s5918_s0 + $0xe0] sm:$0xff] }
 0x24b   : > { %v2247_v17 = vmul.f32 %v2215_v14, %v2023_v21  ;;  %v2309_v6 = vsel %vm1380_vm0, %v6010_v7, -inf  ;;  %v1822_v14 = vld [vmem:[%s5911_s22 + $0xc8] sm:$0xff]  ;;  %v1837_v21 = vld [vmem:[%s5918_s0 + $0x40] sm:$0xff] }
 0x24c   : > { %2310 = vmax.xlane.f32.xlu1 %v2309_v6 }
 0x24d   : > { %v6014_v24 = vmul.f32 0.5, %v2247_v17  ;;  %v1766_v17 = vld [vmem:[%s7905_s8 + $0x8] sm:$0xff] }
 0x24f   : > { %v2315_v42 = vsel %vm1380_vm0, %v6014_v24, -inf }
 0x250   : > { %2316 = vmax.xlane.f32.xlu2 %v2315_v42  ;;  %v1734_v42 = vld [vmem:[%s7904_s7 + $0x8] sm:$0xff] }
 0x265   : > { %2060 = vperm.xlu1 %4715, %v1830_v2   ;;  %v2022_v2 = vsub.f32 %v1734_v42, %v1869_v9 }
 0x26d   : > { %1878 = vperm.xlu1 %4715, %v1800_v54  }
 0x275   : > { %2175 = vperm.xlu1 %4715, %v1853_v44  }
 0x27d   : > { %1988 = vperm.xlu1 %4715, %v1822_v14  }
 0x285   : > { %2080 = vperm.xlu1 %4715, %v1834_v39   ;;  %v1768_v39 = vld [vmem:[%s7905_s8 + $0x18] sm:$0xff] }
 0x28d   : > { %2195 = vperm.xlu1 %4715, %v1857_v53   ;;  %v2071_v53 = vpop.permute.xlu0 %2070 }
 0x28e   : > { %v2216_v60 = vsub.f32 %v1768_v39, %v2071_v53 }
 0x295   : > { %2095 = vperm.xlu1 %4715, %v1837_v21   ;;  %v1736_v21 = vld [vmem:[%s7904_s7 + $0x18] sm:$0xff] }
 0x29d   : > { %2008 = vperm.xlu1 %4715, %v1826_v63  }
 0x2bf   : > { %v2311_v56 = vpop.xlane.xlu1 %2310 }
 0x2d7   : > { %v2061_v6 = vpop.permute.xlu1 %2060 }
 0x2d8   : > { %v2214_v54 = vsub.f32 %v1766_v17, %v2061_v6  ;;  %v1757_v17 = vld [vmem:[%s7904_s7 + $0xc0] sm:$0xff]  ;;  %v1984_v6 = vpop.permute.xlu2 %1983 }
 0x2da   : > { %v2246_v44 = vmul.f32 %v2214_v54, %v2022_v2  ;;  %v1789_v2 = vld [vmem:[%s7905_s8 + $0xc0] sm:$0xff] }
 0x2dc   : > { %v2278_v14 = vmul.f32 0.5, %v2246_v44 }
 0x2de   : > { %v2312_v63 = vsel %vm1380_vm0, %v2278_v14, -inf }
 0x2df   : > { %v1879_v28 = vpop.permute.xlu1 %1878  ;;  %2313 = vmax.xlane.f32.xlu0 %v2312_v63  ;;  %v1854_v63 = vld [vmem:[%s5918_s0 + $0xc8] sm:$0xff] }
 0x2e0   : > { %v2024_v58 = vsub.f32 %v1736_v21, %v1879_v28  ;;  %v2045_v28 = vsub.f32 %v1757_v17, %v1984_v6  ;;  %v1801_v21 = vld [vmem:[%s5911_s22 + $0x20] sm:$0xff]  ;;  %v1824_v17 = vld [vmem:[%s5911_s22 + $0xd8] sm:$0xff] }
 0x2e1   : > { %v1805_v6 = vld [vmem:[%s5911_s22 + $0x40] sm:$0xff] }
 0x2e2   : > { %v2248_v9 = vmul.f32 %v2216_v60, %v2024_v58 }
 0x2e4   : > { %v6039_v42 = vmul.f32 0.5, %v2248_v9  ;;  %v1823_v9 = vld [vmem:[%s5911_s22 + $0xd0] sm:$0xff] }
 0x2e6   : > { %v2318_v54 = vsel %vm1380_vm0, %v6039_v42, -inf }
 0x2e7   : > { %v2176_v44 = vpop.permute.xlu1 %2175  ;;  %2319 = vmax.xlane.f32.xlu1 %v2318_v54  ;;  %v1803_v54 = vld [vmem:[%s5911_s22 + $0x30] sm:$0xff] }
 0x2e8   : > { %v2237_v58 = vsub.f32 %v1789_v2, %v2176_v44  ;;  %v1858_v2 = vld [vmem:[%s5918_s0 + $0xe8] sm:$0xff] }
 0x2e9   : > { %v1838_v44 = vld [vmem:[%s5918_s0 + $0x48] sm:$0xff] }
 0x2ea   : > { %v2269_v60 = vmul.f32 %v2237_v58, %v2045_v28  ;;  %v1828_v28 = vld [vmem:[%s5911_s22 + $0xf8] sm:$0xff]  ;;  %v2076_v58 = vpop.permute.xlu2 %2075 }
 0x2ec   : > { %v6049_v39 = vmul.f32 0.5, %v2269_v60 }
 0x2ee   : > { %v2381_v53 = vsel %vm1380_vm0, %v6049_v39, -inf }
 0x2ef   : > { %2382 = vmax.xlane.f32.xlu0 %v2381_v53  ;;  %v1989_v60 = vpop.permute.xlu1 %1988 }
 0x2f2   : > { %v1889_v53 = vpop.permute.xlu2 %1888 }
 0x303   : > { %1883 = vperm.xlu0 %4714, %v1801_v21   ;;  %v1770_v21 = vld [vmem:[%s7905_s8 + $0x28] sm:$0xff] }
 0x30b   : > { %2180 = vperm.xlu0 %4714, %v1854_v63   ;;  %v2081_v63 = vpop.permute.xlu1 %2080 }
 0x313   : > { %1993 = vperm.xlu0 %4714, %v1823_v9   ;;  %v2186_v9 = vpop.permute.xlu2 %2185 }
 0x31b   : > { %1893 = vperm.xlu0 %4714, %v1803_v54   ;;  %v1738_v54 = vld [vmem:[%s7904_s7 + $0x28] sm:$0xff]  ;;  %v2086_v50 = vpop.permute.xlu2 %2085 }
 0x323   : > { %1998 = vperm.xlu0 %4714, %v1824_v17   ;;  %v2218_v17 = vsub.f32 %v1770_v21, %v2081_v63 }
 0x32b   : > { %1903 = vperm.xlu0 %4714, %v1805_v6   ;;  %v2026_v6 = vsub.f32 %v1738_v54, %v1889_v53  ;;  %v6077_v53 = vpop.permute.xlu2 %2190 }
 0x333   : > { %2200 = vperm.xlu0 %4714, %v1858_v2   ;;  %v2405_v2 = vsub.f32 %v6010_v7, %v2311_v56  ;;  %v1769_v7 = vld [vmem:[%s7905_s8 + $0x20] sm:$0xff] }
 0x33b   : > { %2100 = vperm.xlu0 %4714, %v1838_v44   ;;  %v2250_v44 = vmul.f32 %v2218_v17, %v2026_v6  ;;  %v1790_v17 = vld [vmem:[%s7905_s8 + $0xc8] sm:$0xff]  ;;  %v1899_v6 = vpop.permute.xlu2 %1898 }
 0x33d   : > { %v6069_v22 = vmul.f32 0.5, %v2250_v44 }
 0x33f   : > { %v2324_v38 = vsel %vm1380_vm0, %v6069_v22, -inf }
 0x343   : > { %2018 = vperm.xlu0 %4714, %v1828_v28   ;;  %v2437_v28 = vmul.f32 1.442695, %v2405_v2 }
 0x345   : > { %4783 = vpow2.f32 %v2437_v28 }
 0x34b   : > { %v6075_v8 = vpop.eup %4783 }
 0x34c   : > { %v2501_v56 = vsel %vm1380_vm0, %v6075_v8, 0.0 }
 0x352   : > { %v2314_v49 = vpop.xlane.xlu0 %2313 }
 0x353   : > { %v2406_v32 = vsub.f32 %v2278_v14, %v2314_v49  ;;  %v1737_v49 = vld [vmem:[%s7904_s7 + $0x20] sm:$0xff] }
 0x355   : > { %v2439_v46 = vmul.f32 1.442695, %v2406_v32 }
 0x357   : > { %4785 = vpow2.f32 %v2439_v46  ;;  %v1758_v46 = vld [vmem:[%s7904_s7 + $0xc8] sm:$0xff] }
 0x358   : > { %v2046_v28 = vsub.f32 %v1758_v46, %v1989_v60  ;;  %v2091_v60 = vpop.permute.xlu2 %2090 }
 0x35d   : > { %v6087_v63 = vpop.eup %4785 }
 0x35e   : > { %v2504_v2 = vsel %vm1380_vm0, %v6087_v63, 0.0 }
 0x362   : > { %v6073_v35 = vpop.xlane.xlu0 %2382 }
 0x36d   : > { %2325 = vmax.xlane.f32.xlu0 %v2324_v38  ;;  %v2217_v38 = vsub.f32 %v1769_v7, %v2076_v58 }
 0x375   : > { %2502 = vadd.xlane.f32.xlu0 %v2501_v56  ;;  %v1884_v14 = vpop.permute.xlu0 %1883 }
 0x376   : > { %v2025_v32 = vsub.f32 %v1737_v49, %v1884_v14  ;;  %v1791_v14 = vld [vmem:[%s7905_s8 + $0xd0] sm:$0xff] }
 0x378   : > { %v2249_v21 = vmul.f32 %v2217_v38, %v2025_v32  ;;  %v1759_v38 = vld [vmem:[%s7904_s7 + $0xd0] sm:$0xff]  ;;  %v2196_v32 = vpop.permute.xlu1 %2195 }
 0x37a   : > { %v6089_v54 = vmul.f32 0.5, %v2249_v21 }
 0x37c   : > { %v2321_v58 = vsel %vm1380_vm0, %v6089_v54, -inf }
 0x37d   : > { %2505 = vadd.xlane.f32.xlu0 %v2504_v2  ;;  %2322 = vmax.xlane.f32.xlu1 %v2321_v58  ;;  %v2181_v44 = vpop.permute.xlu0 %2180  ;;  %v2239_v58 = vsub.f32 %v1791_v14, %v2186_v9  ;;  %v1772_v9 = vld [vmem:[%s7905_s8 + $0x38] sm:$0xff] }
 0x37e   : > { %v2238_v7 = vsub.f32 %v1790_v17, %v2181_v44 }
 0x380   : > { %v2270_v49 = vmul.f32 %v2238_v7, %v2046_v28  ;;  %v1771_v28 = vld [vmem:[%s7905_s8 + $0x30] sm:$0xff] }
 0x381   : > { %v1739_v7 = vld [vmem:[%s7904_s7 + $0x30] sm:$0xff] }
 0x382   : > { %v6101_v56 = vmul.f32 0.5, %v2270_v49 }
 0x384   : > { %v2384_v21 = vsel %vm1380_vm0, %v6101_v56, -inf }
 0x385   : > { %2385 = vmax.xlane.f32.xlu2 %v2384_v21  ;;  %v1994_v2 = vpop.permute.xlu0 %1993  ;;  %v2096_v21 = vpop.permute.xlu1 %2095 }
 0x386   : > { %v2047_v46 = vsub.f32 %v1759_v38, %v1994_v2  ;;  %v2219_v38 = vsub.f32 %v1771_v28, %v2086_v50  ;;  %v1760_v50 = vld [vmem:[%s7904_s7 + $0xd8] sm:$0xff] }
 0x388   : > { %v2271_v17 = vmul.f32 %v2239_v58, %v2047_v46  ;;  %v1740_v58 = vld [vmem:[%s7904_s7 + $0x38] sm:$0xff]  ;;  %v2220_v46 = vsub.f32 %v1772_v9, %v2091_v60  ;;  %v1793_v60 = vld [vmem:[%s7905_s8 + $0xe0] sm:$0xff] }
 0x389   : > { %v2028_v36 = vsub.f32 %v1740_v58, %v1899_v6  ;;  %v1761_v9 = vld [vmem:[%s7904_s7 + $0xe0] sm:$0xff] }
 0x38a   : > { %v6111_v44 = vmul.f32 0.5, %v2271_v17  ;;  %v2004_v17 = vpop.permute.xlu2 %2003 }
 0x38b   : > { %v2252_v28 = vmul.f32 %v2220_v46, %v2028_v36  ;;  %v2241_v36 = vsub.f32 %v1793_v60, %v2196_v32  ;;  %v2049_v46 = vsub.f32 %v1761_v9, %v2004_v17 }
 0x38c   : > { %v2387_v49 = vsel %vm1380_vm0, %v6111_v44, -inf }
 0x38d   : > { %2388 = vmax.xlane.f32.xlu2 %v2387_v49  ;;  %v1894_v14 = vpop.permute.xlu0 %1893 }
 0x38e   : > { %v2027_v2 = vsub.f32 %v1739_v7, %v1894_v14  ;;  %v6144_v14 = vmul.f32 0.5, %v2252_v28 }
 0x390   : > { %v2251_v55 = vmul.f32 %v2219_v38, %v2027_v2  ;;  %v2009_v2 = vpop.permute.xlu1 %2008  ;;  %v2330_v28 = vsel %vm1380_vm0, %v6144_v14, -inf }
 0x392   : > { %v6127_v45 = vmul.f32 0.5, %v2251_v55  ;;  %v2240_v55 = vsub.f32 %v1792_v11, %v6077_v53  ;;  %v2317_v38 = vpop.xlane.xlu2 %2316  ;;  %v1773_v11 = vld [vmem:[%s7905_s8 + $0x40] sm:$0xff] }
 0x393   : > { %v2407_v59 = vsub.f32 %v6014_v24, %v2317_v38  ;;  %v1741_v53 = vld [vmem:[%s7904_s7 + $0x40] sm:$0xff]  ;;  %v1762_v38 = vld [vmem:[%s7904_s7 + $0xe8] sm:$0xff] }
 0x394   : > { %v2327_v7 = vsel %vm1380_vm0, %v6127_v45, -inf }
 0x395   : > { %2328 = vmax.xlane.f32.xlu1 %v2327_v7  ;;  %v1999_v6 = vpop.permute.xlu0 %1998  ;;  %v2221_v7 = vsub.f32 %v1773_v11, %v2096_v21  ;;  %v2441_v60 = vmul.f32 1.442695, %v2407_v59  ;;  %v2050_v11 = vsub.f32 %v1762_v38, %v2009_v2  ;;  %v3007_v2 = vld [vmem:[%s7909_s12] sm:$0xf] }
 0x396   : > { %v2048_v49 = vsub.f32 %v1760_v50, %v1999_v6  ;;  %v2273_v50 = vmul.f32 %v2241_v36, %v2049_v46  ;;  %4584 = vmatpush.msk.msra.mxu1 %vm3109_vm1, %v3007_v2 }
 0x397   : > { %4787 = vpow2.f32 %v2441_v60 }
 0x398   : > { %v2272_v58 = vmul.f32 %v2240_v55, %v2048_v49  ;;  %v6159_v6 = vmul.f32 0.5, %v2273_v50  ;;  %v2320_v55 = vpop.xlane.xlu1 %2319 }
 0x399   : > { %v2408_v36 = vsub.f32 %v6039_v42, %v2320_v55 }
 0x39a   : > { %v6146_v37 = vmul.f32 0.5, %v2272_v58  ;;  %v1794_v58 = vld [vmem:[%s7905_s8 + $0xe8] sm:$0xff]  ;;  %v2393_v59 = vsel %vm1380_vm0, %v6159_v6, -inf }
 0x39b   : > { %v2443_v50 = vmul.f32 1.442695, %v2408_v36  ;;  %v6208_v36 = vld [vmem:[%s6194_s30 + $0x8] sm:$0xff] }
 0x39c   : > { %v2390_v32 = vsel %vm1380_vm0, %v6146_v37, -inf }
 0x39d   : > { %2331 = vmax.xlane.f32.xlu1 %v2330_v28  ;;  %2391 = vmax.xlane.f32.xlu2 %v2390_v32  ;;  %v1904_v17 = vpop.permute.xlu0 %1903  ;;  %v6174_v32 = vpop.eup %4787  ;;  %4789 = vpow2.f32 %v2443_v50  ;;  %v1807_v50 = vld [vmem:[%s5911_s22 + $0x50] sm:$0xff] }
 0x39e   : > { %v2029_v24 = vsub.f32 %v1741_v53, %v1904_v17  ;;  %v2429_v17 = vsub.f32 %v6049_v39, %v6073_v35  ;;  %v6199_v39 = vld [vmem:[%s6194_s30] sm:$0xff] }
 0x39f   : > { %4585 = vmatmul.msk.f32.vlgmr.msra.gmra.mxu1 %vm3012_vm2, %v6199_v39 }
 0x3a0   : > { %v2253_v49 = vmul.f32 %v2221_v7, %v2029_v24  ;;  %v2507_v7 = vsel %vm1380_vm0, %v6174_v32, 0.0  ;;  %v2485_v60 = vmul.f32 1.442695, %v2429_v17  ;;  %v1809_v17 = vld [vmem:[%s5911_s22 + $0x60] sm:$0xff] }
 0x3a2   : > { %v6161_v9 = vmul.f32 0.5, %v2253_v49  ;;  %4791 = vpow2.f32 %v2485_v60  ;;  %v1842_v60 = vld [vmem:[%s5918_s0 + $0x68] sm:$0xff] }
 0x3a3   : > { %v6188_v55 = vpop.eup %4789  ;;  %4793 = vrcp.f32 %v5925_v30  ;;  %v2661_v30 = vld [vmem:[%s6233_s23] sm:$0xff] }
 0x3a4   : > { %v2333_v21 = vsel %vm1380_vm0, %v6161_v9, -inf  ;;  %v2510_v35 = vsel %vm1380_vm0, %v6188_v55, 0.0 }
 0x3a5   : > { %2394 = vmax.xlane.f32.xlu1 %v2393_v59  ;;  %2334 = vmax.xlane.f32.xlu0 %v2333_v21  ;;  %v2201_v46 = vpop.permute.xlu0 %2200  ;;  %v1827_v59 = vld [vmem:[%s5911_s22 + $0xf0] sm:$0xff] }
 0x3a6   : > { %v2242_v53 = vsub.f32 %v1794_v58, %v2201_v46  ;;  %v1806_v58 = vld [vmem:[%s5911_s22 + $0x48] sm:$0xff]  ;;  %v1859_v46 = vld [vmem:[%s5918_s0 + $0xf0] sm:$0xff] }
 0x3a7   : > { %4586 = vmatmul.msk.f32.gmra.mxu1 %vm3012_vm2, %v6208_v36 }
 0x3a8   : > { %v2274_v28 = vmul.f32 %v2242_v53, %v2050_v11  ;;  %v6203_v49 = vpop.eup %4791  ;;  %v2789_v11 = vld [vmem:[%s7907_s10] sm:$0x3] }
 0x3a9   : > { %v2573_v38 = vsel %vm1380_vm0, %v6203_v49, 0.0  ;;  %4551 = vmatpush.msk.msra.mxu0 %vm2890_vm3, %v2789_v11  ;;  %4685 = vmatpush.msk.msra.mxu3 %vm2890_vm3, %v2789_v11 }
 0x3aa   : > { %v6176_v42 = vmul.f32 0.5, %v2274_v28 }
 0x3ab   : > { %4686 = vmatpush.msk.msrb.mxu3 %vm3109_vm1, %v3007_v2 }
 0x3ac   : > { %v2396_v24 = vsel %vm1380_vm0, %v6176_v42, -inf }
 0x3ad   : > { %2508 = vadd.xlane.f32.xlu0 %v2507_v7  ;;  %2397 = vmax.xlane.f32.xlu2 %v2396_v24  ;;  %v6214_v21 = vpop.permute.xlu0 %2100  ;;  %v4794_v24 = vpop.eup %4793 }
 0x3ae   : > { %v1701_v2 = vmul.f32 %v4794_v24, %v5750_v31 }
 0x3b5   : > { %2511 = vadd.xlane.f32.xlu0 %v2510_v35  ;;  %v6221_v53 = vpop.permute.xlu0 %2018  ;;  %v6239_v35 = vld [vmem:[%s6194_s30 + $0x10] sm:$0xff] }
 0x3b6   : > { %4587 = vmatmul.msk.f32.gmra.mxu1 %vm3012_vm2, %v6239_v35 }
 0x3bd   : > { %2574 = vadd.xlane.f32.xlu0 %v2573_v38 }
 0x3c5   : > { %1908 = vperm.xlu2 %4716, %v1806_v58  }
 0x3cd   : > { %2013 = vperm.xlu2 %4716, %v1827_v59  }
 0x3d5   : > { %2205 = vperm.xlu2 %4716, %v1859_v46   ;;  %v2693_v46 = vmul.f32 %v2661_v30, %v1701_v2  ;;  %v1844_v30 = vld [vmem:[%s5918_s0 + $0x78] sm:$0xff] }
 0x3dd   : > { %1913 = vperm.xlu2 %4716, %v1807_v50   ;;  %v1811_v50 = vld [vmem:[%s5911_s22 + $0x70] sm:$0xff] }
 0x3e0   : > { %v6224_v28 = vpop.xlane.xlu0 %2325 }
 0x3e5   : > { %1923 = vperm.xlu2 %4716, %v1809_v17   ;;  %v2662_v17 = vld [vmem:[%s6233_s23 + $0x8] sm:$0xff] }
 0x3e8   : > { %v2503_v7 = vpop.xlane.xlu0 %2502 }
 0x3e9   : > { %4795 = vrcp.f32 %v2503_v7  ;;  %v6249_v7 = vld [vmem:[%s6194_s30 + $0x18] sm:$0xff] }
 0x3ea   : > { %4797 = vrcp.f32 %v5927_v57  ;;  %4588 = vmatmul.msk.f32.gmra.mxu1 %vm3012_vm2, %v6249_v7 }
 0x3ed   : > { %2120 = vperm.xlu2 %4716, %v1842_v60  }
 0x3ef   : > { %v4796_v38 = vpop.eup %4795 }
 0x3f0   : > { %v2506_v58 = vpop.xlane.xlu0 %2505  ;;  %v2629_v59 = vmul.f32 %v4796_v38, %v6075_v8  ;;  %v4798_v11 = vpop.eup %4797 }
 0x3f1   : > { %4799 = vrcp.f32 %v2506_v58  ;;  %v1702_v31 = vmul.f32 %v4798_v11, %v5756_v20 }
 0x3f2   : > { %v2725_v57 = vmul.f32 %v2693_v46, %v2629_v59  ;;  %4801 = vrcp.f32 %v5930_v4 }
 0x3f3   : > { %v2694_v60 = vmul.f32 %v2662_v17, %v1702_v31  ;;  %v1774_v31 = vld [vmem:[%s7905_s8 + $0x48] sm:$0xff] }
 0x3f4   : > { %4552 = vmatmul.msk.f32.vlgmr.msra.gmra.mxu0 %vm1380_vm0, %v2725_v57  ;;  %v1742_v17 = vld [vmem:[%s7904_s7 + $0x48] sm:$0xff] }
 0x3f5   : > { %1933 = vperm.xlu2 %4716, %v1811_v50   ;;  %v2663_v50 = vld [vmem:[%s6233_s23 + $0x10] sm:$0xff] }
 0x3f7   : > { %v4800_v24 = vpop.eup %4799 }
 0x3f8   : > { %v2630_v8 = vmul.f32 %v4800_v24, %v6087_v63  ;;  %v6256_v38 = vpop.xlane.xlu2 %2385  ;;  %v4802_v11 = vpop.eup %4801 }
 0x3f9   : > { %v1703_v57 = vmul.f32 %v4802_v11, %v5759_v26 }
 0x3fa   : > { %v2726_v2 = vmul.f32 %v2694_v60, %v2630_v8 }
 0x3fc   : > { %4553 = vmatmul.msk.f32.gmra.mxu0 %vm1380_vm0, %v2726_v2  ;;  %v2695_v2 = vmul.f32 %v2663_v50, %v1703_v57 }
 0x3fd   : > { %2130 = vperm.xlu2 %4716, %v1844_v30  }
 0x400   : > { %v6258_v20 = vpop.xlane.xlu2 %2388 }
 0x410   : > { %v6260_v58 = vpop.xlane.xlu2 %2391 }
 0x418   : > { %v6262_v59 = vpop.xlane.xlu0 %2334 }
 0x420   : > { %v6265_v46 = vpop.xlane.xlu2 %2397  ;;  %v2509_v63 = vpop.xlane.xlu0 %2508 }
 0x421   : > { %4803 = vrcp.f32 %v2509_v63 }
 0x422   : > { %4805 = vrcp.f32 %v5932_v19  ;;  %v2222_v19 = vsub.f32 %v1774_v31, %v6214_v21 }
 0x427   : > { %v4804_v4 = vpop.eup %4803 }
 0x428   : > { %v1909_v24 = vpop.permute.xlu2 %1908  ;;  %v2512_v8 = vpop.xlane.xlu0 %2511  ;;  %v2631_v60 = vmul.f32 %v4804_v4, %v6174_v32 }
 0x429   : > { %v4806_v30 = vpop.eup %4805  ;;  %v2030_v26 = vsub.f32 %v1742_v17, %v1909_v24  ;;  %4807 = vrcp.f32 %v2512_v8  ;;  %v1763_v24 = vld [vmem:[%s7904_s7 + $0xf0] sm:$0xff] }
 0x42a   : > { %v2727_v63 = vmul.f32 %v2695_v2, %v2631_v60  ;;  %4809 = vrcp.f32 %v5979_v3  ;;  %v1704_v47 = vmul.f32 %v4806_v30, %v5767_v0  ;;  %v2685_v0 = vld [vmem:[%s6233_s23 + $0xc0] sm:$0xff]  ;;  %v1795_v8 = vld [vmem:[%s7905_s8 + $0xf0] sm:$0xff]  ;;  %v3130_v2 = vpop.f32.mrf.mxu1 }
 0x42b   : > { %v2254_v11 = vmul.f32 %v2222_v19, %v2030_v26 }
 0x42c   : > { %4554 = vmatmul.msk.f32.gmra.mxu0 %vm1380_vm0, %v2727_v63  ;;  %v2696_v31 = vmul.f32 %v2664_v62, %v1704_v47 }
 0x42d   : > { %v6281_v15 = vmul.f32 0.5, %v2254_v11 }
 0x42f   : > { %v4808_v10 = vpop.eup %4807  ;;  %v2336_v32 = vsel %vm1380_vm0, %v6281_v15, -inf }
 0x430   : > { %v2014_v57 = vpop.permute.xlu2 %2013  ;;  %2337 = vmax.xlane.f32.xlu1 %v2336_v32  ;;  %v2575_v21 = vpop.xlane.xlu0 %2574  ;;  %v2632_v50 = vmul.f32 %v4808_v10, %v6188_v55 }
 0x431   : > { %v4810_v3 = vpop.eup %4809  ;;  %4811 = vrcp.f32 %v2575_v21  ;;  %v2051_v55 = vsub.f32 %v1763_v24, %v2014_v57  ;;  %v1839_v24 = vld [vmem:[%s5918_s0 + $0x50] sm:$0xff] }
 0x432   : > { %v2728_v17 = vmul.f32 %v2696_v31, %v2632_v50  ;;  %v1725_v4 = vmul.f32 %v4810_v3, %v5866_v1  ;;  %v6300_v1 = vld [vmem:[%s7910_s13] ss:$0 sm:$0xff]  ;;  %v3133_v21 = vpop.f32.mrf.mxu1 }
 0x433   : > { %v3131_v63 = vadd.f32 %v6300_v1, %v3130_v2  ;;  %v3134_v50 = vadd.f32 %v6300_v1, %v3133_v21  ;;  %v1860_v2 = vld [vmem:[%s5918_s0 + $0xf8] sm:$0xff] }
 0x434   : > { %4555 = vmatmul.msk.f32.gmra.mxu0 %vm1380_vm0, %v2728_v17  ;;  %v2717_v47 = vmul.f32 %v2685_v0, %v1725_v4  ;;  %v3898_v4 = vld [vmem:[%s7911_s14] sm:$0xf] }
 0x435   : > { %v4618_v57 = vmul.f32 -1.442695, %v3134_v50  ;;  %4649 = vmatpush.msk.msra.mxu2 %vm3109_vm1, %v3898_v4 }
 0x437   : > { %v4812_v60 = vpop.eup %4811 }
 0x438   : > { %v2206_v10 = vpop.permute.xlu2 %2205  ;;  %v2653_v62 = vmul.f32 %v4812_v60, %v6203_v49  ;;  %v4617_v49 = vmul.f32 -1.442695, %v3131_v63 }
 0x439   : > { %v2243_v30 = vsub.f32 %v1795_v8, %v2206_v10 }
 0x43a   : > { %v2749_v19 = vmul.f32 %v2717_v47, %v2653_v62  ;;  %4813 = vpow2.f32 %v4617_v49 }
 0x43b   : > { %v2275_v26 = vmul.f32 %v2243_v30, %v2051_v55  ;;  %4815 = vpow2.f32 %v4618_v57 }
 0x43c   : > { %4576 = vmatmul.msk.f32.vlgmr.msra.gmra.mxu3 %vm1380_vm0, %v2749_v19  ;;  %v1808_v19 = vld [vmem:[%s5911_s22 + $0x58] sm:$0xff] }
 0x43d   : > { %v6304_v11 = vmul.f32 0.5, %v2275_v26  ;;  %4687 = vmatpush.msk.msra.mxu3 %vm3109_vm1, %v3898_v4  ;;  %v6321_v4 = vld [vmem:[%s7908_s11] ss:$0 sm:$0xff] }
 0x43f   : > { %v2399_v32 = vsel %vm1380_vm0, %v6304_v11, -inf }
 0x440   : > { %2400 = vmax.xlane.f32.xlu1 %v2399_v32  ;;  %v4814_v31 = vpop.eup %4813 }
 0x441   : > { %v3322_v3 = vadd.f32 1.0, %v4814_v31  ;;  %v4816_v17 = vpop.eup %4815 }
 0x442   : > { %v3323_v0 = vadd.f32 1.0, %v4816_v17  ;;  %v1840_v17 = vld [vmem:[%s5918_s0 + $0x58] sm:$0xff] }
 0x443   : > { %4817 = vrcp.f32 %v3322_v3  ;;  %vm3359_vm4 = vweird.f32 %v3322_v3  ;;  %v3365_v30 = vand.u32 2147483648, %v3322_v3  ;;  %v3363_v63 = vand.u32 2147483647, %v3322_v3 }
 0x444   : > { %4819 = vrcp.f32 %v3323_v0  ;;  %vm3374_vm8 = vweird.f32 %v3323_v0  ;;  %v3380_v31 = vand.u32 2147483648, %v3323_v0 }
 0x445   : > { %v3366_v49 = vor.u32 1.1754944e-38, %v3365_v30  ;;  %vm3364_vm7 = vcmp.eq.f32.partialorder %v3363_v63, 8.507059e+37  ;;  %v1810_v63 = vld [vmem:[%s5911_s22 + $0x68] sm:$0xff] }
 0x449   : > { %v4818_v8 = vpop.eup %4817 }
 0x44a   : > { %v3355_v60 = vmul.f32 %v4818_v8, %v3322_v3  ;;  %v4820_v62 = vpop.eup %4819  ;;  %vm3360_vm5 = vweird.f32 %v4818_v8  ;;  %v3378_v3 = vand.u32 2147483647, %v3323_v0 }
 0x44b   : > { %v3370_v47 = vmul.f32 %v4820_v62, %v3323_v0  ;;  %vm3361_vm6 = vmor %vm3359_vm4, %vm3360_vm5  ;;  %vm3375_vm9 = vweird.f32 %v4820_v62 }
 0x44c   : > { %v3356_v10 = vsub.f32 1.0, %v3355_v60  ;;  %vm3376_vm10 = vmor %vm3374_vm8, %vm3375_vm9  ;;  %v3136_v60 = vpop.f32.mrf.mxu1  ;;  %vm3379_vm11 = vcmp.eq.f32.partialorder %v3378_v3, 8.507059e+37 }
 0x44d   : > { %v3371_v32 = vsub.f32 1.0, %v3370_v47 }
 0x44e   : > { %v3357_v55 = vmul.f32 %v4818_v8, %v3356_v10  ;;  %v3381_v10 = vor.u32 1.1754944e-38, %v3380_v31 }
 0x44f   : > { %v3372_v50 = vmul.f32 %v4820_v62, %v3371_v32 }
 0x450   : > { %v3358_v26 = vadd.f32 %v4818_v8, %v3357_v55 }
 0x452   : > { %v3362_v21 = vsel %vm3361_vm6, %v4818_v8, %v3358_v26 }
 0x453   : > { %v3367_v57 = vsel %vm3364_vm7, %v3366_v49, %v3362_v21 }
 0x459   : > { %2105 = vperm.xlu1 %4715, %v1839_v24   ;;  %v3373_v24 = vadd.f32 %v4820_v62, %v3372_v50 }
 0x45b   : > { %v3377_v55 = vsel %vm3376_vm10, %v4820_v62, %v3373_v24 }
 0x45c   : > { %v3382_v26 = vsel %vm3379_vm11, %v3381_v10, %v3377_v55  ;;  %v6334_v55 = vpop.xlane.xlu1 %2322 }
 0x45d   : > { %v3835_v0 = vmul.f32 %v3382_v26, %v6208_v36  ;;  %v1845_v36 = vld [vmem:[%s5918_s0 + $0x80] sm:$0xff] }
 0x461   : > { %2210 = vperm.xlu1 %4715, %v1860_v2   ;;  %v3834_v2 = vmul.f32 %v3367_v57, %v6199_v39  ;;  %v1812_v57 = vld [vmem:[%s5911_s22 + $0x78] sm:$0xff] }
 0x467   : > { %v3139_v49 = vpop.f32.mrf.mxu1 }
 0x468   : > { %v3140_v62 = vadd.f32 %v6300_v1, %v3139_v49  ;;  %v2430_v49 = vsub.f32 %v6101_v56, %v6256_v38 }
 0x469   : > { %1918 = vperm.xlu1 %4715, %v1808_v19   ;;  %v3137_v19 = vadd.f32 %v6300_v1, %v3136_v60 }
 0x46a   : > { %v4620_v31 = vmul.f32 -1.442695, %v3140_v62 }
 0x46b   : > { %v4619_v32 = vmul.f32 -1.442695, %v3137_v19 }
 0x46d   : > { %4821 = vpow2.f32 %v4619_v32 }
 0x46e   : > { %4823 = vpow2.f32 %v4620_v31 }
 0x471   : > { %2110 = vperm.xlu1 %4715, %v1840_v17   ;;  %v2911_v8 = vpop.f32.mrf.mxu0 }
 0x472   : > { %v2912_v47 = vadd.f32 %v6321_v4, %v2911_v8 }
 0x473   : > { %v4822_v17 = vpop.eup %4821 }
 0x474   : > { %v3866_v30 = vadd.f32 %v3834_v2, %v2912_v47  ;;  %v3324_v24 = vadd.f32 1.0, %v4822_v17  ;;  %v4824_v3 = vpop.eup %4823 }
 0x475   : > { %v3325_v60 = vadd.f32 1.0, %v4824_v3 }
 0x476   : > { %4650 = vmatmul.msk.f32.vlgmr.msra.gmra.mxu2 %vm3012_vm2, %v3866_v30  ;;  %4825 = vrcp.f32 %v3324_v24  ;;  %vm3389_vm12 = vweird.f32 %v3324_v24  ;;  %v3395_v26 = vand.u32 2147483648, %v3324_v24 }
 0x477   : > { %4827 = vrcp.f32 %v3325_v60  ;;  %vm3404_vm1 = vweird.f32 %v3325_v60  ;;  %v3410_v17 = vand.u32 2147483648, %v3325_v60  ;;  %v3408_v3 = vand.u32 2147483647, %v3325_v60 }
 0x479   : > { %1928 = vperm.xlu1 %4715, %v1810_v63   ;;  %v2914_v39 = vpop.f32.mrf.mxu0  ;;  %v3411_v38 = vor.u32 1.1754944e-38, %v3410_v17  ;;  %vm3409_vm5 = vcmp.eq.f32.partialorder %v3408_v3, 8.507059e+37  ;;  %v1743_v17 = vld [vmem:[%s7904_s7 + $0x50] sm:$0xff] }
 0x47a   : > { %v2915_v21 = vadd.f32 %v6321_v4, %v2914_v39  ;;  %v2329_v39 = vpop.xlane.xlu1 %2328  ;;  %v1775_v3 = vld [vmem:[%s7905_s8 + $0x50] sm:$0xff] }
 0x47c   : > { %v3867_v50 = vadd.f32 %v3835_v0, %v2915_v21  ;;  %v4826_v2 = vpop.eup %4825  ;;  %v3393_v0 = vand.u32 2147483647, %v3324_v24  ;;  %v3396_v21 = vor.u32 1.1754944e-38, %v3395_v26 }
 0x47d   : > { %v3385_v8 = vmul.f32 %v4826_v2, %v3324_v24  ;;  %v4828_v47 = vpop.eup %4827  ;;  %vm3390_vm13 = vweird.f32 %v4826_v2 }
 0x47e   : > { %4651 = vmatmul.msk.f32.gmra.mxu2 %vm3012_vm2, %v3867_v50  ;;  %v3400_v30 = vmul.f32 %v4828_v47, %v3325_v60  ;;  %vm3391_vm14 = vmor %vm3389_vm12, %vm3390_vm13  ;;  %vm3394_vm15 = vcmp.eq.f32.partialorder %v3393_v0, 8.507059e+37  ;;  %vm3405_vm3 = vweird.f32 %v4828_v47 }
 0x47f   : > { %v3386_v10 = vsub.f32 1.0, %v3385_v8  ;;  %vm3406_vm4 = vmor %vm3404_vm1, %vm3405_vm3  ;;  %v2431_v8 = vsub.f32 %v6111_v44, %v6258_v20  ;;  %v2411_v44 = vsub.f32 %v6127_v45, %v2329_v39 }
 0x480   : > { %v3401_v32 = vsub.f32 1.0, %v3400_v30 }
 0x481   : > { %1938 = vperm.xlu1 %4715, %v1812_v57   ;;  %v3387_v19 = vmul.f32 %v4826_v2, %v3386_v10  ;;  %v2487_v57 = vmul.f32 1.442695, %v2430_v49  ;;  %v2489_v26 = vmul.f32 1.442695, %v2431_v8 }
 0x482   : > { %v3402_v62 = vmul.f32 %v4828_v47, %v3401_v32  ;;  %v6341_v10 = vpop.xlane.xlu1 %2331 }
 0x483   : > { %v3388_v63 = vadd.f32 %v4826_v2, %v3387_v19  ;;  %4829 = vpow2.f32 %v2487_v57 }
 0x484   : > { %4831 = vpow2.f32 %v2489_v26 }
 0x485   : > { %v3392_v50 = vsel %vm3391_vm14, %v4826_v2, %v3388_v63 }
 0x486   : > { %v3397_v31 = vsel %vm3394_vm15, %v3396_v21, %v3392_v50  ;;  %v2449_v21 = vmul.f32 1.442695, %v2411_v44 }
 0x487   : > { %v3836_v24 = vmul.f32 %v3397_v31, %v6239_v35  ;;  %v2409_v31 = vsub.f32 %v6089_v54, %v6334_v55  ;;  %v1764_v54 = vld [vmem:[%s7904_s7 + $0xf8] sm:$0xff] }
 0x488   : > { %4833 = vpow2.f32 %v2449_v21  ;;  %v1796_v55 = vld [vmem:[%s7905_s8 + $0xf8] sm:$0xff] }
 0x489   : > { %2135 = vperm.xlu1 %4715, %v1845_v36   ;;  %v3403_v36 = vadd.f32 %v4828_v47, %v3402_v62  ;;  %v6345_v60 = vpop.eup %4829 }
 0x48a   : > { %v2576_v32 = vsel %vm1380_vm0, %v6345_v60, 0.0  ;;  %v6355_v50 = vpop.eup %4831 }
 0x48b   : > { %v3407_v30 = vsel %vm3406_vm4, %v4828_v47, %v3403_v36  ;;  %v6352_v47 = vpop.xlane.xlu1 %2394  ;;  %v1914_v36 = vpop.permute.xlu2 %1913 }
 0x48c   : > { %v3412_v63 = vsel %vm3409_vm5, %v3411_v38, %v3407_v30  ;;  %v2031_v8 = vsub.f32 %v1743_v17, %v1914_v36  ;;  %v2445_v38 = vmul.f32 1.442695, %v2409_v31  ;;  %v1744_v31 = vld [vmem:[%s7904_s7 + $0x58] sm:$0xff] }
 0x48d   : > { %v3837_v35 = vmul.f32 %v3412_v63, %v6249_v7  ;;  %v2579_v7 = vsel %vm1380_vm0, %v6355_v50, 0.0  ;;  %v1776_v17 = vld [vmem:[%s7905_s8 + $0x58] sm:$0xff] }
 0x48e   : > { %v6361_v39 = vpop.eup %4833  ;;  %4835 = vpow2.f32 %v2445_v38 }
 0x48f   : > { %v2519_v62 = vsel %vm1380_vm0, %v6361_v39, 0.0 }
 0x493   : > { %v6385_v26 = vpop.permute.xlu2 %1923 }
 0x4a3   : > { %v6359_v45 = vpop.xlane.xlu1 %2337 }
 0x4a9   : > { %v2917_v56 = vpop.f32.mrf.mxu0 }
 0x4aa   : > { %v2918_v2 = vadd.f32 %v6321_v4, %v2917_v56 }
 0x4ac   : > { %v3868_v19 = vadd.f32 %v3836_v24, %v2918_v2 }
 0x4ae   : > { %4652 = vmatmul.msk.f32.gmra.mxu2 %vm3012_vm2, %v3868_v19 }
 0x4b1   : > { %v2920_v20 = vpop.f32.mrf.mxu0 }
 0x4b2   : > { %v2921_v0 = vadd.f32 %v6321_v4, %v2920_v20 }
 0x4b3   : > { %2577 = vadd.xlane.f32.xlu1 %v2576_v32  ;;  %v6365_v57 = vpop.xlane.xlu1 %2400 }
 0x4b4   : > { %v3869_v49 = vadd.f32 %v3837_v35, %v2921_v0  ;;  %v2052_v35 = vsub.f32 %v1764_v54, %v6221_v53  ;;  %v6388_v0 = vpop.eup %4835  ;;  %v2410_v53 = vsub.f32 %v6069_v22, %v6224_v28  ;;  %v2412_v22 = vsub.f32 %v6144_v14, %v6341_v10  ;;  %v1780_v14 = vld [vmem:[%s7905_s8 + $0x78] sm:$0xff] }
 0x4b6   : > { %4653 = vmatmul.msk.f32.gmra.mxu2 %vm3012_vm2, %v3869_v49  ;;  %v2513_v49 = vsel %vm1380_vm0, %v6388_v0, 0.0 }
 0x4bb   : > { %2580 = vadd.xlane.f32.xlu1 %v2579_v7 }
 0x4c3   : > { %2520 = vadd.xlane.f32.xlu1 %v2519_v62  ;;  %v6396_v62 = vpop.permute.xlu2 %2120 }
 0x4cb   : > { %v2106_v24 = vpop.permute.xlu1 %2105  ;;  %v6406_v38 = vpop.permute.xlu2 %1933 }
 0x4cc   : > { %v2223_v56 = vsub.f32 %v1775_v3, %v2106_v24 }
 0x4ce   : > { %v2255_v2 = vmul.f32 %v2223_v56, %v2031_v8  ;;  %v2447_v8 = vmul.f32 1.442695, %v2410_v53  ;;  %v1843_v53 = vld [vmem:[%s5918_s0 + $0x70] sm:$0xff] }
 0x4d0   : > { %v6375_v30 = vmul.f32 0.5, %v2255_v2  ;;  %4837 = vpow2.f32 %v2447_v8 }
 0x4d2   : > { %v2339_v19 = vsel %vm1380_vm0, %v6375_v30, -inf }
 0x4d3   : > { %2340 = vmax.xlane.f32.xlu2 %v2339_v19  ;;  %v2211_v63 = vpop.permute.xlu1 %2210  ;;  %v2451_v19 = vmul.f32 1.442695, %v2412_v22  ;;  %v2131_v10 = vpop.permute.xlu2 %2130  ;;  %v1846_v22 = vld [vmem:[%s5918_s0 + $0x88] sm:$0xff] }
 0x4d4   : > { %v2244_v44 = vsub.f32 %v1796_v55, %v2211_v63  ;;  %v1841_v55 = vld [vmem:[%s5918_s0 + $0x60] sm:$0xff] }
 0x4d5   : > { %4839 = vpow2.f32 %v2451_v19 }
 0x4d6   : > { %v2276_v20 = vmul.f32 %v2244_v44, %v2052_v35  ;;  %v6417_v63 = vpop.eup %4837  ;;  %v2434_v35 = vsub.f32 %v6176_v42, %v6265_v46  ;;  %v1748_v44 = vld [vmem:[%s7904_s7 + $0x78] sm:$0xff] }
 0x4d8   : > { %v6390_v32 = vmul.f32 0.5, %v2276_v20  ;;  %v2516_v20 = vsel %vm1380_vm0, %v6417_v63, 0.0 }
 0x4da   : > { %v2402_v21 = vsel %vm1380_vm0, %v6390_v32, -inf }
 0x4db   : > { %2514 = vadd.xlane.f32.xlu2 %v2513_v49  ;;  %v1919_v7 = vpop.permute.xlu1 %1918  ;;  %2403 = vmax.xlane.f32.xlu0 %v2402_v21  ;;  %v2228_v21 = vsub.f32 %v1780_v14, %v2131_v10  ;;  %v6432_v46 = vpop.eup %4839 }
 0x4dc   : > { %v2032_v3 = vsub.f32 %v1744_v31, %v1919_v7  ;;  %v2495_v31 = vmul.f32 1.442695, %v2434_v35  ;;  %v1847_v35 = vld [vmem:[%s5918_s0 + $0x90] sm:$0xff] }
 0x4de   : > { %4841 = vpow2.f32 %v2495_v31 }
 0x4df   : > { %4843 = vrcp.f32 %v5982_v16 }
 0x4e3   : > { %v2111_v36 = vpop.permute.xlu1 %2110 }
 0x4e4   : > { %v2224_v24 = vsub.f32 %v1776_v17, %v2111_v36  ;;  %v2522_v36 = vsel %vm1380_vm0, %v6432_v46, 0.0 }
 0x4e6   : > { %v2256_v56 = vmul.f32 %v2224_v24, %v2032_v3  ;;  %v1813_v3 = vld [vmem:[%s5911_s22 + $0x80] sm:$0xff]  ;;  %v6448_v24 = vpop.eup %4841 }
 0x4e7   : > { %v4844_v10 = vpop.eup %4843 }
 0x4e8   : > { %v6408_v2 = vmul.f32 0.5, %v2256_v56  ;;  %v2588_v56 = vsel %vm1380_vm0, %v6448_v24, 0.0 }
 0x4ea   : > { %v2342_v28 = vsel %vm1380_vm0, %v6408_v2, -inf }
 0x4eb   : > { %2343 = vmax.xlane.f32.xlu2 %v2342_v28  ;;  %v6414_v54 = vpop.permute.xlu1 %1928  ;;  %v1814_v28 = vld [vmem:[%s5911_s22 + $0x88] sm:$0xff] }
 0x4ef   : > { %2115 = vperm.xlu0 %4714, %v1841_v55   ;;  %v6460_v55 = vld [vmem:[%s6194_s30 + $0x20] sm:$0xff] }
 0x4f0   : > { %4589 = vmatmul.msk.f32.gmra.mxu1 %vm3012_vm2, %v6460_v55 }
 0x4f3   : > { %v1939_v49 = vpop.permute.xlu1 %1938  ;;  %2517 = vadd.xlane.f32.xlu2 %v2516_v20  ;;  %v1726_v20 = vmul.f32 %v4844_v10, %v5873_v33  ;;  %v1819_v10 = vld [vmem:[%s5911_s22 + $0xb0] sm:$0xff] }
 0x4f4   : > { %v2036_v7 = vsub.f32 %v1748_v44, %v1939_v49  ;;  %v1816_v44 = vld [vmem:[%s5911_s22 + $0x98] sm:$0xff]  ;;  %v2686_v49 = vld [vmem:[%s6233_s23 + $0xc8] sm:$0xff] }
 0x4f5   : > { %v2718_v16 = vmul.f32 %v2686_v49, %v1726_v20  ;;  %v6501_v20 = vld [vmem:[%s6194_s30 + $0x38] sm:$0xff] }
 0x4f6   : > { %v6430_v42 = vmul.f32 %v2228_v21, %v2036_v7 }
 0x4f7   : > { %2125 = vperm.xlu0 %4714, %v1843_v53  }
 0x4f9   : > { %v6440_v17 = vpop.f32.mrf.mxu2 }
 0x4fa   : > { %4111 = vst.msk [vmem:[%s6438_s21] sm:$0xff] %vm3012_vm2, %v6440_v17 }
 0x4fb   : > { %2523 = vadd.xlane.f32.xlu2 %v2522_v36  ;;  %v6464_v19 = vpop.permute.xlu1 %2135 }
 0x4ff   : > { %1943 = vperm.xlu0 %4714, %v1813_v3   ;;  %v1849_v3 = vld [vmem:[%s5918_s0 + $0xa0] sm:$0xff] }
 0x501   : > { %v6450_v8 = vpop.f32.mrf.mxu2 }
 0x502   : > { %4112 = vst.msk [vmem:[%s6438_s21 + $0x8] sm:$0xff] %vm3012_vm2, %v6450_v8 }
 0x503   : > { %2589 = vadd.xlane.f32.xlu2 %v2588_v56 }
 0x507   : > { %2140 = vperm.xlu0 %4714, %v1846_v22  }
 0x51b   : > { %1948 = vperm.xlu2 %4716, %v1814_v28  }
 0x523   : > { %2145 = vperm.xlu2 %4716, %v1847_v35  }
 0x526   : > { %v2578_v14 = vpop.xlane.xlu1 %2577 }
 0x527   : > { %4845 = vrcp.f32 %v2578_v14 }
 0x528   : > { %4847 = vrcp.f32 %v5990_v27  ;;  %v2687_v27 = vld [vmem:[%s6233_s23 + $0xd0] sm:$0xff] }
 0x52b   : > { %1958 = vperm.xlu2 %4716, %v1816_v44   ;;  %v6496_v44 = vld [vmem:[%s6194_s30 + $0x30] sm:$0xff] }
 0x52d   : > { %v4846_v21 = vpop.eup %4845 }
 0x52e   : > { %v2581_v7 = vpop.xlane.xlu1 %2580  ;;  %v2654_v53 = vmul.f32 %v4846_v21, %v6345_v60  ;;  %v4848_v31 = vpop.eup %4847  ;;  %v6483_v60 = vld [vmem:[%s6194_s30 + $0x28] sm:$0xff] }
 0x52f   : > { %4849 = vrcp.f32 %v2581_v7  ;;  %v1727_v33 = vmul.f32 %v4848_v31, %v5885_v51  ;;  %4590 = vmatmul.msk.f32.gmra.mxu1 %vm3012_vm2, %v6483_v60 }
 0x530   : > { %v2750_v36 = vmul.f32 %v2718_v16, %v2654_v53  ;;  %4851 = vrcp.f32 %v5934_v40  ;;  %v2665_v16 = vld [vmem:[%s6233_s23 + $0x20] sm:$0xff] }
 0x531   : > { %v6474_v56 = vpop.f32.mrf.mxu2  ;;  %v2719_v35 = vmul.f32 %v2687_v27, %v1727_v33 }
 0x532   : > { %4113 = vst.msk [vmem:[%s6438_s21 + $0x10] sm:$0xff] %vm3012_vm2, %v6474_v56  ;;  %4577 = vmatmul.msk.f32.gmra.mxu3 %vm1380_vm0, %v2750_v36 }
 0x533   : > { %2155 = vperm.xlu2 %4716, %v1849_v3  }
 0x535   : > { %v4850_v22 = vpop.eup %4849 }
 0x536   : > { %v2655_v28 = vmul.f32 %v4850_v22, %v6355_v50  ;;  %v4852_v21 = vpop.eup %4851 }
 0x537   : > { %4591 = vmatmul.msk.f32.gmra.mxu1 %vm3012_vm2, %v6496_v44  ;;  %v1705_v53 = vmul.f32 %v4852_v21, %v5770_v43  ;;  %v1777_v43 = vld [vmem:[%s7905_s8 + $0x60] sm:$0xff] }
 0x538   : > { %v2751_v14 = vmul.f32 %v2719_v35, %v2655_v28  ;;  %v1745_v28 = vld [vmem:[%s7904_s7 + $0x60] sm:$0xff] }
 0x539   : > { %v6489_v51 = vpop.f32.mrf.mxu2  ;;  %v2697_v33 = vmul.f32 %v2665_v16, %v1705_v53  ;;  %v2432_v16 = vsub.f32 %v6146_v37, %v6260_v58  ;;  %v2521_v37 = vpop.xlane.xlu1 %2520 }
 0x53a   : > { %4114 = vst.msk [vmem:[%s6438_s21 + $0x18] sm:$0xff] %vm3012_vm2, %v6489_v51  ;;  %4578 = vmatmul.msk.f32.gmra.mxu3 %vm1380_vm0, %v2751_v14 }
 0x53b   : > { %1973 = vperm.xlu2 %4716, %v1819_v10  }
 0x53f   : > { %4592 = vmatmul.msk.f32.gmra.mxu1 %vm3012_vm2, %v6501_v20 }
 0x546   : > { %v2341_v50 = vpop.xlane.xlu2 %2340 }
 0x547   : > { %v2415_v7 = vsub.f32 %v6375_v30, %v2341_v50  ;;  %v2033_v50 = vsub.f32 %v1745_v28, %v6385_v26 }
 0x549   : > { %v2457_v36 = vmul.f32 1.442695, %v2415_v7 }
 0x54e   : > { %v2515_v49 = vpop.xlane.xlu2 %2514  ;;  %v6510_v22 = vpop.xlane.xlu0 %2403 }
 0x54f   : > { %4853 = vrcp.f32 %v2515_v49 }
 0x550   : > { %4855 = vpow2.f32 %v2457_v36 }
 0x551   : > { %4857 = vrcp.f32 %v5937_v41 }
 0x555   : > { %v4854_v31 = vpop.eup %4853 }
 0x556   : > { %v2633_v3 = vmul.f32 %v4854_v31, %v6388_v0  ;;  %v6520_v35 = vpop.eup %4855  ;;  %v1746_v0 = vld [vmem:[%s7904_s7 + $0x68] sm:$0xff] }
 0x557   : > { %v2531_v21 = vsel %vm1380_vm0, %v6520_v35, 0.0  ;;  %v2034_v7 = vsub.f32 %v1746_v0, %v6414_v54  ;;  %v4858_v53 = vpop.eup %4857  ;;  %v1779_v54 = vld [vmem:[%s7905_s8 + $0x70] sm:$0xff]  ;;  %v2666_v0 = vld [vmem:[%s6233_s23 + $0x28] sm:$0xff] }
 0x558   : > { %v2729_v27 = vmul.f32 %v2697_v33, %v2633_v3  ;;  %v2413_v3 = vsub.f32 %v6161_v9, %v6262_v59  ;;  %v1747_v33 = vld [vmem:[%s7904_s7 + $0x70] sm:$0xff]  ;;  %v1706_v59 = vmul.f32 %v4858_v53, %v5780_v29  ;;  %v2433_v29 = vsub.f32 %v6159_v6, %v6352_v47 }
 0x559   : > { %v2035_v28 = vsub.f32 %v1747_v33, %v6406_v38 }
 0x55a   : > { %4556 = vmatmul.msk.f32.gmra.mxu0 %vm1380_vm0, %v2729_v27  ;;  %v2493_v6 = vmul.f32 1.442695, %v2433_v29 }
 0x55e   : > { %v2344_v40 = vpop.xlane.xlu2 %2343 }
 0x55f   : > { %v2416_v30 = vsub.f32 %v6408_v2, %v2344_v40  ;;  %v1778_v2 = vld [vmem:[%s7905_s8 + $0x68] sm:$0xff]  ;;  %v2491_v40 = vmul.f32 1.442695, %v2432_v16 }
 0x560   : > { %v2226_v31 = vsub.f32 %v1778_v2, %v6396_v62 }
 0x561   : > { %v2459_v14 = vmul.f32 1.442695, %v2416_v30  ;;  %v2116_v10 = vpop.permute.xlu0 %2115 }
 0x562   : > { %v2225_v49 = vsub.f32 %v1777_v43, %v2116_v10  ;;  %v2258_v27 = vmul.f32 %v2226_v31, %v2034_v7  ;;  %v2414_v7 = vsub.f32 %v6281_v15, %v6359_v45  ;;  %v2667_v15 = vld [vmem:[%s6233_s23 + $0x30] sm:$0xff] }
 0x563   : > { %4859 = vpow2.f32 %v2459_v14  ;;  %v2453_v14 = vmul.f32 1.442695, %v2413_v3 }
 0x564   : > { %v2257_v41 = vmul.f32 %v2225_v49, %v2033_v50  ;;  %2532 = vadd.xlane.f32.xlu2 %v2531_v21  ;;  %v6556_v10 = vmul.f32 0.5, %v2258_v27  ;;  %v2435_v27 = vsub.f32 %v6304_v11, %v6365_v57 }
 0x566   : > { %v6536_v26 = vmul.f32 0.5, %v2257_v41  ;;  %v2518_v36 = vpop.xlane.xlu2 %2517  ;;  %v2348_v53 = vsel %vm1380_vm0, %v6556_v10, -inf }
 0x567   : > { %4861 = vrcp.f32 %v2518_v36 }
 0x568   : > { %v2345_v58 = vsel %vm1380_vm0, %v6536_v26, -inf  ;;  %4863 = vrcp.f32 %v5939_v12  ;;  %v2698_v12 = vmul.f32 %v2666_v0, %v1706_v59  ;;  %v2497_v59 = vmul.f32 1.442695, %v2435_v27 }
 0x569   : > { %v6548_v62 = vpop.eup %4859  ;;  %2346 = vmax.xlane.f32.xlu0 %v2345_v58  ;;  %v2126_v9 = vpop.permute.xlu0 %2125  ;;  %4865 = vrcp.f32 %v2521_v37 }
 0x56a   : > { %v2227_v30 = vsub.f32 %v1779_v54, %v2126_v9  ;;  %v2534_v43 = vsel %vm1380_vm0, %v6548_v62, 0.0  ;;  %4867 = vpow2.f32 %v2491_v40  ;;  %v2668_v40 = vld [vmem:[%s6233_s23 + $0x38] sm:$0xff] }
 0x56b   : > { %4869 = vpow2.f32 %v2453_v14 }
 0x56c   : > { %v2259_v50 = vmul.f32 %v2227_v30, %v2035_v28  ;;  %2535 = vadd.xlane.f32.xlu2 %v2534_v43  ;;  %4871 = vrcp.f32 %v5941_v23 }
 0x56d   : > { %v4862_v49 = vpop.eup %4861 }
 0x56e   : > { %v6560_v2 = vmul.f32 0.5, %v2259_v50  ;;  %v2634_v38 = vmul.f32 %v4862_v49, %v6417_v63  ;;  %v4864_v21 = vpop.eup %4863  ;;  %v2524_v41 = vpop.xlane.xlu2 %2523  ;;  %v2455_v63 = vmul.f32 1.442695, %v2414_v7  ;;  %v6604_v49 = vmul.f32 0.5, %v6430_v42 }
 0x56f   : > { %v4866_v36 = vpop.eup %4865  ;;  %v1707_v47 = vmul.f32 %v4864_v21, %v5776_v13  ;;  %4873 = vrcp.f32 %v2524_v41  ;;  %v2436_v21 = vsub.f32 %v6390_v32, %v6510_v22 }
 0x570   : > { %v2351_v16 = vsel %vm1380_vm0, %v6560_v2, -inf  ;;  %v2730_v31 = vmul.f32 %v2698_v12, %v2634_v38  ;;  %v6573_v45 = vpop.eup %4867  ;;  %v2635_v3 = vmul.f32 %v4866_v36, %v6361_v39  ;;  %4875 = vpow2.f32 %v2493_v6  ;;  %v3142_v36 = vpop.f32.mrf.mxu1 }
 0x571   : > { %2349 = vmax.xlane.f32.xlu0 %v2348_v53  ;;  %2352 = vmax.xlane.f32.xlu1 %v2351_v16  ;;  %v6576_v33 = vpop.eup %4869  ;;  %v2699_v54 = vmul.f32 %v2667_v15, %v1707_v47  ;;  %4877 = vpow2.f32 %v2455_v63  ;;  %v2582_v13 = vsel %vm1380_vm0, %v6573_v45, 0.0  ;;  %v1944_v50 = vpop.permute.xlu0 %1943  ;;  %v2354_v41 = vsel %vm1380_vm0, %v6604_v49, -inf  ;;  %v1817_v63 = vld [vmem:[%s5911_s22 + $0xa0] sm:$0xff]  ;;  %v1848_v15 = vld [vmem:[%s5918_s0 + $0x98] sm:$0xff] }
 0x572   : > { %4557 = vmatmul.msk.f32.gmra.mxu0 %vm1380_vm0, %v2730_v31  ;;  %v4872_v23 = vpop.eup %4871  ;;  %v2525_v37 = vsel %vm1380_vm0, %v6576_v33, 0.0  ;;  %4879 = vpow2.f32 %v2497_v59  ;;  %v2499_v42 = vmul.f32 1.442695, %v2436_v21  ;;  %v1815_v31 = vld [vmem:[%s5911_s22 + $0x90] sm:$0xff]  ;;  %v3143_v6 = vadd.f32 %v6300_v1, %v3142_v36 }
 0x573   : > { %v2731_v58 = vmul.f32 %v2699_v54, %v2635_v3  ;;  %v1708_v39 = vmul.f32 %v4872_v23, %v5783_v25  ;;  %v1749_v25 = vld [vmem:[%s7904_s7 + $0x80] sm:$0xff]  ;;  %v1851_v3 = vld [vmem:[%s5918_s0 + $0xb0] sm:$0xff]  ;;  %v1818_v23 = vld [vmem:[%s5911_s22 + $0xa8] sm:$0xff] }
 0x574   : > { %v2037_v12 = vsub.f32 %v1749_v25, %v1944_v50  ;;  %4881 = vpow2.f32 %v2499_v42  ;;  %v4621_v47 = vmul.f32 -1.442695, %v3143_v6  ;;  %v6650_v42 = vld [vmem:[%s6194_s30 + $0x50] sm:$0xff] }
 0x575   : > { %v4874_v9 = vpop.eup %4873  ;;  %v2700_v30 = vmul.f32 %v2668_v40, %v1708_v39  ;;  %v6634_v39 = vld [vmem:[%s6194_s30 + $0x40] sm:$0xff] }
 0x576   : > { %v6587_v28 = vpop.eup %4875  ;;  %v2636_v11 = vmul.f32 %v4874_v9, %v6432_v46  ;;  %v1781_v46 = vld [vmem:[%s7905_s8 + $0x80] sm:$0xff]  ;;  %4883 = vpow2.f32 %v4621_v47  ;;  %v1850_v9 = vld [vmem:[%s5918_s0 + $0xa8] sm:$0xff]  ;;  %4593 = vmatmul.msk.f32.gmra.mxu1 %vm3012_vm2, %v6634_v39 }
 0x577   : > { %v6590_v57 = vpop.eup %4877  ;;  %v2585_v43 = vsel %vm1380_vm0, %v6587_v28, 0.0  ;;  %v2229_v38 = vsub.f32 %v1781_v46, %v6464_v19 }
 0x578   : > { %v2528_v0 = vsel %vm1380_vm0, %v6590_v57, 0.0  ;;  %v2732_v14 = vmul.f32 %v2700_v30, %v2636_v11  ;;  %v6606_v29 = vpop.eup %4879 }
 0x579   : > { %2583 = vadd.xlane.f32.xlu0 %v2582_v13  ;;  %2526 = vadd.xlane.f32.xlu1 %v2525_v37  ;;  %v2261_v7 = vmul.f32 %v2229_v38, %v2037_v12  ;;  %v2591_v53 = vsel %vm1380_vm0, %v6606_v29, 0.0  ;;  %v6629_v37 = vpop.xlane.xlu2 %2589 }
 0x57a   : > { %4558 = vmatmul.msk.f32.gmra.mxu0 %vm1380_vm0, %v2731_v58  ;;  %v6619_v32 = vpop.eup %4881 }
 0x57b   : > { %v6615_v16 = vmul.f32 0.5, %v2261_v7  ;;  %v2594_v22 = vsel %vm1380_vm0, %v6619_v32, 0.0  ;;  %v1852_v7 = vld [vmem:[%s5918_s0 + $0xb8] sm:$0xff] }
 0x57c   : > { %v4884_v54 = vpop.eup %4883 }
 0x57d   : > { %v2357_v19 = vsel %vm1380_vm0, %v6615_v16, -inf  ;;  %v3326_v27 = vadd.f32 1.0, %v4884_v54 }
 0x57f   : > { %4885 = vrcp.f32 %v3326_v27  ;;  %vm3419_vm6 = vweird.f32 %v3326_v27  ;;  %v3423_v36 = vand.u32 2147483647, %v3326_v27 }
 0x581   : > { %2586 = vadd.xlane.f32.xlu0 %v2585_v43  ;;  %2529 = vadd.xlane.f32.xlu1 %v2528_v0  ;;  %v6640_v0 = vld [vmem:[%s6194_s30 + $0x48] sm:$0xff]  ;;  %v1949_v25 = vpop.permute.xlu2 %1948  ;;  %vm3424_vm9 = vcmp.eq.f32.partialorder %v3423_v36, 8.507059e+37 }
 0x582   : > { %4559 = vmatmul.msk.f32.gmra.mxu0 %vm1380_vm0, %v2732_v14  ;;  %v1820_v14 = vld [vmem:[%s5911_s22 + $0xb8] sm:$0xff]  ;;  %4594 = vmatmul.msk.f32.gmra.mxu1 %vm3012_vm2, %v6640_v0 }
 0x585   : > { %v4886_v59 = vpop.eup %4885 }
 0x586   : > { %v3415_v30 = vmul.f32 %v4886_v59, %v3326_v27  ;;  %vm3420_vm7 = vweird.f32 %v4886_v59 }
 0x587   : > { %vm6659_vm8 = vmor %vm3419_vm6, %vm3420_vm7 }
 0x588   : > { %v3416_v50 = vsub.f32 1.0, %v3415_v30 }
 0x589   : > { %2355 = vmax.xlane.f32.xlu0 %v2354_v41  ;;  %2592 = vadd.xlane.f32.xlu1 %v2591_v53  ;;  %v6657_v6 = vpop.permute.xlu2 %2145 }
 0x58a   : > { %v3417_v21 = vmul.f32 %v4886_v59, %v3416_v50  ;;  %4595 = vmatmul.msk.f32.gmra.mxu1 %vm3012_vm2, %v6650_v42 }
 0x591   : > { %2358 = vmax.xlane.f32.xlu0 %v2357_v19  ;;  %v3425_v19 = vand.u32 2147483648, %v3326_v27 }
 0x599   : > { %2595 = vadd.xlane.f32.xlu0 %v2594_v22  ;;  %v1750_v22 = vld [vmem:[%s7904_s7 + $0x88] sm:$0xff] }
 0x59a   : > { %v2038_v54 = vsub.f32 %v1750_v22, %v1949_v25 }
 0x5a2   : > { %1953 = vperm.xlu1 %4715, %v1815_v31   ;;  %v3418_v31 = vadd.f32 %v4886_v59, %v3417_v21 }
 0x5a4   : > { %v3422_v27 = vsel %vm6659_vm8, %v4886_v59, %v3418_v31  ;;  %v6680_v59 = vpop.permute.xlu2 %1958 }
 0x5aa   : > { %1963 = vperm.xlu1 %4715, %v1817_v63   ;;  %v2141_v63 = vpop.permute.xlu0 %2140 }
 0x5ac   : > { %v3145_v13 = vpop.f32.mrf.mxu1 }
 0x5ad   : > { %2150 = vperm.xlu0 %4714, %v1848_v15   ;;  %v3146_v58 = vadd.f32 %v6300_v1, %v3145_v13 }
 0x5af   : > { %v4622_v40 = vmul.f32 -1.442695, %v3146_v58 }
 0x5b1   : > { %4887 = vpow2.f32 %v4622_v40 }
 0x5b2   : > { %2165 = vperm.xlu1 %4715, %v1851_v3  }
 0x5b4   : > { %v3148_v11 = vpop.f32.mrf.mxu1 }
 0x5b5   : > { %1968 = vperm.xlu0 %4714, %v1818_v23   ;;  %v3149_v43 = vadd.f32 %v6300_v1, %v3148_v11  ;;  %v3426_v23 = vor.u32 1.1754944e-38, %v3425_v19 }
 0x5b7   : > { %v4623_v46 = vmul.f32 -1.442695, %v3149_v43  ;;  %v4888_v12 = vpop.eup %4887  ;;  %v3427_v11 = vsel %vm3424_vm9, %v3426_v23, %v3422_v27 }
 0x5b8   : > { %v6646_v41 = vadd.f32 1.0, %v4888_v12  ;;  %v3838_v43 = vmul.f32 %v3427_v11, %v6460_v55 }
 0x5b9   : > { %4889 = vpow2.f32 %v4623_v46 }
 0x5ba   : > { %4891 = vrcp.f32 %v6646_v41  ;;  %vm3434_vm10 = vweird.f32 %v6646_v41  ;;  %v3438_v27 = vand.u32 2147483647, %v6646_v41 }
 0x5bc   : > { %v3151_v38 = vpop.f32.mrf.mxu1  ;;  %vm3439_vm13 = vcmp.eq.f32.partialorder %v3438_v27, 8.507059e+37  ;;  %v2669_v27 = vld [vmem:[%s6233_s23 + $0x40] sm:$0xff] }
 0x5bd   : > { %2160 = vperm.xlu0 %4714, %v1850_v9   ;;  %v3152_v53 = vadd.f32 %v6300_v1, %v3151_v38  ;;  %v1782_v1 = vld [vmem:[%s7905_s8 + $0x88] sm:$0xff]  ;;  %v6672_v9 = vld [vmem:[%s6194_s30 + $0x58] sm:$0xff] }
 0x5be   : > { %v2230_v13 = vsub.f32 %v1782_v1, %v2141_v63  ;;  %4596 = vmatmul.msk.f32.gmra.mxu1 %vm3012_vm2, %v6672_v9  ;;  %v6695_v1 = vpop.permute.xlu2 %2155 }
 0x5bf   : > { %v4624_v15 = vmul.f32 -1.442695, %v3152_v53  ;;  %v4890_v3 = vpop.eup %4889 }
 0x5c0   : > { %v6669_v58 = vadd.f32 1.0, %v4890_v3  ;;  %v2262_v40 = vmul.f32 %v2230_v13, %v2038_v54  ;;  %v4892_v30 = vpop.eup %4891 }
 0x5c1   : > { %4893 = vpow2.f32 %v4624_v15  ;;  %v3430_v25 = vmul.f32 %v4892_v30, %v6646_v41  ;;  %vm3435_vm11 = vweird.f32 %v4892_v30  ;;  %v3440_v15 = vand.u32 2147483648, %v6646_v41 }
 0x5c2   : > { %4895 = vrcp.f32 %v6669_v58  ;;  %vm6699_vm12 = vmor %vm3434_vm10, %vm3435_vm11  ;;  %vm3449_vm14 = vweird.f32 %v6669_v58 }
 0x5c3   : > { %v3431_v53 = vsub.f32 1.0, %v3430_v25 }
 0x5c5   : > { %1978 = vperm.xlu0 %4714, %v1820_v14   ;;  %v6678_v14 = vmul.f32 0.5, %v2262_v40  ;;  %v3432_v47 = vmul.f32 %v4892_v30, %v3431_v53 }
 0x5c7   : > { %v4894_v46 = vpop.eup %4893  ;;  %v2360_v21 = vsel %vm1380_vm0, %v6678_v14, -inf  ;;  %v3433_v63 = vadd.f32 %v4892_v30, %v3432_v47 }
 0x5c8   : > { %v6688_v55 = vpop.eup %4895 }
 0x5c9   : > { %v3445_v31 = vmul.f32 %v6688_v55, %v6669_v58  ;;  %v3437_v25 = vsel %vm6699_vm12, %v4892_v30, %v3433_v63  ;;  %vm3450_vm15 = vweird.f32 %v6688_v55 }
 0x5ca   : > { %vm6726_vm1 = vmor %vm3449_vm14, %vm3450_vm15 }
 0x5cb   : > { %v3446_v3 = vsub.f32 1.0, %v3445_v31  ;;  %v7984_v31 = vld [vmem:[#allocation21_spill] sm:$0xff] }
 0x5cd   : > { %2170 = vperm.xlu0 %4714, %v1852_v7   ;;  %v6686_v7 = vadd.f32 1.0, %v4894_v46  ;;  %v3447_v46 = vmul.f32 %v6688_v55, %v3446_v3 }
 0x5cf   : > { %4897 = vrcp.f32 %v6686_v7  ;;  %vm3464_vm4 = vweird.f32 %v6686_v7 }
 0x5d5   : > { %v6704_v13 = vpop.eup %4897 }
 0x5d6   : > { %v3460_v41 = vmul.f32 %v6704_v13, %v6686_v7  ;;  %vm3465_vm5 = vweird.f32 %v6704_v13 }
 0x5d7   : > { %v2923_v50 = vpop.f32.mrf.mxu0  ;;  %vm6758_vm6 = vmor %vm3464_vm4, %vm3465_vm5 }
 0x5d8   : > { %v2924_v12 = vadd.f32 %v6321_v4, %v2923_v50  ;;  %v3441_v50 = vor.u32 1.1754944e-38, %v3440_v15  ;;  %v3461_v47 = vsub.f32 1.0, %v3460_v41 }
 0x5da   : > { %v3870_v38 = vadd.f32 %v3838_v43, %v2924_v12  ;;  %v3442_v30 = vsel %vm3439_vm13, %v3441_v50, %v3437_v25  ;;  %v3470_v50 = vand.u32 2147483648, %v6686_v7 }
 0x5db   : > { %v3839_v63 = vmul.f32 %v3442_v30, %v6483_v60  ;;  %v3468_v30 = vand.u32 2147483647, %v6686_v7  ;;  %v7986_v7 = vld [vmem:[#allocation37_spill] sm:$0xff] }
 0x5dc   : > { %2361 = vmax.xlane.f32.xlu1 %v2360_v21  ;;  %v2347_v19 = vpop.xlane.xlu0 %2346  ;;  %4654 = vmatmul.msk.f32.gmra.mxu2 %vm3012_vm2, %v3870_v38  ;;  %v3448_v38 = vadd.f32 %v6688_v55, %v3447_v46  ;;  %v3455_v21 = vand.u32 2147483648, %v6669_v58 }
 0x5dd   : > { %v2417_v22 = vsub.f32 %v6536_v26, %v2347_v19  ;;  %v3462_v26 = vmul.f32 %v6704_v13, %v3461_v47  ;;  %v3471_v47 = vor.u32 1.1754944e-38, %v3470_v50  ;;  %vm3469_vm7 = vcmp.eq.f32.partialorder %v3468_v30, 8.507059e+37 }
 0x5de   : > { %v3456_v3 = vor.u32 1.1754944e-38, %v3455_v21 }
 0x5df   : > { %v2461_v36 = vmul.f32 1.442695, %v2417_v22 }
 0x5e1   : > { %4899 = vpow2.f32 %v2461_v36  ;;  %v3453_v36 = vand.u32 2147483647, %v6669_v58 }
 0x5e2   : > { %4901 = vrcp.f32 %v5948_v34 }
 0x5e3   : > { %4903 = vrcp.f32 %v5986_v52  ;;  %vm3454_vm3 = vcmp.eq.f32.partialorder %v3453_v36, 8.507059e+37 }
 0x5e4   : > { %v2353_v54 = vpop.xlane.xlu1 %2352  ;;  %v2350_v23 = vpop.xlane.xlu0 %2349 }
 0x5e5   : > { %v2418_v40 = vsub.f32 %v6556_v10, %v2350_v23  ;;  %v2419_v12 = vsub.f32 %v6560_v2, %v2353_v54  ;;  %v6721_v10 = vpop.permute.xlu2 %1973 }
 0x5e7   : > { %v6709_v11 = vpop.eup %4899  ;;  %v2463_v43 = vmul.f32 1.442695, %v2418_v40  ;;  %v2465_v2 = vmul.f32 1.442695, %v2419_v12 }
 0x5e8   : > { %v2537_v34 = vsel %vm1380_vm0, %v6709_v11, 0.0  ;;  %v4902_v52 = vpop.eup %4901 }
 0x5e9   : > { %2538 = vadd.xlane.f32.xlu1 %v2537_v34  ;;  %4905 = vpow2.f32 %v2463_v43  ;;  %v4904_v53 = vpop.eup %4903  ;;  %v1709_v54 = vmul.f32 %v4902_v52, %v5795_v61  ;;  %v3463_v52 = vadd.f32 %v6704_v13, %v3462_v26 }
 0x5ea   : > { %4907 = vrcp.f32 %v5944_v5  ;;  %v3452_v5 = vsel %vm6726_vm1, %v6688_v55, %v3448_v38  ;;  %v1728_v60 = vmul.f32 %v4904_v53, %v5881_v48  ;;  %v2688_v55 = vld [vmem:[%s6233_s23 + $0xd8] sm:$0xff] }
 0x5eb   : > { %v2701_v34 = vmul.f32 %v2669_v27, %v1709_v54  ;;  %v7987_v54 = vld [vmem:[#allocation17_spill] sm:$0xff]  ;;  %v2689_v27 = vld [vmem:[%s6233_s23 + $0xe0] sm:$0xff] }
 0x5ec   : > { %v2527_v19 = vpop.xlane.xlu1 %2526  ;;  %v2584_v22 = vpop.xlane.xlu0 %2583  ;;  %v2720_v53 = vmul.f32 %v2688_v55, %v1728_v60  ;;  %v2670_v60 = vld [vmem:[%s6233_s23 + $0x48] sm:$0xff] }
 0x5ed   : > { %4909 = vrcp.f32 %v2527_v19  ;;  %v2533_v25 = vpop.xlane.xlu2 %2532 }
 0x5ee   : > { %4911 = vrcp.f32 %v2584_v22 }
 0x5ef   : > { %4913 = vrcp.f32 %v5988_v18  ;;  %v2926_v15 = vpop.f32.mrf.mxu0  ;;  %v6737_v23 = vpop.eup %4905 }
 0x5f0   : > { %4915 = vpow2.f32 %v2465_v2  ;;  %v2927_v58 = vadd.f32 %v6321_v4, %v2926_v15  ;;  %v2540_v18 = vsel %vm1380_vm0, %v6737_v23, 0.0  ;;  %v4908_v40 = vpop.eup %4907  ;;  %v3457_v4 = vsel %vm3454_vm3, %v3456_v3, %v3452_v5  ;;  %v6771_v5 = vld [vmem:[%s7908_s11] ss:$0 sm:$0xff] }
 0x5f1   : > { %2541 = vadd.xlane.f32.xlu1 %v2540_v18 }
 0x5f2   : > { %v3871_v43 = vadd.f32 %v3839_v63, %v2927_v58  ;;  %v7985_v63 = vld [vmem:[#allocation2_spill] sm:$0xff] }
 0x5f3   : > { %v4910_v61 = vpop.eup %4909  ;;  %v1710_v15 = vmul.f32 %v4908_v40, %v7985_v63  ;;  %v2690_v63 = vld [vmem:[%s6233_s23 + $0xe8] sm:$0xff] }
 0x5f4   : > { %v4912_v46 = vpop.eup %4911  ;;  %v2530_v41 = vpop.xlane.xlu1 %2529  ;;  %4655 = vmatmul.msk.f32.gmra.mxu2 %vm3012_vm2, %v3871_v43  ;;  %v2637_v12 = vmul.f32 %v4910_v61, %v6576_v33  ;;  %v3840_v33 = vmul.f32 %v3457_v4, %v6496_v44  ;;  %v3467_v44 = vsel %vm6758_vm6, %v6704_v13, %v3463_v52 }
 0x5f5   : > { %v2587_v48 = vpop.xlane.xlu0 %2586  ;;  %v4914_v38 = vpop.eup %4913  ;;  %4917 = vrcp.f32 %v2530_v41  ;;  %v2656_v21 = vmul.f32 %v4912_v46, %v6573_v45  ;;  %v3472_v43 = vsel %vm3469_vm7, %v3471_v47, %v3467_v44 }
 0x5f6   : > { %v6762_v19 = vpop.eup %4915  ;;  %4919 = vrcp.f32 %v2587_v48  ;;  %v2733_v22 = vmul.f32 %v2701_v34, %v2637_v12  ;;  %v1729_v58 = vmul.f32 %v4914_v38, %v7987_v54  ;;  %v2536_v50 = vpop.xlane.xlu2 %2535  ;;  %v7988_v12 = vld [vmem:[#allocation24_spill] sm:$0xff]  ;;  %v3841_v34 = vmul.f32 %v3472_v43, %v6501_v20  ;;  %v7989_v38 = vld [vmem:[#allocation35_spill] sm:$0xff] }
 0x5f7   : > { %4921 = vrcp.f32 %v7984_v31  ;;  %v2929_v36 = vpop.f32.mrf.mxu0  ;;  %v2752_v45 = vmul.f32 %v2720_v53, %v2656_v21  ;;  %v2543_v26 = vsel %vm1380_vm0, %v6762_v19, 0.0  ;;  %v7991_v31 = vld [vmem:[#allocation19_spill] sm:$0xff] }
 0x5f8   : > { %4923 = vrcp.f32 %v7986_v7  ;;  %v2930_v3 = vadd.f32 %v6771_v5, %v2929_v36  ;;  %4560 = vmatmul.msk.f32.gmra.mxu0 %vm1380_vm0, %v2733_v22  ;;  %v2721_v48 = vmul.f32 %v2689_v27, %v1729_v58  ;;  %v2671_v36 = vld [vmem:[%s6233_s23 + $0x50] sm:$0xff] }
 0x5f9   : > { %4925 = vrcp.f32 %v2533_v25  ;;  %4579 = vmatmul.msk.f32.gmra.mxu3 %vm1380_vm0, %v2752_v45  ;;  %2544 = vadd.xlane.f32.xlu1 %v2543_v26  ;;  %v2702_v25 = vmul.f32 %v2670_v60, %v1710_v15 }
 0x5fa   : > { %4927 = vrcp.f32 %v6629_v37  ;;  %v3872_v18 = vadd.f32 %v3840_v33, %v2930_v3 }
 0x5fb   : > { %v4918_v40 = vpop.eup %4917  ;;  %4929 = vrcp.f32 %v7988_v12 }
 0x5fc   : > { %v4920_v55 = vpop.eup %4919  ;;  %4656 = vmatmul.msk.f32.gmra.mxu2 %vm3012_vm2, %v3872_v18  ;;  %v2638_v13 = vmul.f32 %v4918_v40, %v6590_v57  ;;  %4931 = vrcp.f32 %v7989_v38  ;;  %v2593_v21 = vpop.xlane.xlu1 %2592  ;;  %v7992_v40 = vld [vmem:[#allocation36_spill] sm:$0xff] }
 0x5fd   : > { %v2356_v61 = vpop.xlane.xlu0 %2355  ;;  %v4922_v4 = vpop.eup %4921  ;;  %v2657_v41 = vmul.f32 %v4920_v55, %v6587_v28  ;;  %4933 = vrcp.f32 %v2536_v50 }
 0x5fe   : > { %v2420_v46 = vsub.f32 %v6604_v49, %v2356_v61  ;;  %v4924_v37 = vpop.eup %4923  ;;  %v2734_v52 = vmul.f32 %v2702_v25, %v2638_v13  ;;  %v7990_v49 = vld [vmem:[#allocation3_spill] sm:$0xff]  ;;  %v7993_v61 = vld [vmem:[#allocation5_spill] sm:$0xff] }
 0x5ff   : > { %v4926_v30 = vpop.eup %4925  ;;  %v2932_v53 = vpop.f32.mrf.mxu0  ;;  %v2753_v2 = vmul.f32 %v2721_v48, %v2657_v41  ;;  %v1711_v22 = vmul.f32 %v4922_v4, %v7990_v49  ;;  %v1730_v20 = vmul.f32 %v4924_v37, %v7991_v31  ;;  %v2672_v4 = vld [vmem:[%s6233_s23 + $0x58] sm:$0xff] }
 0x600   : > { %v2467_v57 = vmul.f32 1.442695, %v2420_v46  ;;  %v4928_v33 = vpop.eup %4927  ;;  %v2933_v28 = vadd.f32 %v6771_v5, %v2932_v53  ;;  %4561 = vmatmul.msk.f32.gmra.mxu0 %vm1380_vm0, %v2734_v52  ;;  %v2639_v47 = vmul.f32 %v4926_v30, %v6520_v35  ;;  %v2691_v46 = vld [vmem:[%s6233_s23 + $0xf0] sm:$0xff] }
 0x601   : > { %4580 = vmatmul.msk.f32.gmra.mxu3 %vm1380_vm0, %v2753_v2  ;;  %v2658_v15 = vmul.f32 %v4928_v33, %v6448_v24  ;;  %v4930_v7 = vpop.eup %4929  ;;  %v2703_v44 = vmul.f32 %v2671_v36, %v1711_v22  ;;  %v2722_v26 = vmul.f32 %v2690_v63, %v1730_v20  ;;  %v1783_v53 = vld [vmem:[%s7905_s8 + $0x90] sm:$0xff] }
 0x602   : > { %4935 = vpow2.f32 %v2467_v57  ;;  %v3873_v45 = vadd.f32 %v3841_v34, %v2933_v28  ;;  %v4932_v54 = vpop.eup %4931  ;;  %v1712_v13 = vmul.f32 %v4930_v7, %v7993_v61  ;;  %v1751_v2 = vld [vmem:[%s7904_s7 + $0x90] sm:$0xff]  ;;  %v2231_v31 = vsub.f32 %v1783_v53, %v6657_v6  ;;  %v6844_v6 = vld [vmem:[%s6194_s30 + $0xc0] sm:$0xff]  ;;  %v6899_v53 = vld [vmem:[%s6194_s30 + $0xd8] sm:$0xff] }
 0x603   : > { %4937 = vrcp.f32 %v2593_v21  ;;  %v4934_v60 = vpop.eup %4933  ;;  %v2735_v18 = vmul.f32 %v2703_v44, %v2639_v47  ;;  %v2754_v43 = vmul.f32 %v2722_v26, %v2658_v15  ;;  %v7995_v21 = vld [vmem:[#allocation20_spill] sm:$0xff]  ;;  %v1752_v15 = vld [vmem:[%s7904_s7 + $0x98] sm:$0xff]  ;;  %v1753_v7 = vld [vmem:[%s7904_s7 + $0xa0] sm:$0xff] }
 0x604   : > { %4657 = vmatmul.msk.f32.gmra.mxu2 %vm3012_vm2, %v3873_v45  ;;  %4939 = vrcp.f32 %v7992_v40  ;;  %v2640_v50 = vmul.f32 %v4934_v60, %v6548_v62  ;;  %v2704_v37 = vmul.f32 %v2672_v4, %v1712_v13  ;;  %v1785_v26 = vld [vmem:[%s7905_s8 + $0xa0] sm:$0xff]  ;;  %v6881_v4 = vld [vmem:[%s6194_s30 + $0xd0] sm:$0xff] }
 0x605   : > { %v2359_v3 = vpop.xlane.xlu0 %2358  ;;  %v2233_v40 = vsub.f32 %v1785_v26, %v6695_v1  ;;  %v6866_v61 = vld [vmem:[%s6194_s30 + $0x60] sm:$0xff]  ;;  %v1754_v1 = vld [vmem:[%s7904_s7 + $0xa8] sm:$0xff] }
 0x606   : > { %v2421_v58 = vsub.f32 %v6615_v16, %v2359_v3  ;;  %v7994_v16 = vld [vmem:[#allocation18_spill] sm:$0xff]  ;;  %v2736_v52 = vmul.f32 %v2704_v37, %v2640_v50  ;;  %4597 = vmatmul.msk.f32.gmra.mxu1 %vm3012_vm2, %v6866_v61  ;;  %v1787_v50 = vld [vmem:[%s7905_s8 + $0xb0] sm:$0xff]  ;;  %v6931_v26 = vld [vmem:[%s6194_s30 + $0xe8] sm:$0xff] }
 0x607   : > { %v1731_v25 = vmul.f32 %v4932_v54, %v7994_v16  ;;  %v2040_v54 = vsub.f32 %v1752_v15, %v6680_v59  ;;  %v6861_v59 = vld [vmem:[%s6194_s30 + $0xc8] sm:$0xff]  ;;  %v6921_v15 = vld [vmem:[%s7910_s13] ss:$0 sm:$0xff] }
 0x608   : > { %v6803_v27 = vpop.eup %4935  ;;  %v2469_v35 = vmul.f32 1.442695, %v2421_v58  ;;  %4562 = vmatmul.msk.f32.gmra.mxu0 %vm1380_vm0, %v2735_v18  ;;  %v1786_v16 = vld [vmem:[%s7905_s8 + $0xa8] sm:$0xff] }
 0x609   : > { %v4938_v24 = vpop.eup %4937  ;;  %v2546_v55 = vsel %vm1380_vm0, %v6803_v27, 0.0  ;;  %4581 = vmatmul.msk.f32.gmra.mxu3 %vm1380_vm0, %v2754_v43  ;;  %v2723_v34 = vmul.f32 %v2691_v46, %v1731_v25 }
 0x60a   : > { %4941 = vpow2.f32 %v2469_v35  ;;  %2547 = vadd.xlane.f32.xlu1 %v2546_v55  ;;  %v2659_v41 = vmul.f32 %v4938_v24, %v6606_v29  ;;  %v4940_v12 = vpop.eup %4939  ;;  %v2692_v29 = vld [vmem:[%s6233_s23 + $0xf8] sm:$0xff] }
 0x60b   : > { %v1732_v57 = vmul.f32 %v4940_v12, %v7995_v21  ;;  %v1755_v12 = vld [vmem:[%s7904_s7 + $0xb0] sm:$0xff] }
 0x60c   : > { %v2755_v38 = vmul.f32 %v2723_v34, %v2659_v41  ;;  %v2043_v21 = vsub.f32 %v1755_v12, %v6721_v10  ;;  %v1756_v10 = vld [vmem:[%s7904_s7 + $0xb8] sm:$0xff] }
 0x60d   : > { %v2596_v48 = vpop.xlane.xlu0 %2595  ;;  %v2724_v28 = vmul.f32 %v2692_v29, %v1732_v57 }
 0x60e   : > { %4943 = vrcp.f32 %v2596_v48 }
 0x610   : > { %v6816_v30 = vpop.eup %4941  ;;  %4563 = vmatmul.msk.f32.gmra.mxu0 %vm1380_vm0, %v2736_v52 }
 0x611   : > { %v2549_v62 = vsel %vm1380_vm0, %v6816_v30, 0.0  ;;  %4582 = vmatmul.msk.f32.gmra.mxu3 %vm1380_vm0, %v2755_v38  ;;  %v2770_v38 = vld [vmem:[%s6194_s30 + $0x68] sm:$0xff] }
 0x612   : > { %2550 = vadd.xlane.f32.xlu1 %v2549_v62  ;;  %4598 = vmatmul.msk.f32.gmra.mxu1 %vm3012_vm2, %v2770_v38 }
 0x614   : > { %v4944_v33 = vpop.eup %4943  ;;  %v1954_v49 = vpop.permute.xlu1 %1953 }
 0x615   : > { %v2660_v22 = vmul.f32 %v4944_v33, %v6619_v32  ;;  %v2039_v20 = vsub.f32 %v1751_v2, %v1954_v49  ;;  %v1784_v32 = vld [vmem:[%s7905_s8 + $0x98] sm:$0xff]  ;;  %v3154_v33 = vpop.f32.mrf.mxu1  ;;  %v2771_v49 = vld [vmem:[%s6194_s30 + $0x70] sm:$0xff] }
 0x617   : > { %v2756_v36 = vmul.f32 %v2724_v28, %v2660_v22  ;;  %v2263_v45 = vmul.f32 %v2231_v31, %v2039_v20  ;;  %v1788_v28 = vld [vmem:[%s7905_s8 + $0xb8] sm:$0xff]  ;;  %v6916_v20 = vld [vmem:[%s6194_s30 + $0xe0] sm:$0xff] }
 0x619   : > { %v6832_v47 = vmul.f32 0.5, %v2263_v45  ;;  %4583 = vmatmul.msk.f32.gmra.mxu3 %vm1380_vm0, %v2756_v36 }
 0x61a   : > { %4599 = vmatmul.msk.f32.gmra.mxu1 %vm3012_vm2, %v2771_v49 }
 0x61b   : > { %v2363_v63 = vsel %vm1380_vm0, %v6832_v47, -inf }
 0x61c   : > { %2364 = vmax.xlane.f32.xlu0 %v2363_v63  ;;  %v1964_v3 = vpop.permute.xlu1 %1963 }
 0x61d   : > { %v2041_v60 = vsub.f32 %v1753_v7, %v1964_v3  ;;  %v3157_v7 = vpop.f32.mrf.mxu1 }
 0x61f   : > { %v2151_v44 = vpop.permute.xlu0 %2150  ;;  %v2265_v43 = vmul.f32 %v2233_v40, %v2041_v60  ;;  %v3158_v60 = vadd.f32 %v6921_v15, %v3157_v7  ;;  %v2673_v7 = vld [vmem:[%s6233_s23 + $0x60] sm:$0xff] }
 0x620   : > { %v2232_v58 = vsub.f32 %v1784_v32, %v2151_v44  ;;  %v3155_v32 = vadd.f32 %v6921_v15, %v3154_v33 }
 0x621   : > { %4609 = vmatmul.msk.f32.vlgmr.msrb.gmra.mxu3 %vm3012_vm2, %v6844_v6  ;;  %v6868_v13 = vmul.f32 0.5, %v2265_v43  ;;  %v4626_v40 = vmul.f32 -1.442695, %v3158_v60 }
 0x622   : > { %v2264_v18 = vmul.f32 %v2232_v58, %v2040_v54  ;;  %v4625_v54 = vmul.f32 -1.442695, %v3155_v32 }
 0x623   : > { %v2369_v25 = vsel %vm1380_vm0, %v6868_v13, -inf }
 0x624   : > { %v6856_v35 = vmul.f32 0.5, %v2264_v18  ;;  %v2166_v46 = vpop.permute.xlu1 %2165  ;;  %4945 = vpow2.f32 %v4625_v54  ;;  %v2772_v18 = vld [vmem:[%s6194_s30 + $0x78] sm:$0xff]  ;;  %v6974_v54 = vpop.f32.mrf.mxu3 }
 0x625   : > { %v2235_v34 = vsub.f32 %v1787_v50, %v2166_v46  ;;  %4600 = vmatmul.msk.f32.gmra.mxu1 %vm3012_vm2, %v2772_v18  ;;  %v3160_v43 = vpop.f32.mrf.mxu1  ;;  %4947 = vpow2.f32 %v4626_v40  ;;  %v2773_v46 = vld [vmem:[%s6194_s30 + $0x80] sm:$0xff] }
 0x626   : > { %v2366_v24 = vsel %vm1380_vm0, %v6856_v35, -inf }
 0x627   : > { %2367 = vmax.xlane.f32.xlu2 %v2366_v24  ;;  %v1969_v55 = vpop.permute.xlu0 %1968  ;;  %v2267_v62 = vmul.f32 %v2235_v34, %v2043_v21  ;;  %v2788_v34 = vld [vmem:[%s6194_s30 + $0xf8] sm:$0xff] }
 0x628   : > { %v2042_v48 = vsub.f32 %v1754_v1, %v1969_v55  ;;  %v2787_v55 = vld [vmem:[%s6194_s30 + $0xf0] sm:$0xff] }
 0x629   : > { %4610 = vmatmul.msk.f32.gmra.mxu3 %vm3012_vm2, %v6861_v59  ;;  %v6904_v22 = vmul.f32 0.5, %v2267_v62 }
 0x62a   : > { %v4946_v24 = vpop.eup %4945 }
 0x62b   : > { %v2375_v31 = vsel %vm1380_vm0, %v6904_v22, -inf  ;;  %v6942_v50 = vadd.f32 1.0, %v4946_v24 }
 0x62d   : > { %4601 = vmatmul.msk.f32.gmra.mxu1 %vm3012_vm2, %v2773_v46  ;;  %v7999_v46 = vld [vmem:[#allocation6_spill] sm:$0xff]  ;;  %vm3479_vm8 = vweird.f32 %v6942_v50 }
 0x62f   : > { %2370 = vmax.xlane.f32.xlu2 %v2369_v25  ;;  %v2161_v41 = vpop.permute.xlu0 %2160  ;;  %v3161_v25 = vadd.f32 %v6921_v15, %v3160_v43 }
 0x630   : > { %v2234_v37 = vsub.f32 %v1786_v16, %v2161_v41 }
 0x631   : > { %4611 = vmatmul.msk.f32.gmra.mxu3 %vm3012_vm2, %v6881_v4 }
 0x632   : > { %v2266_v52 = vmul.f32 %v2234_v37, %v2042_v48  ;;  %v4627_v48 = vmul.f32 -1.442695, %v3161_v25  ;;  %v4948_v37 = vpop.eup %4947 }
 0x634   : > { %v6893_v57 = vmul.f32 0.5, %v2266_v52  ;;  %v7996_v52 = vld [vmem:[#allocation22_spill] sm:$0xff] }
 0x636   : > { %v2372_v29 = vsel %vm1380_vm0, %v6893_v57, -inf }
 0x637   : > { %2373 = vmax.xlane.f32.xlu2 %v2372_v29  ;;  %v1979_v2 = vpop.permute.xlu0 %1978 }
 0x638   : > { %v2044_v45 = vsub.f32 %v1756_v10, %v1979_v2 }
 0x639   : > { %4612 = vmatmul.msk.f32.gmra.mxu3 %vm3012_vm2, %v6899_v53 }
 0x63b   : > { %v3163_v12 = vpop.f32.mrf.mxu1 }
 0x63c   : > { %v3164_v38 = vadd.f32 %v6921_v15, %v3163_v12  ;;  %v3485_v12 = vand.u32 2147483648, %v6942_v50 }
 0x63e   : > { %v4628_v33 = vmul.f32 -1.442695, %v3164_v38 }
 0x63f   : > { %2376 = vmax.xlane.f32.xlu2 %v2375_v31  ;;  %v2171_v36 = vpop.permute.xlu0 %2170  ;;  %v7997_v31 = vld [vmem:[#allocation23_spill] sm:$0xff] }
 0x640   : > { %v2236_v63 = vsub.f32 %v1788_v28, %v2171_v36 }
 0x641   : > { %4613 = vmatmul.msk.f32.gmra.mxu3 %vm3012_vm2, %v6916_v20 }
 0x642   : > { %v2268_v3 = vmul.f32 %v2236_v63, %v2044_v45  ;;  %v7998_v45 = vld [vmem:[#allocation4_spill] sm:$0xff] }
 0x644   : > { %v6926_v44 = vmul.f32 0.5, %v2268_v3 }
 0x646   : > { %v2378_v58 = vsel %vm1380_vm0, %v6926_v44, -inf }
 0x647   : > { %2379 = vmax.xlane.f32.xlu2 %v2378_v58 }
 0x649   : > { %4614 = vmatmul.msk.f32.gmra.mxu3 %vm3012_vm2, %v6931_v26 }
 0x64f   : > { %v2362_v1 = vpop.xlane.xlu1 %2361 }
 0x650   : > { %v2422_v16 = vsub.f32 %v6678_v14, %v2362_v1  ;;  %v6949_v14 = vadd.f32 1.0, %v4948_v37  ;;  %v2674_v37 = vld [vmem:[%s6233_s23 + $0x68] sm:$0xff] }
 0x651   : > { %4615 = vmatmul.msk.f32.gmra.mxu3 %vm3012_vm2, %v2787_v55 }
 0x652   : > { %v2471_v41 = vmul.f32 1.442695, %v2422_v16  ;;  %vm3494_vm12 = vweird.f32 %v6949_v14 }
 0x654   : > { %4949 = vpow2.f32 %v2471_v41 }
 0x655   : > { %4951 = vrcp.f32 %v6942_v50 }
 0x656   : > { %4953 = vrcp.f32 %v7996_v52  ;;  %v6990_v52 = vpop.f32.mrf.mxu3 }
 0x657   : > { %4955 = vpow2.f32 %v4627_v48  ;;  %v8000_v48 = vld [vmem:[#allocation27_spill] sm:$0xff] }
 0x658   : > { %4957 = vrcp.f32 %v6949_v14 }
 0x659   : > { %4616 = vmatmul.msk.f32.gmra.mxu3 %vm3012_vm2, %v2788_v34 }
 0x65a   : > { %v6953_v21 = vpop.eup %4949 }
 0x65b   : > { %v6955_v62 = vpop.eup %4951  ;;  %v2552_v29 = vsel %vm1380_vm0, %v6953_v21, 0.0 }
 0x65c   : > { %v2539_v2 = vpop.xlane.xlu1 %2538  ;;  %2553 = vadd.xlane.f32.xlu1 %v2552_v29  ;;  %v4954_v49 = vpop.eup %4953  ;;  %v3475_v28 = vmul.f32 %v6955_v62, %v6942_v50  ;;  %vm3480_vm9 = vweird.f32 %v6955_v62  ;;  %v3483_v29 = vand.u32 2147483647, %v6942_v50 }
 0x65d   : > { %4959 = vrcp.f32 %v2539_v2  ;;  %v4956_v10 = vpop.eup %4955  ;;  %v1713_v63 = vmul.f32 %v4954_v49, %v7998_v45  ;;  %vm6996_vm10 = vmor %vm3479_vm8, %vm3480_vm9  ;;  %v3486_v45 = vor.u32 1.1754944e-38, %v3485_v12 }
 0x65e   : > { %4961 = vrcp.f32 %v7997_v31  ;;  %v6969_v32 = vadd.f32 1.0, %v4956_v10  ;;  %v6972_v3 = vpop.eup %4957  ;;  %v3476_v58 = vsub.f32 1.0, %v3475_v28  ;;  %vm3484_vm11 = vcmp.eq.f32.partialorder %v3483_v29, 8.507059e+37 }
 0x65f   : > { %v6963_v36 = vpop.f32.mrf.mxu2  ;;  %4963 = vpow2.f32 %v4628_v33  ;;  %v2705_v40 = vmul.f32 %v2673_v7, %v1713_v63  ;;  %v3490_v24 = vmul.f32 %v6972_v3, %v6949_v14  ;;  %vm3495_vm13 = vweird.f32 %v6972_v3 }
 0x660   : > { %4115 = vst.msk [vmem:[%s6438_s21 + $0x20] sm:$0xff] %vm3012_vm2, %v6963_v36  ;;  %4965 = vrcp.f32 %v6969_v32  ;;  %v3477_v25 = vmul.f32 %v6955_v62, %v3476_v58  ;;  %vm7015_vm14 = vmor %vm3494_vm12, %vm3495_vm13  ;;  %vm3509_vm1 = vweird.f32 %v6969_v32 }
 0x661   : > { %v3491_v34 = vsub.f32 1.0, %v3490_v24  ;;  %v3500_v24 = vand.u32 2147483648, %v6949_v14 }
 0x662   : > { %v3478_v38 = vadd.f32 %v6955_v62, %v3477_v25 }
 0x663   : > { %v4960_v60 = vpop.eup %4959  ;;  %v3492_v63 = vmul.f32 %v6972_v3, %v3491_v34  ;;  %v3501_v29 = vor.u32 1.1754944e-38, %v3500_v24 }
 0x664   : > { %v2641_v18 = vmul.f32 %v4960_v60, %v6709_v11  ;;  %v4962_v43 = vpop.eup %4961  ;;  %v2542_v55 = vpop.xlane.xlu1 %2541  ;;  %v3482_v58 = vsel %vm6996_vm10, %v6955_v62, %v3478_v38  ;;  %v3498_v62 = vand.u32 2147483647, %v6949_v14 }
 0x665   : > { %v4964_v1 = vpop.eup %4963  ;;  %4967 = vrcp.f32 %v2542_v55  ;;  %v1714_v41 = vmul.f32 %v4962_v43, %v7999_v46  ;;  %v3493_v43 = vadd.f32 %v6972_v3, %v3492_v63  ;;  %v2675_v55 = vld [vmem:[%s6233_s23 + $0x70] sm:$0xff]  ;;  %v3513_v63 = vand.u32 2147483647, %v6969_v32 }
 0x666   : > { %v2737_v16 = vmul.f32 %v2705_v40, %v2641_v18  ;;  %4969 = vrcp.f32 %v8000_v48  ;;  %v6986_v11 = vadd.f32 1.0, %v4964_v1  ;;  %v6994_v2 = vpop.eup %4965  ;;  %v3487_v40 = vsel %vm3484_vm11, %v3486_v45, %v3482_v58  ;;  %v8009_v1 = vld [vmem:[#allocation26_spill] sm:$0xff] }
 0x667   : > { %v2706_v10 = vmul.f32 %v2674_v37, %v1714_v41  ;;  %v3505_v50 = vmul.f32 %v6994_v2, %v6969_v32  ;;  %v7022_v41 = vpop.f32.mrf.mxu3  ;;  %v3842_v48 = vmul.f32 %v3487_v40, %v6634_v39  ;;  %v3497_v38 = vsel %vm7015_vm14, %v6972_v3, %v3493_v43 }
 0x668   : > { %4564 = vmatmul.msk.f32.gmra.mxu0 %vm1380_vm0, %v2737_v16  ;;  %4971 = vrcp.f32 %v6986_v11  ;;  %vm3499_vm15 = vcmp.eq.f32.partialorder %v3498_v62, 8.507059e+37  ;;  %vm3510_vm3 = vweird.f32 %v6994_v2  ;;  %vm3514_vm5 = vcmp.eq.f32.partialorder %v3513_v63, 8.507059e+37 }
 0x669   : > { %v3506_v16 = vsub.f32 1.0, %v3505_v50  ;;  %v3502_v3 = vsel %vm3499_vm15, %v3501_v29, %v3497_v38  ;;  %vm7046_vm4 = vmor %vm3509_vm1, %vm3510_vm3  ;;  %vm3524_vm6 = vweird.f32 %v6986_v11  ;;  %v8013_v50 = vld [vmem:[#allocation9_spill] sm:$0xff] }
 0x66b   : > { %v4968_v49 = vpop.eup %4967 }
 0x66c   : > { %v2545_v28 = vpop.xlane.xlu1 %2544  ;;  %v2642_v31 = vmul.f32 %v4968_v49, %v6737_v23  ;;  %v4970_v7 = vpop.eup %4969  ;;  %v8003_v23 = vld [vmem:[#allocation8_spill] sm:$0xff]  ;;  %v3507_v49 = vmul.f32 %v6994_v2, %v3506_v16 }
 0x66d   : > { %4973 = vrcp.f32 %v2545_v28  ;;  %v1715_v18 = vmul.f32 %v4970_v7, %v8003_v23  ;;  %v3843_v23 = vmul.f32 %v3502_v3, %v6640_v0  ;;  %v8010_v0 = vld [vmem:[#allocation7_spill] sm:$0xff] }
 0x66e   : > { %v2738_v60 = vmul.f32 %v2706_v10, %v2642_v31  ;;  %v7020_v25 = vpop.eup %4971  ;;  %v8006_v10 = vld [vmem:[#allocation25_spill] sm:$0xff]  ;;  %v3515_v31 = vand.u32 2147483648, %v6969_v32  ;;  %v3508_v45 = vadd.f32 %v6994_v2, %v3507_v49 }
 0x66f   : > { %v2707_v34 = vmul.f32 %v2675_v55, %v1715_v18  ;;  %v3520_v14 = vmul.f32 %v7020_v25, %v6986_v11  ;;  %4975 = vrcp.f32 %v8006_v10  ;;  %vm3525_vm7 = vweird.f32 %v7020_v25 }
 0x670   : > { %4565 = vmatmul.msk.f32.gmra.mxu0 %vm1380_vm0, %v2738_v60  ;;  %v3516_v43 = vor.u32 1.1754944e-38, %v3515_v31  ;;  %v3512_v32 = vsel %vm7046_vm4, %v6994_v2, %v3508_v45  ;;  %v3530_v2 = vand.u32 2147483648, %v6986_v11  ;;  %vm7072_vm8 = vmor %vm3524_vm6, %vm3525_vm7 }
 0x671   : > { %v3521_v7 = vsub.f32 1.0, %v3520_v14 }
 0x672   : > { %v3531_v31 = vor.u32 1.1754944e-38, %v3530_v2 }
 0x673   : > { %v4974_v46 = vpop.eup %4973  ;;  %v3522_v55 = vmul.f32 %v7020_v25, %v3521_v7 }
 0x674   : > { %v2643_v12 = vmul.f32 %v4974_v46, %v6762_v19 }
 0x675   : > { %v2935_v37 = vpop.f32.mrf.mxu0  ;;  %v4976_v18 = vpop.eup %4975 }
 0x676   : > { %v2936_v33 = vadd.f32 %v6771_v5, %v2935_v37  ;;  %v2739_v28 = vmul.f32 %v2707_v34, %v2643_v12  ;;  %v1716_v46 = vmul.f32 %v4976_v18, %v8010_v0  ;;  %v2676_v37 = vld [vmem:[%s6233_s23 + $0x78] sm:$0xff]  ;;  %v3523_v12 = vadd.f32 %v7020_v25, %v3522_v55 }
 0x677   : > { %v7034_v39 = vpop.f32.mrf.mxu2  ;;  %v3528_v34 = vand.u32 2147483647, %v6986_v11 }
 0x678   : > { %v3874_v19 = vadd.f32 %v3842_v48, %v2936_v33  ;;  %4116 = vst.msk [vmem:[%s6438_s21 + $0x28] sm:$0xff] %vm3012_vm2, %v7034_v39  ;;  %4566 = vmatmul.msk.f32.gmra.mxu0 %vm1380_vm0, %v2739_v28  ;;  %v3517_v48 = vsel %vm3514_vm5, %v3516_v43, %v3512_v32  ;;  %v2708_v28 = vmul.f32 %v2676_v37, %v1716_v46 }
 0x679   : > { %v3844_v49 = vmul.f32 %v3517_v48, %v6650_v42  ;;  %v3527_v63 = vsel %vm7072_vm8, %v7020_v25, %v3523_v12  ;;  %vm3529_vm9 = vcmp.eq.f32.partialorder %v3528_v34, 8.507059e+37 }
 0x67a   : > { %4658 = vmatmul.msk.f32.gmra.mxu2 %vm3012_vm2, %v3874_v19 }
 0x67c   : > { %v7050_v58 = vpop.f32.mrf.mxu3 }
 0x67d   : > { %v2548_v60 = vpop.xlane.xlu1 %2547  ;;  %v2938_v40 = vpop.f32.mrf.mxu0 }
 0x67e   : > { %4977 = vrcp.f32 %v2548_v60  ;;  %v2939_v24 = vadd.f32 %v6771_v5, %v2938_v40 }
 0x67f   : > { %4979 = vrcp.f32 %v8009_v1  ;;  %v7059_v62 = vpop.f32.mrf.mxu2 }
 0x680   : > { %v3875_v16 = vadd.f32 %v3843_v23, %v2939_v24  ;;  %4117 = vst.msk [vmem:[%s6438_s21 + $0x30] sm:$0xff] %vm3012_vm2, %v7059_v62  ;;  %v2677_v23 = vld [vmem:[%s6233_s23 + $0x80] sm:$0xff] }
 0x682   : > { %4659 = vmatmul.msk.f32.gmra.mxu2 %vm3012_vm2, %v3875_v16 }
 0x684   : > { %v4978_v38 = vpop.eup %4977  ;;  %v7076_v14 = vpop.f32.mrf.mxu3 }
 0x685   : > { %v2551_v33 = vpop.xlane.xlu1 %2550  ;;  %v2644_v10 = vmul.f32 %v4978_v38, %v6803_v27  ;;  %v4980_v19 = vpop.eup %4979  ;;  %v3532_v27 = vsel %vm3529_vm9, %v3531_v31, %v3527_v63  ;;  %v7111_v38 = vld [vmem:[%s6194_s30 + $0x88] sm:$0xff] }
 0x686   : > { %4981 = vrcp.f32 %v2551_v33  ;;  %v2941_v3 = vpop.f32.mrf.mxu0  ;;  %v1717_v42 = vmul.f32 %v4980_v19, %v8013_v50  ;;  %v3845_v25 = vmul.f32 %v3532_v27, %v6672_v9  ;;  %4602 = vmatmul.msk.f32.gmra.mxu1 %vm3012_vm2, %v7111_v38  ;;  %v3166_v31 = vpop.f32.mrf.mxu1 }
 0x687   : > { %v2942_v11 = vadd.f32 %v6771_v5, %v2941_v3  ;;  %v2740_v45 = vmul.f32 %v2708_v28, %v2644_v10  ;;  %v7084_v7 = vpop.f32.mrf.mxu2 }
 0x688   : > { %4118 = vst.msk [vmem:[%s6438_s21 + $0x38] sm:$0xff] %vm3012_vm2, %v7084_v7  ;;  %v2709_v24 = vmul.f32 %v2677_v23, %v1717_v42 }
 0x689   : > { %v3876_v60 = vadd.f32 %v3844_v49, %v2942_v11  ;;  %4567 = vmatmul.msk.f32.gmra.mxu0 %vm1380_vm0, %v2740_v45  ;;  %v3167_v45 = vadd.f32 %v6921_v15, %v3166_v31 }
 0x68b   : > { %4660 = vmatmul.msk.f32.gmra.mxu2 %vm3012_vm2, %v3876_v60  ;;  %v4629_v50 = vmul.f32 -1.442695, %v3167_v45 }
 0x68c   : > { %v4982_v18 = vpop.eup %4981  ;;  %v7093_v40 = vpop.f32.mrf.mxu3 }
 0x68d   : > { %v2645_v43 = vmul.f32 %v4982_v18, %v6816_v30 }
 0x68e   : > { %v2944_v32 = vpop.f32.mrf.mxu0 }
 0x68f   : > { %v2945_v55 = vadd.f32 %v6771_v5, %v2944_v32  ;;  %v2741_v1 = vmul.f32 %v2709_v24, %v2645_v43  ;;  %v2365_v16 = vpop.xlane.xlu0 %2364  ;;  %v3169_v24 = vpop.f32.mrf.mxu1 }
 0x690   : > { %v2423_v46 = vsub.f32 %v6832_v47, %v2365_v16 }
 0x691   : > { %v3877_v0 = vadd.f32 %v3845_v25, %v2945_v55  ;;  %4568 = vmatmul.msk.f32.gmra.mxu0 %vm1380_vm0, %v2741_v1  ;;  %v3170_v55 = vadd.f32 %v6921_v15, %v3169_v24 }
 0x692   : > { %v2473_v48 = vmul.f32 1.442695, %v2423_v46 }
 0x693   : > { %4661 = vmatmul.msk.f32.gmra.mxu2 %vm3012_vm2, %v3877_v0 }
 0x694   : > { %4983 = vpow2.f32 %v2473_v48  ;;  %v7101_v37 = vpop.f32.mrf.mxu3 }
 0x69a   : > { %v7103_v9 = vpop.eup %4983  ;;  %v2368_v30 = vpop.xlane.xlu2 %2367 }
 0x69b   : > { %v2424_v2 = vsub.f32 %v6856_v35, %v2368_v30  ;;  %v2555_v12 = vsel %vm1380_vm0, %v7103_v9, 0.0 }
 0x69c   : > { %v7108_v34 = vpop.f32.mrf.mxu3  ;;  %2556 = vadd.xlane.f32.xlu0 %v2555_v12 }
 0x69d   : > { %v2475_v47 = vmul.f32 1.442695, %v2424_v2  ;;  %v8014_v2 = vld [vmem:[#allocation30_spill] sm:$0xff] }
 0x69f   : > { %4985 = vpow2.f32 %v2475_v47 }
 0x6a2   : > { %v2371_v29 = vpop.xlane.xlu2 %2370 }
 0x6a3   : > { %v2425_v33 = vsub.f32 %v6868_v13, %v2371_v29 }
 0x6a4   : > { %v3202_v49 = vpop.f32.mrf.mxu3 }
 0x6a5   : > { %v7116_v10 = vpop.eup %4985  ;;  %v2477_v35 = vmul.f32 1.442695, %v2425_v33  ;;  %v3203_v28 = vadd.f32 %v6921_v15, %v3202_v49 }
 0x6a6   : > { %v2558_v19 = vsel %vm1380_vm0, %v7116_v10, 0.0 }
 0x6a7   : > { %4987 = vpow2.f32 %v2477_v35  ;;  %v4641_v3 = vmul.f32 -1.442695, %v3203_v28  ;;  %2559 = vadd.xlane.f32.xlu2 %v2558_v19  ;;  %v3172_v28 = vpop.f32.mrf.mxu1 }
 0x6a9   : > { %4989 = vpow2.f32 %v4641_v3 }
 0x6aa   : > { %v2374_v11 = vpop.xlane.xlu2 %2373  ;;  %4991 = vpow2.f32 %v4629_v50 }
 0x6ab   : > { %v2426_v63 = vsub.f32 %v6893_v57, %v2374_v11 }
 0x6ac   : > { %v3205_v13 = vpop.f32.mrf.mxu3 }
 0x6ad   : > { %v7123_v42 = vpop.eup %4987  ;;  %v2479_v60 = vmul.f32 1.442695, %v2426_v63  ;;  %v3206_v27 = vadd.f32 %v6921_v15, %v3205_v13  ;;  %v3173_v63 = vadd.f32 %v6921_v15, %v3172_v28 }
 0x6ae   : > { %v2561_v23 = vsel %vm1380_vm0, %v7123_v42, 0.0 }
 0x6af   : > { %v4990_v18 = vpop.eup %4989  ;;  %4993 = vpow2.f32 %v2479_v60  ;;  %v4642_v25 = vmul.f32 -1.442695, %v3206_v27  ;;  %2562 = vadd.xlane.f32.xlu1 %v2561_v23 }
 0x6b0   : > { %v3346_v43 = vadd.f32 1.0, %v4990_v18  ;;  %v4992_v1 = vpop.eup %4991 }
 0x6b1   : > { %4995 = vpow2.f32 %v4642_v25  ;;  %v7133_v30 = vadd.f32 1.0, %v4992_v1  ;;  %v4631_v25 = vmul.f32 -1.442695, %v3173_v63 }
 0x6b2   : > { %4997 = vrcp.f32 %v3346_v43  ;;  %v2377_v57 = vpop.xlane.xlu2 %2376  ;;  %vm3719_vm10 = vweird.f32 %v3346_v43  ;;  %v3723_v19 = vand.u32 2147483647, %v3346_v43  ;;  %v3725_v3 = vand.u32 2147483648, %v3346_v43 }
 0x6b3   : > { %v2427_v32 = vsub.f32 %v6904_v22, %v2377_v57  ;;  %4999 = vrcp.f32 %v8014_v2  ;;  %v4630_v22 = vmul.f32 -1.442695, %v3170_v55  ;;  %vm3539_vm6 = vweird.f32 %v7133_v30 }
 0x6b4   : > { %v3208_v16 = vpop.f32.mrf.mxu3  ;;  %vm3724_vm13 = vcmp.eq.f32.partialorder %v3723_v19, 8.507059e+37 }
 0x6b5   : > { %v7130_v0 = vpop.eup %4993  ;;  %v2481_v46 = vmul.f32 1.442695, %v2427_v32  ;;  %v3209_v48 = vadd.f32 %v6921_v15, %v3208_v16 }
 0x6b6   : > { %v2564_v12 = vsel %vm1380_vm0, %v7130_v0, 0.0 }
 0x6b7   : > { %v4996_v47 = vpop.eup %4995  ;;  %5001 = vpow2.f32 %v2481_v46  ;;  %v4643_v29 = vmul.f32 -1.442695, %v3209_v48  ;;  %2565 = vadd.xlane.f32.xlu0 %v2564_v12  ;;  %v8017_v48 = vld [vmem:[#allocation11_spill] sm:$0xff] }
 0x6b8   : > { %v4998_v33 = vpop.eup %4997  ;;  %v7138_v49 = vadd.f32 1.0, %v4996_v47  ;;  %5003 = vrcp.f32 %v7133_v30 }
 0x6b9   : > { %v3715_v35 = vmul.f32 %v4998_v33, %v3346_v43  ;;  %5005 = vpow2.f32 %v4643_v29  ;;  %vm3720_vm11 = vweird.f32 %v4998_v33  ;;  %v5000_v13 = vpop.eup %4999  ;;  %v2984_v43 = vadd.f32 %v6771_v5, %v6974_v54 }
 0x6ba   : > { %5007 = vrcp.f32 %v7138_v49  ;;  %v2380_v31 = vpop.xlane.xlu2 %2379  ;;  %vm7151_vm12 = vmor %vm3719_vm10, %vm3720_vm11  ;;  %v1718_v2 = vmul.f32 %v5000_v13, %v8017_v48  ;;  %vm3734_vm14 = vweird.f32 %v7138_v49  ;;  %v3740_v28 = vand.u32 2147483648, %v7138_v49 }
 0x6bb   : > { %v3716_v11 = vsub.f32 1.0, %v3715_v35  ;;  %v2428_v45 = vsub.f32 %v6926_v44, %v2380_v31  ;;  %5009 = vpow2.f32 %v4630_v22  ;;  %v3726_v44 = vor.u32 1.1754944e-38, %v3725_v3 }
 0x6bc   : > { %v3211_v50 = vpop.f32.mrf.mxu3  ;;  %v3738_v31 = vand.u32 2147483647, %v7138_v49 }
 0x6bd   : > { %v7144_v60 = vpop.eup %5001  ;;  %v3717_v27 = vmul.f32 %v4998_v33, %v3716_v11  ;;  %v2483_v23 = vmul.f32 1.442695, %v2428_v45  ;;  %v3212_v18 = vadd.f32 %v6921_v15, %v3211_v50 }
 0x6be   : > { %v7147_v24 = vpop.eup %5003  ;;  %v2567_v32 = vsel %vm1380_vm0, %v7144_v60, 0.0  ;;  %vm3739_vm3 = vcmp.eq.f32.partialorder %v3738_v31, 8.507059e+37 }
 0x6bf   : > { %v5006_v55 = vpop.eup %5005  ;;  %v3718_v1 = vadd.f32 %v4998_v33, %v3717_v27  ;;  %5011 = vpow2.f32 %v2483_v23  ;;  %v4644_v16 = vmul.f32 -1.442695, %v3212_v18  ;;  %2568 = vadd.xlane.f32.xlu2 %v2567_v32  ;;  %v3535_v45 = vmul.f32 %v7147_v24, %v7133_v30 }
 0x6c0   : > { %v5008_v46 = vpop.eup %5007  ;;  %v7160_v12 = vadd.f32 1.0, %v5006_v55  ;;  %5013 = vpow2.f32 %v4631_v25  ;;  %v3741_v25 = vor.u32 1.1754944e-38, %v3740_v28  ;;  %vm3540_vm7 = vweird.f32 %v7147_v24 }
 0x6c1   : > { %v5010_v47 = vpop.eup %5009  ;;  %v3730_v29 = vmul.f32 %v5008_v46, %v7138_v49  ;;  %5015 = vpow2.f32 %v4644_v16  ;;  %v3722_v22 = vsel %vm7151_vm12, %v4998_v33, %v3718_v1  ;;  %vm3735_vm15 = vweird.f32 %v5008_v46  ;;  %v2678_v33 = vld [vmem:[%s6233_s23 + $0x88] sm:$0xff]  ;;  %vm7247_vm10 = vmor %vm3539_vm6, %vm3540_vm7 }
 0x6c2   : > { %5017 = vrcp.f32 %v7160_v12  ;;  %v3727_v35 = vsel %vm3724_vm13, %v3726_v44, %v3722_v22  ;;  %v7168_v19 = vadd.f32 1.0, %v5010_v47  ;;  %vm7183_vm1 = vmor %vm3734_vm14, %vm3735_vm15  ;;  %v7188_v55 = vmul.f32 %v2678_v33, %v1718_v2 }
 0x6c3   : > { %v3731_v54 = vsub.f32 1.0, %v3730_v29  ;;  %v3858_v3 = vmul.f32 %v3727_v35, %v6844_v6  ;;  %v2987_v16 = vadd.f32 %v6771_v5, %v6990_v52  ;;  %v7194_v49 = vadd.f32 %v6771_v5, %v7022_v41 }
 0x6c4   : > { %v3214_v11 = vpop.f32.mrf.mxu3  ;;  %5019 = vrcp.f32 %v7168_v19  ;;  %v3753_v52 = vand.u32 2147483647, %v7160_v12  ;;  %v3755_v35 = vand.u32 2147483648, %v7160_v12  ;;  %vm3749_vm4 = vweird.f32 %v7160_v12 }
 0x6c5   : > { %v7175_v63 = vpop.eup %5011  ;;  %v3215_v13 = vadd.f32 %v6921_v15, %v3214_v11  ;;  %v3890_v50 = vadd.f32 %v3858_v3, %v2984_v43  ;;  %v3732_v27 = vmul.f32 %v5008_v46, %v3731_v54  ;;  %v3536_v43 = vsub.f32 1.0, %v3535_v45  ;;  %v3175_v3 = vpop.f32.mrf.mxu1 }
 0x6c6   : > { %v5014_v23 = vpop.eup %5013  ;;  %v2570_v6 = vsel %vm1380_vm0, %v7175_v63, 0.0  ;;  %vm7225_vm9 = vcmp.eq.f32.partialorder %v3753_v52, 8.507059e+37 }
 0x6c7   : > { %v5016_v57 = vpop.eup %5015  ;;  %v4645_v44 = vmul.f32 -1.442695, %v3215_v13  ;;  %4674 = vmatmul.msk.f32.vlgmr.msra.gmra.mxu3 %vm3012_vm2, %v3890_v50  ;;  %2571 = vadd.xlane.f32.xlu1 %v2570_v6  ;;  %v3733_v32 = vadd.f32 %v5008_v46, %v3732_v27  ;;  %v7201_v22 = vadd.f32 1.0, %v5014_v23  ;;  %v3537_v11 = vmul.f32 %v7147_v24, %v3536_v43 }
 0x6c8   : > { %v5018_v1 = vpop.eup %5017  ;;  %v7196_v48 = vadd.f32 1.0, %v5016_v57  ;;  %v3543_v50 = vand.u32 2147483647, %v7133_v30  ;;  %v3176_v57 = vadd.f32 %v6921_v15, %v3175_v3 }
 0x6c9   : > { %v3745_v47 = vmul.f32 %v5018_v1, %v7160_v12  ;;  %5021 = vpow2.f32 %v4645_v44  ;;  %v3737_v29 = vsel %vm7183_vm1, %v5008_v46, %v3733_v32  ;;  %vm3750_vm5 = vweird.f32 %v5018_v1 }
 0x6ca   : > { %5023 = vrcp.f32 %v7196_v48  ;;  %v3742_v2 = vsel %vm3739_vm3, %v3741_v25, %v3737_v29  ;;  %v7206_v41 = vpop.eup %5019  ;;  %v7212_v46 = vadd.f32 %v6771_v5, %v7050_v58  ;;  %vm7221_vm8 = vmor %vm3749_vm4, %vm3750_vm5  ;;  %v3756_v58 = vor.u32 1.1754944e-38, %v3755_v35 }
 0x6cb   : > { %v3746_v28 = vsub.f32 1.0, %v3745_v47  ;;  %v3859_v54 = vmul.f32 %v3742_v2, %v6861_v59  ;;  %5025 = vrcp.f32 %v7201_v22  ;;  %v3550_v59 = vmul.f32 %v7206_v41, %v7168_v19 }
 0x6cc   : > { %v3217_v31 = vpop.f32.mrf.mxu3  ;;  %v3545_v25 = vand.u32 2147483648, %v7133_v30  ;;  %v7237_v43 = vadd.f32 %v7147_v24, %v3537_v11  ;;  %v3770_v2 = vand.u32 2147483648, %v7196_v48  ;;  %vm3764_vm11 = vweird.f32 %v7196_v48  ;;  %v7259_v30 = vld [vmem:[%s6194_s30 + $0x90] sm:$0xff] }
 0x6cd   : > { %v3218_v45 = vadd.f32 %v6921_v15, %v3217_v31  ;;  %v3891_v33 = vadd.f32 %v3859_v54, %v2987_v16  ;;  %v3747_v13 = vmul.f32 %v5018_v1, %v3746_v28  ;;  %v3768_v16 = vand.u32 2147483647, %v7196_v48  ;;  %4603 = vmatmul.msk.f32.gmra.mxu1 %vm3012_vm2, %v7259_v30 }
 0x6ce   : > { %v3551_v28 = vsub.f32 1.0, %v3550_v59  ;;  %v4632_v31 = vmul.f32 -1.442695, %v3176_v57  ;;  %vm7269_vm14 = vcmp.eq.f32.partialorder %v3543_v50, 8.507059e+37  ;;  %v3546_v59 = vor.u32 1.1754944e-38, %v3545_v25 }
 0x6cf   : > { %v5022_v27 = vpop.eup %5021  ;;  %v4646_v23 = vmul.f32 -1.442695, %v3218_v45  ;;  %4675 = vmatmul.msk.f32.gmra.mxu3 %vm3012_vm2, %v3891_v33  ;;  %v2554_v6 = vpop.xlane.xlu1 %2553  ;;  %v3748_v18 = vadd.f32 %v5018_v1, %v3747_v13  ;;  %vm7261_vm13 = vcmp.eq.f32.partialorder %v3768_v16, 8.507059e+37  ;;  %v3542_v33 = vsel %vm7247_vm10, %v7147_v24, %v7237_v43 }
 0x6d0   : > { %v5024_v44 = vpop.eup %5023  ;;  %v7233_v32 = vadd.f32 1.0, %v5022_v27  ;;  %5027 = vrcp.f32 %v2554_v6  ;;  %v3178_v27 = vpop.f32.mrf.mxu1  ;;  %v3552_v50 = vmul.f32 %v7206_v41, %v3551_v28  ;;  %vm3554_vm1 = vweird.f32 %v7168_v19 }
 0x6d1   : > { %v3760_v47 = vmul.f32 %v5024_v44, %v7196_v48  ;;  %5029 = vpow2.f32 %v4646_v23  ;;  %v3752_v29 = vsel %vm7221_vm8, %v5018_v1, %v3748_v18  ;;  %v7255_v54 = vpop.eup %5025  ;;  %vm3765_vm12 = vweird.f32 %v5024_v44 }
 0x6d2   : > { %5031 = vrcp.f32 %v7233_v32  ;;  %v3757_v35 = vsel %vm7225_vm9, %v3756_v58, %v3752_v29  ;;  %v3771_v58 = vor.u32 1.1754944e-38, %v3770_v2  ;;  %v7279_v6 = vmul.f32 %v7255_v54, %v7201_v22  ;;  %vm7284_vm15 = vmor %vm3764_vm11, %vm3765_vm12 }
 0x6d3   : > { %v3761_v1 = vsub.f32 1.0, %v3760_v47  ;;  %v3860_v3 = vmul.f32 %v3757_v35, %v6881_v4  ;;  %vm3555_vm3 = vweird.f32 %v7206_v41  ;;  %5033 = vpow2.f32 %v4632_v31  ;;  %v7319_v31 = vld [vmem:[%s6194_s30 + $0x98] sm:$0xff] }
 0x6d4   : > { %v3220_v11 = vpop.f32.mrf.mxu3  ;;  %vm3779_vm4 = vweird.f32 %v7233_v32  ;;  %v3783_v43 = vand.u32 2147483647, %v7233_v32  ;;  %v3179_v47 = vadd.f32 %v6921_v15, %v3178_v27  ;;  %v3785_v35 = vand.u32 2147483648, %v7233_v32  ;;  %vm7313_vm6 = vmor %vm3554_vm1, %vm3555_vm3 }
 0x6d5   : > { %v3221_v4 = vadd.f32 %v6921_v15, %v3220_v11  ;;  %v3892_v12 = vadd.f32 %v3860_v3, %v7194_v49  ;;  %v3762_v5 = vmul.f32 %v5024_v44, %v3761_v1  ;;  %v3553_v28 = vadd.f32 %v7206_v41, %v3552_v50  ;;  %4604 = vmatmul.msk.f32.gmra.mxu1 %vm3012_vm2, %v7319_v31 }
 0x6d6   : > { %v5028_v23 = vpop.eup %5027  ;;  %v3560_v45 = vand.u32 2147483648, %v7168_v19  ;;  %vm7342_vm8 = vcmp.eq.f32.partialorder %v3783_v43, 8.507059e+37  ;;  %v3575_v50 = vand.u32 2147483648, %v7201_v22 }
 0x6d7   : > { %v5030_v49 = vpop.eup %5029  ;;  %v4647_v18 = vmul.f32 -1.442695, %v3221_v4  ;;  %4676 = vmatmul.msk.f32.gmra.mxu3 %vm3012_vm2, %v3892_v12  ;;  %v2646_v25 = vmul.f32 %v5028_v23, %v6953_v21  ;;  %v3763_v57 = vadd.f32 %v5024_v44, %v3762_v5  ;;  %v4633_v4 = vmul.f32 -1.442695, %v3179_v47  ;;  %v7327_v12 = vld [vmem:[%s7908_s11] ss:$0 sm:$0xff] }
 0x6d8   : > { %v5032_v16 = vpop.eup %5031  ;;  %v7293_v48 = vadd.f32 1.0, %v5030_v49  ;;  %v2996_v5 = vadd.f32 %v7327_v12, %v7076_v14  ;;  %v3786_v14 = vor.u32 1.1754944e-38, %v3785_v35  ;;  %v7364_v47 = vld [vmem:[%s6194_s30 + $0xa0] sm:$0xff] }
 0x6d9   : > { %v3775_v29 = vmul.f32 %v5032_v16, %v7233_v32  ;;  %5035 = vpow2.f32 %v4647_v18  ;;  %v2742_v2 = vmul.f32 %v7188_v55, %v2646_v25  ;;  %v3767_v21 = vsel %vm7284_vm15, %v5024_v44, %v3763_v57 }
 0x6da   : > { %5037 = vrcp.f32 %v7293_v48  ;;  %v3772_v52 = vsel %vm7261_vm13, %v3771_v58, %v3767_v21  ;;  %vm3780_vm5 = vweird.f32 %v5032_v16  ;;  %v3558_v44 = vand.u32 2147483647, %v7168_v19 }
 0x6db   : > { %v3776_v1 = vsub.f32 1.0, %v3775_v29  ;;  %4569 = vmatmul.msk.f32.gmra.mxu0 %vm1380_vm0, %v2742_v2  ;;  %v3861_v3 = vmul.f32 %v3772_v52, %v6899_v53  ;;  %v5034_v53 = vpop.eup %5033  ;;  %v3547_v19 = vsel %vm7269_vm14, %v3546_v59, %v3542_v33  ;;  %vm7338_vm7 = vmor %vm3779_vm4, %vm3780_vm5  ;;  %v3566_v59 = vsub.f32 1.0, %v7279_v6 }
 0x6dc   : > { %v3223_v11 = vpop.f32.mrf.mxu3  ;;  %vm7350_vm9 = vcmp.eq.f32.partialorder %v3558_v44, 8.507059e+37  ;;  %v7357_v25 = vadd.f32 1.0, %v5034_v53  ;;  %v3561_v57 = vor.u32 1.1754944e-38, %v3560_v45  ;;  %5039 = vpow2.f32 %v4633_v4 }
 0x6dd   : > { %v3224_v58 = vadd.f32 %v6921_v15, %v3223_v11  ;;  %v3893_v27 = vadd.f32 %v3861_v3, %v7212_v46  ;;  %v3777_v23 = vmul.f32 %v5032_v16, %v3776_v1  ;;  %v3557_v15 = vsel %vm7313_vm6, %v7206_v41, %v3553_v28  ;;  %4605 = vmatmul.msk.f32.gmra.mxu1 %vm3012_vm2, %v7364_v47 }
 0x6de   : > { %vm3794_vm10 = vweird.f32 %v7293_v48  ;;  %v3798_v29 = vand.u32 2147483647, %v7293_v48  ;;  %v3800_v2 = vand.u32 2147483648, %v7293_v48  ;;  %v3567_v35 = vmul.f32 %v7255_v54, %v3566_v59 }
 0x6df   : > { %v5036_v46 = vpop.eup %5035  ;;  %v4648_v13 = vmul.f32 -1.442695, %v3224_v58  ;;  %4677 = vmatmul.msk.f32.gmra.mxu3 %vm3012_vm2, %v3893_v27  ;;  %v3778_v33 = vadd.f32 %v5032_v16, %v3777_v23  ;;  %v2999_v44 = vadd.f32 %v7327_v12, %v7093_v40  ;;  %vm3569_vm14 = vweird.f32 %v7201_v22 }
 0x6e0   : > { %v5038_v49 = vpop.eup %5037  ;;  %v7355_v18 = vadd.f32 1.0, %v5036_v46  ;;  %v3801_v45 = vor.u32 1.1754944e-38, %v3800_v2  ;;  %vm3799_vm13 = vcmp.eq.f32.partialorder %v3798_v29, 8.507059e+37  ;;  %vm3570_vm15 = vweird.f32 %v7255_v54  ;;  %v7406_v46 = vld [vmem:[%s6194_s30 + $0xa8] sm:$0xff] }
 0x6e1   : > { %v3790_v41 = vmul.f32 %v5038_v49, %v7293_v48  ;;  %5041 = vpow2.f32 %v4648_v13  ;;  %v3782_v43 = vsel %vm7338_vm7, %v5032_v16, %v3778_v33  ;;  %vm3795_vm11 = vweird.f32 %v5038_v49  ;;  %vm7415_vm3 = vmor %vm3569_vm14, %vm3570_vm15 }
 0x6e2   : > { %5043 = vrcp.f32 %v7355_v18  ;;  %v3787_v6 = vsel %vm7342_vm8, %v3786_v14, %v3782_v43  ;;  %v3846_v16 = vmul.f32 %v3547_v19, %v6866_v61  ;;  %v5040_v55 = vpop.eup %5039  ;;  %vm7384_vm12 = vmor %vm3794_vm10, %vm3795_vm11  ;;  %v3573_v48 = vand.u32 2147483647, %v7201_v22 }
 0x6e3   : > { %v3791_v21 = vsub.f32 1.0, %v3790_v41  ;;  %v3862_v52 = vmul.f32 %v3787_v6, %v6916_v20  ;;  %5045 = vrcp.f32 %v7357_v25  ;;  %v3562_v20 = vsel %vm7350_vm9, %v3561_v57, %v3557_v15  ;;  %v5106_v57 = vld [vmem:[%s6194_s30 + $0x68] sm:$0xff] }
 0x6e4   : > { %v7398_v24 = vadd.f32 1.0, %v5040_v55  ;;  %vm3809_vm1 = vweird.f32 %v7355_v18  ;;  %v3815_v15 = vand.u32 2147483648, %v7355_v18  ;;  %v3847_v41 = vmul.f32 %v5106_v57, %v3562_v20  ;;  %v7439_v20 = vld [vmem:[%s6194_s30 + $0xb0] sm:$0xff] }
 0x6e5   : > { %v2947_v28 = vpop.f32.mrf.mxu0  ;;  %v3894_v1 = vadd.f32 %v3862_v52, %v2996_v5  ;;  %v3792_v3 = vmul.f32 %v5038_v49, %v3791_v21  ;;  %v3568_v5 = vadd.f32 %v7255_v54, %v3567_v35  ;;  %4606 = vmatmul.msk.f32.gmra.mxu1 %vm3012_vm2, %v7406_v46  ;;  %vm3574_vm5 = vcmp.eq.f32.partialorder %v3573_v48, 8.507059e+37 }
 0x6e6   : > { %v2948_v11 = vadd.f32 %v7327_v12, %v2947_v28  ;;  %v3816_v21 = vor.u32 1.1754944e-38, %v3815_v15  ;;  %v3002_v28 = vadd.f32 %v7327_v12, %v7101_v37  ;;  %v5107_v37 = vld [vmem:[%s6194_s30 + $0xf0] sm:$0xff] }
 0x6e7   : > { %v5042_v4 = vpop.eup %5041  ;;  %4678 = vmatmul.msk.f32.gmra.mxu3 %vm3012_vm2, %v3894_v1  ;;  %v3793_v53 = vadd.f32 %v5038_v49, %v3792_v3  ;;  %v3572_v2 = vsel %vm7415_vm3, %v7255_v54, %v3568_v5  ;;  %v5108_v5 = vld [vmem:[%s6194_s30 + $0x70] sm:$0xff] }
 0x6e8   : > { %v5044_v40 = vpop.eup %5043  ;;  %v7391_v58 = vadd.f32 1.0, %v5042_v4  ;;  %v3878_v27 = vadd.f32 %v3846_v16, %v2948_v11 }
 0x6e9   : > { %v3805_v23 = vmul.f32 %v5044_v40, %v7355_v18  ;;  %v3797_v19 = vsel %vm7384_vm12, %v5038_v49, %v3793_v53  ;;  %v7408_v13 = vpop.eup %5045  ;;  %vm3810_vm4 = vweird.f32 %v5044_v40  ;;  %v3813_v49 = vand.u32 2147483647, %v7355_v18 }
 0x6ea   : > { %5047 = vrcp.f32 %v7391_v58  ;;  %4662 = vmatmul.msk.f32.gmra.mxu2 %vm3012_vm2, %v3878_v27  ;;  %v3802_v14 = vsel %vm3799_vm13, %v3801_v45, %v3797_v19  ;;  %v3580_v22 = vmul.f32 %v7408_v13, %v7357_v25  ;;  %vm3811_vm6 = vmor %vm3809_vm1, %vm3810_vm4  ;;  %vm3824_vm8 = vweird.f32 %v7391_v58 }
 0x6eb   : > { %v3806_v33 = vsub.f32 1.0, %v3805_v23  ;;  %v3863_v32 = vmul.f32 %v3802_v14, %v6931_v26  ;;  %5049 = vrcp.f32 %v7398_v24  ;;  %v3576_v26 = vor.u32 1.1754944e-38, %v3575_v50 }
 0x6ec   : > { %vm3814_vm7 = vcmp.eq.f32.partialorder %v3813_v49, 8.507059e+37  ;;  %v3581_v11 = vsub.f32 1.0, %v3580_v22  ;;  %v3828_v53 = vand.u32 2147483647, %v7391_v58  ;;  %vm3584_vm12 = vweird.f32 %v7357_v25 }
 0x6ed   : > { %v3895_v43 = vadd.f32 %v3863_v32, %v2999_v44  ;;  %v3807_v6 = vmul.f32 %v5044_v40, %v3806_v33  ;;  %v2950_v29 = vpop.f32.mrf.mxu0  ;;  %v3577_v3 = vsel %vm3574_vm5, %v3576_v26, %v3572_v2  ;;  %v3830_v44 = vand.u32 2147483648, %v7391_v58  ;;  %4607 = vmatmul.msk.f32.gmra.mxu1 %vm3012_vm2, %v7439_v20 }
 0x6ee   : > { %v2951_v52 = vadd.f32 %v7327_v12, %v2950_v29  ;;  %v3582_v14 = vmul.f32 %v7408_v13, %v3581_v11  ;;  %vm3829_vm11 = vcmp.eq.f32.partialorder %v3828_v53, 8.507059e+37  ;;  %vm3585_vm13 = vweird.f32 %v7408_v13  ;;  %v7466_v29 = vld [vmem:[%s6194_s30 + $0xb8] sm:$0xff] }
 0x6ef   : > { %4679 = vmatmul.msk.f32.gmra.mxu3 %vm3012_vm2, %v3895_v43  ;;  %v3808_v35 = vadd.f32 %v5044_v40, %v3807_v6  ;;  %v3831_v50 = vor.u32 1.1754944e-38, %v3830_v44  ;;  %v3005_v26 = vadd.f32 %v7327_v12, %v7108_v34  ;;  %v5109_v6 = vld [vmem:[%s6194_s30 + $0xf8] sm:$0xff]  ;;  %vm3586_vm14 = vmor %vm3584_vm12, %vm3585_vm13  ;;  %vm3599_vm1 = vweird.f32 %v7398_v24 }
 0x6f0   : > { %v5048_v16 = vpop.eup %5047  ;;  %v3879_v54 = vadd.f32 %v3847_v41, %v2951_v52  ;;  %v3583_v57 = vadd.f32 %v7408_v13, %v3582_v14  ;;  %v3588_v41 = vand.u32 2147483647, %v7357_v25  ;;  %v2679_v14 = vld [vmem:[%s6233_s23 + $0x90] sm:$0xff] }
 0x6f1   : > { %v3820_v1 = vmul.f32 %v5048_v16, %v7391_v58  ;;  %v3812_v18 = vsel %vm3811_vm6, %v5044_v40, %v3808_v35  ;;  %v7441_v61 = vpop.eup %5049  ;;  %vm3825_vm9 = vweird.f32 %v5048_v16  ;;  %v3848_v40 = vmul.f32 %v5108_v5, %v3577_v3 }
 0x6f2   : > { %v3817_v55 = vsel %vm3814_vm7, %v3816_v21, %v3812_v18  ;;  %4663 = vmatmul.msk.f32.gmra.mxu2 %vm3012_vm2, %v3879_v54  ;;  %v3595_v23 = vmul.f32 %v7441_v61, %v7398_v24  ;;  %vm3826_vm10 = vmor %vm3824_vm8, %vm3825_vm9  ;;  %v3590_v58 = vand.u32 2147483648, %v7357_v25  ;;  %v3587_v34 = vsel %vm3586_vm14, %v7408_v13, %v3583_v57  ;;  %v5110_v13 = vld [vmem:[%s6194_s30 + $0x78] sm:$0xff] }
 0x6f3   : > { %v3821_v45 = vsub.f32 1.0, %v3820_v1  ;;  %v3864_v4 = vmul.f32 %v5107_v37, %v3817_v55  ;;  %vm3589_vm15 = vcmp.eq.f32.partialorder %v3588_v41, 8.507059e+37  ;;  %vm3600_vm3 = vweird.f32 %v7441_v61 }
 0x6f4   : > { %v3596_v43 = vsub.f32 1.0, %v3595_v23  ;;  %v3591_v52 = vor.u32 1.1754944e-38, %v3590_v58  ;;  %v3603_v1 = vand.u32 2147483647, %v7398_v24  ;;  %vm3601_vm4 = vmor %vm3599_vm1, %vm3600_vm3 }
 0x6f5   : > { %v3896_v27 = vadd.f32 %v3864_v4, %v3002_v28  ;;  %v3822_v48 = vmul.f32 %v5048_v16, %v3821_v45  ;;  %v2953_v19 = vpop.f32.mrf.mxu0  ;;  %4608 = vmatmul.msk.f32.gmra.mxu1 %vm3012_vm2, %v7466_v29  ;;  %v5111_v4 = vld [vmem:[%s6194_s30 + $0x80] sm:$0xff] }
 0x6f6   : > { %v2954_v15 = vadd.f32 %v7327_v12, %v2953_v19  ;;  %v3597_v25 = vmul.f32 %v7441_v61, %v3596_v43  ;;  %v3592_v35 = vsel %vm3589_vm15, %v3591_v52, %v3587_v34  ;;  %vm3604_vm5 = vcmp.eq.f32.partialorder %v3603_v1, 8.507059e+37  ;;  %v8045_v19 = vld [vmem:[#allocation10_spill] sm:$0xff]  ;;  %v8047_v43 = vld [vmem:[#allocation33_spill] sm:$0xff] }
 0x6f7   : > { %4680 = vmatmul.msk.f32.gmra.mxu3 %vm3012_vm2, %v3896_v27  ;;  %v3823_v33 = vadd.f32 %v5048_v16, %v3822_v48  ;;  %v3849_v54 = vmul.f32 %v5110_v13, %v3592_v35  ;;  %v8049_v13 = vld [vmem:[#allocation31_spill] sm:$0xff] }
 0x6f8   : > { %v3880_v32 = vadd.f32 %v3848_v40, %v2954_v15  ;;  %v3598_v28 = vadd.f32 %v7441_v61, %v3597_v25  ;;  %v8046_v15 = vld [vmem:[#allocation29_spill] sm:$0xff] }
 0x6f9   : > { %v3827_v59 = vsel %vm3826_vm10, %v5048_v16, %v3823_v33  ;;  %v3605_v16 = vand.u32 2147483648, %v7398_v24  ;;  %v8044_v24 = vld [vmem:[#allocation28_spill] sm:$0xff] }
 0x6fa   : > { %v3832_v49 = vsel %vm3829_vm11, %v3831_v50, %v3827_v59  ;;  %4664 = vmatmul.msk.f32.gmra.mxu2 %vm3012_vm2, %v3880_v32  ;;  %v3602_v11 = vsel %vm3601_vm4, %v7441_v61, %v3598_v28  ;;  %5051 = vrcp.f32 %v8044_v24 }
 0x6fb   : > { %v3865_v22 = vmul.f32 %v5109_v6, %v3832_v49  ;;  %v3606_v55 = vor.u32 1.1754944e-38, %v3605_v16 }
 0x6fd   : > { %v7470_v2 = vpop.f32.mrf.mxu2  ;;  %v3897_v21 = vadd.f32 %v3865_v22, %v3005_v26  ;;  %v3607_v37 = vsel %vm3604_vm5, %v3606_v55, %v3602_v11  ;;  %v8048_v26 = vld [vmem:[#allocation12_spill] sm:$0xff]  ;;  %v2680_v22 = vld [vmem:[%s6233_s23 + $0x98] sm:$0xff] }
 0x6fe   : > { %4119 = vst.msk [vmem:[%s6438_s21 + $0x40] sm:$0xff] %vm3012_vm2, %v7470_v2  ;;  %v3850_v53 = vmul.f32 %v5111_v4, %v3607_v37 }
 0x6ff   : > { %4681 = vmatmul.msk.f32.gmra.mxu3 %vm3012_vm2, %v3897_v21 }
 0x700   : > { %v5052_v48 = vpop.eup %5051 }
 0x701   : > { %v1719_v50 = vmul.f32 %v5052_v48, %v8045_v19 }
 0x703   : > { %v2711_v58 = vmul.f32 %v2679_v14, %v1719_v50  ;;  %v3181_v21 = vpop.f32.mrf.mxu1 }
 0x705   : > { %v7484_v18 = vpop.f32.mrf.mxu2 }
 0x706   : > { %v2956_v3 = vpop.f32.mrf.mxu0  ;;  %4120 = vst.msk [vmem:[%s6438_s21 + $0x48] sm:$0xff] %vm3012_vm2, %v7484_v18 }
 0x707   : > { %v2957_v44 = vadd.f32 %v7327_v12, %v2956_v3 }
 0x709   : > { %v3881_v45 = vadd.f32 %v3849_v54, %v2957_v44  ;;  %v8050_v54 = vld [vmem:[#allocation14_spill] sm:$0xff] }
 0x70b   : > { %4665 = vmatmul.msk.f32.gmra.mxu2 %vm3012_vm2, %v3881_v45 }
 0x70e   : > { %v2959_v5 = vpop.f32.mrf.mxu0  ;;  %v7494_v40 = vpop.f32.mrf.mxu2 }
 0x70f   : > { %v2960_v27 = vadd.f32 %v7327_v12, %v2959_v5  ;;  %4121 = vst.msk [vmem:[%s6438_s21 + $0x50] sm:$0xff] %vm3012_vm2, %v7494_v40  ;;  %v2557_v61 = vpop.xlane.xlu0 %2556  ;;  %v8052_v5 = vld [vmem:[#allocation13_spill] sm:$0xff] }
 0x710   : > { %5053 = vrcp.f32 %v2557_v61  ;;  %v2682_v61 = vld [vmem:[%s6233_s23 + $0xa8] sm:$0xff] }
 0x711   : > { %v3882_v23 = vadd.f32 %v3850_v53, %v2960_v27  ;;  %5055 = vrcp.f32 %v8046_v15  ;;  %v8051_v53 = vld [vmem:[#allocation32_spill] sm:$0xff] }
 0x713   : > { %4666 = vmatmul.msk.f32.gmra.mxu2 %vm3012_vm2, %v3882_v23 }
 0x716   : > { %v7504_v33 = vpop.f32.mrf.mxu2  ;;  %v5054_v32 = vpop.eup %5053 }
 0x717   : > { %4122 = vst.msk [vmem:[%s6438_s21 + $0x58] sm:$0xff] %vm3012_vm2, %v7504_v33  ;;  %v2647_v59 = vmul.f32 %v5054_v32, %v7103_v9  ;;  %v5056_v41 = vpop.eup %5055  ;;  %v7518_v9 = vld [vmem:[%s7910_s13] ss:$0 sm:$0xff] }
 0x718   : > { %v1720_v6 = vmul.f32 %v5056_v41, %v8048_v26  ;;  %v3182_v16 = vadd.f32 %v7518_v9, %v3181_v21 }
 0x719   : > { %v2743_v49 = vmul.f32 %v2711_v58, %v2647_v59  ;;  %v8053_v59 = vld [vmem:[#allocation34_spill] sm:$0xff]  ;;  %v8054_v58 = vld [vmem:[#allocation15_spill] sm:$0xff] }
 0x71a   : > { %v2560_v57 = vpop.xlane.xlu2 %2559  ;;  %v2712_v35 = vmul.f32 %v2680_v22, %v1720_v6  ;;  %v4634_v55 = vmul.f32 -1.442695, %v3182_v16 }
 0x71b   : > { %5057 = vrcp.f32 %v2560_v57  ;;  %4570 = vmatmul.msk.f32.gmra.mxu0 %vm1380_vm0, %v2743_v49  ;;  %v2683_v57 = vld [vmem:[%s6233_s23 + $0xb0] sm:$0xff] }
 0x71c   : > { %5059 = vrcp.f32 %v8047_v43 }
 0x721   : > { %v5058_v52 = vpop.eup %5057 }
 0x722   : > { %v2563_v34 = vpop.xlane.xlu1 %2562  ;;  %v2648_v25 = vmul.f32 %v5058_v52, %v7116_v10  ;;  %v5060_v28 = vpop.eup %5059  ;;  %v2681_v10 = vld [vmem:[%s6233_s23 + $0xa0] sm:$0xff]  ;;  %v8055_v52 = vld [vmem:[#allocation16_spill] sm:$0xff] }
 0x723   : > { %5061 = vrcp.f32 %v2563_v34  ;;  %v1721_v3 = vmul.f32 %v5060_v28, %v8050_v54 }
 0x724   : > { %v2744_v1 = vmul.f32 %v2712_v35, %v2648_v25  ;;  %5063 = vrcp.f32 %v8049_v13  ;;  %v2684_v25 = vld [vmem:[%s6233_s23 + $0xb8] sm:$0xff] }
 0x725   : > { %v2713_v37 = vmul.f32 %v2681_v10, %v1721_v3  ;;  %5065 = vpow2.f32 %v4634_v55 }
 0x726   : > { %4571 = vmatmul.msk.f32.gmra.mxu0 %vm1380_vm0, %v2744_v1 }
 0x729   : > { %v5062_v44 = vpop.eup %5061 }
 0x72a   : > { %v2566_v11 = vpop.xlane.xlu0 %2565  ;;  %v2649_v45 = vmul.f32 %v5062_v44, %v7123_v42  ;;  %v5064_v24 = vpop.eup %5063 }
 0x72b   : > { %5067 = vrcp.f32 %v2566_v11  ;;  %v1722_v27 = vmul.f32 %v5064_v24, %v8052_v5  ;;  %v5066_v48 = vpop.eup %5065 }
 0x72c   : > { %v2745_v4 = vmul.f32 %v2713_v37, %v2649_v45  ;;  %5069 = vrcp.f32 %v8051_v53  ;;  %v3339_v32 = vadd.f32 1.0, %v5066_v48 }
 0x72d   : > { %v2714_v14 = vmul.f32 %v2682_v61, %v1722_v27 }
 0x72e   : > { %4572 = vmatmul.msk.f32.gmra.mxu0 %vm1380_vm0, %v2745_v4  ;;  %vm3614_vm6 = vweird.f32 %v3339_v32  ;;  %v3620_v55 = vand.u32 2147483648, %v3339_v32  ;;  %v3618_v44 = vand.u32 2147483647, %v3339_v32 }
 0x730   : > { %vm3619_vm9 = vcmp.eq.f32.partialorder %v3618_v44, 8.507059e+37 }
 0x731   : > { %v5068_v23 = vpop.eup %5067 }
 0x732   : > { %v2569_v19 = vpop.xlane.xlu2 %2568  ;;  %v2650_v50 = vmul.f32 %v5068_v23, %v7130_v0  ;;  %v5070_v42 = vpop.eup %5069 }
 0x733   : > { %5071 = vrcp.f32 %v2569_v19  ;;  %v1723_v49 = vmul.f32 %v5070_v42, %v8054_v58 }
 0x734   : > { %v2746_v15 = vmul.f32 %v2714_v14, %v2650_v50  ;;  %5073 = vrcp.f32 %v8053_v59 }
 0x735   : > { %5075 = vrcp.f32 %v3339_v32  ;;  %v2715_v6 = vmul.f32 %v2683_v57, %v1723_v49 }
 0x736   : > { %4573 = vmatmul.msk.f32.gmra.mxu0 %vm1380_vm0, %v2746_v15 }
 0x739   : > { %v5072_v41 = vpop.eup %5071 }
 0x73a   : > { %v2572_v43 = vpop.xlane.xlu1 %2571  ;;  %v2651_v26 = vmul.f32 %v5072_v41, %v7144_v60  ;;  %v5074_v0 = vpop.eup %5073 }
 0x73b   : > { %5077 = vrcp.f32 %v2572_v43  ;;  %v5076_v21 = vpop.eup %5075  ;;  %v1724_v34 = vmul.f32 %v5074_v0, %v8055_v52 }
 0x73c   : > { %v2747_v22 = vmul.f32 %v2715_v6, %v2651_v26  ;;  %v3610_v16 = vmul.f32 %v5076_v21, %v3339_v32  ;;  %vm3615_vm7 = vweird.f32 %v5076_v21 }
 0x73d   : > { %v2716_v1 = vmul.f32 %v2684_v25, %v1724_v34  ;;  %vm3616_vm8 = vmor %vm3614_vm6, %vm3615_vm7 }
 0x73e   : > { %4574 = vmatmul.msk.f32.gmra.mxu0 %vm1380_vm0, %v2747_v22  ;;  %v3611_v54 = vsub.f32 1.0, %v3610_v16 }
 0x740   : > { %v3612_v60 = vmul.f32 %v5076_v21, %v3611_v54 }
 0x741   : > { %v5078_v35 = vpop.eup %5077 }
 0x742   : > { %v2652_v28 = vmul.f32 %v5078_v35, %v7175_v63  ;;  %v3613_v10 = vadd.f32 %v5076_v21, %v3612_v60  ;;  %v3621_v63 = vor.u32 1.1754944e-38, %v3620_v55 }
 0x744   : > { %v2748_v13 = vmul.f32 %v2716_v1, %v2652_v28  ;;  %v3617_v11 = vsel %vm3616_vm8, %v5076_v21, %v3613_v10 }
 0x745   : > { %v3622_v37 = vsel %vm3619_vm9, %v3621_v63, %v3617_v11 }
 0x746   : > { %4575 = vmatmul.msk.f32.gmra.mxu0 %vm1380_vm0, %v2748_v13  ;;  %v3851_v24 = vmul.f32 %v3622_v37, %v7111_v38 }
 0x74a   : > { %v7541_v3 = vpop.f32.mrf.mxu3  ;;  %v3184_v61 = vpop.f32.mrf.mxu1 }
 0x74b   : > { %4135 = vst.msk [vmem:[%s6438_s21 + $0xc0] sm:$0xff] %vm3012_vm2, %v7541_v3  ;;  %v3185_v38 = vadd.f32 %v7518_v9, %v3184_v61 }
 0x74d   : > { %v4635_v19 = vmul.f32 -1.442695, %v3185_v38 }
 0x74f   : > { %5079 = vpow2.f32 %v4635_v19 }
 0x752   : > { %v7546_v45 = vpop.f32.mrf.mxu3  ;;  %v3187_v23 = vpop.f32.mrf.mxu1 }
 0x753   : > { %4136 = vst.msk [vmem:[%s6438_s21 + $0xc8] sm:$0xff] %vm3012_vm2, %v7546_v45  ;;  %v3188_v15 = vadd.f32 %v7518_v9, %v3187_v23 }
 0x755   : > { %v5080_v59 = vpop.eup %5079  ;;  %v4636_v58 = vmul.f32 -1.442695, %v3188_v15 }
 0x756   : > { %v3340_v49 = vadd.f32 1.0, %v5080_v59 }
 0x757   : > { %5081 = vpow2.f32 %v4636_v58 }
 0x758   : > { %v2962_v4 = vpop.f32.mrf.mxu0  ;;  %5083 = vrcp.f32 %v3340_v49  ;;  %vm3629_vm0 = vweird.f32 %v3340_v49 }
 0x759   : > { %v2963_v53 = vadd.f32 %v7327_v12, %v2962_v4  ;;  %v3635_v4 = vand.u32 2147483648, %v3340_v49 }
 0x75a   : > { %v7553_v5 = vpop.f32.mrf.mxu3  ;;  %v3190_v42 = vpop.f32.mrf.mxu1 }
 0x75b   : > { %v3883_v27 = vadd.f32 %v3851_v24, %v2963_v53  ;;  %4137 = vst.msk [vmem:[%s6438_s21 + $0xd0] sm:$0xff] %vm3012_vm2, %v7553_v5  ;;  %v3191_v41 = vadd.f32 %v7518_v9, %v3190_v42  ;;  %v3636_v23 = vor.u32 1.1754944e-38, %v3635_v4 }
 0x75d   : > { %4667 = vmatmul.msk.f32.gmra.mxu2 %vm3012_vm2, %v3883_v27  ;;  %v4637_v6 = vmul.f32 -1.442695, %v3191_v41  ;;  %v5082_v0 = vpop.eup %5081  ;;  %v3633_v27 = vand.u32 2147483647, %v3340_v49 }
 0x75e   : > { %v5084_v52 = vpop.eup %5083  ;;  %v7598_v34 = vadd.f32 1.0, %v5082_v0 }
 0x75f   : > { %5085 = vpow2.f32 %v4637_v6  ;;  %v3625_v35 = vmul.f32 %v5084_v52, %v3340_v49  ;;  %vm3630_vm10 = vweird.f32 %v5084_v52  ;;  %vm3634_vm12 = vcmp.eq.f32.partialorder %v3633_v27, 8.507059e+37 }
 0x760   : > { %5087 = vrcp.f32 %v7598_v34  ;;  %vm3631_vm11 = vmor %vm3629_vm0, %vm3630_vm10  ;;  %vm3644_vm13 = vweird.f32 %v7598_v34 }
 0x761   : > { %v3626_v13 = vsub.f32 1.0, %v3625_v35  ;;  %v3650_v35 = vand.u32 2147483648, %v7598_v34 }
 0x762   : > { %v7559_v48 = vpop.f32.mrf.mxu3  ;;  %v3193_v43 = vpop.f32.mrf.mxu1 }
 0x763   : > { %4138 = vst.msk [vmem:[%s6438_s21 + $0xd8] sm:$0xff] %vm3012_vm2, %v7559_v48  ;;  %v3194_v21 = vadd.f32 %v7518_v9, %v3193_v43  ;;  %v3627_v10 = vmul.f32 %v5084_v52, %v3626_v13 }
 0x765   : > { %v4638_v16 = vmul.f32 -1.442695, %v3194_v21  ;;  %v5086_v1 = vpop.eup %5085  ;;  %v3628_v53 = vadd.f32 %v5084_v52, %v3627_v10 }
 0x766   : > { %v7607_v60 = vadd.f32 1.0, %v5086_v1  ;;  %v5088_v55 = vpop.eup %5087  ;;  %v3648_v1 = vand.u32 2147483647, %v7598_v34 }
 0x767   : > { %5089 = vpow2.f32 %v4638_v16  ;;  %v3640_v24 = vmul.f32 %v5088_v55, %v7598_v34  ;;  %v3632_v15 = vsel %vm3631_vm11, %v5084_v52, %v3628_v53  ;;  %vm3645_vm14 = vweird.f32 %v5088_v55 }
 0x768   : > { %5091 = vrcp.f32 %v7607_v60  ;;  %v3637_v49 = vsel %vm3634_vm12, %v3636_v23, %v3632_v15  ;;  %vm3646_vm15 = vmor %vm3644_vm13, %vm3645_vm14  ;;  %vm3649_vm1 = vcmp.eq.f32.partialorder %v3648_v1, 8.507059e+37  ;;  %vm3659_vm3 = vweird.f32 %v7607_v60 }
 0x769   : > { %v3641_v19 = vsub.f32 1.0, %v3640_v24  ;;  %v3852_v52 = vmul.f32 %v3637_v49, %v7259_v30  ;;  %v3665_v4 = vand.u32 2147483648, %v7607_v60 }
 0x76a   : > { %v7565_v50 = vpop.f32.mrf.mxu3  ;;  %v3196_v28 = vpop.f32.mrf.mxu1 }
 0x76b   : > { %4139 = vst.msk [vmem:[%s6438_s21 + $0xe0] sm:$0xff] %vm3012_vm2, %v7565_v50  ;;  %v3197_v54 = vadd.f32 %v7518_v9, %v3196_v28  ;;  %v3642_v6 = vmul.f32 %v5088_v55, %v3641_v19 }
 0x76d   : > { %v7570_v14 = vpop.f32.mrf.mxu2  ;;  %v4639_v44 = vmul.f32 -1.442695, %v3197_v54  ;;  %v5090_v63 = vpop.eup %5089  ;;  %v3643_v28 = vadd.f32 %v5088_v55, %v3642_v6 }
 0x76e   : > { %4123 = vst.msk [vmem:[%s6438_s21 + $0x60] sm:$0xff] %vm3012_vm2, %v7570_v14  ;;  %v7616_v61 = vadd.f32 1.0, %v5090_v63  ;;  %v5092_v42 = vpop.eup %5091 }
 0x76f   : > { %5093 = vpow2.f32 %v4639_v44  ;;  %v3655_v43 = vmul.f32 %v5092_v42, %v7607_v60  ;;  %v3651_v44 = vor.u32 1.1754944e-38, %v3650_v35  ;;  %vm3660_vm4 = vweird.f32 %v5092_v42 }
 0x770   : > { %5095 = vrcp.f32 %v7616_v61  ;;  %vm3661_vm5 = vmor %vm3659_vm3, %vm3660_vm4  ;;  %vm3674_vm7 = vweird.f32 %v7616_v61 }
 0x771   : > { %v3656_v13 = vsub.f32 1.0, %v3655_v43 }
 0x772   : > { %v7576_v32 = vpop.f32.mrf.mxu3  ;;  %v3199_v37 = vpop.f32.mrf.mxu1 }
 0x773   : > { %4140 = vst.msk [vmem:[%s6438_s21 + $0xe8] sm:$0xff] %vm3012_vm2, %v7576_v32  ;;  %v3200_v38 = vadd.f32 %v7518_v9, %v3199_v37  ;;  %v3647_v37 = vsel %vm3646_vm15, %v5088_v55, %v3643_v28  ;;  %v3657_v30 = vmul.f32 %v5092_v42, %v3656_v13 }
 0x774   : > { %v3652_v34 = vsel %vm3649_vm1, %v3651_v44, %v3647_v37 }
 0x775   : > { %v7581_v57 = vpop.f32.mrf.mxu2  ;;  %v4640_v59 = vmul.f32 -1.442695, %v3200_v38  ;;  %v5094_v41 = vpop.eup %5093  ;;  %v3658_v27 = vadd.f32 %v5092_v42, %v3657_v30  ;;  %v3663_v38 = vand.u32 2147483647, %v7607_v60  ;;  %v3853_v55 = vmul.f32 %v3652_v34, %v7319_v31 }
 0x776   : > { %4124 = vst.msk [vmem:[%s6438_s21 + $0x68] sm:$0xff] %vm3012_vm2, %v7581_v57  ;;  %v7627_v9 = vadd.f32 1.0, %v5094_v41  ;;  %v5096_v16 = vpop.eup %5095 }
 0x777   : > { %5097 = vpow2.f32 %v4640_v59  ;;  %v3670_v10 = vmul.f32 %v5096_v16, %v7616_v61  ;;  %v3666_v59 = vor.u32 1.1754944e-38, %v3665_v4  ;;  %v3662_v6 = vsel %vm3661_vm5, %v5092_v42, %v3658_v27 }
 0x778   : > { %5099 = vrcp.f32 %v7627_v9  ;;  %vm3664_vm6 = vcmp.eq.f32.partialorder %v3663_v38, 8.507059e+37  ;;  %vm3675_vm8 = vweird.f32 %v5096_v16  ;;  %vm3689_vm10 = vweird.f32 %v7627_v9 }
 0x779   : > { %v3671_v53 = vsub.f32 1.0, %v3670_v10  ;;  %v3667_v60 = vsel %vm3664_vm6, %v3666_v59, %v3662_v6  ;;  %vm7648_vm9 = vmor %vm3674_vm7, %vm3675_vm8  ;;  %v3695_v30 = vand.u32 2147483648, %v7627_v9 }
 0x77a   : > { %v7587_v26 = vpop.f32.mrf.mxu3  ;;  %v3854_v13 = vmul.f32 %v3667_v60, %v7364_v47  ;;  %v3693_v47 = vand.u32 2147483647, %v7627_v9 }
 0x77b   : > { %4141 = vst.msk [vmem:[%s6438_s21 + $0xf0] sm:$0xff] %vm3012_vm2, %v7587_v26  ;;  %v3672_v41 = vmul.f32 %v5096_v16, %v3671_v53  ;;  %v3696_v38 = vor.u32 1.1754944e-38, %v3695_v30 }
 0x77c   : > { %vm3694_vm13 = vcmp.eq.f32.partialorder %v3693_v47, 8.507059e+37 }
 0x77d   : > { %v7592_v22 = vpop.f32.mrf.mxu2  ;;  %v5098_v63 = vpop.eup %5097 }
 0x77e   : > { %4125 = vst.msk [vmem:[%s6438_s21 + $0x70] sm:$0xff] %vm3012_vm2, %v7592_v22  ;;  %v7637_v24 = vadd.f32 1.0, %v5098_v63  ;;  %v5100_v23 = vpop.eup %5099 }
 0x77f   : > { %v3685_v43 = vmul.f32 %v5100_v23, %v7627_v9  ;;  %vm3690_vm11 = vweird.f32 %v5100_v23 }
 0x780   : > { %5101 = vrcp.f32 %v7637_v24  ;;  %vm3691_vm12 = vmor %vm3689_vm10, %vm3690_vm11  ;;  %vm3704_vm14 = vweird.f32 %v7637_v24  ;;  %v3710_v9 = vand.u32 2147483648, %v7637_v24 }
 0x781   : > { %v3686_v35 = vsub.f32 1.0, %v3685_v43  ;;  %v3708_v43 = vand.u32 2147483647, %v7637_v24 }
 0x782   : > { %v7600_v25 = vpop.f32.mrf.mxu3  ;;  %v3711_v6 = vor.u32 1.1754944e-38, %v3710_v9 }
 0x783   : > { %4142 = vst.msk [vmem:[%s6438_s21 + $0xf8] sm:$0xff] %vm3012_vm2, %v7600_v25  ;;  %v3687_v37 = vmul.f32 %v5100_v23, %v3686_v35  ;;  %vm3709_vm3 = vcmp.eq.f32.partialorder %v3708_v43, 8.507059e+37 }
 0x785   : > { %v3688_v34 = vadd.f32 %v5100_v23, %v3687_v37 }
 0x786   : > { %v5102_v28 = vpop.eup %5101 }
 0x787   : > { %v3700_v44 = vmul.f32 %v5102_v28, %v7637_v24  ;;  %vm3705_vm15 = vweird.f32 %v5102_v28 }
 0x788   : > { %vm3706_vm1 = vmor %vm3704_vm14, %vm3705_vm15 }
 0x789   : > { %v3701_v4 = vsub.f32 1.0, %v3700_v44 }
 0x78e   : > { %v7610_v11 = vpop.f32.mrf.mxu2 }
 0x78f   : > { %4126 = vst.msk [vmem:[%s6438_s21 + $0x78] sm:$0xff] %vm3012_vm2, %v7610_v11 }
 0x796   : > { %v7620_v58 = vpop.f32.mrf.mxu2 }
 0x797   : > { %4127 = vst.msk [vmem:[%s6438_s21 + $0x80] sm:$0xff] %vm3012_vm2, %v7620_v58 }
 0x798   : > { %v2965_v0 = vpop.f32.mrf.mxu0 }
 0x799   : > { %v2966_v21 = vadd.f32 %v7327_v12, %v2965_v0  ;;  %v3673_v0 = vadd.f32 %v5096_v16, %v3672_v41 }
 0x79b   : > { %v3884_v54 = vadd.f32 %v3852_v52, %v2966_v21  ;;  %v3680_v21 = vand.u32 2147483648, %v7616_v61  ;;  %v3678_v52 = vand.u32 2147483647, %v7616_v61 }
 0x79d   : > { %4668 = vmatmul.msk.f32.gmra.mxu2 %vm3012_vm2, %v3884_v54  ;;  %v3677_v54 = vsel %vm7648_vm9, %v5096_v16, %v3673_v0  ;;  %v3681_v10 = vor.u32 1.1754944e-38, %v3680_v21  ;;  %vm3679_vm0 = vcmp.eq.f32.partialorder %v3678_v52, 8.507059e+37 }
 0x79f   : > { %v3682_v61 = vsel %vm3679_vm0, %v3681_v10, %v3677_v54 }
 0x7a0   : > { %v3855_v27 = vmul.f32 %v3682_v61, %v7406_v46 }
 0x7a3   : > { %v2968_v19 = vpop.f32.mrf.mxu0 }
 0x7a4   : > { %v2969_v15 = vadd.f32 %v7327_v12, %v2968_v19 }
 0x7a6   : > { %v3885_v49 = vadd.f32 %v3853_v55, %v2969_v15  ;;  %v3692_v15 = vsel %vm3691_vm12, %v5100_v23, %v3688_v34  ;;  %v3702_v55 = vmul.f32 %v5102_v28, %v3701_v4 }
 0x7a7   : > { %v3697_v59 = vsel %vm3694_vm13, %v3696_v38, %v3692_v15 }
 0x7a8   : > { %4669 = vmatmul.msk.f32.gmra.mxu2 %vm3012_vm2, %v3885_v49  ;;  %v3703_v41 = vadd.f32 %v5102_v28, %v3702_v55  ;;  %v3856_v23 = vmul.f32 %v3697_v59, %v7439_v20 }
 0x7aa   : > { %v3707_v0 = vsel %vm3706_vm1, %v5102_v28, %v3703_v41 }
 0x7ab   : > { %v2971_v1 = vpop.f32.mrf.mxu0  ;;  %v3712_v21 = vsel %vm3709_vm3, %v3711_v6, %v3707_v0 }
 0x7ac   : > { %v2972_v42 = vadd.f32 %v7327_v12, %v2971_v1  ;;  %v3857_v52 = vmul.f32 %v3712_v21, %v7466_v29 }
 0x7ae   : > { %v3886_v63 = vadd.f32 %v3854_v13, %v2972_v42 }
 0x7b0   : > { %4670 = vmatmul.msk.f32.gmra.mxu2 %vm3012_vm2, %v3886_v63 }
 0x7b3   : > { %v2974_v53 = vpop.f32.mrf.mxu0 }
 0x7b4   : > { %v2975_v16 = vadd.f32 %v7327_v12, %v2974_v53 }
 0x7b6   : > { %v3887_v19 = vadd.f32 %v3855_v27, %v2975_v16 }
 0x7b8   : > { %4671 = vmatmul.msk.f32.gmra.mxu2 %vm3012_vm2, %v3887_v19 }
 0x7bb   : > { %v2977_v49 = vpop.f32.mrf.mxu0 }
 0x7bc   : > { %v2978_v46 = vadd.f32 %v7327_v12, %v2977_v49 }
 0x7be   : > { %v3888_v60 = vadd.f32 %v3856_v23, %v2978_v46 }
 0x7c0   : > { %4672 = vmatmul.msk.f32.gmra.mxu2 %vm3012_vm2, %v3888_v60 }
 0x7c3   : > { %v2980_v31 = vpop.f32.mrf.mxu0 }
 0x7c4   : > { %v2981_v24 = vadd.f32 %v7327_v12, %v2980_v31 }
 0x7c6   : > { %v3889_v35 = vadd.f32 %v3857_v52, %v2981_v24 }
 0x7c8   : > { %4673 = vmatmul.msk.f32.gmra.mxu2 %vm3012_vm2, %v3889_v35 }
 0x7e0   : > { %v7674_v20 = vpop.f32.mrf.mxu2 }
 0x7e1   : > { %4128 = vst.msk [vmem:[%s6438_s21 + $0x88] sm:$0xff] %vm3012_vm2, %v7674_v20 }
 0x820   : > { %v7679_v28 = vpop.f32.mrf.mxu2 }
 0x821   : > { %4129 = vst.msk [vmem:[%s6438_s21 + $0x90] sm:$0xff] %vm3012_vm2, %v7679_v28 }
 0x82b   : > { %v7684_v1 = vpop.f32.mrf.mxu2 }
 0x82c   : > { %4130 = vst.msk [vmem:[%s6438_s21 + $0x98] sm:$0xff] %vm3012_vm2, %v7684_v1 }
 0x833   : > { %v7689_v12 = vpop.f32.mrf.mxu2 }
 0x834   : > { %4131 = vst.msk [vmem:[%s6438_s21 + $0xa0] sm:$0xff] %vm3012_vm2, %v7689_v12 }
 0x83b   : > { %v7694_v29 = vpop.f32.mrf.mxu2 }
 0x83c   : > { %4132 = vst.msk [vmem:[%s6438_s21 + $0xa8] sm:$0xff] %vm3012_vm2, %v7694_v29 }
 0x843   : > { %v7699_v42 = vpop.f32.mrf.mxu2 }
 0x844   : > { %4133 = vst.msk [vmem:[%s6438_s21 + $0xb0] sm:$0xff] %vm3012_vm2, %v7699_v42 }
 0x848   : > { %4147 = sbr.rel (%p4682_p5) target bundleno = 2128 (0x850), region = 84 }
 0x84b   : > { %v7704_v13 = vpop.f32.mrf.mxu2 }
 0x84c   : > { %4134 = vst.msk [vmem:[%s6438_s21 + $0xb8] sm:$0xff] %vm3012_vm2, %v7704_v13 }
 0x84d   : > { %vm4148_vm4 = vcmask 24576   ;;  %v5138_v54 = vmov 0.0  }
 0x84e   : > { %4149 = vst.msk [vmem:[%s7913_s16] sm:$0x1] %vm4148_vm4, %v5138_v54 }
 0x84f   : > { %4150 = vst.msk [vmem:[%s7914_s17] sm:$0x1] %vm4148_vm4, %v5138_v54 }
 0x850 PF: > { %v4152_v10 = vsel %vm3012_vm2, %v6440_v17, 0.0  ;;  %v4153_v44 = vsel %vm3012_vm2, %v6450_v8, 0.0  ;;  %v4155_v63 = vsel %vm3012_vm2, %v6474_v56, 0.0  ;;  %v4157_v61 = vsel %vm3012_vm2, %v6489_v51, 0.0 }
 0x851   : > { %v4154_v37 = vadd.f32 %v4153_v44, %v4152_v10  ;;  %v4159_v34 = vsel %vm3012_vm2, %v6963_v36, 0.0  ;;  %v4161_v4 = vsel %vm3012_vm2, %v7034_v39, 0.0  ;;  %v4163_v16 = vsel %vm3012_vm2, %v7059_v62, 0.0 }
 0x852   : > { %v4225_v27 = vmul.f32 %v6440_v17, %v6440_v17  ;;  %v4226_v19 = vmul.f32 %v6450_v8, %v6450_v8  ;;  %v4227_v15 = vmul.f32 %v6474_v56, %v6474_v56  ;;  %v4165_v55 = vsel %vm3012_vm2, %v7084_v7, 0.0 }
 0x853   : > { %v4156_v30 = vadd.f32 %v4155_v63, %v4154_v37  ;;  %v4228_v9 = vmul.f32 %v6489_v51, %v6489_v51  ;;  %v4167_v41 = vsel %vm3012_vm2, %v7470_v2, 0.0  ;;  %v4229_v49 = vmul.f32 %v6963_v36, %v6963_v36 }
 0x854   : > { %v4257_v43 = vsel %vm3012_vm2, %v4225_v27, 0.0  ;;  %v4258_v8 = vsel %vm3012_vm2, %v4226_v19, 0.0  ;;  %v4260_v56 = vsel %vm3012_vm2, %v4227_v15, 0.0  ;;  %v4169_v46 = vsel %vm3012_vm2, %v7484_v18, 0.0 }
 0x855   : > { %v4158_v47 = vadd.f32 %v4157_v61, %v4156_v30  ;;  %v4259_v23 = vadd.f32 %v4258_v8, %v4257_v43  ;;  %v4230_v51 = vmul.f32 %v7034_v39, %v7034_v39  ;;  %v4262_v60 = vsel %vm3012_vm2, %v4228_v9, 0.0 }
 0x856   : > { %v4171_v0 = vsel %vm3012_vm2, %v7494_v40, 0.0  ;;  %v4231_v36 = vmul.f32 %v7059_v62, %v7059_v62  ;;  %v4264_v24 = vsel %vm3012_vm2, %v4229_v49, 0.0  ;;  %v4173_v52 = vsel %vm3012_vm2, %v7504_v33, 0.0 }
 0x857   : > { %v4160_v53 = vadd.f32 %v4159_v34, %v4158_v47  ;;  %v4261_v21 = vadd.f32 %v4260_v56, %v4259_v23  ;;  %v4232_v39 = vmul.f32 %v7084_v7, %v7084_v7  ;;  %v4266_v10 = vsel %vm3012_vm2, %v4230_v51, 0.0 }
 0x858   : > { %v4175_v44 = vsel %vm3012_vm2, %v7570_v14, 0.0  ;;  %v4233_v62 = vmul.f32 %v7470_v2, %v7470_v2  ;;  %v4268_v61 = vsel %vm3012_vm2, %v4231_v36, 0.0  ;;  %v4177_v30 = vsel %vm3012_vm2, %v7581_v57, 0.0 }
 0x859   : > { %v4162_v38 = vadd.f32 %v4161_v4, %v4160_v53  ;;  %v4263_v35 = vadd.f32 %v4262_v60, %v4261_v21  ;;  %v4234_v7 = vmul.f32 %v7484_v18, %v7484_v18  ;;  %v4270_v4 = vsel %vm3012_vm2, %v4232_v39, 0.0 }
 0x85a   : > { %v4179_v53 = vsel %vm3012_vm2, %v7592_v22, 0.0  ;;  %v4235_v2 = vmul.f32 %v7494_v40, %v7494_v40  ;;  %v4181_v19 = vsel %vm3012_vm2, %v7610_v11, 0.0  ;;  %v4236_v18 = vmul.f32 %v7504_v33, %v7504_v33 }
 0x85b   : > { %v4164_v59 = vadd.f32 %v4163_v16, %v4162_v38  ;;  %v4265_v63 = vadd.f32 %v4264_v24, %v4263_v35  ;;  %v4272_v38 = vsel %vm3012_vm2, %v4233_v62, 0.0  ;;  %v4183_v9 = vsel %vm3012_vm2, %v7620_v58, 0.0 }
 0x85c   : > { %v4237_v40 = vmul.f32 %v7570_v14, %v7570_v14  ;;  %v4185_v49 = vsel %vm3012_vm2, %v7674_v20, 0.0  ;;  %v4238_v33 = vmul.f32 %v7581_v57, %v7581_v57  ;;  %v4187_v23 = vsel %vm3012_vm2, %v7679_v28, 0.0 }
 0x85d   : > { %v4166_v17 = vadd.f32 %v4165_v55, %v4164_v59  ;;  %v4267_v34 = vadd.f32 %v4266_v10, %v4265_v63  ;;  %v4274_v59 = vsel %vm3012_vm2, %v4234_v7, 0.0  ;;  %v4239_v14 = vmul.f32 %v7592_v22, %v7592_v22 }
 0x85e   : > { %v4280_v60 = vsel %vm3012_vm2, %v4237_v40, 0.0  ;;  %v4240_v57 = vmul.f32 %v7610_v11, %v7610_v11  ;;  %v4282_v36 = vsel %vm3012_vm2, %v4238_v33, 0.0  ;;  %v4191_v24 = vsel %vm3012_vm2, %v7689_v12, 0.0 }
 0x85f   : > { %v4168_v6 = vadd.f32 %v4167_v41, %v4166_v17  ;;  %v4269_v16 = vadd.f32 %v4268_v61, %v4267_v34  ;;  %v4276_v17 = vsel %vm3012_vm2, %v4235_v2, 0.0  ;;  %v4241_v22 = vmul.f32 %v7620_v58, %v7620_v58 }
 0x860   : > { %v4193_v39 = vsel %vm3012_vm2, %v7694_v29, 0.0  ;;  %v4242_v11 = vmul.f32 %v7674_v20, %v7674_v20  ;;  %v4286_v63 = vsel %vm3012_vm2, %v4240_v57, 0.0  ;;  %v4243_v58 = vmul.f32 %v7679_v28, %v7679_v28 }
 0x861   : > { %v4170_v31 = vadd.f32 %v4169_v46, %v4168_v6  ;;  %v4271_v15 = vadd.f32 %v4270_v4, %v4269_v16  ;;  %v4278_v46 = vsel %vm3012_vm2, %v4236_v18, 0.0  ;;  %v4197_v34 = vsel %vm3012_vm2, %v7704_v13, 0.0 }
 0x862   : > { %v4244_v20 = vmul.f32 %v7684_v1, %v7684_v1  ;;  %v4290_v4 = vsel %vm3012_vm2, %v4242_v11, 0.0  ;;  %v4245_v28 = vmul.f32 %v7689_v12, %v7689_v12  ;;  %v4292_v2 = vsel %vm3012_vm2, %v4243_v58, 0.0 }
 0x863   : > { %v4172_v54 = vadd.f32 %v4171_v0, %v4170_v31  ;;  %v4273_v41 = vadd.f32 %v4272_v38, %v4271_v15  ;;  %v4189_v0 = vsel %vm3012_vm2, %v7684_v1, 0.0  ;;  %v4201_v38 = vsel %vm3012_vm2, %v7546_v45, 0.0 }
 0x864   : > { %v4246_v1 = vmul.f32 %v7694_v29, %v7694_v29  ;;  %v4203_v18 = vsel %vm3012_vm2, %v7553_v5, 0.0  ;;  %v4247_v12 = vmul.f32 %v7699_v42, %v7699_v42  ;;  %v4248_v29 = vmul.f32 %v7704_v13, %v7704_v13 }
 0x865   : > { %v4174_v37 = vadd.f32 %v4173_v52, %v4172_v54  ;;  %v4275_v8 = vadd.f32 %v4274_v59, %v4273_v41  ;;  %v4284_v54 = vsel %vm3012_vm2, %v4239_v14, 0.0  ;;  %v4296_v41 = vsel %vm3012_vm2, %v4245_v28, 0.0 }
 0x866   : > { %v4250_v13 = vmul.f32 %v7546_v45, %v7546_v45  ;;  %v4302_v14 = vsel %vm3012_vm2, %v4248_v29, 0.0  ;;  %v4213_v57 = vsel %vm3012_vm2, %v7600_v25, 0.0  ;;  %v4252_v45 = vmul.f32 %v7559_v48, %v7559_v48 }
 0x867   : > { %v4176_v47 = vadd.f32 %v4175_v44, %v4174_v37  ;;  %v4277_v6 = vadd.f32 %v4276_v17, %v4275_v8  ;;  %v4195_v37 = vsel %vm3012_vm2, %v7699_v42, 0.0  ;;  %v4207_v8 = vsel %vm3012_vm2, %v7565_v50, 0.0 }
 0x868   : > { %v4249_v42 = vmul.f32 %v7541_v3, %v7541_v3  ;;  %v4310_v11 = vsel %vm3012_vm2, %v4252_v45, 0.0  ;;  %vm4222_vm5 = vcmask 24576  }
 0x869   : > { %v4178_v27 = vadd.f32 %v4177_v30, %v4176_v47  ;;  %v4279_v21 = vadd.f32 %v4278_v46, %v4277_v6  ;;  %v4288_v30 = vsel %vm3012_vm2, %v4241_v22, 0.0  ;;  %v4300_v46 = vsel %vm3012_vm2, %v4247_v12, 0.0 }
 0x86b   : > { %v4180_v55 = vadd.f32 %v4179_v53, %v4178_v27  ;;  %v4281_v52 = vadd.f32 %v4280_v60, %v4279_v21  ;;  %v4199_v53 = vsel %vm3012_vm2, %v7541_v3, 0.0  ;;  %v4211_v60 = vsel %vm3012_vm2, %v7587_v26, 0.0 }
 0x86c   : > { %v4251_v3 = vmul.f32 %v7553_v5, %v7553_v5 }
 0x86d   : > { %v4182_v43 = vadd.f32 %v4181_v19, %v4180_v55  ;;  %v4283_v10 = vadd.f32 %v4282_v36, %v4281_v52  ;;  %v4294_v55 = vsel %vm3012_vm2, %v4244_v20, 0.0  ;;  %v4306_v52 = vsel %vm3012_vm2, %v4250_v13, 0.0 }
 0x86f   : > { %v4184_v56 = vadd.f32 %v4183_v9, %v4182_v43  ;;  %v4285_v62 = vadd.f32 %v4284_v54, %v4283_v10  ;;  %v4205_v43 = vsel %vm3012_vm2, %v7559_v48, 0.0  ;;  %v4253_v54 = vmul.f32 %v7565_v50, %v7565_v50 }
 0x870   : > { %v4255_v48 = vmul.f32 %v7587_v26, %v7587_v26  ;;  %v4256_v50 = vmul.f32 %v7600_v25, %v7600_v25  ;;  %v4151_v26 = vld [vmem:[%s7913_s16] sm:$0x1] }
 0x871   : > { %v4186_v51 = vadd.f32 %v4185_v49, %v4184_v56  ;;  %v4287_v47 = vadd.f32 %v4286_v63, %v4285_v62  ;;  %v4298_v49 = vsel %vm3012_vm2, %v4246_v1, 0.0  ;;  %v4312_v62 = vsel %vm3012_vm2, %v4253_v54, 0.0  ;;  %v4224_v1 = vld [vmem:[%s7914_s17] sm:$0x1] }
 0x873   : > { %v4188_v31 = vadd.f32 %v4187_v23, %v4186_v51  ;;  %v4289_v16 = vadd.f32 %v4288_v30, %v4287_v47  ;;  %v4209_v23 = vsel %vm3012_vm2, %v7576_v32, 0.0 }
 0x875   : > { %v4190_v35 = vadd.f32 %v4189_v0, %v4188_v31  ;;  %v4291_v19 = vadd.f32 %v4290_v4, %v4289_v16  ;;  %v4304_v31 = vsel %vm3012_vm2, %v4249_v42, 0.0  ;;  %v4318_v4 = vsel %vm3012_vm2, %v4256_v50, 0.0 }
 0x877   : > { %v4192_v44 = vadd.f32 %v4191_v24, %v4190_v35  ;;  %v4293_v59 = vadd.f32 %v4292_v2, %v4291_v19 }
 0x879   : > { %v4194_v61 = vadd.f32 %v4193_v39, %v4192_v44  ;;  %v4295_v40 = vadd.f32 %v4294_v55, %v4293_v59  ;;  %v4308_v39 = vsel %vm3012_vm2, %v4251_v3, 0.0  ;;  %v4254_v44 = vmul.f32 %v7576_v32, %v7576_v32 }
 0x87a   : > { %v4316_v32 = vsel %vm3012_vm2, %v4255_v48, 0.0 }
 0x87b   : > { %v4196_v7 = vadd.f32 %v4195_v37, %v4194_v61  ;;  %v4297_v56 = vadd.f32 %v4296_v41, %v4295_v40  ;;  %v4314_v30 = vsel %vm3012_vm2, %v4254_v44, 0.0 }
 0x87d   : > { %v4198_v27 = vadd.f32 %v4197_v34, %v4196_v7  ;;  %v4299_v6 = vadd.f32 %v4298_v49, %v4297_v56 }
 0x87f   : > { %v4200_v15 = vadd.f32 %v4199_v53, %v4198_v27  ;;  %v4301_v0 = vadd.f32 %v4300_v46, %v4299_v6 }
 0x881   : > { %v4202_v9 = vadd.f32 %v4201_v38, %v4200_v15  ;;  %v4303_v36 = vadd.f32 %v4302_v14, %v4301_v0 }
 0x883   : > { %v4204_v17 = vadd.f32 %v4203_v18, %v4202_v9  ;;  %v4305_v35 = vadd.f32 %v4304_v31, %v4303_v36 }
 0x885   : > { %v4206_v33 = vadd.f32 %v4205_v43, %v4204_v17  ;;  %v4307_v5 = vadd.f32 %v4306_v52, %v4305_v35 }
 0x887   : > { %v4208_v51 = vadd.f32 %v4207_v8, %v4206_v33  ;;  %v4309_v63 = vadd.f32 %v4308_v39, %v4307_v5 }
 0x889   : > { %v4210_v21 = vadd.f32 %v4209_v23, %v4208_v51  ;;  %v4311_v61 = vadd.f32 %v4310_v11, %v4309_v63 }
 0x88b   : > { %v4212_v24 = vadd.f32 %v4211_v60, %v4210_v21  ;;  %v4313_v34 = vadd.f32 %v4312_v62, %v4311_v61 }
 0x88d   : > { %v4214_v22 = vadd.f32 %v4213_v57, %v4212_v24  ;;  %v4315_v7 = vadd.f32 %v4314_v30, %v4313_v34 }
 0x88f   : > { %v4215_v10 = vrot.slane %v4214_v22, 4  ;;  %v4317_v53 = vadd.f32 %v4316_v32, %v4315_v7 }
 0x891   : > { %v4216_v37 = vadd.f32 %v4215_v10, %v4214_v22  ;;  %v4319_v27 = vadd.f32 %v4318_v4, %v4317_v53 }
 0x893   : > { %v4217_v58 = vrot.slane %v4216_v37, 2  ;;  %v4320_v25 = vrot.slane %v4319_v27, 4 }
 0x895   : > { %v4218_v47 = vadd.f32 %v4217_v58, %v4216_v37  ;;  %v4321_v2 = vadd.f32 %v4320_v25, %v4319_v27 }
 0x897   : > { %v4219_v20 = vrot.slane %v4218_v47, 1  ;;  %v4322_v38 = vrot.slane %v4321_v2, 2 }
 0x899   : > { %v4220_v16 = vadd.f32 %v4219_v20, %v4218_v47  ;;  %v4323_v19 = vadd.f32 %v4322_v38, %v4321_v2 }
 0x89b   : > { %v4221_v28 = vadd.f32 %v4220_v16, %v4151_v26  ;;  %v4324_v15 = vrot.slane %v4323_v19, 1 }
 0x89d   : > { %4223 = vst.msk [vmem:[%s7913_s16] sm:$0x1] %vm4222_vm5, %v4221_v28  ;;  %v4325_v55 = vadd.f32 %v4324_v15, %v4323_v19 }
 0x89f   : > { %v4326_v18 = vadd.f32 %v4325_v55, %v4224_v1 }
 0x8a1   : > { %4327 = vst.msk [vmem:[%s7914_s17] sm:$0x1] %vm4222_vm5, %v4326_v18 }
 0x8a2 PF: > { %s28_s26 = sadd.s32 1, %s5135_s26   ;;  %s8058_s24 = smov %s5131_s25 }
 0x8a3   : > { %p25_p6 = scmp.ge.s32.totalorder %s28_s26, 4   ;;  %s8059_s25 = smov %s8061_s27 }
 0x8a5   :  { %27 = sbr.rel (!%p25_p6) target bundleno = 4 (0x4), region = 157 }

</bundles_post_ra>
